<compile_context>
chip_gen: v7x
topology: tpu7x:2x2x1
jax: 0.10.0
libtpu: 0.0.40
codegen_flags: <defaults>
</compile_context>

<pallas_src>
import math

import jax
import jax.numpy as jnp
from jax import lax
from jax.experimental import pallas as pl
from jax.experimental.pallas import tpu as pltpu

EPS = 1e-5          # nn.InstanceNorm2d default eps
LEAKY_SLOPE = 0.2   # nn.LeakyReLU(0.2)


# ------------------------- Pallas kernel -------------------------

def _residual_block_kernel(x_ref, w1_ref, g1_ref, b1_ref,
                           w2_ref, g2_ref, b2_ref, o_ref,
                           xpad_ref, ypad_ref):
    """One batch sample per grid step.

    x_ref   : (1, H, W, C) f32      un-padded input (also the identity path)
    w*_ref  : (3, 3*C, C) bf16      conv weights, the 3 kw taps folded into K
    g*/b*   : (1, C) f32            InstanceNorm affine params
    o_ref   : (1, H, W*C) f32       lane-dense output block
    xpad_ref: (H+2, W+2, C) bf16    VMEM scratch: zero-padded input
    ypad_ref: (H+2, W+2, C) bf16    VMEM scratch: zero-padded intermediate
    """
    Hp, Wp, C = xpad_ref.shape
    H, W = Hp - 2, Wp - 2
    HW = H * W
    inv_hw = 1.0 / float(HW)

    x_f32 = x_ref[0]                                    # (H, W, C) f32

    # ---- zero only the 1-px border of both padded slabs (interior is fully
    #      overwritten every step; re-zero per step so megacore sharding of the
    #      batch axis can never observe an un-initialized border). ----
    zrow = jnp.zeros((1, Wp, C), jnp.bfloat16)
    zcol = jnp.zeros((Hp, 1, C), jnp.bfloat16)
    for pad_ref in (xpad_ref, ypad_ref):
        pad_ref[pl.ds(0, 1), :, :] = zrow
        pad_ref[pl.ds(Hp - 1, 1), :, :] = zrow
        pad_ref[:, pl.ds(0, 1), :] = zcol
        pad_ref[:, pl.ds(Wp - 1, 1), :] = zcol

    # bf16 cast happens exactly once, when filling the padded slab.
    xpad_ref[pl.ds(1, H), pl.ds(1, W), :] = x_f32.astype(jnp.bfloat16)

    def conv3x3(src_ref, w_ref):
        # kw taps merged: operand (HW, 3*C) built from three shifted slices,
        # weights pre-reshaped to (3, 3*C, C). 3 matmuls, K=3*C, f32 accum.
        acc = None
        for kh in range(3):
            a = jnp.concatenate(
                [src_ref[pl.ds(kh, H), pl.ds(kw, W), :] for kw in range(3)],
                axis=-1).reshape(HW, 3 * C)
            t = jnp.dot(a, w_ref[kh], preferred_element_type=jnp.float32)
            acc = t if acc is None else acc + t
        return acc                                       # (HW, C) f32

    def instance_norm(acc, g_ref, b_ref):
        # Two-pass stats (better cancellation behaviour than E[x^2]-E[x]^2).
        mean = jnp.sum(acc, axis=0, keepdims=True) * inv_hw          # (1, C)
        d = acc - mean
        var = jnp.sum(d * d, axis=0, keepdims=True) * inv_hw
        return d * lax.rsqrt(var + EPS) * g_ref[...] + b_ref[...]

    # ---- conv1 -> IN1 -> LeakyReLU(0.2) ----
    y = instance_norm(conv3x3(xpad_ref, w1_ref), g1_ref, b1_ref)
    y = jnp.where(y > 0, y, LEAKY_SLOPE * y)

    # stash the intermediate (bf16) into its padded VMEM slab; never hits HBM.
    ypad_ref[pl.ds(1, H), pl.ds(1, W), :] = (
        y.reshape(H, W, C).astype(jnp.bfloat16))

    # ---- conv2 -> IN2 -> residual add ----
    y2 = instance_norm(conv3x3(ypad_ref, w2_ref), g2_ref, b2_ref)
    out = y2.reshape(H, W, C) + x_f32                    # f32 residual add
    o_ref[0] = out.reshape(H, W * C)                     # lane-dense store


# ------------------------- Wrapper -------------------------

def _vmem_limit_bytes():
    """Generation-aware scoped-VMEM limit (v5e/v6e: 128 MiB, v7x: 64 MiB)."""
    cap = 64 * 1024 * 1024
    try:
        cap = int(pltpu.get_tpu_info().vmem_capacity_bytes)
    except Exception:
        pass
    limit = min(100 * 1024 * 1024, (cap * 3) // 4)
    return max(32 * 1024 * 1024, limit)


def residual_block(x_nchw, params):
    """Forward of _Residual_Block.  x_nchw: (N, 64, H, W) f32 -> same shape."""
    x = jnp.transpose(x_nchw, (0, 2, 3, 1))               # NCHW -> NHWC
    N, H, W, C = x.shape
    Hp, Wp = H + 2, W + 2

    # conv weights (kh, kw, cin, cout) -> (kh, kw*cin, cout), bf16 for the MXU.
    w1 = params["w1"].astype(jnp.bfloat16).reshape(3, 3 * C, C)
    w2 = params["w2"].astype(jnp.bfloat16).reshape(3, 3 * C, C)
    g1 = params["g1"].reshape(1, C).astype(jnp.float32)
    b1 = params["b1"].reshape(1, C).astype(jnp.float32)
    g2 = params["g2"].reshape(1, C).astype(jnp.float32)
    b2 = params["b2"].reshape(1, C).astype(jnp.float32)

    vec_spec = pl.BlockSpec((1, C), lambda n: (0, 0))
    wgt_spec = pl.BlockSpec((3, 3 * C, C), lambda n: (0, 0, 0))

    out = pl.pallas_call(
        _residual_block_kernel,
        out_shape=jax.ShapeDtypeStruct((N, H, W * C), jnp.float32),
        grid=(N,),
        in_specs=[
            pl.BlockSpec((1, H, W, C), lambda n: (n, 0, 0, 0)),
            wgt_spec, vec_spec, vec_spec,
            wgt_spec, vec_spec, vec_spec,
        ],
        out_specs=pl.BlockSpec((1, H, W * C), lambda n: (n, 0, 0)),
        scratch_shapes=[pltpu.VMEM((Hp, Wp, C), jnp.bfloat16),   # padded input
                        pltpu.VMEM((Hp, Wp, C), jnp.bfloat16)],  # padded mid
        compiler_params=pltpu.CompilerParams(
            dimension_semantics=("parallel",),
            vmem_limit_bytes=_vmem_limit_bytes()),
    )(x, w1, g1, b1, w2, g2, b2)

    out = out.reshape(N, H, W, C)
    return jnp.transpose(out, (0, 3, 1, 2))               # NHWC -> NCHW


# ------------------- Pure-JAX reference (same bf16 matmul dtype) -------------------

def _conv3x3_ref(x_nhwc, w_hwio):
    return lax.conv_general_dilated(
        x_nhwc.astype(jnp.bfloat16), w_hwio.astype(jnp.bfloat16),
        window_strides=(1, 1), padding=((1, 1), (1, 1)),
        dimension_numbers=("NHWC", "HWIO", "NHWC"),
        preferred_element_type=jnp.float32)


def _inorm_ref(x_nhwc, g, b):
    mean = jnp.mean(x_nhwc, axis=(1, 2), keepdims=True)
    var = jnp.mean(jnp.square(x_nhwc - mean), axis=(1, 2), keepdims=True)
    return (x_nhwc - mean) * lax.rsqrt(var + EPS) * g + b


def reference_residual_block(x_nchw, params):
    x = jnp.transpose(x_nchw, (0, 2, 3, 1))
    h = _conv3x3_ref(x, params["w1"])
    h = _inorm_ref(h, params["g1"], params["b1"])
    h = jnp.where(h > 0, h, LEAKY_SLOPE * h)
    h = _conv3x3_ref(h, params["w2"])
    h = _inorm_ref(h, params["g2"], params["b2"]) + x
    return jnp.transpose(h, (0, 3, 1, 2))


# ------------------------- Test -------------------------

if __name__ == "__main__":
    key = jax.random.PRNGKey(0)
    k1, k2, k3, k4, k5, k6, kx = jax.random.split(key, 7)

    N, C, H, W = 2, 64, 16, 16          # module fixes C=64 (in/out channels)
    std = math.sqrt(2.0 / (3 * 3 * C))
    # Weights stored as (kh, kw, in, out) == PyTorch OIHW transposed (2, 3, 1, 0).
    params = {
        "w1": jax.random.normal(k1, (3, 3, C, C), jnp.float32) * std,
        "w2": jax.random.normal(k2, (3, 3, C, C), jnp.float32) * std,
        "g1": 1.0 + 0.1 * jax.random.normal(k3, (C,), jnp.float32),
        "b1": 0.1 * jax.random.normal(k4, (C,), jnp.float32),
        "g2": 1.0 + 0.1 * jax.random.normal(k5, (C,), jnp.float32),
        "b2": 0.1 * jax.random.normal(k6, (C,), jnp.float32),
    }
    x = jax.random.normal(kx, (N, C, H, W), jnp.float32)

    out = jax.jit(residual_block)(x, params)
    out = jax.block_until_ready(out)

    ref = reference_residual_block(x, params)

    assert out.shape == (N, C, H, W), out.shape
    assert bool(jnp.all(jnp.isfinite(out)))
    err = float(jnp.max(jnp.abs(out - ref)))
    assert err < 2e-2, f"max abs error vs reference: {err}"
    print("KERNEL_OK")
</pallas_src>

<mosaic_0001>
module attributes {stable_mosaic.version = 11 : i64} {
  func.func @_residual_block_kernel(%arg0: i32, %arg1: memref<1x16x16x64xf32, #tpu.memory_space<vmem>>, %arg2: memref<3x192x64xbf16, #tpu.memory_space<vmem>>, %arg3: memref<1x64xf32, #tpu.memory_space<vmem>>, %arg4: memref<1x64xf32, #tpu.memory_space<vmem>>, %arg5: memref<3x192x64xbf16, #tpu.memory_space<vmem>>, %arg6: memref<1x64xf32, #tpu.memory_space<vmem>>, %arg7: memref<1x64xf32, #tpu.memory_space<vmem>>, %arg8: memref<1x16x1024xf32, #tpu.memory_space<vmem>>, %arg9: memref<18x18x64xbf16, #tpu.memory_space<vmem>>, %arg10: memref<18x18x64xbf16, #tpu.memory_space<vmem>>) attributes {dimension_semantics = [#tpu.dimension_semantics<parallel>], iteration_bounds = array<i64: 2>, scalar_prefetch = 0 : i64, scratch_operands = 2 : i64, tpu.core_type = #tpu.core_type<tc>, window_params = [{transform_indices = @transform_0, window_bounds = array<i64: 1, 16, 16, 64>}, {pipeline_mode = #tpu.pipeline_mode<synchronous>, transform_indices = @transform_1, window_bounds = array<i64: 3, 192, 64>}, {pipeline_mode = #tpu.pipeline_mode<synchronous>, transform_indices = @transform_2, window_bounds = array<i64: 1, 64>}, {pipeline_mode = #tpu.pipeline_mode<synchronous>, transform_indices = @transform_3, window_bounds = array<i64: 1, 64>}, {pipeline_mode = #tpu.pipeline_mode<synchronous>, transform_indices = @transform_4, window_bounds = array<i64: 3, 192, 64>}, {pipeline_mode = #tpu.pipeline_mode<synchronous>, transform_indices = @transform_5, window_bounds = array<i64: 1, 64>}, {pipeline_mode = #tpu.pipeline_mode<synchronous>, transform_indices = @transform_6, window_bounds = array<i64: 1, 64>}, {transform_indices = @transform_7, window_bounds = array<i64: 1, 16, 1024>}]} {
    %c0 = arith.constant 0 : index
    %c0_0 = arith.constant 0 : index
    %c0_1 = arith.constant 0 : index
    %c0_2 = arith.constant 0 : index
    %0 = vector.load %arg1[%c0, %c0_0, %c0_1, %c0_2] : memref<1x16x16x64xf32, #tpu.memory_space<vmem>>, vector<1x16x16x64xf32>
    %1 = vector.shape_cast %0 : vector<1x16x16x64xf32> to vector<16x16x64xf32>
    %cst = arith.constant 0.000000e+00 : bf16
    %2 = vector.broadcast %cst : bf16 to vector<1x18x64xbf16>
    %cst_3 = arith.constant 0.000000e+00 : bf16
    %3 = vector.broadcast %cst_3 : bf16 to vector<18x1x64xbf16>
    %c0_4 = arith.constant 0 : index
    %c0_5 = arith.constant 0 : index
    %c0_6 = arith.constant 0 : index
    %4 = vector.load %arg9[%c0_4, %c0_5, %c0_6] : memref<18x18x64xbf16, #tpu.memory_space<vmem>>, vector<1x18x64xbf16>
    tpu.vector_store %arg9[%c0_4, %c0_5, %c0_6], %2 {strides = array<i32>} : memref<18x18x64xbf16, #tpu.memory_space<vmem>>, vector<1x18x64xbf16>,
    %c17 = arith.constant 17 : index
    %c0_7 = arith.constant 0 : index
    %c0_8 = arith.constant 0 : index
    %5 = vector.load %arg9[%c17, %c0_7, %c0_8] : memref<18x18x64xbf16, #tpu.memory_space<vmem>>, vector<1x18x64xbf16>
    tpu.vector_store %arg9[%c17, %c0_7, %c0_8], %2 {strides = array<i32>} : memref<18x18x64xbf16, #tpu.memory_space<vmem>>, vector<1x18x64xbf16>,
    %c0_9 = arith.constant 0 : index
    %c0_10 = arith.constant 0 : index
    %c0_11 = arith.constant 0 : index
    %6 = vector.load %arg9[%c0_9, %c0_10, %c0_11] : memref<18x18x64xbf16, #tpu.memory_space<vmem>>, vector<18x1x64xbf16>
    tpu.vector_store %arg9[%c0_9, %c0_10, %c0_11], %3 {strides = array<i32>} : memref<18x18x64xbf16, #tpu.memory_space<vmem>>, vector<18x1x64xbf16>,
    %c0_12 = arith.constant 0 : index
    %c17_13 = arith.constant 17 : index
    %c0_14 = arith.constant 0 : index
    %7 = vector.load %arg9[%c0_12, %c17_13, %c0_14] : memref<18x18x64xbf16, #tpu.memory_space<vmem>>, vector<18x1x64xbf16>
    tpu.vector_store %arg9[%c0_12, %c17_13, %c0_14], %3 {strides = array<i32>} : memref<18x18x64xbf16, #tpu.memory_space<vmem>>, vector<18x1x64xbf16>,
    %c0_15 = arith.constant 0 : index
    %c0_16 = arith.constant 0 : index
    %c0_17 = arith.constant 0 : index
    %8 = vector.load %arg10[%c0_15, %c0_16, %c0_17] : memref<18x18x64xbf16, #tpu.memory_space<vmem>>, vector<1x18x64xbf16>
    tpu.vector_store %arg10[%c0_15, %c0_16, %c0_17], %2 {strides = array<i32>} : memref<18x18x64xbf16, #tpu.memory_space<vmem>>, vector<1x18x64xbf16>,
    %c17_18 = arith.constant 17 : index
    %c0_19 = arith.constant 0 : index
    %c0_20 = arith.constant 0 : index
    %9 = vector.load %arg10[%c17_18, %c0_19, %c0_20] : memref<18x18x64xbf16, #tpu.memory_space<vmem>>, vector<1x18x64xbf16>
    tpu.vector_store %arg10[%c17_18, %c0_19, %c0_20], %2 {strides = array<i32>} : memref<18x18x64xbf16, #tpu.memory_space<vmem>>, vector<1x18x64xbf16>,
    %c0_21 = arith.constant 0 : index
    %c0_22 = arith.constant 0 : index
    %c0_23 = arith.constant 0 : index
    %10 = vector.load %arg10[%c0_21, %c0_22, %c0_23] : memref<18x18x64xbf16, #tpu.memory_space<vmem>>, vector<18x1x64xbf16>
    tpu.vector_store %arg10[%c0_21, %c0_22, %c0_23], %3 {strides = array<i32>} : memref<18x18x64xbf16, #tpu.memory_space<vmem>>, vector<18x1x64xbf16>,
    %c0_24 = arith.constant 0 : index
    %c17_25 = arith.constant 17 : index
    %c0_26 = arith.constant 0 : index
    %11 = vector.load %arg10[%c0_24, %c17_25, %c0_26] : memref<18x18x64xbf16, #tpu.memory_space<vmem>>, vector<18x1x64xbf16>
    tpu.vector_store %arg10[%c0_24, %c17_25, %c0_26], %3 {strides = array<i32>} : memref<18x18x64xbf16, #tpu.memory_space<vmem>>, vector<18x1x64xbf16>,
    %12 = arith.truncf %1 : vector<16x16x64xf32> to vector<16x16x64xbf16>
    %c1 = arith.constant 1 : index
    %c1_27 = arith.constant 1 : index
    %c0_28 = arith.constant 0 : index
    %13 = vector.load %arg9[%c1, %c1_27, %c0_28] : memref<18x18x64xbf16, #tpu.memory_space<vmem>>, vector<16x16x64xbf16>
    tpu.vector_store %arg9[%c1, %c1_27, %c0_28], %12 {strides = array<i32>} : memref<18x18x64xbf16, #tpu.memory_space<vmem>>, vector<16x16x64xbf16>,
    %c0_29 = arith.constant 0 : index
    %c0_30 = arith.constant 0 : index
    %c0_31 = arith.constant 0 : index
    %14 = vector.load %arg9[%c0_29, %c0_30, %c0_31] : memref<18x18x64xbf16, #tpu.memory_space<vmem>>, vector<16x16x64xbf16>
    %c0_32 = arith.constant 0 : index
    %c1_33 = arith.constant 1 : index
    %c0_34 = arith.constant 0 : index
    %15 = vector.load %arg9[%c0_32, %c1_33, %c0_34] : memref<18x18x64xbf16, #tpu.memory_space<vmem>>, vector<16x16x64xbf16>
    %c0_35 = arith.constant 0 : index
    %c2 = arith.constant 2 : index
    %c0_36 = arith.constant 0 : index
    %16 = vector.load %arg9[%c0_35, %c2, %c0_36] : memref<18x18x64xbf16, #tpu.memory_space<vmem>>, vector<16x16x64xbf16>
    %17 = tpu.concatenate %14, %15, %16 in 2 : vector<16x16x64xbf16>, vector<16x16x64xbf16>, vector<16x16x64xbf16> -> vector<16x16x192xbf16>
    %18 = vector.shape_cast %17 : vector<16x16x192xbf16> to vector<256x192xbf16>
    %c0_37 = arith.constant 0 : index
    %c0_38 = arith.constant 0 : index
    %c0_39 = arith.constant 0 : index
    %19 = vector.load %arg2[%c0_37, %c0_38, %c0_39] : memref<3x192x64xbf16, #tpu.memory_space<vmem>>, vector<1x192x64xbf16>
    %20 = vector.shape_cast %19 : vector<1x192x64xbf16> to vector<192x64xbf16>
    %cst_40 = arith.constant dense<0.000000e+00> : vector<256x64xf32>
    %21 = tpu.matmul %18, %20, %cst_40 {dimension_numbers = #tpu.dot_dimension_numbers<[1], [0], [0], [1], [0, 0, 1, 1], [], []>} : vector<256x192xbf16>, vector<192x64xbf16>, vector<256x64xf32> -> vector<256x64xf32>
    %c1_41 = arith.constant 1 : index
    %c0_42 = arith.constant 0 : index
    %c0_43 = arith.constant 0 : index
    %22 = vector.load %arg9[%c1_41, %c0_42, %c0_43] : memref<18x18x64xbf16, #tpu.memory_space<vmem>>, vector<16x16x64xbf16>
    %c1_44 = arith.constant 1 : index
    %c1_45 = arith.constant 1 : index
    %c0_46 = arith.constant 0 : index
    %23 = vector.load %arg9[%c1_44, %c1_45, %c0_46] : memref<18x18x64xbf16, #tpu.memory_space<vmem>>, vector<16x16x64xbf16>
    %c1_47 = arith.constant 1 : index
    %c2_48 = arith.constant 2 : index
    %c0_49 = arith.constant 0 : index
    %24 = vector.load %arg9[%c1_47, %c2_48, %c0_49] : memref<18x18x64xbf16, #tpu.memory_space<vmem>>, vector<16x16x64xbf16>
    %25 = tpu.concatenate %22, %23, %24 in 2 : vector<16x16x64xbf16>, vector<16x16x64xbf16>, vector<16x16x64xbf16> -> vector<16x16x192xbf16>
    %26 = vector.shape_cast %25 : vector<16x16x192xbf16> to vector<256x192xbf16>
    %c1_50 = arith.constant 1 : index
    %c0_51 = arith.constant 0 : index
    %c0_52 = arith.constant 0 : index
    %27 = vector.load %arg2[%c1_50, %c0_51, %c0_52] : memref<3x192x64xbf16, #tpu.memory_space<vmem>>, vector<1x192x64xbf16>
    %28 = vector.shape_cast %27 : vector<1x192x64xbf16> to vector<192x64xbf16>
    %cst_53 = arith.constant dense<0.000000e+00> : vector<256x64xf32>
    %29 = tpu.matmul %26, %28, %cst_53 {dimension_numbers = #tpu.dot_dimension_numbers<[1], [0], [0], [1], [0, 0, 1, 1], [], []>} : vector<256x192xbf16>, vector<192x64xbf16>, vector<256x64xf32> -> vector<256x64xf32>
    %30 = arith.addf %21, %29 : vector<256x64xf32>
    %c2_54 = arith.constant 2 : index
    %c0_55 = arith.constant 0 : index
    %c0_56 = arith.constant 0 : index
    %31 = vector.load %arg9[%c2_54, %c0_55, %c0_56] : memref<18x18x64xbf16, #tpu.memory_space<vmem>>, vector<16x16x64xbf16>
    %c2_57 = arith.constant 2 : index
    %c1_58 = arith.constant 1 : index
    %c0_59 = arith.constant 0 : index
    %32 = vector.load %arg9[%c2_57, %c1_58, %c0_59] : memref<18x18x64xbf16, #tpu.memory_space<vmem>>, vector<16x16x64xbf16>
    %c2_60 = arith.constant 2 : index
    %c2_61 = arith.constant 2 : index
    %c0_62 = arith.constant 0 : index
    %33 = vector.load %arg9[%c2_60, %c2_61, %c0_62] : memref<18x18x64xbf16, #tpu.memory_space<vmem>>, vector<16x16x64xbf16>
    %34 = tpu.concatenate %31, %32, %33 in 2 : vector<16x16x64xbf16>, vector<16x16x64xbf16>, vector<16x16x64xbf16> -> vector<16x16x192xbf16>
    %35 = vector.shape_cast %34 : vector<16x16x192xbf16> to vector<256x192xbf16>
    %c2_63 = arith.constant 2 : index
    %c0_64 = arith.constant 0 : index
    %c0_65 = arith.constant 0 : index
    %36 = vector.load %arg2[%c2_63, %c0_64, %c0_65] : memref<3x192x64xbf16, #tpu.memory_space<vmem>>, vector<1x192x64xbf16>
    %37 = vector.shape_cast %36 : vector<1x192x64xbf16> to vector<192x64xbf16>
    %cst_66 = arith.constant dense<0.000000e+00> : vector<256x64xf32>
    %38 = tpu.matmul %35, %37, %cst_66 {dimension_numbers = #tpu.dot_dimension_numbers<[1], [0], [0], [1], [0, 0, 1, 1], [], []>} : vector<256x192xbf16>, vector<192x64xbf16>, vector<256x64xf32> -> vector<256x64xf32>
    %39 = arith.addf %30, %38 : vector<256x64xf32>
    %cst_67 = arith.constant dense<0.000000e+00> : vector<64xf32>
    %40 = vector.multi_reduction <add>, %39, %cst_67 [0] : vector<256x64xf32> to vector<64xf32>
    %41 = vector.shape_cast %40 : vector<64xf32> to vector<1x64xf32>
    %cst_68 = arith.constant 3.906250e-03 : f32
    %42 = vector.broadcast %cst_68 : f32 to vector<1x64xf32>
    %43 = arith.mulf %41, %42 : vector<1x64xf32>
    %44 = vector.broadcast %43 : vector<1x64xf32> to vector<256x64xf32>
    %45 = arith.subf %39, %44 : vector<256x64xf32>
    %46 = arith.mulf %45, %45 : vector<256x64xf32>
    %cst_69 = arith.constant dense<0.000000e+00> : vector<64xf32>
    %47 = vector.multi_reduction <add>, %46, %cst_69 [0] : vector<256x64xf32> to vector<64xf32>
    %48 = vector.shape_cast %47 : vector<64xf32> to vector<1x64xf32>
    %cst_70 = arith.constant 3.906250e-03 : f32
    %49 = vector.broadcast %cst_70 : f32 to vector<1x64xf32>
    %50 = arith.mulf %48, %49 : vector<1x64xf32>
    %cst_71 = arith.constant 9.99999974E-6 : f32
    %51 = vector.broadcast %cst_71 : f32 to vector<1x64xf32>
    %52 = arith.addf %50, %51 : vector<1x64xf32>
    %53 = math.rsqrt %52 : vector<1x64xf32>
    %54 = vector.broadcast %53 : vector<1x64xf32> to vector<256x64xf32>
    %55 = arith.mulf %45, %54 : vector<256x64xf32>
    %c0_72 = arith.constant 0 : index
    %c0_73 = arith.constant 0 : index
    %56 = vector.load %arg3[%c0_72, %c0_73] : memref<1x64xf32, #tpu.memory_space<vmem>>, vector<1x64xf32>
    %57 = vector.broadcast %56 : vector<1x64xf32> to vector<256x64xf32>
    %58 = arith.mulf %55, %57 : vector<256x64xf32>
    %c0_74 = arith.constant 0 : index
    %c0_75 = arith.constant 0 : index
    %59 = vector.load %arg4[%c0_74, %c0_75] : memref<1x64xf32, #tpu.memory_space<vmem>>, vector<1x64xf32>
    %60 = vector.broadcast %59 : vector<1x64xf32> to vector<256x64xf32>
    %61 = arith.addf %58, %60 : vector<256x64xf32>
    %cst_76 = arith.constant 0.000000e+00 : f32
    %62 = vector.broadcast %cst_76 : f32 to vector<256x64xf32>
    %63 = arith.cmpf ogt, %61, %62 : vector<256x64xf32>
    %cst_77 = arith.constant 2.000000e-01 : f32
    %64 = vector.broadcast %cst_77 : f32 to vector<256x64xf32>
    %65 = arith.mulf %64, %61 : vector<256x64xf32>
    %66 = arith.select %63, %61, %65 : vector<256x64xi1>, vector<256x64xf32>
    %67 = vector.shape_cast %66 : vector<256x64xf32> to vector<16x16x64xf32>
    %68 = arith.truncf %67 : vector<16x16x64xf32> to vector<16x16x64xbf16>
    %c1_78 = arith.constant 1 : index
    %c1_79 = arith.constant 1 : index
    %c0_80 = arith.constant 0 : index
    %69 = vector.load %arg10[%c1_78, %c1_79, %c0_80] : memref<18x18x64xbf16, #tpu.memory_space<vmem>>, vector<16x16x64xbf16>
    tpu.vector_store %arg10[%c1_78, %c1_79, %c0_80], %68 {strides = array<i32>} : memref<18x18x64xbf16, #tpu.memory_space<vmem>>, vector<16x16x64xbf16>,
    %c0_81 = arith.constant 0 : index
    %c0_82 = arith.constant 0 : index
    %c0_83 = arith.constant 0 : index
    %70 = vector.load %arg10[%c0_81, %c0_82, %c0_83] : memref<18x18x64xbf16, #tpu.memory_space<vmem>>, vector<16x16x64xbf16>
    %c0_84 = arith.constant 0 : index
    %c1_85 = arith.constant 1 : index
    %c0_86 = arith.constant 0 : index
    %71 = vector.load %arg10[%c0_84, %c1_85, %c0_86] : memref<18x18x64xbf16, #tpu.memory_space<vmem>>, vector<16x16x64xbf16>
    %c0_87 = arith.constant 0 : index
    %c2_88 = arith.constant 2 : index
    %c0_89 = arith.constant 0 : index
    %72 = vector.load %arg10[%c0_87, %c2_88, %c0_89] : memref<18x18x64xbf16, #tpu.memory_space<vmem>>, vector<16x16x64xbf16>
    %73 = tpu.concatenate %70, %71, %72 in 2 : vector<16x16x64xbf16>, vector<16x16x64xbf16>, vector<16x16x64xbf16> -> vector<16x16x192xbf16>
    %74 = vector.shape_cast %73 : vector<16x16x192xbf16> to vector<256x192xbf16>
    %c0_90 = arith.constant 0 : index
    %c0_91 = arith.constant 0 : index
    %c0_92 = arith.constant 0 : index
    %75 = vector.load %arg5[%c0_90, %c0_91, %c0_92] : memref<3x192x64xbf16, #tpu.memory_space<vmem>>, vector<1x192x64xbf16>
    %76 = vector.shape_cast %75 : vector<1x192x64xbf16> to vector<192x64xbf16>
    %cst_93 = arith.constant dense<0.000000e+00> : vector<256x64xf32>
    %77 = tpu.matmul %74, %76, %cst_93 {dimension_numbers = #tpu.dot_dimension_numbers<[1], [0], [0], [1], [0, 0, 1, 1], [], []>} : vector<256x192xbf16>, vector<192x64xbf16>, vector<256x64xf32> -> vector<256x64xf32>
    %c1_94 = arith.constant 1 : index
    %c0_95 = arith.constant 0 : index
    %c0_96 = arith.constant 0 : index
    %78 = vector.load %arg10[%c1_94, %c0_95, %c0_96] : memref<18x18x64xbf16, #tpu.memory_space<vmem>>, vector<16x16x64xbf16>
    %c1_97 = arith.constant 1 : index
    %c1_98 = arith.constant 1 : index
    %c0_99 = arith.constant 0 : index
    %79 = vector.load %arg10[%c1_97, %c1_98, %c0_99] : memref<18x18x64xbf16, #tpu.memory_space<vmem>>, vector<16x16x64xbf16>
    %c1_100 = arith.constant 1 : index
    %c2_101 = arith.constant 2 : index
    %c0_102 = arith.constant 0 : index
    %80 = vector.load %arg10[%c1_100, %c2_101, %c0_102] : memref<18x18x64xbf16, #tpu.memory_space<vmem>>, vector<16x16x64xbf16>
    %81 = tpu.concatenate %78, %79, %80 in 2 : vector<16x16x64xbf16>, vector<16x16x64xbf16>, vector<16x16x64xbf16> -> vector<16x16x192xbf16>
    %82 = vector.shape_cast %81 : vector<16x16x192xbf16> to vector<256x192xbf16>
    %c1_103 = arith.constant 1 : index
    %c0_104 = arith.constant 0 : index
    %c0_105 = arith.constant 0 : index
    %83 = vector.load %arg5[%c1_103, %c0_104, %c0_105] : memref<3x192x64xbf16, #tpu.memory_space<vmem>>, vector<1x192x64xbf16>
    %84 = vector.shape_cast %83 : vector<1x192x64xbf16> to vector<192x64xbf16>
    %cst_106 = arith.constant dense<0.000000e+00> : vector<256x64xf32>
    %85 = tpu.matmul %82, %84, %cst_106 {dimension_numbers = #tpu.dot_dimension_numbers<[1], [0], [0], [1], [0, 0, 1, 1], [], []>} : vector<256x192xbf16>, vector<192x64xbf16>, vector<256x64xf32> -> vector<256x64xf32>
    %86 = arith.addf %77, %85 : vector<256x64xf32>
    %c2_107 = arith.constant 2 : index
    %c0_108 = arith.constant 0 : index
    %c0_109 = arith.constant 0 : index
    %87 = vector.load %arg10[%c2_107, %c0_108, %c0_109] : memref<18x18x64xbf16, #tpu.memory_space<vmem>>, vector<16x16x64xbf16>
    %c2_110 = arith.constant 2 : index
    %c1_111 = arith.constant 1 : index
    %c0_112 = arith.constant 0 : index
    %88 = vector.load %arg10[%c2_110, %c1_111, %c0_112] : memref<18x18x64xbf16, #tpu.memory_space<vmem>>, vector<16x16x64xbf16>
    %c2_113 = arith.constant 2 : index
    %c2_114 = arith.constant 2 : index
    %c0_115 = arith.constant 0 : index
    %89 = vector.load %arg10[%c2_113, %c2_114, %c0_115] : memref<18x18x64xbf16, #tpu.memory_space<vmem>>, vector<16x16x64xbf16>
    %90 = tpu.concatenate %87, %88, %89 in 2 : vector<16x16x64xbf16>, vector<16x16x64xbf16>, vector<16x16x64xbf16> -> vector<16x16x192xbf16>
    %91 = vector.shape_cast %90 : vector<16x16x192xbf16> to vector<256x192xbf16>
    %c2_116 = arith.constant 2 : index
    %c0_117 = arith.constant 0 : index
    %c0_118 = arith.constant 0 : index
    %92 = vector.load %arg5[%c2_116, %c0_117, %c0_118] : memref<3x192x64xbf16, #tpu.memory_space<vmem>>, vector<1x192x64xbf16>
    %93 = vector.shape_cast %92 : vector<1x192x64xbf16> to vector<192x64xbf16>
    %cst_119 = arith.constant dense<0.000000e+00> : vector<256x64xf32>
    %94 = tpu.matmul %91, %93, %cst_119 {dimension_numbers = #tpu.dot_dimension_numbers<[1], [0], [0], [1], [0, 0, 1, 1], [], []>} : vector<256x192xbf16>, vector<192x64xbf16>, vector<256x64xf32> -> vector<256x64xf32>
    %95 = arith.addf %86, %94 : vector<256x64xf32>
    %cst_120 = arith.constant dense<0.000000e+00> : vector<64xf32>
    %96 = vector.multi_reduction <add>, %95, %cst_120 [0] : vector<256x64xf32> to vector<64xf32>
    %97 = vector.shape_cast %96 : vector<64xf32> to vector<1x64xf32>
    %cst_121 = arith.constant 3.906250e-03 : f32
    %98 = vector.broadcast %cst_121 : f32 to vector<1x64xf32>
    %99 = arith.mulf %97, %98 : vector<1x64xf32>
    %100 = vector.broadcast %99 : vector<1x64xf32> to vector<256x64xf32>
    %101 = arith.subf %95, %100 : vector<256x64xf32>
    %102 = arith.mulf %101, %101 : vector<256x64xf32>
    %cst_122 = arith.constant dense<0.000000e+00> : vector<64xf32>
    %103 = vector.multi_reduction <add>, %102, %cst_122 [0] : vector<256x64xf32> to vector<64xf32>
    %104 = vector.shape_cast %103 : vector<64xf32> to vector<1x64xf32>
    %cst_123 = arith.constant 3.906250e-03 : f32
    %105 = vector.broadcast %cst_123 : f32 to vector<1x64xf32>
    %106 = arith.mulf %104, %105 : vector<1x64xf32>
    %cst_124 = arith.constant 9.99999974E-6 : f32
    %107 = vector.broadcast %cst_124 : f32 to vector<1x64xf32>
    %108 = arith.addf %106, %107 : vector<1x64xf32>
    %109 = math.rsqrt %108 : vector<1x64xf32>
    %110 = vector.broadcast %109 : vector<1x64xf32> to vector<256x64xf32>
    %111 = arith.mulf %101, %110 : vector<256x64xf32>
    %c0_125 = arith.constant 0 : index
    %c0_126 = arith.constant 0 : index
    %112 = vector.load %arg6[%c0_125, %c0_126] : memref<1x64xf32, #tpu.memory_space<vmem>>, vector<1x64xf32>
    %113 = vector.broadcast %112 : vector<1x64xf32> to vector<256x64xf32>
    %114 = arith.mulf %111, %113 : vector<256x64xf32>
    %c0_127 = arith.constant 0 : index
    %c0_128 = arith.constant 0 : index
    %115 = vector.load %arg7[%c0_127, %c0_128] : memref<1x64xf32, #tpu.memory_space<vmem>>, vector<1x64xf32>
    %116 = vector.broadcast %115 : vector<1x64xf32> to vector<256x64xf32>
    %117 = arith.addf %114, %116 : vector<256x64xf32>
    %118 = vector.shape_cast %117 : vector<256x64xf32> to vector<16x16x64xf32>
    %119 = arith.addf %118, %1 : vector<16x16x64xf32>
    %120 = vector.shape_cast %119 : vector<16x16x64xf32> to vector<16x1024xf32>
    %c0_129 = arith.constant 0 : index
    %c0_130 = arith.constant 0 : index
    %c0_131 = arith.constant 0 : index
    %121 = vector.load %arg8[%c0_129, %c0_130, %c0_131] : memref<1x16x1024xf32, #tpu.memory_space<vmem>>, vector<1x16x1024xf32>
    %122 = vector.shape_cast %121 : vector<1x16x1024xf32> to vector<16x1024xf32>
    %123 = vector.shape_cast %120 : vector<16x1024xf32> to vector<1x16x1024xf32>
    tpu.vector_store %arg8[%c0_129, %c0_130, %c0_131], %123 {strides = array<i32>} : memref<1x16x1024xf32, #tpu.memory_space<vmem>>, vector<1x16x1024xf32>,
    return
  }
  func.func @transform_0(%arg0: i32) -> (i32, i32, i32, i32) {
    %c0_i32 = arith.constant 0 : i32
    %c0_i32_0 = arith.constant 0 : i32
    %c0_i32_1 = arith.constant 0 : i32
    %c0_i32_2 = arith.constant 0 : i32
    return %arg0, %c0_i32, %c0_i32_0, %c0_i32_1 : i32, i32, i32, i32
  }
  func.func @transform_1(%arg0: i32) -> (i32, i32, i32) {
    %c0_i32 = arith.constant 0 : i32
    %c0_i32_0 = arith.constant 0 : i32
    %c0_i32_1 = arith.constant 0 : i32
    %c0_i32_2 = arith.constant 0 : i32
    return %c0_i32, %c0_i32_0, %c0_i32_1 : i32, i32, i32
  }
  func.func @transform_2(%arg0: i32) -> (i32, i32) {
    %c0_i32 = arith.constant 0 : i32
    %c0_i32_0 = arith.constant 0 : i32
    %c0_i32_1 = arith.constant 0 : i32
    return %c0_i32, %c0_i32_0 : i32, i32
  }
  func.func @transform_3(%arg0: i32) -> (i32, i32) {
    %c0_i32 = arith.constant 0 : i32
    %c0_i32_0 = arith.constant 0 : i32
    %c0_i32_1 = arith.constant 0 : i32
    return %c0_i32, %c0_i32_0 : i32, i32
  }
  func.func @transform_4(%arg0: i32) -> (i32, i32, i32) {
    %c0_i32 = arith.constant 0 : i32
    %c0_i32_0 = arith.constant 0 : i32
    %c0_i32_1 = arith.constant 0 : i32
    %c0_i32_2 = arith.constant 0 : i32
    return %c0_i32, %c0_i32_0, %c0_i32_1 : i32, i32, i32
  }
  func.func @transform_5(%arg0: i32) -> (i32, i32) {
    %c0_i32 = arith.constant 0 : i32
    %c0_i32_0 = arith.constant 0 : i32
    %c0_i32_1 = arith.constant 0 : i32
    return %c0_i32, %c0_i32_0 : i32, i32
  }
  func.func @transform_6(%arg0: i32) -> (i32, i32) {
    %c0_i32 = arith.constant 0 : i32
    %c0_i32_0 = arith.constant 0 : i32
    %c0_i32_1 = arith.constant 0 : i32
    return %c0_i32, %c0_i32_0 : i32, i32
  }
  func.func @transform_7(%arg0: i32) -> (i32, i32, i32) {
    %c0_i32 = arith.constant 0 : i32
    %c0_i32_0 = arith.constant 0 : i32
    %c0_i32_1 = arith.constant 0 : i32
    return %arg0, %c0_i32, %c0_i32_0 : i32, i32, i32
  }
}

</mosaic_0001>

<bundles_post_ra>
// kernel: residual_block.1
= control target key start
LH: loop header
LB: loop body
LE: loop exit
PB: predicated region body
PF: predicated region fallthrough
CT: control target
= control target key end

     0   :  { %s9823_s24 = smov 0   ;;  %s13949_s0 = inlined_call_operand.vmem [shape: f32[2,16,16,64], index: 0, kind: input, shape index: {}]   ;;  %s13950_s1 = inlined_call_operand.vmem [shape: bf16[3,192,64], index: 1, kind: input, shape index: {}]   ;;  %s13951_s2 = inlined_call_operand.vmem [shape: f32[1,64], index: 2, kind: input, shape index: {}]   ;;  %s13952_s3 = inlined_call_operand.vmem [shape: f32[1,64], index: 3, kind: input, shape index: {}]   ;;  %s13953_s4 = inlined_call_operand.vmem [shape: bf16[3,192,64], index: 4, kind: input, shape index: {}]   ;;  %s13954_s5 = inlined_call_operand.vmem [shape: f32[1,64], index: 5, kind: input, shape index: {}]   ;;  %s13955_s6 = inlined_call_operand.vmem [shape: f32[1,64], index: 6, kind: input, shape index: {}]   ;;  %s13956_s7 = inlined_call_operand.vmem [shape: f32[2,16,1024], index: 7, kind: output, shape index: {}]  }
   0x1 LB: > { %s8329_s25 = sadd.s32 4294967295, %s9777_s24   ;;  %p8333_p0 = scmp.ge.s32.totalorder %s9777_s24, 1  ;;  %s9777_s24 = sphi %s9823_s24, %s17_s24  }
   0x2   : > { %p237_p1 = scmp.lt.s32.totalorder %s9777_s24, 3 }
   0x4   : > { %p238_p2 = pnand %p8333_p0, %p237_p1 }
   0x6   : > { %241 = sbr.rel (%p238_p2) target bundleno = 2003 (0x7d3), region = 48 }
   0xd   : > { %p269_p3 = scmp.lt.s32.totalorder %s8329_s25, 1  ;;  %vm315_vm0 = vcmask 516096   ;;  %vm322_vm1 = vsmask.f32 256  ;;  %v14035_v0 = vmov 0  ;;  %vm13995_vm4 = vcmask 519168  }
   0xe   : > { %vm9833_vm2 = vmand %vm315_vm0, %vm322_vm1  ;;  %v327_v1 = vld [vmem:[#allocation2 + $0xc] sm:$0x1]  ;;  %vm378_vm3 = vsmask.f32 7938  ;;  %v383_v2 = vld [vmem:[#allocation2 + $0x14] sm:$0x1] }
   0xf   : > { %v14036_v0 = vsel %vm9833_vm2, 4294967295, %v14035_v0  ;;  %s14508_s25 = smov (!%p269_p3, %s8329_s25), 1  ;;  %v328_v3 = vsel %vm9833_vm2, 0, %v327_v1  ;;  %vm9843_vm5 = vmand %vm315_vm0, %vm378_vm3  ;;  %v14038_v4 = vmov 0  ;;  %v330_v6 = vld [vmem:[#allocation2 + $0x18] sm:$0x1] }
  0x10   : > { %14037 = vst [vmem:[#allocation4_spill] sm:$0xff] %v14036_v0  ;;  %v14039_v4 = vsel %vm9843_vm5, 4294967295, %v14038_v4  ;;  %329 = vst [vmem:[#allocation2 + $0xc] sm:$0x1] %v328_v3  ;;  %v384_v5 = vsel %vm9843_vm5, 0, %v383_v2  ;;  %s8960_s26 = sshll.u32 %s14508_s25, 8 }
  0x11   : > { %14040 = vst [vmem:[#allocation5_spill] sm:$0xff] %v14039_v4  ;;  %v386_v7 = vld [vmem:[#allocation2 + $0x20] sm:$0x1]  ;;  %385 = vst [vmem:[#allocation2 + $0x14] sm:$0x1] %v384_v5  ;;  %v331_v8 = vsel %vm9833_vm2, 0, %v330_v6  ;;  %s9886_s8 = scalar_lea.vmem %s13949_s0, %s8960_s26 }
  0x12   : > { %v387_v9 = vsel %vm9843_vm5, 0, %v386_v7  ;;  %v333_v10 = vld [vmem:[#allocation2 + $0x24] sm:$0x1]  ;;  %v13957_v11 = vmov 0   ;;  %332 = vst [vmem:[#allocation2 + $0x18] sm:$0x1] %v331_v8  ;;  %vm9917_vm8 = vmand %vm13995_vm4, %vm378_vm3 }
  0x13   : > { %2374 = vmatprep.subr.bf16.mxu0 %v13957_v11  ;;  %313 = vst.msk [vmem:[#allocation2] sm:$0xf] %vm13995_vm4, %v13957_v11  ;;  %314 = vst.msk [vmem:[#allocation2 + $0x4] sm:$0xf] %vm13995_vm4, %v13957_v11  ;;  %v9312_v12 = vld [vmem:[%s13950_s1 + $0x60] sm:$0xff]   ;;  %5945 = vmatprep.subr.bf16.mxu1 %v13957_v11  ;;  %v334_v13 = vsel %vm9833_vm2, 0, %v333_v10 }
  0x14   : > { %316 = vst.msk [vmem:[#allocation2 + $0x8] sm:$0x1] %vm315_vm0, %v13957_v11  ;;  %320 = vst.msk [vmem:[#allocation2 + $0xd4] sm:$0x1] %vm315_vm0, %v13957_v11  ;;  %v389_v14 = vld [vmem:[#allocation2 + $0x2c] sm:$0x1]  ;;  %2375 = vmatpush1.bf16.msra.mxu0 %v9312_v12 }
  0x15   : > { %318 = vst.msk [vmem:[#allocation2 + $0xcc] sm:$0xf] %vm13995_vm4, %v13957_v11  ;;  %319 = vst.msk [vmem:[#allocation2 + $0xd0] sm:$0xf] %vm13995_vm4, %v13957_v11  ;;  %v336_v15 = vld [vmem:[#allocation2 + $0x30] sm:$0x1]  ;;  %2376 = vmatprep.subr.bf16.mxu0 %v13957_v11 }
  0x16   : > { %434 = vst.msk [vmem:[#allocation3] sm:$0xf] %vm13995_vm4, %v13957_v11  ;;  %435 = vst.msk [vmem:[#allocation3 + $0x4] sm:$0xf] %vm13995_vm4, %v13957_v11  ;;  %v9313_v16 = vld [vmem:[%s13950_s1 + $0x68] sm:$0xff]   ;;  %v280_v17 = vld [vmem:[%s9886_s8] sm:$0xff] }
  0x17   : > { %436 = vst.msk [vmem:[#allocation3 + $0x8] sm:$0x1] %vm315_vm0, %v13957_v11  ;;  %440 = vst.msk [vmem:[#allocation3 + $0xd4] sm:$0x1] %vm315_vm0, %v13957_v11  ;;  %v281_v18 = vld [vmem:[%s9886_s8 + $0x8] sm:$0xff]  ;;  %v282_v19 = vld [vmem:[%s9886_s8 + $0x10] sm:$0xff]  ;;  %v8962_v22 = vpack.c.bf16 %v280_v17, %v280_v17 }
  0x18   : > { %438 = vst.msk [vmem:[#allocation3 + $0xcc] sm:$0xf] %vm13995_vm4, %v13957_v11  ;;  %439 = vst.msk [vmem:[#allocation3 + $0xd0] sm:$0xf] %vm13995_vm4, %v13957_v11  ;;  %v390_v20 = vsel %vm9843_vm5, 0, %v389_v14  ;;  %v337_v21 = vsel %vm9833_vm2, 0, %v336_v15  ;;  %v8963_v23 = vpack.c.bf16 %v281_v18, %v281_v18  ;;  %v8964_v25 = vpack.c.bf16 %v282_v19, %v282_v19  ;;  %2377 = vmatpush1.bf16.msra.mxu0 %v9313_v16 }
  0x19   : > { %388 = vst [vmem:[#allocation2 + $0x20] sm:$0x1] %v387_v9  ;;  %335 = vst [vmem:[#allocation2 + $0x24] sm:$0x1] %v334_v13  ;;  %v283_v24 = vld [vmem:[%s9886_s8 + $0x18] sm:$0xff]  ;;  %v284_v26 = vld [vmem:[%s9886_s8 + $0x20] sm:$0xff]  ;;  %2378 = vmatprep.subr.bf16.mxu0 %v13957_v11 }
  0x1a   : > { %v285_v27 = vld [vmem:[%s9886_s8 + $0x28] sm:$0xff]  ;;  %391 = vst [vmem:[#allocation2 + $0x2c] sm:$0x1] %v390_v20  ;;  %338 = vst [vmem:[#allocation2 + $0x30] sm:$0x1] %v337_v21  ;;  %v8965_v28 = vpack.c.bf16 %v283_v24, %v283_v24  ;;  %v8966_v29 = vpack.c.bf16 %v284_v26, %v284_v26  ;;  %v648_v31 = vshrl.u32 %v8962_v22, 16 }
  0x1b   : > { %vm645_vm6 = vsmask.f32 4368  ;;  %v9904_v30 = vpack.c.bf16 %v285_v27, %v285_v27  ;;  %v651_v32 = vshll.u32 %v8962_v22, 16  ;;  %v656_v33 = vshrl.u32 %v8963_v23, 16  ;;  %v286_v35 = vld [vmem:[%s9886_s8 + $0x30] sm:$0xff]  ;;  %v287_v36 = vld [vmem:[%s9886_s8 + $0x38] sm:$0xff] }
  0x1c   : > { %v659_v34 = vshll.u32 %v8963_v23, 16  ;;  %v665_v37 = vshrl.u32 %v8964_v25, 16  ;;  %v668_v38 = vshll.u32 %v8964_v25, 16  ;;  %v673_v39 = vshrl.u32 %v8965_v28, 16  ;;  %vm9910_vm7 = vmor %vm322_vm1, %vm645_vm6  ;;  %v970_v47 = vld [vmem:[#allocation2 + $0xc] sm:$0xf] }
  0x1d   : > { %v676_v40 = vshll.u32 %v8965_v28, 16  ;;  %v14041_v41 = vmov 0  ;;  %v650_v42 = vrot.slane %v648_v31, 7  ;;  %v658_v43 = vrot.slane %v656_v33, 7  ;;  %v974_v48 = vld [vmem:[#allocation2 + $0x14] sm:$0x1] }
  0x1e   : > { %v14042_v41 = vsel %vm9910_vm7, 4294967295, %v14041_v41  ;;  %v682_v44 = vshrl.u32 %v8966_v29, 16  ;;  %v685_v45 = vshll.u32 %v8966_v29, 16  ;;  %v14044_v46 = vmov 0  ;;  %v977_v57 = vld [vmem:[#allocation2 + $0x18] sm:$0xf] }
  0x1f   : > { %14043 = vst [vmem:[#allocation6_spill] sm:$0xff] %v14042_v41  ;;  %v14045_v46 = vsel %vm9917_vm8, 4294967295, %v14044_v46  ;;  %v667_v49 = vrot.slane %v665_v37, 7  ;;  %v675_v50 = vrot.slane %v673_v39, 7  ;;  %v9921_v51 = vpack.c.bf16 %v286_v35, %v286_v35  ;;  %v392_v63 = vld [vmem:[#allocation2 + $0x38] sm:$0x1] }
  0x20   : > { %14046 = vst [vmem:[#allocation7_spill] sm:$0xff] %v14045_v46  ;;  %v9923_v52 = vpack.c.bf16 %v287_v36, %v287_v36  ;;  %v653_v53 = vor.u32 %v651_v32, %v650_v42  ;;  %v654_v54 = vrot.slane %v650_v42, 4  ;;  %v661_v55 = vor.u32 %v659_v34, %v658_v43  ;;  %v981_v58 = vld [vmem:[#allocation2 + $0x20] sm:$0x1]  ;;  %v984_v6 = vld [vmem:[#allocation2 + $0x24] sm:$0xf] }
  0x21   : > { %v663_v56 = vrot.slane %v658_v43, 4  ;;  %v670_v59 = vor.u32 %v668_v38, %v667_v49  ;;  %v671_v60 = vrot.slane %v667_v49, 4  ;;  %v678_v61 = vor.u32 %v676_v40, %v675_v50  ;;  %v339_v12 = vld [vmem:[#allocation2 + $0x3c] sm:$0x1]  ;;  %v395_v13 = vld [vmem:[#allocation2 + $0x44] sm:$0x1] }
  0x22   : > { %v680_v62 = vrot.slane %v675_v50, 4  ;;  %v662_v1 = vsel %vm9910_vm7, %v654_v54, %v661_v55  ;;  %v971_v2 = vsel %vm9917_vm8, %v653_v53, %v970_v47  ;;  %v684_v5 = vrot.slane %v682_v44, 7  ;;  %v288_v18 = vld [vmem:[%s9886_s8 + $0x40] sm:$0xff]  ;;  %v342_v19 = vld [vmem:[#allocation2 + $0x48] sm:$0x1]  ;;  %v290_v35 = vld [vmem:[%s9886_s8 + $0x50] sm:$0xff] }
  0x23   : > { %v975_v3 = vsel %vm9833_vm2, %v663_v56, %v974_v48  ;;  %972 = vst [vmem:[#allocation2 + $0xc] sm:$0xf] %v971_v2  ;;  %973 = vst.msk [vmem:[#allocation2 + $0x10] sm:$0xf] %vm13995_vm4, %v662_v1  ;;  %v679_v7 = vsel %vm9910_vm7, %v671_v60, %v678_v61  ;;  %v978_v8 = vsel %vm9917_vm8, %v670_v59, %v977_v57  ;;  %v690_v10 = vshrl.u32 %v9904_v30, 16  ;;  %v289_v34 = vld [vmem:[%s9886_s8 + $0x48] sm:$0xff] }
  0x24   : > { %976 = vst [vmem:[#allocation2 + $0x14] sm:$0x1] %v975_v3  ;;  %v982_v9 = vsel %vm9833_vm2, %v680_v62, %v981_v58  ;;  %979 = vst [vmem:[#allocation2 + $0x18] sm:$0xf] %v978_v8  ;;  %v687_v14 = vor.u32 %v685_v45, %v684_v5  ;;  %v688_v15 = vrot.slane %v684_v5, 4  ;;  %v693_v16 = vshll.u32 %v9904_v30, 16 }
  0x25   : > { %980 = vst.msk [vmem:[#allocation2 + $0x1c] sm:$0xf] %vm13995_vm4, %v679_v7  ;;  %983 = vst [vmem:[#allocation2 + $0x20] sm:$0x1] %v982_v9  ;;  %v393_v17 = vsel %vm9843_vm5, 0, %v392_v63  ;;  %v692_v20 = vrot.slane %v690_v10, 7  ;;  %v9957_v38 = vpack.c.bf16 %v288_v18, %v288_v18  ;;  %v8971_v54 = vpack.c.bf16 %v289_v34, %v289_v34 }
  0x26   : > { %394 = vst [vmem:[#allocation2 + $0x38] sm:$0x1] %v393_v17  ;;  %v699_v21 = vshrl.u32 %v9921_v51, 16  ;;  %v702_v22 = vshll.u32 %v9921_v51, 16  ;;  %v707_v23 = vshrl.u32 %v9923_v52, 16  ;;  %v985_v25 = vsel %vm9917_vm8, %v687_v14, %v984_v6  ;;  %v291_v36 = vld [vmem:[%s9886_s8 + $0x58] sm:$0xff] }
  0x27   : > { %v398_v24 = vld [vmem:[#allocation2 + $0x50] sm:$0x1]  ;;  %v988_v26 = vld [vmem:[#allocation2 + $0x2c] sm:$0x1]  ;;  %v710_v27 = vshll.u32 %v9923_v52, 16  ;;  %v340_v28 = vsel %vm9833_vm2, 0, %v339_v12  ;;  %v695_v30 = vor.u32 %v693_v16, %v692_v20  ;;  %v9974_v55 = vpack.c.bf16 %v290_v35, %v290_v35 }
  0x28   : > { %v396_v29 = vsel %vm9843_vm5, 0, %v395_v13  ;;  %v697_v31 = vrot.slane %v692_v20, 4  ;;  %986 = vst [vmem:[#allocation2 + $0x24] sm:$0xf] %v985_v25  ;;  %v701_v32 = vrot.slane %v699_v21, 7  ;;  %v709_v33 = vrot.slane %v707_v23, 7 }
  0x29   : > { %341 = vst [vmem:[#allocation2 + $0x3c] sm:$0x1] %v340_v28  ;;  %397 = vst [vmem:[#allocation2 + $0x44] sm:$0x1] %v396_v29  ;;  %vm13992_vm9 = vsmask.f32 7424  ;;  %v696_v44 = vsel %vm9910_vm7, %v688_v15, %v695_v30  ;;  %v9976_v56 = vpack.c.bf16 %v291_v36, %v291_v36 }
  0x2a   : > { %v991_v37 = vld [vmem:[#allocation2 + $0x30] sm:$0xf]  ;;  %v343_v39 = vsel %vm9833_vm2, 0, %v342_v19  ;;  %v399_v40 = vsel %vm9843_vm5, 0, %v398_v24  ;;  %v292_v42 = vld [vmem:[%s9886_s8 + $0x60] sm:$0xff]  ;;  %v293_v43 = vld [vmem:[%s9886_s8 + $0x68] sm:$0xff]  ;;  %v989_v45 = vsel %vm9833_vm2, %v697_v31, %v988_v26  ;;  %v704_v47 = vor.u32 %v702_v22, %v701_v32 }
  0x2b   : > { %v705_v48 = vrot.slane %v701_v32, 4  ;;  %344 = vst [vmem:[#allocation2 + $0x48] sm:$0x1] %v343_v39  ;;  %400 = vst [vmem:[#allocation2 + $0x50] sm:$0x1] %v399_v40  ;;  %v294_v49 = vld [vmem:[%s9886_s8 + $0x70] sm:$0xff]  ;;  %v712_v53 = vor.u32 %v710_v27, %v709_v33  ;;  %v9985_v62 = vpack.c.bf16 %v292_v42, %v292_v42  ;;  %v9989_v3 = vpack.c.bf16 %v293_v43, %v293_v43 }
  0x2c   : > { %v295_v50 = vld [vmem:[%s9886_s8 + $0x78] sm:$0xff]  ;;  %v1669_v51 = vld [vmem:[#allocation2 + $0xc] sm:$0xf]  ;;  %v9971_v52 = vld [vmem:[#allocation2 + $0x10] sm:$0xf]  ;;  %v714_v60 = vrot.slane %v709_v33, 4  ;;  %v992_v61 = vsel %vm9917_vm8, %v704_v47, %v991_v37  ;;  %v9991_v5 = vpack.c.bf16 %v294_v49, %v294_v49 }
  0x2d   : > { %987 = vst.msk [vmem:[#allocation2 + $0x28] sm:$0xf] %vm13995_vm4, %v696_v44  ;;  %990 = vst [vmem:[#allocation2 + $0x2c] sm:$0x1] %v989_v45  ;;  %v9979_v57 = vcombine.low %v1669_v51, %v9971_v52  ;;  %v1671_v59 = vld [vmem:[#allocation2 + $0x18] sm:$0xf]  ;;  %v713_v1 = vsel %vm9910_vm7, %v705_v48, %v712_v53  ;;  %v9993_v6 = vpack.c.bf16 %v295_v50, %v295_v50 }
  0x2e   : > { %v9981_v58 = vld [vmem:[#allocation2 + $0x14] ss:$0 sps:$4 sm:$0x11]   ;;  %v1672_v63 = vld [vmem:[#allocation2 + $0x1c] sm:$0xf]  ;;  %v716_v15 = vshrl.u32 %v9957_v38, 16 }
  0x2f   : > { %993 = vst [vmem:[#allocation2 + $0x30] sm:$0xf] %v992_v61  ;;  %v995_v2 = vld [vmem:[#allocation2 + $0x38] sm:$0x1]  ;;  %v1862_v7 = vshrl.u32 %v9979_v57, 16  ;;  %v1864_v8 = vshll.u32 %v9979_v57, 16  ;;  %v9998_v10 = vcombine.low %v1671_v59, %v1672_v63 }
  0x30   : > { %v1869_v9 = vshll.u32 %v9981_v58, 16  ;;  %v9297_v12 = vld [vmem:[#allocation2 + $0x20] ss:$0 sps:$4 sm:$0x11]   ;;  %994 = vst.msk [vmem:[#allocation2 + $0x34] sm:$0xf] %vm13995_vm4, %v713_v1  ;;  %v996_v14 = vsel %vm9833_vm2, %v714_v60, %v995_v2 }
  0x31   : > { %v1673_v13 = vld [vmem:[#allocation2 + $0x24] sm:$0xf]  ;;  %v719_v16 = vshll.u32 %v9957_v38, 16  ;;  %v724_v17 = vshrl.u32 %v8971_v54, 16  ;;  %v1866_v19 = vrot.slane %v1864_v8, 1  ;;  %v1874_v21 = vshrl.u32 %v9998_v10, 16 }
  0x32   : > { %v296_v18 = vld [vmem:[%s9886_s8 + $0x80] sm:$0xff]  ;;  %v1871_v20 = vrot.slane %v1869_v9, 1  ;;  %v1876_v22 = vshll.u32 %v9998_v10, 16  ;;  %997 = vst [vmem:[#allocation2 + $0x38] sm:$0x1] %v996_v14  ;;  %v1881_v24 = vshll.u32 %v9297_v12, 16 }
  0x33   : > { %v998_v23 = vld [vmem:[#allocation2 + $0x3c] sm:$0xf]  ;;  %v718_v25 = vrot.slane %v716_v15, 7  ;;  %v726_v26 = vrot.slane %v724_v17, 7  ;;  %v727_v27 = vshll.u32 %v8971_v54, 16  ;;  %v1867_v29 = vor.u32 %v1866_v19, %v1862_v7  ;;  %v9316_v39 = vld [vmem:[%s13950_s1 + $0x70] sm:$0xff]  }
  0x34   : > { %v1002_v28 = vld [vmem:[#allocation2 + $0x44] sm:$0x1]  ;;  %v1878_v30 = vrot.slane %v1876_v22, 1  ;;  %v1674_v31 = vld [vmem:[#allocation2 + $0x28] sm:$0xf]  ;;  %v733_v32 = vshrl.u32 %v9974_v55, 16  ;;  %v10009_v33 = vpack.c.bf16 %v296_v18, %v296_v18  ;;  %2379 = vmatpush1.bf16.msra.mxu0 %v9316_v39 }
  0x35   : > { %v1883_v34 = vrot.slane %v1881_v24, 1  ;;  %v10011_v35 = vcombine.low %v1673_v13, %v1674_v31  ;;  %v9299_v36 = vld [vmem:[#allocation2 + $0x2c] ss:$0 sps:$4 sm:$0x11]   ;;  %v721_v37 = vor.u32 %v719_v16, %v718_v25  ;;  %v722_v38 = vrot.slane %v718_v25, 4  ;;  %s9780_s13 = smov 64   ;;  %2380 = vmatprep.subr.bf16.mxu0 %v13957_v11 }
  0x36   : > { %v1872_v40 = vsel %vm13992_vm9, %v1867_v29, %v1871_v20  ;;  %v1879_v42 = vor.u32 %v1878_v30, %v1874_v21  ;;  %v1675_v43 = vld [vmem:[#allocation2 + $0x30] sm:$0xf]  ;;  %v729_v44 = vor.u32 %v727_v27, %v726_v26  ;;  %v731_v45 = vrot.slane %v726_v26, 4  ;;  %v297_v47 = vld [vmem:[%s9886_s8 + $0x88] sm:$0xff]  ;;  %v345_v54 = vld [vmem:[#allocation2 + $0x54] sm:$0x1] }
  0x37   : > { %2053 = vrot.lane.b32.xlu0 %v1872_v40, %s9780_s13  ;;  %v1886_v48 = vshrl.u32 %v10011_v35, 16  ;;  %v1888_v49 = vshll.u32 %v10011_v35, 16  ;;  %v1893_v50 = vshll.u32 %v9299_v36, 16  ;;  %v1676_v51 = vld [vmem:[#allocation2 + $0x34] sm:$0xf]  ;;  %v999_v53 = vsel %vm9917_vm8, %v721_v37, %v998_v23  ;;  %v9317_v59 = vld [vmem:[%s13950_s1 + $0x78] sm:$0xff]  }
  0x38   : > { %v1884_v60 = vsel %vm13992_vm9, %v1879_v42, %v1883_v34  ;;  %v10027_v61 = vcombine.low %v1675_v43, %v1676_v51  ;;  %v730_v63 = vsel %vm9910_vm7, %v722_v38, %v729_v44  ;;  %1000 = vst [vmem:[#allocation2 + $0x3c] sm:$0xf] %v999_v53  ;;  %v1003_v1 = vsel %vm9833_vm2, %v731_v45, %v1002_v28  ;;  %v1005_v2 = vld [vmem:[#allocation2 + $0x48] sm:$0xf]  ;;  %v401_v7 = vld [vmem:[#allocation2 + $0x5c] sm:$0x1] }
  0x39   : > { %v1890_v8 = vrot.slane %v1888_v49, 1  ;;  %v1895_v9 = vrot.slane %v1893_v50, 1  ;;  %1001 = vst.msk [vmem:[#allocation2 + $0x40] sm:$0xf] %vm13995_vm4, %v730_v63  ;;  %1004 = vst [vmem:[#allocation2 + $0x44] sm:$0x1] %v1003_v1  ;;  %v10039_v18 = vpack.c.bf16 %v297_v47, %v297_v47  ;;  %2381 = vmatpush1.bf16.msra.mxu0 %v9317_v59 }
  0x3a   : > { %v735_v12 = vrot.slane %v733_v32, 7  ;;  %v736_v13 = vshll.u32 %v9974_v55, 16  ;;  %v9301_v14 = vld [vmem:[#allocation2 + $0x38] ss:$0 sps:$4 sm:$0x11]   ;;  %v1898_v15 = vshrl.u32 %v10027_v61, 16  ;;  %2382 = vmatprep.subr.bf16.mxu0 %v13957_v11 }
  0x3b   : > { %v1900_v16 = vshll.u32 %v10027_v61, 16  ;;  %v741_v17 = vshrl.u32 %v9976_v56, 16  ;;  %2055 = vrot.lane.b32.xlu0 %v1884_v60, %s9780_s13  ;;  %v1891_v19 = vor.u32 %v1890_v8, %v1886_v48  ;;  %v744_v22 = vshll.u32 %v9976_v56, 16  ;;  %v348_v23 = vld [vmem:[#allocation2 + $0x60] sm:$0x1] }
  0x3c   : > { %v738_v20 = vor.u32 %v736_v13, %v735_v12  ;;  %v739_v21 = vrot.slane %v735_v12, 4  ;;  %v1905_v55 = vshll.u32 %v9301_v14, 16  ;;  %v1009_v26 = vld [vmem:[#allocation2 + $0x50] sm:$0x1]  ;;  %v346_v27 = vsel %vm9833_vm2, 0, %v345_v54  ;;  %v9320_v54 = vld [vmem:[%s13950_s1 + $0x80] sm:$0xff]  }
  0x3d   : > { %v1902_v24 = vrot.slane %v1900_v16, 1  ;;  %v743_v25 = vrot.slane %v741_v17, 7  ;;  %v1896_v28 = vsel %vm13992_vm9, %v1891_v19, %v1895_v9  ;;  %347 = vst [vmem:[#allocation2 + $0x54] sm:$0x1] %v346_v27  ;;  %v402_v56 = vsel %vm9843_vm5, 0, %v401_v7  ;;  %v298_v14 = vld [vmem:[%s9886_s8 + $0x90] sm:$0xff]  ;;  %2383 = vmatpush1.bf16.msra.mxu0 %v9320_v54 }
  0x3e   : > { %v1006_v29 = vsel %vm9917_vm8, %v738_v20, %v1005_v2  ;;  %v750_v30 = vshrl.u32 %v9985_v62, 16  ;;  %v404_v31 = vld [vmem:[#allocation2 + $0x68] sm:$0x1]  ;;  %2057 = vrot.lane.b32.xlu1 %v1896_v28, %s9780_s13  ;;  %v1907_v34 = vrot.slane %v1905_v55, 1  ;;  %403 = vst [vmem:[#allocation2 + $0x5c] sm:$0x1] %v402_v56  ;;  %2384 = vmatprep.subr.bf16.mxu0 %v13957_v11 }
  0x3f   : > { %v1903_v32 = vor.u32 %v1902_v24, %v1898_v15  ;;  %v746_v36 = vor.u32 %v744_v22, %v743_v25  ;;  %v748_v37 = vrot.slane %v743_v25, 4  ;;  %1007 = vst [vmem:[#allocation2 + $0x48] sm:$0xf] %v1006_v29  ;;  %v1677_v38 = vld [vmem:[#allocation2 + $0x3c] sm:$0xf]  ;;  %v753_v40 = vshll.u32 %v9985_v62, 16 }
  0x40   : > { %v752_v39 = vrot.slane %v750_v30, 7  ;;  %v758_v42 = vshrl.u32 %v9989_v3, 16  ;;  %v761_v43 = vshll.u32 %v9989_v3, 16  ;;  %v1678_v45 = vld [vmem:[#allocation2 + $0x40] sm:$0xf]  ;;  %v349_v49 = vsel %vm9833_vm2, 0, %v348_v23 }
  0x41   : > { %v1908_v44 = vsel %vm13992_vm9, %v1903_v32, %v1907_v34  ;;  %v747_v47 = vsel %vm9910_vm7, %v739_v21, %v746_v36  ;;  %v1010_v48 = vsel %vm9833_vm2, %v748_v37, %v1009_v26  ;;  %v10063_v50 = vcombine.low %v1677_v38, %v1678_v45  ;;  %v9303_v51 = vld [vmem:[#allocation2 + $0x44] ss:$0 sps:$4 sm:$0x11]   ;;  %350 = vst [vmem:[#allocation2 + $0x60] sm:$0x1] %v349_v49  ;;  %v299_v15 = vld [vmem:[%s9886_s8 + $0x98] sm:$0xff] }
  0x42   : > { %1008 = vst.msk [vmem:[#allocation2 + $0x4c] sm:$0xf] %vm13995_vm4, %v747_v47  ;;  %1011 = vst [vmem:[#allocation2 + $0x50] sm:$0x1] %v1010_v48  ;;  %v755_v62 = vor.u32 %v753_v40, %v752_v39  ;;  %v756_v3 = vrot.slane %v752_v39, 4  ;;  %v760_v53 = vrot.slane %v758_v42, 7  ;;  %2059 = vrot.lane.b32.xlu1 %v1908_v44, %s9780_s13  ;;  %v10097_v40 = vpack.c.bf16 %v298_v14, %v298_v14 }
  0x43   : > { %v405_v59 = vsel %vm9843_vm5, 0, %v404_v31  ;;  %v767_v60 = vshrl.u32 %v9991_v5, 16  ;;  %v770_v63 = vshll.u32 %v9991_v5, 16  ;;  %v775_v1 = vshrl.u32 %v9993_v6, 16  ;;  %v351_v2 = vld [vmem:[#allocation2 + $0x6c] sm:$0x1] }
  0x44   : > { %v407_v7 = vld [vmem:[#allocation2 + $0x74] sm:$0x1]  ;;  %v1910_v8 = vshrl.u32 %v10063_v50, 16  ;;  %v1912_v9 = vshll.u32 %v10063_v50, 16  ;;  %v1917_v12 = vshll.u32 %v9303_v51, 16  ;;  %v763_v13 = vor.u32 %v761_v43, %v760_v53  ;;  %v9321_v16 = vld [vmem:[%s13950_s1 + $0x88] sm:$0xff]  }
  0x45   : > { %406 = vst [vmem:[#allocation2 + $0x68] sm:$0x1] %v405_v59  ;;  %v765_v17 = vrot.slane %v760_v53, 4  ;;  %v1012_v5 = vld [vmem:[#allocation2 + $0x54] sm:$0xf]  ;;  %v769_v19 = vrot.slane %v767_v60, 7  ;;  %2385 = vmatpush1.bf16.msra.mxu0 %v9321_v16  ;;  %v10099_v42 = vpack.c.bf16 %v299_v15, %v299_v15 }
  0x46   : > { %v777_v20 = vrot.slane %v775_v1, 7  ;;  %v778_v21 = vshll.u32 %v9993_v6, 16  ;;  %v1914_v22 = vrot.slane %v1912_v9, 1  ;;  %v1919_v23 = vrot.slane %v1917_v12, 1  ;;  %v1679_v24 = vld [vmem:[#allocation2 + $0x48] sm:$0xf]  ;;  %2386 = vmatprep.subr.bf16.mxu0 %v13957_v11 }
  0x47   : > { %v764_v55 = vsel %vm9910_vm7, %v756_v3, %v763_v13  ;;  %v1013_v25 = vsel %vm9917_vm8, %v755_v62, %v1012_v5  ;;  %v1016_v26 = vld [vmem:[#allocation2 + $0x5c] sm:$0x1]  ;;  %v354_v27 = vld [vmem:[#allocation2 + $0x78] sm:$0x1]  ;;  %v772_v6 = vor.u32 %v770_v63, %v769_v19  ;;  %v773_v29 = vrot.slane %v769_v19, 4  ;;  %v300_v43 = vld [vmem:[%s9886_s8 + $0xa0] sm:$0xff] }
  0x48   : > { %1014 = vst [vmem:[#allocation2 + $0x54] sm:$0xf] %v1013_v25  ;;  %1015 = vst.msk [vmem:[#allocation2 + $0x58] sm:$0xf] %vm13995_vm4, %v764_v55  ;;  %v1017_v28 = vsel %vm9833_vm2, %v765_v17, %v1016_v26  ;;  %v780_v56 = vor.u32 %v778_v21, %v777_v20  ;;  %v1915_v30 = vor.u32 %v1914_v22, %v1910_v8  ;;  %v782_v31 = vrot.slane %v777_v20, 4  ;;  %v301_v44 = vld [vmem:[%s9886_s8 + $0xa8] sm:$0xff] }
  0x49   : > { %1018 = vst [vmem:[#allocation2 + $0x5c] sm:$0x1] %v1017_v28  ;;  %v352_v32 = vsel %vm9833_vm2, 0, %v351_v2  ;;  %v408_v34 = vsel %vm9843_vm5, 0, %v407_v7  ;;  %v410_v36 = vld [vmem:[#allocation2 + $0x80] sm:$0x1]  ;;  %v10128_v17 = vpack.c.bf16 %v300_v43, %v300_v43  ;;  %v10130_v5 = vpack.c.bf16 %v301_v44, %v301_v44 }
  0x4a   : > { %v1680_v37 = vld [vmem:[#allocation2 + $0x4c] sm:$0xf]  ;;  %v781_v38 = vsel %vm9910_vm7, %v773_v29, %v780_v56  ;;  %v1019_v39 = vld [vmem:[#allocation2 + $0x60] sm:$0xf]  ;;  %353 = vst [vmem:[#allocation2 + $0x6c] sm:$0x1] %v352_v32  ;;  %v1920_v45 = vsel %vm13992_vm9, %v1915_v30, %v1919_v23 }
  0x4b   : > { %409 = vst [vmem:[#allocation2 + $0x74] sm:$0x1] %v408_v34  ;;  %v10105_v47 = vcombine.low %v1679_v24, %v1680_v37  ;;  %v9305_v48 = vld [vmem:[#allocation2 + $0x50] ss:$0 sps:$4 sm:$0x11]   ;;  %v1020_v49 = vsel %vm9917_vm8, %v772_v6, %v1019_v39  ;;  %v784_v51 = vshrl.u32 %v10009_v33, 16  ;;  %2061 = vrot.lane.b32.xlu0 %v1920_v45, %s9780_s13 }
  0x4c   : > { %1022 = vst.msk [vmem:[#allocation2 + $0x64] sm:$0xf] %vm13995_vm4, %v781_v38  ;;  %1021 = vst [vmem:[#allocation2 + $0x60] sm:$0xf] %v1020_v49  ;;  %v1023_v62 = vld [vmem:[#allocation2 + $0x68] sm:$0x1] }
  0x4d   : > { %v787_v3 = vshll.u32 %v10009_v33, 16  ;;  %v792_v53 = vshrl.u32 %v10039_v18, 16  ;;  %v795_v54 = vshll.u32 %v10039_v18, 16  ;;  %v355_v59 = vsel %vm9833_vm2, 0, %v354_v27  ;;  %v9324_v33 = vld [vmem:[%s13950_s1 + $0x90] sm:$0xff]   ;;  %v303_v24 = vld [vmem:[%s9886_s8 + $0xb8] sm:$0xff] }
  0x4e   : > { %v1922_v60 = vshrl.u32 %v10105_v47, 16  ;;  %v1924_v63 = vshll.u32 %v10105_v47, 16  ;;  %v1929_v1 = vshll.u32 %v9305_v48, 16  ;;  %v1024_v2 = vsel %vm9833_vm2, %v782_v31, %v1023_v62  ;;  %356 = vst [vmem:[#allocation2 + $0x78] sm:$0x1] %v355_v59  ;;  %v302_v12 = vld [vmem:[%s9886_s8 + $0xb0] sm:$0xff]  ;;  %2387 = vmatpush1.bf16.msra.mxu0 %v9324_v33 }
  0x4f   : > { %1025 = vst [vmem:[#allocation2 + $0x68] sm:$0x1] %v1024_v2  ;;  %v786_v7 = vrot.slane %v784_v51, 7  ;;  %v794_v8 = vrot.slane %v792_v53, 7  ;;  %v411_v18 = vsel %vm9843_vm5, 0, %v410_v36  ;;  %v801_v9 = vshrl.u32 %v10097_v40, 16  ;;  %2388 = vmatprep.subr.bf16.mxu0 %v13957_v11 }
  0x50   : > { %v1926_v13 = vrot.slane %v1924_v63, 1  ;;  %v1931_v14 = vrot.slane %v1929_v1, 1  ;;  %v1681_v15 = vld [vmem:[#allocation2 + $0x54] sm:$0xf]  ;;  %v1682_v16 = vld [vmem:[#allocation2 + $0x58] sm:$0xf]  ;;  %v10138_v6 = vpack.c.bf16 %v302_v12, %v302_v12 }
  0x51   : > { %412 = vst [vmem:[#allocation2 + $0x80] sm:$0x1] %v411_v18  ;;  %v10132_v19 = vcombine.low %v1681_v15, %v1682_v16  ;;  %v9307_v20 = vld [vmem:[#allocation2 + $0x5c] ss:$0 sps:$4 sm:$0x11]   ;;  %v789_v21 = vor.u32 %v787_v3, %v786_v7  ;;  %v790_v22 = vrot.slane %v786_v7, 4  ;;  %v797_v23 = vor.u32 %v795_v54, %v794_v8 }
  0x52   : > { %v1927_v55 = vor.u32 %v1926_v13, %v1922_v60  ;;  %v799_v25 = vrot.slane %v794_v8, 4  ;;  %v1026_v26 = vld [vmem:[#allocation2 + $0x6c] sm:$0xf]  ;;  %v1030_v27 = vld [vmem:[#allocation2 + $0x74] sm:$0x1]  ;;  %v10136_v28 = vrot.slane %v801_v9, 7 }
  0x53   : > { %v1934_v29 = vshrl.u32 %v10132_v19, 16  ;;  %v1936_v56 = vshll.u32 %v10132_v19, 16  ;;  %v1941_v30 = vshll.u32 %v9307_v20, 16  ;;  %v1684_v31 = vld [vmem:[#allocation2 + $0x64] sm:$0xf]  ;;  %v798_v32 = vsel %vm9910_vm7, %v790_v22, %v797_v23  ;;  %v9325_v36 = vld [vmem:[%s13950_s1 + $0x98] sm:$0xff]  }
  0x54   : > { %v357_v34 = vld [vmem:[#allocation2 + $0x84] sm:$0x1]  ;;  %v1932_v37 = vsel %vm13992_vm9, %v1927_v55, %v1931_v14  ;;  %v1683_v38 = vld [vmem:[#allocation2 + $0x60] sm:$0xf]  ;;  %v1027_v39 = vsel %vm9917_vm8, %v789_v21, %v1026_v26  ;;  %1029 = vst.msk [vmem:[#allocation2 + $0x70] sm:$0xf] %vm13995_vm4, %v798_v32  ;;  %v1031_v43 = vsel %vm9833_vm2, %v799_v25, %v1030_v27  ;;  %2389 = vmatpush1.bf16.msra.mxu0 %v9325_v36 }
  0x55   : > { %v804_v44 = vshll.u32 %v10097_v40, 16  ;;  %v413_v45 = vld [vmem:[#allocation2 + $0x8c] sm:$0x1]  ;;  %v304_v48 = vld [vmem:[%s9886_s8 + $0xc0] sm:$0xff]  ;;  %2063 = vrot.lane.b32.xlu1 %v1932_v37, %s9780_s13  ;;  %v1938_v49 = vrot.slane %v1936_v56, 1  ;;  %v1943_v51 = vrot.slane %v1941_v30, 1  ;;  %v10156_v62 = vcombine.low %v1683_v38, %v1684_v31  ;;  %2390 = vmatprep.subr.bf16.mxu0 %v13957_v11 }
  0x56   : > { %1028 = vst [vmem:[#allocation2 + $0x6c] sm:$0xf] %v1027_v39  ;;  %1032 = vst [vmem:[#allocation2 + $0x74] sm:$0x1] %v1031_v43  ;;  %v807_v3 = vrot.slane %v10136_v28, 4  ;;  %v809_v60 = vshrl.u32 %v10099_v42, 16  ;;  %v10161_v40 = vpack.c.bf16 %v303_v24, %v303_v24  ;;  %v10163_v63 = vpack.c.bf16 %v304_v48, %v304_v48 }
  0x57   : > { %14047 = vst [vmem:[#allocation8_spill] sm:$0xff] %v10156_v62  ;;  %v1033_v53 = vld [vmem:[#allocation2 + $0x78] sm:$0xf]  ;;  %v9309_v54 = vld [vmem:[#allocation2 + $0x68] ss:$0 sps:$4 sm:$0x11]   ;;  %v806_v59 = vor.u32 %v804_v44, %v10136_v28  ;;  %v1939_v1 = vor.u32 %v1938_v49, %v1934_v29 }
  0x58   : > { %v1946_v2 = vshrl.u32 %v10156_v62, 16  ;;  %v1948_v33 = vshll.u32 %v10156_v62, 16  ;;  %v812_v7 = vshll.u32 %v10099_v42, 16  ;;  %v1037_v8 = vld [vmem:[#allocation2 + $0x80] sm:$0x1]  ;;  %v1953_v13 = vshll.u32 %v9309_v54, 16 }
  0x59   : > { %v360_v18 = vld [vmem:[#allocation2 + $0x90] sm:$0x1]  ;;  %v416_v9 = vld [vmem:[#allocation2 + $0x98] sm:$0x1]  ;;  %v9328_v12 = vld [vmem:[%s13950_s1 + $0xa0] sm:$0xff]   ;;  %v811_v14 = vrot.slane %v809_v60, 7  ;;  %v1034_v15 = vsel %vm9917_vm8, %v806_v59, %v1033_v53  ;;  %v1944_v20 = vsel %vm13992_vm9, %v1939_v1, %v1943_v51 }
  0x5a   : > { %v358_v16 = vsel %vm9833_vm2, 0, %v357_v34  ;;  %v1950_v21 = vrot.slane %v1948_v33, 1  ;;  %1035 = vst [vmem:[#allocation2 + $0x78] sm:$0xf] %v1034_v15  ;;  %v414_v42 = vsel %vm9843_vm5, 0, %v413_v45  ;;  %v818_v22 = vshrl.u32 %v10128_v17, 16  ;;  %2391 = vmatpush1.bf16.msra.mxu0 %v9328_v12  ;;  %2065 = vrot.lane.b32.xlu0 %v1944_v20, %s9780_s13 }
  0x5b   : > { %359 = vst [vmem:[#allocation2 + $0x84] sm:$0x1] %v358_v16  ;;  %v9329_v23 = vld [vmem:[%s13950_s1 + $0xa8] sm:$0xff]   ;;  %v1955_v24 = vrot.slane %v1953_v13, 1  ;;  %v814_v55 = vor.u32 %v812_v7, %v811_v14  ;;  %v816_v25 = vrot.slane %v811_v14, 4  ;;  %v821_v26 = vshll.u32 %v10128_v17, 16  ;;  %2392 = vmatprep.subr.bf16.mxu0 %v13957_v11 }
  0x5c   : > { %415 = vst [vmem:[#allocation2 + $0x8c] sm:$0x1] %v414_v42  ;;  %v1951_v27 = vor.u32 %v1950_v21, %v1946_v2  ;;  %v10186_v28 = vld [vmem:[#allocation2 + $0x70] sm:$0xf]  ;;  %v820_v29 = vrot.slane %v818_v22, 7  ;;  %v826_v56 = vshrl.u32 %v10130_v5, 16 }
  0x5d   : > { %v829_v30 = vshll.u32 %v10130_v5, 16  ;;  %v1685_v31 = vld [vmem:[#allocation2 + $0x6c] sm:$0xf]  ;;  %v815_v32 = vsel %vm9910_vm7, %v807_v3, %v814_v55  ;;  %v1038_v34 = vsel %vm9833_vm2, %v816_v25, %v1037_v8  ;;  %v361_v17 = vsel %vm9833_vm2, 0, %v360_v18  ;;  %v9332_v45 = vld [vmem:[%s13950_s1 + $0xb0] sm:$0xff]   ;;  %v307_v33 = vld [vmem:[%s9886_s8 + $0xd8] sm:$0xff] }
  0x5e   : > { %v417_v36 = vsel %vm9843_vm5, 0, %v416_v9  ;;  %v1956_v37 = vsel %vm13992_vm9, %v1951_v27, %v1955_v24  ;;  %v10200_v38 = vcombine.low %v1685_v31, %v10186_v28  ;;  %v10202_v39 = vld [vmem:[#allocation2 + $0x74] ss:$0 sps:$4 sm:$0x11]   ;;  %1036 = vst.msk [vmem:[#allocation2 + $0x7c] sm:$0xf] %vm13995_vm4, %v815_v32  ;;  %v823_v5 = vor.u32 %v821_v26, %v820_v29  ;;  %2393 = vmatpush1.bf16.msra.mxu0 %v9329_v23 }
  0x5f   : > { %1039 = vst [vmem:[#allocation2 + $0x80] sm:$0x1] %v1038_v34  ;;  %v824_v43 = vrot.slane %v820_v29, 4  ;;  %362 = vst [vmem:[#allocation2 + $0x90] sm:$0x1] %v361_v17  ;;  %v305_v44 = vld [vmem:[%s9886_s8 + $0xc8] sm:$0xff]  ;;  %2067 = vrot.lane.b32.xlu1 %v1956_v37, %s9780_s13  ;;  %2394 = vmatprep.subr.bf16.mxu0 %v13957_v11  ;;  %v10237_v32 = vpack.c.bf16 %v307_v33, %v307_v33 }
  0x60   : > { %14048 = vst [vmem:[#allocation9_spill] sm:$0xff] %v10200_v38  ;;  %418 = vst [vmem:[#allocation2 + $0x98] sm:$0x1] %v417_v36  ;;  %v828_v48 = vrot.slane %v826_v56, 7  ;;  %v835_v49 = vshrl.u32 %v10138_v6, 16  ;;  %v838_v51 = vshll.u32 %v10138_v6, 16  ;;  %v10220_v12 = vpack.c.bf16 %v305_v44, %v305_v44 }
  0x61   : > { %v843_v3 = vshrl.u32 %v10161_v40, 16  ;;  %v363_v53 = vld [vmem:[#allocation2 + $0x9c] sm:$0x1]  ;;  %v1958_v54 = vshrl.u32 %v10200_v38, 16  ;;  %v1960_v59 = vshll.u32 %v10200_v38, 16  ;;  %v1965_v60 = vshll.u32 %v10202_v39, 16 }
  0x62   : > { %v846_v1 = vshll.u32 %v10161_v40, 16  ;;  %v306_v2 = vld [vmem:[%s9886_s8 + $0xd0] sm:$0xff]  ;;  %v1687_v7 = vld [vmem:[#allocation2 + $0x78] sm:$0xf]  ;;  %v831_v8 = vor.u32 %v829_v30, %v828_v48  ;;  %v833_v18 = vrot.slane %v828_v48, 4  ;;  %v837_v6 = vrot.slane %v835_v49, 7  ;;  %2395 = vmatpush1.bf16.msra.mxu0 %v9332_v45 }
  0x63   : > { %v1040_v9 = vld [vmem:[#allocation2 + $0x84] sm:$0xf]  ;;  %v1962_v13 = vrot.slane %v1960_v59, 1  ;;  %v1967_v14 = vrot.slane %v1965_v60, 1  ;;  %v1044_v16 = vld [vmem:[#allocation2 + $0x8c] sm:$0x1]  ;;  %2396 = vmatprep.subr.bf16.mxu0 %v13957_v11  ;;  %v8988_v31 = vpack.c.bf16 %v306_v2, %v306_v2 }
  0x64   : > { %v1041_v15 = vsel %vm9917_vm8, %v823_v5, %v1040_v9  ;;  %v845_v20 = vrot.slane %v843_v3, 7  ;;  %v419_v21 = vld [vmem:[#allocation2 + $0xa4] sm:$0x1]  ;;  %v9333_v40 = vld [vmem:[%s13950_s1 + $0xb8] sm:$0xff]   ;;  %v832_v42 = vsel %vm9910_vm7, %v824_v43, %v831_v8  ;;  %v1045_v22 = vsel %vm9833_vm2, %v833_v18, %v1044_v16  ;;  %v366_v29 = vld [vmem:[#allocation2 + $0xa8] sm:$0x1] }
  0x65   : > { %1042 = vst [vmem:[#allocation2 + $0x84] sm:$0xf] %v1041_v15  ;;  %v840_v23 = vor.u32 %v838_v51, %v837_v6  ;;  %v841_v24 = vrot.slane %v837_v6, 4  ;;  %v1963_v55 = vor.u32 %v1962_v13, %v1958_v54  ;;  %1043 = vst.msk [vmem:[#allocation2 + $0x88] sm:$0xf] %vm13995_vm4, %v832_v42  ;;  %v364_v27 = vsel %vm9833_vm2, 0, %v363_v53 }
  0x66   : > { %1046 = vst [vmem:[#allocation2 + $0x8c] sm:$0x1] %v1045_v22  ;;  %v848_v25 = vor.u32 %v846_v1, %v845_v20  ;;  %v850_v26 = vrot.slane %v845_v20, 4  ;;  %v10235_v56 = vld [vmem:[#allocation2 + $0x7c] sm:$0xf]  ;;  %2397 = vmatpush1.bf16.msra.mxu0 %v9333_v40  ;;  %v420_v45 = vsel %vm9843_vm5, 0, %v419_v21 }
  0x67   : > { %v1047_v30 = vld [vmem:[#allocation2 + $0x90] sm:$0xf]  ;;  %365 = vst [vmem:[#allocation2 + $0x9c] sm:$0x1] %v364_v27  ;;  %v1968_v34 = vsel %vm13992_vm9, %v1963_v55, %v1967_v14  ;;  %v10241_v17 = vcombine.low %v1687_v7, %v10235_v56  ;;  %v1051_v43 = vld [vmem:[#allocation2 + $0x98] sm:$0x1]  ;;  %2655 = vmatprep.subr.bf16.mxu0 %v13957_v11 }
  0x68   : > { %v10243_v36 = vld [vmem:[#allocation2 + $0x80] ss:$0 sps:$4 sm:$0x11]   ;;  %v849_v37 = vsel %vm9910_vm7, %v841_v24, %v848_v25  ;;  %v1048_v5 = vsel %vm9917_vm8, %v840_v23, %v1047_v30  ;;  %2069 = vrot.lane.b32.xlu0 %v1968_v34, %s9780_s13  ;;  %v1052_v44 = vsel %vm9833_vm2, %v850_v26, %v1051_v43  ;;  %v852_v48 = vshrl.u32 %v10163_v63, 16  ;;  %v422_v51 = vld [vmem:[#allocation2 + $0xb0] sm:$0x1] }
  0x69   : > { %14049 = vst [vmem:[#allocation10_spill] sm:$0xff] %v10241_v17  ;;  %1049 = vst [vmem:[#allocation2 + $0x90] sm:$0xf] %v1048_v5  ;;  %v855_v49 = vshll.u32 %v10163_v63, 16  ;;  %v1970_v3 = vshrl.u32 %v10241_v17, 16  ;;  %v1972_v53 = vshll.u32 %v10241_v17, 16 }
  0x6a   : > { %1050 = vst.msk [vmem:[#allocation2 + $0x94] sm:$0xf] %vm13995_vm4, %v849_v37  ;;  %v1977_v54 = vshll.u32 %v10243_v36, 16  ;;  %1053 = vst [vmem:[#allocation2 + $0x98] sm:$0x1] %v1052_v44  ;;  %v860_v59 = vshrl.u32 %v10220_v12, 16 }
  0x6b   : > { %421 = vst [vmem:[#allocation2 + $0xa4] sm:$0x1] %v420_v45  ;;  %v854_v60 = vrot.slane %v852_v48, 7  ;;  %v863_v1 = vshll.u32 %v10220_v12, 16  ;;  %v367_v63 = vsel %vm9833_vm2, 0, %v366_v29  ;;  %v423_v2 = vsel %vm9843_vm5, 0, %v422_v51 }
  0x6c   : > { %v1974_v33 = vrot.slane %v1972_v53, 1  ;;  %v1979_v7 = vrot.slane %v1977_v54, 1  ;;  %v1689_v8 = vld [vmem:[#allocation2 + $0x84] sm:$0xf]  ;;  %v862_v18 = vrot.slane %v860_v59, 7  ;;  %v869_v9 = vshrl.u32 %v8988_v31, 16 }
  0x6d   : > { %368 = vst [vmem:[#allocation2 + $0xa8] sm:$0x1] %v367_v63  ;;  %424 = vst [vmem:[#allocation2 + $0xb0] sm:$0x1] %v423_v2  ;;  %v308_v6 = vld [vmem:[%s9886_s8 + $0xe0] sm:$0xff]  ;;  %v857_v14 = vor.u32 %v855_v49, %v854_v60  ;;  %v858_v15 = vrot.slane %v854_v60, 4 }
  0x6e   : > { %v10268_v13 = vld [vmem:[#allocation2 + $0x88] sm:$0xf]  ;;  %v872_v16 = vshll.u32 %v8988_v31, 16  ;;  %v1975_v12 = vor.u32 %v1974_v33, %v1970_v3  ;;  %v10273_v21 = vld [vmem:[#allocation2 + $0x8c] ss:$0 sps:$4 sm:$0x11]   ;;  %v865_v40 = vor.u32 %v863_v1, %v862_v18  ;;  %v8990_v44 = vpack.c.bf16 %v308_v6, %v308_v6 }
  0x6f   : > { %v10271_v20 = vcombine.low %v1689_v8, %v10268_v13  ;;  %v867_v42 = vrot.slane %v862_v18, 4  ;;  %v1054_v22 = vld [vmem:[#allocation2 + $0x9c] sm:$0xf]  ;;  %v871_v24 = vrot.slane %v869_v9, 7  ;;  %v877_v55 = vshrl.u32 %v10237_v32, 16  ;;  %v309_v34 = vld [vmem:[%s9886_s8 + $0xe8] sm:$0xff] }
  0x70   : > { %v1055_v23 = vsel %vm9917_vm8, %v857_v14, %v1054_v22  ;;  %v880_v25 = vshll.u32 %v10237_v32, 16  ;;  %v1980_v26 = vsel %vm13992_vm9, %v1975_v12, %v1979_v7  ;;  %v1989_v30 = vshll.u32 %v10273_v21, 16  ;;  %v1691_v31 = vld [vmem:[#allocation2 + $0x90] sm:$0xf]  ;;  %v369_v6 = vld [vmem:[#allocation2 + $0xb4] sm:$0x1] }
  0x71   : > { %14050 = vst [vmem:[#allocation11_spill] sm:$0xff] %v10271_v20  ;;  %v1982_v27 = vshrl.u32 %v10271_v20, 16  ;;  %v1984_v29 = vshll.u32 %v10271_v20, 16  ;;  %1056 = vst [vmem:[#allocation2 + $0x9c] sm:$0xf] %v1055_v23  ;;  %2071 = vrot.lane.b32.xlu1 %v1980_v26, %s9780_s13  ;;  %v866_v5 = vsel %vm9910_vm7, %v858_v15, %v865_v40  ;;  %v874_v32 = vor.u32 %v872_v16, %v871_v24  ;;  %v310_v23 = vld [vmem:[%s9886_s8 + $0xf0] sm:$0xff] }
  0x72   : > { %v10285_v37 = vld [vmem:[#allocation2 + $0x94] sm:$0xf]  ;;  %v1058_v43 = vld [vmem:[#allocation2 + $0xa4] sm:$0x1]  ;;  %v1991_v48 = vrot.slane %v1989_v30, 1  ;;  %v875_v53 = vrot.slane %v871_v24, 4  ;;  %v8991_v1 = vpack.c.bf16 %v309_v34, %v309_v34 }
  0x73   : > { %v1986_v45 = vrot.slane %v1984_v29, 1  ;;  %v10290_v49 = vcombine.low %v1691_v31, %v10285_v37  ;;  %v10292_v51 = vld [vmem:[#allocation2 + $0x98] ss:$0 sps:$4 sm:$0x11]   ;;  %1057 = vst.msk [vmem:[#allocation2 + $0xa0] sm:$0xf] %vm13995_vm4, %v866_v5  ;;  %v1059_v3 = vsel %vm9833_vm2, %v867_v42, %v1058_v43 }
  0x74   : > { %1060 = vst [vmem:[#allocation2 + $0xa4] sm:$0x1] %v1059_v3  ;;  %v879_v54 = vrot.slane %v877_v55, 7  ;;  %v1061_v59 = vld [vmem:[#allocation2 + $0xa8] sm:$0xf]  ;;  %v2001_v7 = vshll.u32 %v10292_v51, 16 }
  0x75   : > { %14051 = vst [vmem:[#allocation12_spill] sm:$0xff] %v10290_v49  ;;  %v1065_v60 = vld [vmem:[#allocation2 + $0xb0] sm:$0x1]  ;;  %v1987_v63 = vor.u32 %v1986_v45, %v1982_v27  ;;  %v1994_v2 = vshrl.u32 %v10290_v49, 16  ;;  %v1996_v33 = vshll.u32 %v10290_v49, 16  ;;  %v1062_v9 = vsel %vm9917_vm8, %v874_v32, %v1061_v59  ;;  %v311_v5 = vld [vmem:[%s9886_s8 + $0xf8] sm:$0xff] }
  0x76   : > { %v882_v8 = vor.u32 %v880_v25, %v879_v54  ;;  %v884_v18 = vrot.slane %v879_v54, 4  ;;  %v425_v14 = vld [vmem:[#allocation2 + $0xbc] sm:$0x1]  ;;  %v886_v15 = vshrl.u32 %v8990_v44, 16  ;;  %v2003_v40 = vrot.slane %v2001_v7, 1 }
  0x77   : > { %v1992_v16 = vsel %vm13992_vm9, %v1987_v63, %v1991_v48  ;;  %v1998_v12 = vrot.slane %v1996_v33, 1  ;;  %1063 = vst [vmem:[#allocation2 + $0xa8] sm:$0xf] %v1062_v9  ;;  %v370_v42 = vsel %vm9833_vm2, 0, %v369_v6  ;;  %v1717_v22 = vld [vmem:[#allocation2 + $0xc] sm:$0xe]  ;;  %v8992_v59 = vpack.c.bf16 %v310_v23, %v310_v23 }
  0x78   : > { %2073 = vrot.lane.b32.xlu0 %v1992_v16, %s9780_s13  ;;  %v1693_v24 = vld [vmem:[#allocation2 + $0x9c] sm:$0xf]  ;;  %v883_v55 = vsel %vm9910_vm7, %v875_v53, %v882_v8  ;;  %v1066_v25 = vsel %vm9833_vm2, %v884_v18, %v1065_v60  ;;  %371 = vst [vmem:[#allocation2 + $0xb4] sm:$0x1] %v370_v42  ;;  %v426_v26 = vsel %vm9843_vm5, 0, %v425_v14  ;;  %v888_v27 = vrot.slane %v886_v15, 7 }
  0x79   : > { %v1999_v29 = vor.u32 %v1998_v12, %v1994_v2  ;;  %1064 = vst.msk [vmem:[#allocation2 + $0xac] sm:$0xf] %vm13995_vm4, %v883_v55  ;;  %1067 = vst [vmem:[#allocation2 + $0xb0] sm:$0x1] %v1066_v25  ;;  %v889_v30 = vshll.u32 %v8990_v44, 16  ;;  %v894_v31 = vshrl.u32 %v8991_v1, 16  ;;  %v8450_v45 = vcombine.low %v1717_v22, %v9971_v52 }
  0x7a   : > { %427 = vst [vmem:[#allocation2 + $0xbc] sm:$0x1] %v426_v26  ;;  %v897_v34 = vshll.u32 %v8991_v1, 16  ;;  %v10315_v43 = vld [vmem:[#allocation2 + $0xa0] sm:$0xf]  ;;  %v892_v32 = vrot.slane %v888_v27, 4  ;;  %v8993_v33 = vpack.c.bf16 %v311_v5, %v311_v5 }
  0x7b   : > { %vm13993_vm10 = vcmask 1046528   ;;  %vm13994_vm11 = vcmask 523264   ;;  %v2004_v48 = vsel %vm13992_vm9, %v1999_v29, %v2003_v40  ;;  %v10320_v3 = vcombine.low %v1693_v24, %v10315_v43  ;;  %v10322_v53 = vld [vmem:[#allocation2 + $0xa4] ss:$0 sps:$4 sm:$0x11]  }
  0x7c   : > { %v896_v54 = vrot.slane %v894_v31, 7  ;;  %2075 = vrot.lane.b32.xlu1 %v2004_v48, %s9780_s13  ;;  %v891_v44 = vor.u32 %v889_v30, %v888_v27  ;;  %v2133_v60 = vrot.slane %v8450_v45, 1  ;;  %v2134_v1 = vrot.slane %v9981_v58, 1  ;;  %v372_v63 = vld [vmem:[#allocation2 + $0xc0] sm:$0x1] }
  0x7d   : > { %14052 = vst [vmem:[#allocation13_spill] sm:$0xff] %v10320_v3  ;;  %v428_v2 = vld [vmem:[#allocation2 + $0xc8] sm:$0x1]  ;;  %v2006_v52 = vshrl.u32 %v10320_v3, 16  ;;  %v2008_v7 = vshll.u32 %v10320_v3, 16  ;;  %v2013_v8 = vshll.u32 %v10322_v53, 16 }
  0x7e   : > { %v899_v18 = vor.u32 %v897_v34, %v896_v54  ;;  %v1695_v9 = vld [vmem:[#allocation2 + $0xa8] sm:$0xf]  ;;  %v901_v6 = vrot.slane %v896_v54, 4  ;;  %v2135_v14 = vsel %vm13993_vm10, %v2133_v60, %v2134_v1  ;;  %v373_v15 = vsel %vm9833_vm2, 0, %v372_v63  ;;  %v1088_v11 = vld [vmem:[#allocation2 + $0x24] sm:$0xf] }
  0x7f   : > { %v429_v58 = vsel %vm9843_vm5, 0, %v428_v2  ;;  %v2010_v16 = vrot.slane %v2008_v7, 1  ;;  %v2015_v12 = vrot.slane %v2013_v8, 1  ;;  %v1068_v42 = vld [vmem:[#allocation2 + $0xb4] sm:$0xf]  ;;  %8502 = vmatprep.mubr.msk.bf16.mxu0 %vm13994_vm11, %v2135_v14  ;;  %v903_v22 = vshrl.u32 %v8992_v59, 16 }
  0x80   : > { %v900_v40 = vsel %vm9910_vm7, %v892_v32, %v899_v18  ;;  %374 = vst [vmem:[#allocation2 + $0xc0] sm:$0x1] %v373_v15  ;;  %430 = vst [vmem:[#allocation2 + $0xc8] sm:$0x1] %v429_v58  ;;  %v10337_v23 = vld [vmem:[#allocation2 + $0xac] sm:$0xf]  ;;  %v1069_v24 = vsel %vm9917_vm8, %v891_v44, %v1068_v42 }
  0x81   : > { %1071 = vst.msk [vmem:[#allocation2 + $0xb8] sm:$0xf] %vm13995_vm4, %v900_v40  ;;  %v1072_v55 = vld [vmem:[#allocation2 + $0xbc] sm:$0x1]  ;;  %v2011_v25 = vor.u32 %v2010_v16, %v2006_v52  ;;  %v10343_v26 = vcombine.low %v1695_v9, %v10337_v23  ;;  %1070 = vst [vmem:[#allocation2 + $0xb4] sm:$0xf] %v1069_v24 }
  0x82   : > { %v10345_v27 = vld [vmem:[#allocation2 + $0xb0] ss:$0 sps:$4 sm:$0x11]   ;;  %v1073_v29 = vsel %vm9833_vm2, %v901_v6, %v1072_v55  ;;  %v905_v30 = vrot.slane %v903_v22, 7  ;;  %v906_v31 = vshll.u32 %v8992_v59, 16  ;;  %v911_v34 = vshrl.u32 %v8993_v33, 16 }
  0x83   : > { %14053 = vst [vmem:[#allocation14_spill] sm:$0xff] %v10343_v26  ;;  %1074 = vst [vmem:[#allocation2 + $0xbc] sm:$0x1] %v1073_v29  ;;  %v914_v5 = vshll.u32 %v8993_v33, 16  ;;  %v2016_v32 = vsel %vm13992_vm9, %v2011_v25, %v2015_v12  ;;  %v2018_v45 = vshrl.u32 %v10343_v26, 16  ;;  %v2020_v48 = vshll.u32 %v10343_v26, 16 }
  0x84   : > { %v2025_v54 = vshll.u32 %v10345_v27, 16  ;;  %v324_v44 = vld [vmem:[#allocation2] sm:$0x1]  ;;  %2077 = vrot.lane.b32.xlu0 %v2016_v32, %s9780_s13  ;;  %v908_v60 = vor.u32 %v906_v31, %v905_v30  ;;  %v909_v1 = vrot.slane %v905_v30, 4  ;;  %v913_v63 = vrot.slane %v911_v34, 7 }
  0x85   : > { %v380_v2 = vld [vmem:[#allocation2 + $0x8] sm:$0x1]  ;;  %v2022_v52 = vrot.slane %v2020_v48, 1  ;;  %v325_v59 = vsel %vm9833_vm2, 0, %v324_v44  ;;  %v1084_v16 = vld [vmem:[#allocation2 + $0xc] sm:$0xf] }
  0x86   : > { %v2027_v7 = vrot.slane %v2025_v54, 1  ;;  %v381_v33 = vsel %vm9843_vm5, 0, %v380_v2  ;;  %v916_v8 = vor.u32 %v914_v5, %v913_v63  ;;  %v918_v18 = vrot.slane %v913_v63, 4  ;;  %326 = vst [vmem:[#allocation2] sm:$0x1] %v325_v59 }
  0x87   : > { %v1075_v9 = vld [vmem:[#allocation2 + $0xc0] sm:$0xf]  ;;  %v1079_v6 = vld [vmem:[#allocation2 + $0xc8] sm:$0x1]  ;;  %382 = vst [vmem:[#allocation2 + $0x8] sm:$0x1] %v381_v33  ;;  %v2023_v14 = vor.u32 %v2022_v52, %v2018_v45 }
  0x88   : > { %v10358_v15 = vld [vmem:[#allocation2 + $0xb8] sm:$0xf]  ;;  %v1076_v58 = vsel %vm9917_vm8, %v908_v60, %v1075_v9  ;;  %v1697_v12 = vld [vmem:[#allocation2 + $0xb4] sm:$0xf]  ;;  %v917_v40 = vsel %vm9910_vm7, %v909_v1, %v916_v8  ;;  %v1080_v42 = vsel %vm9833_vm2, %v918_v18, %v1079_v6  ;;  %v10366_v22 = vld [vmem:[#allocation2 + $0x10] sm:$0xf] }
  0x89   : > { %1077 = vst [vmem:[#allocation2 + $0xc0] sm:$0xf] %v1076_v58  ;;  %v2028_v24 = vsel %vm13992_vm9, %v2023_v14, %v2027_v7  ;;  %v10370_v55 = vcombine.low %v1697_v12, %v10358_v15  ;;  %1078 = vst.msk [vmem:[#allocation2 + $0xc4] sm:$0xf] %vm13995_vm4, %v917_v40  ;;  %v10375_v29 = vld [vmem:[#allocation2 + $0x4] sm:$0xf]  ;;  %v10378_v30 = vcombine.low %v1084_v16, %v10366_v22 }
  0x8a   : > { %v10372_v25 = vld [vmem:[#allocation2 + $0xbc] ss:$0 sps:$4 sm:$0x11]   ;;  %1081 = vst [vmem:[#allocation2 + $0xc8] sm:$0x1] %v1080_v42  ;;  %2079 = vrot.lane.b32.xlu1 %v2028_v24, %s9780_s13 }
  0x8b   : > { %14054 = vst [vmem:[#allocation15_spill] sm:$0xff] %v10370_v55  ;;  %14055 = vst [vmem:[#allocation16_spill] sm:$0xff] %v10378_v30  ;;  %v10381_v31 = vld [vmem:[#allocation2 + $0x14] ss:$0 sps:$4 sm:$0x11]   ;;  %v2030_v34 = vshrl.u32 %v10370_v55, 16 }
  0x8c   : > { %v2032_v5 = vshll.u32 %v10370_v55, 16  ;;  %v2037_v32 = vshll.u32 %v10372_v25, 16  ;;  %v1290_v45 = vshll.u32 %v10378_v30, 16  ;;  %v1086_v48 = vld [vmem:[#allocation2 + $0x18] sm:$0xf]  ;;  %v1288_v2 = vshrl.u32 %v10378_v30, 16 }
  0x8d   : > { %v1082_v60 = vld [vmem:[#allocation2] sm:$0xf]  ;;  %v1295_v33 = vshll.u32 %v10381_v31, 16  ;;  %v10394_v8 = vld [vmem:[#allocation2 + $0x1c] sm:$0xf] }
  0x8e   : > { %v2034_v54 = vrot.slane %v2032_v5, 1  ;;  %v2039_v44 = vrot.slane %v2037_v32, 1  ;;  %v10388_v1 = vcombine.low %v1082_v60, %v10375_v29  ;;  %v10390_v63 = vld [vmem:[#allocation2 + $0x8] ss:$0 sps:$4 sm:$0x11]   ;;  %v1292_v59 = vrot.slane %v1290_v45, 1 }
  0x8f   : > { %v10401_v14 = vcombine.low %v1086_v48, %v10394_v8  ;;  %v1283_v40 = vshll.u32 %v10390_v63, 16  ;;  %v10411_v24 = vld [vmem:[#allocation2 + $0x20] ss:$0 sps:$4 sm:$0x11]   ;;  %v10419_v46 = vld [vmem:[#allocation2 + $0x28] sm:$0xf] }
  0x90   : > { %14056 = vst [vmem:[#allocation17_spill] sm:$0xff] %v10388_v1  ;;  %v2035_v52 = vor.u32 %v2034_v54, %v2030_v34  ;;  %v1699_v7 = vld [vmem:[#allocation2 + $0xc0] sm:$0xf]  ;;  %v10396_v18 = vld [vmem:[#allocation2 + $0xc4] sm:$0xf]  ;;  %v1276_v9 = vshrl.u32 %v10388_v1, 16 }
  0x91   : > { %v1278_v6 = vshll.u32 %v10388_v1, 16  ;;  %14057 = vst [vmem:[#allocation18_spill] sm:$0xff] %v10401_v14  ;;  %v10405_v16 = vcombine.low %v1699_v7, %v10396_v18  ;;  %v10407_v12 = vld [vmem:[#allocation2 + $0xc8] ss:$0 sps:$4 sm:$0x11]   ;;  %v1300_v34 = vshrl.u32 %v10401_v14, 16 }
  0x92   : > { %v2040_v58 = vsel %vm13992_vm9, %v2035_v52, %v2039_v44  ;;  %v1302_v5 = vshll.u32 %v10401_v14, 16  ;;  %v2049_v48 = vshll.u32 %v10407_v12, 16  ;;  %v1718_v54 = vld [vmem:[#allocation2 + $0x18] sm:$0xe]  ;;  %v1285_v44 = vrot.slane %v1283_v40, 1 }
  0x93   : > { %14058 = vst [vmem:[#allocation19_spill] sm:$0xff] %v10405_v16  ;;  %2081 = vrot.lane.b32.xlu0 %v2040_v58, %s9780_s13  ;;  %v1280_v42 = vrot.slane %v1278_v6, 1  ;;  %v2042_v32 = vshrl.u32 %v10405_v16, 16  ;;  %v2044_v45 = vshll.u32 %v10405_v16, 16  ;;  %v1307_v7 = vshll.u32 %v10411_v24, 16 }
  0x94   : > { %v1304_v52 = vrot.slane %v1302_v5, 1  ;;  %v2051_v6 = vrot.slane %v2049_v48, 1  ;;  %v9636_v41 = vld [vmem:[#allocation2 + $0x1c] sm:$0xf]  ;;  %v1719_v0 = vld [vmem:[#allocation2 + $0x24] sm:$0xe]  ;;  %v1293_v40 = vor.u32 %v1292_v59, %v1288_v2 }
  0x95   : > { %v1281_v60 = vor.u32 %v1280_v42, %v1276_v9  ;;  %v2046_v58 = vrot.slane %v2044_v45, 1  ;;  %v8451_v30 = vcombine.low %v1718_v54, %v9636_v41  ;;  %v1309_v4 = vrot.slane %v1307_v7, 1  ;;  %v10426_v5 = vld [vmem:[#allocation2 + $0x2c] ss:$0 sps:$4 sm:$0x11]  }
  0x96   : > { %v1305_v1 = vor.u32 %v1304_v52, %v1300_v34  ;;  %v1297_v9 = vrot.slane %v1295_v33, 1  ;;  %v10424_v42 = vcombine.low %v1088_v11, %v10419_v46  ;;  %v1090_v48 = vld [vmem:[#allocation2 + $0x30] sm:$0xf]  ;;  %v10429_v55 = vld [vmem:[#allocation2 + $0x34] sm:$0xf] }
  0x97   : > { %v1286_v14 = vsel %vm13992_vm9, %v1281_v60, %v1285_v44  ;;  %v2047_v16 = vor.u32 %v2046_v58, %v2042_v32  ;;  %v10436_v2 = vrot.slane %v8451_v30, 1  ;;  %v10439_v11 = vcombine.low %v1090_v48, %v10429_v55  ;;  %v10441_v59 = vld [vmem:[#allocation2 + $0x38] ss:$0 sps:$4 sm:$0x11]   ;;  %v10445_v54 = vld [vmem:[#allocation2 + $0x40] sm:$0xf] }
  0x98   : > { %1467 = vrot.lane.b32.xlu0 %v1286_v14, %s9780_s13  ;;  %14059 = vst [vmem:[#allocation20_spill] sm:$0xff] %v10424_v42  ;;  %v1310_v45 = vsel %vm13992_vm9, %v1305_v1, %v1309_v4  ;;  %v1312_v34 = vshrl.u32 %v10424_v42, 16  ;;  %v1314_v32 = vshll.u32 %v10424_v42, 16  ;;  %v1319_v14 = vshll.u32 %v10426_v5, 16  ;;  %v9637_v44 = vld [vmem:[#allocation2 + $0x28] sm:$0xf] }
  0x99   : > { %v2052_v41 = vsel %vm13992_vm9, %v2047_v16, %v2051_v6  ;;  %14060 = vst [vmem:[#allocation21_spill] sm:$0xff] %v10439_v11  ;;  %v1298_v4 = vsel %vm13992_vm9, %v1293_v40, %v1297_v9  ;;  %v1092_v16 = vld [vmem:[#allocation2 + $0x3c] sm:$0xf]  ;;  %v8452_v60 = vcombine.low %v1719_v0, %v9637_v44  ;;  %v1324_v52 = vshrl.u32 %v10439_v11, 16  ;;  %v1725_v26 = vld [vmem:[#allocation2 + $0x6c] sm:$0xe] }
  0x9a   : > { %2083 = vrot.lane.b32.xlu1 %v2052_v41, %s9780_s13  ;;  %v1316_v1 = vrot.slane %v1314_v32, 1  ;;  %v1321_v33 = vrot.slane %v1319_v14, 1  ;;  %v1326_v30 = vshll.u32 %v10439_v11, 16  ;;  %v1331_v7 = vshll.u32 %v10441_v59, 16  ;;  %v10468_v11 = vld [vmem:[#allocation2 + $0x4c] sm:$0xf] }
  0x9b   : > { %v10450_v58 = vld [vmem:[#allocation2 + $0x20] ss:$0 sps:$4 sm:$0x11]   ;;  %v10454_v9 = vcombine.low %v1092_v16, %v10445_v54  ;;  %v10458_v48 = vld [vmem:[#allocation2 + $0x2c] ss:$0 sps:$4 sm:$0x11]   ;;  %v8458_v32 = vcombine.low %v1725_v26, %v10186_v28 }
  0x9c   : > { %1471 = vrot.lane.b32.xlu0 %v1310_v45, %s9780_s13  ;;  %v1317_v40 = vor.u32 %v1316_v1, %v1312_v34  ;;  %v10456_v45 = vld [vmem:[#allocation2 + $0x44] ss:$0 sps:$4 sm:$0x11]   ;;  %v10462_v41 = vld [vmem:[#allocation2 + $0x38] ss:$0 sps:$4 sm:$0x11]  }
  0x9d   : > { %14061 = vst [vmem:[#allocation22_spill] sm:$0xff] %v10454_v9  ;;  %v1328_v14 = vrot.slane %v1326_v30, 1  ;;  %v1333_v44 = vrot.slane %v1331_v7, 1  ;;  %v1336_v34 = vshrl.u32 %v10454_v9, 16  ;;  %v1338_v1 = vshll.u32 %v10454_v9, 16 }
  0x9e   : > { %1469 = vrot.lane.b32.xlu1 %v1298_v4, %s9780_s13  ;;  %v1322_v6 = vsel %vm13992_vm9, %v1317_v40, %v1321_v33  ;;  %v1094_v16 = vld [vmem:[#allocation2 + $0x48] sm:$0xf]  ;;  %v10470_v42 = vrot.slane %v8452_v60, 1  ;;  %v1343_v4 = vshll.u32 %v10456_v45, 16  ;;  %v1096_v49 = vld [vmem:[#allocation2 + $0x54] sm:$0xf] }
  0x9f   : > { %v1329_v0 = vor.u32 %v1328_v14, %v1324_v52  ;;  %v10473_v3 = vld [vmem:[#allocation2 + $0x44] ss:$0 sps:$4 sm:$0x11]   ;;  %v1340_v7 = vrot.slane %v1338_v1, 1  ;;  %v10477_v33 = vcombine.low %v1094_v16, %v10468_v11  ;;  %v2158_v14 = vrot.slane %v10202_v39, 1 }
  0xa0   : > { %v10479_v40 = vld [vmem:[#allocation2 + $0x50] ss:$0 sps:$4 sm:$0x11]   ;;  %v1345_v52 = vrot.slane %v1343_v4, 1  ;;  %v2157_v20 = vrot.slane %v8458_v32, 1  ;;  %v2161_v28 = vrot.slane %v10243_v36, 1 }
  0xa1   : > { %14062 = vst [vmem:[#allocation23_spill] sm:$0xff] %v10477_v33  ;;  %v1334_v60 = vsel %vm13992_vm9, %v1329_v0, %v1333_v44  ;;  %v1341_v9 = vor.u32 %v1340_v7, %v1336_v34  ;;  %v1348_v30 = vshrl.u32 %v10477_v33, 16  ;;  %v1350_v1 = vshll.u32 %v10477_v33, 16  ;;  %v10489_v17 = vld [vmem:[#allocation2 + $0x58] sm:$0xf] }
  0xa2   : > { %1473 = vrot.lane.b32.xlu1 %v1322_v6, %s9780_s13  ;;  %1475 = vrot.lane.b32.xlu0 %v1334_v60, %s9780_s13  ;;  %v1355_v16 = vshll.u32 %v10479_v40, 16  ;;  %14063 = vst [vmem:[#allocation24_spill] sm:$0xff] %v10489_v17  ;;  %v1720_v26 = vld [vmem:[#allocation2 + $0x30] sm:$0xe]  ;;  %v10494_v44 = vcombine.low %v1096_v49, %v10489_v17  ;;  %v10500_v4 = vsel %vm13993_vm10, %v2157_v20, %v2158_v14  ;;  %v1726_v32 = vld [vmem:[#allocation2 + $0x78] sm:$0xe] }
  0xa3   : > { %v1346_v6 = vsel %vm13992_vm9, %v1341_v9, %v1345_v52  ;;  %v1352_v0 = vrot.slane %v1350_v1, 1  ;;  %v10496_v34 = vld [vmem:[#allocation2 + $0x5c] ss:$0 sps:$4 sm:$0x11]   ;;  %14066 = vst [vmem:[#allocation27_spill] sm:$0xff] %v10500_v4  ;;  %v8459_v1 = vcombine.low %v1726_v32, %v10235_v56  ;;  %v2164_v4 = vrot.slane %v10273_v21, 1 }
  0xa4   : > { %v1357_v39 = vrot.slane %v1355_v16, 1  ;;  %14064 = vst [vmem:[#allocation25_spill] sm:$0xff] %v10494_v44  ;;  %14065 = vst [vmem:[#allocation26_spill] sm:$0xff] %v10496_v34  ;;  %v1360_v60 = vshrl.u32 %v10494_v44, 16  ;;  %v1362_v36 = vshll.u32 %v10494_v44, 16  ;;  %v1367_v9 = vshll.u32 %v10496_v34, 16 }
  0xa5   : > { %v1353_v7 = vor.u32 %v1352_v0, %v1348_v30  ;;  %v1098_v52 = vld [vmem:[#allocation2 + $0x60] sm:$0xf]  ;;  %v1099_v49 = vld [vmem:[#allocation2 + $0x64] sm:$0xf]  ;;  %v9642_v14 = vld [vmem:[#allocation2 + $0x34] sm:$0xf] }
  0xa6   : > { %1477 = vrot.lane.b32.xlu1 %v1346_v6, %s9780_s13  ;;  %v1727_v16 = vld [vmem:[#allocation2 + $0x84] sm:$0xe]  ;;  %v1364_v38 = vrot.slane %v1362_v36, 1  ;;  %v1369_v6 = vrot.slane %v1367_v9, 1  ;;  %v10507_v62 = vcombine.low %v1098_v52, %v1099_v49  ;;  %v8453_v30 = vcombine.low %v1720_v26, %v9642_v14  ;;  %v1100_v34 = vld [vmem:[#allocation2 + $0x6c] sm:$0xf] }
  0xa7   : > { %v1358_v33 = vsel %vm13992_vm9, %v1353_v7, %v1357_v39  ;;  %v9363_v20 = vld [vmem:[#allocation2 + $0x68] ss:$0 sps:$4 sm:$0x11]   ;;  %v2160_v0 = vrot.slane %v8459_v1, 1  ;;  %v8460_v44 = vcombine.low %v1727_v16, %v10268_v13  ;;  %v1101_v56 = vld [vmem:[#allocation2 + $0x70] sm:$0xf] }
  0xa8   : > { %1479 = vrot.lane.b32.xlu0 %v1358_v33, %s9780_s13  ;;  %v1365_v32 = vor.u32 %v1364_v38, %v1360_v60  ;;  %v1372_v17 = vshrl.u32 %v10507_v62, 16  ;;  %v1374_v39 = vshll.u32 %v10507_v62, 16  ;;  %v1379_v7 = vshll.u32 %v9363_v20, 16  ;;  %v9365_v33 = vld [vmem:[#allocation2 + $0x74] ss:$0 sps:$4 sm:$0x11]  }
  0xa9   : > { %v10515_v36 = vsel %vm13993_vm10, %v2160_v0, %v2161_v28  ;;  %v2163_v9 = vrot.slane %v8460_v44, 1  ;;  %v10517_v26 = vcombine.low %v1100_v34, %v1101_v56  ;;  %v14067_v52 = vrot.slane %v10450_v58, 1  ;;  %v1728_v1 = vld [vmem:[#allocation2 + $0x90] sm:$0xe]  ;;  %v9336_v49 = vld [vmem:[%s13950_s1] sm:$0xff]  }
  0xaa   : > { %v1370_v21 = vsel %vm13992_vm9, %v1365_v32, %v1369_v6  ;;  %v1376_v38 = vrot.slane %v1374_v39, 1  ;;  %v1381_v60 = vrot.slane %v1379_v7, 1  ;;  %v10527_v28 = vld [vmem:[#allocation2 + $0x3c] sm:$0xe]  ;;  %v1391_v34 = vshll.u32 %v9365_v33, 16  ;;  %v2054_v32 = vpop.permute.xlu0 %2053 }
  0xab   : > { %v2138_v13 = vsel %vm13993_vm10, %v10436_v2, %v14067_v52  ;;  %1481 = vrot.lane.b32.xlu1 %v1370_v21, %s9780_s13  ;;  %v10531_v44 = vsel %vm13993_vm10, %v2163_v9, %v2164_v4  ;;  %v1384_v58 = vshrl.u32 %v10517_v26, 16  ;;  %v1386_v2 = vshll.u32 %v10517_v26, 16  ;;  %v1102_v16 = vld [vmem:[#allocation2 + $0x78] sm:$0xf]  ;;  %v1103_v56 = vld [vmem:[#allocation2 + $0x7c] sm:$0xf] }
  0xac   : > { %v10535_v6 = vrot.slane %v8453_v30, 1  ;;  %v1377_v20 = vor.u32 %v1376_v38, %v1372_v17  ;;  %v8461_v14 = vcombine.low %v1728_v1, %v10285_v37  ;;  %v2167_v0 = vrot.slane %v10292_v51, 1  ;;  %v10539_v39 = vld [vmem:[#allocation2 + $0x50] ss:$0 sps:$4 sm:$0x11]   ;;  %v9339_v38 = vld [vmem:[%s13950_s1 + $0x8] sm:$0xff]  }
  0xad   : > { %v2149_v4 = vrot.slane %v10539_v39, 1  ;;  %v1388_v7 = vrot.slane %v1386_v2, 1  ;;  %v1393_v9 = vrot.slane %v1391_v34, 1  ;;  %v10542_v52 = vcombine.low %v1102_v16, %v1103_v56  ;;  %v9368_v21 = vld [vmem:[#allocation2 + $0x80] ss:$0 sps:$4 sm:$0x11]  }
  0xae   : > { %v2182_v30 = vsel %vm13994_vm11, %v9979_v57, %v2054_v32  ;;  %v1382_v17 = vsel %vm13992_vm9, %v1377_v20, %v1381_v60  ;;  %v2166_v33 = vrot.slane %v8461_v14, 1  ;;  %v1729_v37 = vld [vmem:[#allocation2 + $0x9c] sm:$0xe]  ;;  %v2170_v51 = vrot.slane %v10322_v53, 1  ;;  %v9644_v57 = vld [vmem:[#allocation2 + $0x40] sm:$0xf]  ;;  %v2056_v32 = vpop.permute.xlu0 %2055 }
  0xaf   : > { %2407 = vmatmul.mubr.bf16.vlgmr.msra.gmra.mrb[0].mxu0 %v2182_v30  ;;  %1483 = vrot.lane.b32.xlu0 %v1382_v17, %s9780_s13  ;;  %v1389_v1 = vor.u32 %v1388_v7, %v1384_v58  ;;  %v1396_v2 = vshrl.u32 %v10542_v52, 16  ;;  %v1398_v34 = vshll.u32 %v10542_v52, 16  ;;  %v1403_v16 = vshll.u32 %v9368_v21, 16  ;;  %v1104_v14 = vld [vmem:[#allocation2 + $0x84] sm:$0xf] }
  0xb0   : > { %2656 = vmatpush1.bf16.msra.mxu0 %v9336_v49  ;;  %8503 = vmatprep.mubr.msk.bf16.mxu0 %vm13994_vm11, %v2138_v13  ;;  %v8454_v60 = vcombine.low %v10527_v28, %v9644_v57  ;;  %v10557_v53 = vsel %vm13993_vm10, %v2166_v33, %v2167_v0  ;;  %v8462_v20 = vcombine.low %v1729_v37, %v10315_v43  ;;  %v1105_v56 = vld [vmem:[#allocation2 + $0x88] sm:$0xf]  ;;  %v14068_v58 = vmov 0   ;;  %v9371_v13 = vld [vmem:[#allocation2 + $0x8c] ss:$0 sps:$4 sm:$0x11]  }
  0xb1   : > { %2657 = vmatprep.subr.bf16.mxu0 %v14068_v58  ;;  %v1394_v7 = vsel %vm13992_vm9, %v1389_v1, %v1393_v9  ;;  %v1400_v30 = vrot.slane %v1398_v34, 1  ;;  %v1405_v21 = vrot.slane %v1403_v16, 1  ;;  %v10562_v49 = vcombine.low %v1104_v14, %v1105_v56  ;;  %v1730_v17 = vld [vmem:[#allocation2 + $0xa8] sm:$0xe]  ;;  %v9344_v43 = vld [vmem:[%s13950_s1 + $0x10] sm:$0xff]  }
  0xb2   : > { %1485 = vrot.lane.b32.xlu1 %v1394_v7, %s9780_s13  ;;  %v2169_v28 = vrot.slane %v8462_v20, 1  ;;  %v2173_v0 = vrot.slane %v10345_v27, 1  ;;  %v1415_v1 = vshll.u32 %v9371_v13, 16  ;;  %v2185_v34 = vsel %vm13994_vm11, %v9998_v10, %v2056_v32  ;;  %v1107_v14 = vld [vmem:[#allocation2 + $0x94] sm:$0xf] }
  0xb3   : > { %v1401_v33 = vor.u32 %v1400_v30, %v1396_v2  ;;  %v1408_v37 = vshrl.u32 %v10562_v49, 16  ;;  %v1410_v9 = vshll.u32 %v10562_v49, 16  ;;  %v14069_v16 = vrot.slane %v10458_v48, 1  ;;  %v1106_v2 = vld [vmem:[#allocation2 + $0x90] sm:$0xf] }
  0xb4   : > { %2658 = vmatpush1.bf16.msra.mxu0 %v9339_v38  ;;  %v10578_v27 = vsel %vm13993_vm10, %v2169_v28, %v2170_v51  ;;  %v8463_v20 = vcombine.low %v1730_v17, %v10337_v23  ;;  %v10582_v56 = vrot.slane %v8454_v60, 1  ;;  %v1417_v38 = vrot.slane %v1415_v1, 1  ;;  %v9374_v32 = vld [vmem:[#allocation2 + $0x98] ss:$0 sps:$4 sm:$0x11]  }
  0xb5   : > { %v2141_v57 = vsel %vm13993_vm10, %v10470_v42, %v14069_v16  ;;  %2659 = vmatprep.subr.bf16.mxu0 %v14068_v58  ;;  %v1406_v7 = vsel %vm13992_vm9, %v1401_v33, %v1405_v21  ;;  %v1412_v10 = vrot.slane %v1410_v9, 1  ;;  %v10586_v42 = vcombine.low %v1106_v2, %v1107_v14  ;;  %v1731_v51 = vld [vmem:[#allocation2 + $0xb4] sm:$0xe]  ;;  %v1108_v23 = vld [vmem:[#allocation2 + $0x9c] sm:$0xf]  ;;  %v2058_v33 = vpop.permute.xlu1 %2057 }
  0xb6   : > { %1487 = vrot.lane.b32.xlu0 %v1406_v7, %s9780_s13  ;;  %v2172_v48 = vrot.slane %v8463_v20, 1  ;;  %v2176_v30 = vrot.slane %v10372_v25, 1  ;;  %v1427_v28 = vshll.u32 %v9374_v32, 16  ;;  %v8464_v60 = vcombine.low %v1731_v51, %v10358_v15  ;;  %v1109_v17 = vld [vmem:[#allocation2 + $0xa0] sm:$0xf]  ;;  %v9347_v9 = vld [vmem:[%s13950_s1 + $0x18] sm:$0xff]  }
  0xb7   : > { %2415 = vmatmul.mubr.bf16.gmra.mrb[4].mxu0 %v2185_v34  ;;  %v1413_v13 = vor.u32 %v1412_v10, %v1408_v37  ;;  %v2179_v21 = vrot.slane %v10407_v12, 1  ;;  %v10595_v1 = vld [vmem:[#allocation2 + $0x48] sm:$0xe]  ;;  %v1420_v37 = vshrl.u32 %v10586_v42, 16  ;;  %v1422_v15 = vshll.u32 %v10586_v42, 16 }
  0xb8   : > { %8504 = vmatprep.mubr.msk.bf16.mxu0 %vm13994_vm11, %v2141_v57  ;;  %2660 = vmatpush1.bf16.msra.mxu0 %v9344_v43  ;;  %v10598_v25 = vsel %vm13993_vm10, %v2172_v48, %v2173_v0  ;;  %v10602_v34 = vcombine.low %v1108_v23, %v1109_v17  ;;  %v9376_v12 = vld [vmem:[#allocation2 + $0xa4] ss:$0 sps:$4 sm:$0x11]   ;;  %v1429_v16 = vrot.slane %v1427_v28, 1  ;;  %v2175_v57 = vrot.slane %v8464_v60, 1 }
  0xb9   : > { %2661 = vmatprep.subr.bf16.mxu0 %v14068_v58  ;;  %v1418_v43 = vsel %vm13992_vm9, %v1413_v13, %v1417_v38  ;;  %v1424_v20 = vrot.slane %v1422_v15, 1  ;;  %v1439_v14 = vshll.u32 %v9376_v12, 16  ;;  %v1732_v7 = vld [vmem:[#allocation2 + $0xc0] sm:$0xe]  ;;  %v2188_v10 = vsel %vm13994_vm11, %v10011_v35, %v2058_v33  ;;  %v1110_v38 = vld [vmem:[#allocation2 + $0xa8] sm:$0xf] }
  0xba   : > { %1489 = vrot.lane.b32.xlu1 %v1418_v43, %s9780_s13  ;;  %v1432_v2 = vshrl.u32 %v10602_v34, 16  ;;  %v1434_v0 = vshll.u32 %v10602_v34, 16  ;;  %v10612_v32 = vsel %vm13993_vm10, %v2175_v57, %v2176_v30  ;;  %v8465_v48 = vcombine.low %v1732_v7, %v10396_v18  ;;  %v1111_v51 = vld [vmem:[#allocation2 + $0xac] sm:$0xf]  ;;  %v9350_v23 = vld [vmem:[%s13950_s1 + $0x20] sm:$0xff]  }
  0xbb   : > { %v1425_v13 = vor.u32 %v1424_v20, %v1420_v37  ;;  %v1441_v60 = vrot.slane %v1439_v14, 1  ;;  %v10618_v17 = vcombine.low %v1110_v38, %v1111_v51  ;;  %v9380_v15 = vld [vmem:[#allocation2 + $0xb0] ss:$0 sps:$4 sm:$0x11]   ;;  %v14070_v35 = vrot.slane %v10462_v41, 1  ;;  %v9355_v37 = vld [vmem:[%s13950_s1 + $0x28] sm:$0xff]   ;;  %v2060_v38 = vpop.permute.xlu1 %2059 }
  0xbc   : > { %2662 = vmatpush1.bf16.msra.mxu0 %v9347_v9  ;;  %v1436_v28 = vrot.slane %v1434_v0, 1  ;;  %v9645_v33 = vld [vmem:[#allocation2 + $0x4c] sm:$0xf]  ;;  %v2178_v9 = vrot.slane %v8465_v48, 1  ;;  %v1130_v12 = vld [vmem:[#allocation2] sm:$0xe] }
  0xbd   : > { %v2144_v30 = vsel %vm13993_vm10, %v10535_v6, %v14070_v35  ;;  %v8455_v18 = vcombine.low %v10595_v1, %v9645_v33  ;;  %2663 = vmatprep.subr.bf16.mxu0 %v14068_v58  ;;  %v1549_v43 = vrot.slane %v10390_v63, 1  ;;  %v1430_v57 = vsel %vm13992_vm9, %v1425_v13, %v1429_v16  ;;  %v1112_v0 = vld [vmem:[#allocation2 + $0xb4] sm:$0xf]  ;;  %v1113_v7 = vld [vmem:[#allocation2 + $0xb8] sm:$0xf] }
  0xbe   : > { %v1437_v20 = vor.u32 %v1436_v28, %v1432_v2  ;;  %v1444_v41 = vshrl.u32 %v10618_v17, 16  ;;  %v1446_v6 = vshll.u32 %v10618_v17, 16  ;;  %1491 = vrot.lane.b32.xlu0 %v1430_v57, %s9780_s13  ;;  %v10635_v1 = vsel %vm13993_vm10, %v2178_v9, %v2179_v21  ;;  %v1131_v13 = vld [vmem:[#allocation2 + $0xc] sm:$0xe]  ;;  %v2821_v39 = vld [vmem:[#allocation2 + $0x30] sm:$0xf] }
  0xbf   : > { %2423 = vmatmul.mubr.bf16.gmra.mrb[8].mxu0 %v2188_v10  ;;  %v1451_v14 = vshll.u32 %v9380_v15, 16  ;;  %v8402_v63 = vcombine.low %v1130_v12, %v10375_v29  ;;  %v1552_v48 = vrot.slane %v10381_v31, 1  ;;  %v10641_v51 = vcombine.low %v1112_v0, %v1113_v7  ;;  %v9384_v10 = vld [vmem:[#allocation2 + $0xbc] ss:$0 sps:$4 sm:$0x11]  }
  0xc0   : > { %8505 = vmatprep.mubr.msk.bf16.mxu0 %vm13994_vm11, %v2144_v30  ;;  %2664 = vmatpush1.bf16.msra.mxu0 %v9350_v23  ;;  %v1442_v16 = vsel %vm13992_vm9, %v1437_v20, %v1441_v60  ;;  %v1448_v2 = vrot.slane %v1446_v6, 1  ;;  %v8403_v28 = vcombine.low %v1131_v13, %v10366_v22  ;;  %v10646_v31 = vld [vmem:[#allocation2 + $0x54] sm:$0xe]  ;;  %v1463_v35 = vshll.u32 %v9384_v10, 16  ;;  %v2817_v30 = vld [vmem:[#allocation2 + $0x18] sm:$0xf] }
  0xc1   : > { %2665 = vmatprep.subr.bf16.mxu0 %v14068_v58  ;;  %1493 = vrot.lane.b32.xlu1 %v1442_v16, %s9780_s13  ;;  %v1453_v21 = vrot.slane %v1451_v14, 1  ;;  %v1548_v29 = vrot.slane %v8402_v63, 1  ;;  %v1456_v23 = vshrl.u32 %v10641_v51, 16  ;;  %v1458_v60 = vshll.u32 %v10641_v51, 16  ;;  %v2818_v20 = vld [vmem:[#allocation2 + $0x1c] sm:$0xf] }
  0xc2   : > { %v1449_v15 = vor.u32 %v1448_v2, %v1444_v41  ;;  %v2191_v33 = vsel %vm13994_vm11, %v10027_v61, %v2060_v38  ;;  %v2148_v9 = vrot.slane %v8455_v18, 1  ;;  %v1551_v57 = vrot.slane %v8403_v28, 1  ;;  %v9358_v22 = vld [vmem:[%s13950_s1 + $0x30] sm:$0xff]   ;;  %v9388_v63 = vld [vmem:[#allocation2 + $0x20] ss:$0 sps:$4 sm:$0x11]  }
  0xc3   : > { %v10653_v12 = vsel %vm13993_vm10, %v1548_v29, %v1549_v43  ;;  %v1460_v6 = vrot.slane %v1458_v60, 1  ;;  %v1465_v0 = vrot.slane %v1463_v35, 1  ;;  %v10659_v14 = vcombine.low %v2817_v30, %v2818_v20  ;;  %v2819_v7 = vld [vmem:[#allocation2 + $0x24] sm:$0xf]  ;;  %v2820_v38 = vld [vmem:[#allocation2 + $0x28] sm:$0xf]  ;;  %v2062_v60 = vpop.permute.xlu0 %2061 }
  0xc4   : > { %2666 = vmatpush1.bf16.msra.mxu0 %v9355_v37  ;;  %v1454_v41 = vsel %vm13992_vm9, %v1449_v15, %v1453_v21  ;;  %v14071_v61 = vrot.slane %v10473_v3, 1  ;;  %v10668_v43 = vsel %vm13993_vm10, %v1551_v57, %v1552_v48  ;;  %v1132_v37 = vld [vmem:[#allocation2 + $0x18] sm:$0xe]  ;;  %v1555_v29 = vrot.slane %v10411_v24, 1 }
  0xc5   : > { %2667 = vmatprep.subr.bf16.mxu0 %v14068_v58  ;;  %1495 = vrot.lane.b32.xlu0 %v1454_v41, %s9780_s13  ;;  %v9361_v16 = vld [vmem:[%s13950_s1 + $0x38] sm:$0xff]   ;;  %v1461_v2 = vor.u32 %v1460_v6, %v1456_v23  ;;  %v3010_v3 = vshrl.u32 %v10659_v14, 16  ;;  %v3012_v10 = vshll.u32 %v10659_v14, 16  ;;  %v8404_v48 = vcombine.low %v1132_v37, %v10394_v8  ;;  %v9391_v15 = vld [vmem:[#allocation2 + $0x2c] ss:$0 sps:$4 sm:$0x11]  }
  0xc6   : > { %v2147_v18 = vsel %vm13993_vm10, %v10582_v56, %v14071_v61  ;;  %v3017_v56 = vshll.u32 %v9388_v63, 16  ;;  %v9646_v13 = vld [vmem:[#allocation2 + $0x58] sm:$0xf]  ;;  %v10678_v28 = vcombine.low %v2819_v7, %v2820_v38  ;;  %v2150_v23 = vsel %vm13993_vm10, %v2148_v9, %v2149_v4  ;;  %v9366_v4 = vld [vmem:[%s13950_s1 + $0x40] sm:$0xff]   ;;  %v2822_v6 = vld [vmem:[#allocation2 + $0x34] sm:$0xf] }
  0xc7   : > { %2431 = vmatmul.mubr.bf16.gmra.mrb[12].mxu0 %v2191_v33  ;;  %v8456_v21 = vcombine.low %v10646_v31, %v9646_v13  ;;  %v1466_v35 = vsel %vm13992_vm9, %v1461_v2, %v1465_v0  ;;  %v3014_v30 = vrot.slane %v3012_v10, 1  ;;  %v1133_v31 = vld [vmem:[#allocation2 + $0x24] sm:$0xe]  ;;  %v1554_v8 = vrot.slane %v8404_v48, 1  ;;  %v1134_v7 = vld [vmem:[#allocation2 + $0x30] sm:$0xe] }
  0xc8   : > { %8506 = vmatprep.mubr.msk.bf16.mxu0 %vm13994_vm11, %v2147_v18  ;;  %2668 = vmatpush1.bf16.msra.mxu0 %v9358_v22  ;;  %v3019_v33 = vrot.slane %v3017_v56, 1  ;;  %v3022_v24 = vshrl.u32 %v10678_v28, 16  ;;  %v3024_v57 = vshll.u32 %v10678_v28, 16  ;;  %v1558_v20 = vrot.slane %v10426_v5, 1  ;;  %v1724_v10 = vld [vmem:[#allocation2 + $0x60] sm:$0xe] }
  0xc9   : > { %2669 = vmatprep.subr.bf16.mxu0 %v14068_v58  ;;  %1497 = vrot.lane.b32.xlu1 %v1466_v35, %s9780_s13  ;;  %v3015_v9 = vor.u32 %v3014_v30, %v3010_v3  ;;  %v3029_v22 = vshll.u32 %v9391_v15, 16  ;;  %v8405_v41 = vcombine.low %v1133_v31, %v10419_v46  ;;  %v1561_v0 = vrot.slane %v10441_v59, 1  ;;  %v9395_v37 = vld [vmem:[#allocation2 + $0x38] ss:$0 sps:$4 sm:$0x11]  }
  0xca   : > { %v2194_v63 = vsel %vm13994_vm11, %v10063_v50, %v2062_v60  ;;  %v10698_v61 = vsel %vm13993_vm10, %v1554_v8, %v1555_v29  ;;  %v3026_v18 = vrot.slane %v3024_v57, 1  ;;  %v10700_v5 = vcombine.low %v2821_v39, %v2822_v6  ;;  %v2823_v48 = vld [vmem:[#allocation2 + $0x3c] sm:$0xf]  ;;  %v2824_v35 = vld [vmem:[#allocation2 + $0x40] sm:$0xf] }
  0xcb   : > { %v3020_v38 = vsel %vm13992_vm9, %v3015_v9, %v3019_v33  ;;  %v3031_v2 = vrot.slane %v3029_v22, 1  ;;  %v1557_v3 = vrot.slane %v8405_v41, 1  ;;  %v8406_v46 = vcombine.low %v1134_v7, %v10429_v55  ;;  %v9647_v29 = vld [vmem:[#allocation2 + $0x5c] ss:$0 sps:$4 sm:$0x11]   ;;  %v9369_v55 = vld [vmem:[%s13950_s1 + $0x48] sm:$0xff]   ;;  %v2064_v22 = vpop.permute.xlu1 %2063 }
  0xcc   : > { %2670 = vmatpush1.bf16.msra.mxu0 %v9361_v16  ;;  %3201 = vrot.lane.b32.xlu0 %v3020_v38, %s9780_s13  ;;  %v3027_v50 = vor.u32 %v3026_v18, %v3022_v24  ;;  %v3034_v59 = vshrl.u32 %v10700_v5, 16  ;;  %v3036_v56 = vshll.u32 %v10700_v5, 16  ;;  %v3041_v13 = vshll.u32 %v9395_v37, 16  ;;  %v10717_v24 = vld [vmem:[#allocation2 + $0x44] ss:$0 sps:$4 sm:$0x11]  }
  0xcd   : > { %2671 = vmatprep.subr.bf16.mxu0 %v14068_v58  ;;  %v2152_v16 = vrot.slane %v9647_v29, 1  ;;  %v10709_v15 = vsel %vm13993_vm10, %v1557_v3, %v1558_v20  ;;  %v1560_v60 = vrot.slane %v8406_v46, 1  ;;  %v10715_v8 = vcombine.low %v2823_v48, %v2824_v35  ;;  %v1135_v39 = vld [vmem:[#allocation2 + $0x3c] sm:$0xe]  ;;  %v2825_v18 = vld [vmem:[#allocation2 + $0x48] sm:$0xf] }
  0xce   : > { %v3032_v30 = vsel %vm13992_vm9, %v3027_v50, %v3031_v2  ;;  %v3038_v33 = vrot.slane %v3036_v56, 1  ;;  %v3043_v31 = vrot.slane %v3041_v13, 1  ;;  %v2151_v57 = vrot.slane %v8456_v21, 1  ;;  %v9648_v21 = vld [vmem:[#allocation2 + $0x64] sm:$0xf] }
  0xcf   : > { %2439 = vmatmul.mubr.bf16.gmra.mrb[16].mxu0 %v2194_v63  ;;  %v10721_v20 = vsel %vm13993_vm10, %v1560_v60, %v1561_v0  ;;  %v1564_v9 = vrot.slane %v10456_v45, 1  ;;  %3203 = vrot.lane.b32.xlu1 %v3032_v30, %s9780_s13  ;;  %v3046_v6 = vshrl.u32 %v10715_v8, 16  ;;  %v3048_v63 = vshll.u32 %v10715_v8, 16  ;;  %v9372_v0 = vld [vmem:[%s13950_s1 + $0x50] sm:$0xff]   ;;  %v10733_v37 = vld [vmem:[#allocation2 + $0x4c] sm:$0xf] }
  0xd0   : > { %8507 = vmatprep.mubr.msk.bf16.mxu0 %vm13994_vm11, %v2150_v23  ;;  %2672 = vmatpush1.bf16.msra.mxu0 %v9366_v4  ;;  %v3039_v41 = vor.u32 %v3038_v33, %v3034_v59  ;;  %v3053_v23 = vshll.u32 %v10717_v24, 16  ;;  %v8457_v4 = vcombine.low %v1724_v10, %v9648_v21  ;;  %v8407_v45 = vcombine.low %v1135_v39, %v10445_v54  ;;  %v10742_v50 = vld [vmem:[#allocation2 + $0x50] ss:$0 sps:$4 sm:$0x11]   ;;  %v1136_v33 = vld [vmem:[#allocation2 + $0x48] sm:$0xe] }
  0xd1   : > { %2673 = vmatprep.subr.bf16.mxu0 %v14068_v58  ;;  %v3050_v38 = vrot.slane %v3048_v63, 1  ;;  %v10737_v3 = vcombine.low %v2825_v18, %v10733_v37  ;;  %v2197_v46 = vsel %vm13994_vm11, %v10105_v47, %v2064_v22  ;;  %v2153_v54 = vsel %vm13993_vm10, %v2151_v57, %v2152_v16  ;;  %v9649_v60 = vld [vmem:[#allocation2 + $0x68] ss:$0 sps:$4 sm:$0x11]   ;;  %v9377_v16 = vld [vmem:[%s13950_s1 + $0x58] sm:$0xff]  }
  0xd2   : > { %v3044_v7 = vsel %vm13992_vm9, %v3039_v41, %v3043_v31  ;;  %v3055_v2 = vrot.slane %v3053_v23, 1  ;;  %v1563_v10 = vrot.slane %v8407_v45, 1  ;;  %v3065_v47 = vshll.u32 %v10742_v50, 16  ;;  %v2827_v41 = vld [vmem:[#allocation2 + $0x54] sm:$0xf] }
  0xd3   : > { %3205 = vrot.lane.b32.xlu0 %v3044_v7, %s9780_s13  ;;  %v3051_v59 = vor.u32 %v3050_v38, %v3046_v6  ;;  %v3060_v56 = vshll.u32 %v10737_v3, 16  ;;  %v3058_v48 = vshrl.u32 %v10737_v3, 16  ;;  %v2154_v29 = vrot.slane %v8457_v4, 1  ;;  %v10761_v6 = vld [vmem:[#allocation2 + $0x58] sm:$0xf] }
  0xd4   : > { %2674 = vmatpush1.bf16.msra.mxu0 %v9369_v55  ;;  %v10748_v13 = vsel %vm13993_vm10, %v1563_v10, %v1564_v9  ;;  %v2155_v35 = vrot.slane %v9649_v60, 1  ;;  %v3067_v31 = vrot.slane %v3065_v47, 1  ;;  %v8408_v57 = vcombine.low %v1136_v33, %v10468_v11  ;;  %v2066_v9 = vpop.permute.xlu0 %2065  ;;  %v10773_v4 = vld [vmem:[#allocation2 + $0x5c] ss:$0 sps:$4 sm:$0x11]   ;;  %v14072_v10 = vld [vmem:[#allocation24_spill] sm:$0xff] }
  0xd5   : > { %2675 = vmatprep.subr.bf16.mxu0 %v14068_v58  ;;  %v3056_v55 = vsel %vm13992_vm9, %v3051_v59, %v3055_v2  ;;  %v3062_v30 = vrot.slane %v3060_v56, 1  ;;  %v1567_v39 = vrot.slane %v10479_v40, 1  ;;  %v10764_v23 = vcombine.low %v2827_v41, %v10761_v6  ;;  %v14073_v59 = vld [vmem:[#allocation26_spill] sm:$0xff]  ;;  %v14075_v41 = vld [vmem:[#allocation27_spill] sm:$0xff] }
  0xd6   : > { %3207 = vrot.lane.b32.xlu1 %v3056_v55, %s9780_s13  ;;  %v1566_v63 = vrot.slane %v8408_v57, 1  ;;  %v2200_v11 = vsel %vm13994_vm11, %v10132_v19, %v2066_v9  ;;  %v2156_v45 = vsel %vm13993_vm10, %v2154_v29, %v2155_v35  ;;  %v3077_v38 = vshll.u32 %v10773_v4, 16  ;;  %v1137_v19 = vld [vmem:[#allocation2 + $0x54] sm:$0xe]  ;;  %v2829_v47 = vld [vmem:[#allocation2 + $0x60] sm:$0xf] }
  0xd7   : > { %2447 = vmatmul.mubr.bf16.gmra.mrb[20].mxu0 %v2197_v46  ;;  %v3063_v22 = vor.u32 %v3062_v30, %v3058_v48  ;;  %v3070_v18 = vshrl.u32 %v10764_v23, 16  ;;  %v1570_v56 = vrot.slane %v14073_v59, 1  ;;  %v2068_v48 = vpop.permute.xlu1 %2067  ;;  %v10783_v29 = vld [vmem:[#allocation2 + $0x64] sm:$0xf]  ;;  %v14074_v55 = vld [vmem:[#allocation8_spill] sm:$0xff] }
  0xd8   : > { %8508 = vmatprep.mubr.msk.bf16.mxu0 %vm13994_vm11, %v2153_v54  ;;  %2676 = vmatpush1.bf16.msra.mxu0 %v9372_v0  ;;  %v10771_v40 = vsel %vm13993_vm10, %v1566_v63, %v1567_v39  ;;  %v3072_v0 = vshll.u32 %v10764_v23, 16  ;;  %v3079_v46 = vrot.slane %v3077_v38, 1  ;;  %v8409_v54 = vcombine.low %v1137_v19, %v14072_v10  ;;  %v14076_v38 = vld [vmem:[#allocation9_spill] sm:$0xff] }
  0xd9   : > { %2677 = vmatprep.subr.bf16.mxu0 %v14068_v58  ;;  %v3068_v21 = vsel %vm13992_vm9, %v3063_v22, %v3067_v31  ;;  %v2203_v30 = vsel %vm13994_vm11, %v14074_v55, %v2068_v48  ;;  %v10795_v31 = vld [vmem:[#allocation2 + $0x68] ss:$0 sps:$4 sm:$0x11]  }
  0xda   : > { %3209 = vrot.lane.b32.xlu0 %v3068_v21, %s9780_s13  ;;  %v3074_v7 = vrot.slane %v3072_v0, 1  ;;  %v1569_v35 = vrot.slane %v8409_v54, 1  ;;  %v3089_v22 = vshll.u32 %v10795_v31, 16  ;;  %v2831_v0 = vld [vmem:[#allocation2 + $0x6c] sm:$0xf] }
  0xdc   : > { %2678 = vmatpush1.bf16.msra.mxu0 %v9377_v16  ;;  %v3075_v2 = vor.u32 %v3074_v7, %v3070_v18  ;;  %v10787_v16 = vcombine.low %v2829_v47, %v10783_v29  ;;  %v10793_v33 = vsel %vm13993_vm10, %v1569_v35, %v1570_v56  ;;  %v3091_v21 = vrot.slane %v3089_v22, 1  ;;  %v10818_v35 = vld [vmem:[#allocation2 + $0x7c] sm:$0xf] }
  0xdd   : > { %3522 = vmatprep.subr.bf16.mxu0 %v14068_v58 }
  0xde   : > { %v3080_v60 = vsel %vm13992_vm9, %v3075_v2, %v3079_v46  ;;  %v3084_v57 = vshll.u32 %v10787_v16, 16  ;;  %v3082_v39 = vshrl.u32 %v10787_v16, 16  ;;  %v10811_v2 = vld [vmem:[#allocation2 + $0x74] ss:$0 sps:$4 sm:$0x11]  }
  0xdf   : > { %2455 = vmatmul.mubr.bf16.gmra.mrb[24].mxu0 %v2200_v11  ;;  %3211 = vrot.lane.b32.xlu1 %v3080_v60, %s9780_s13  ;;  %v2070_v11 = vpop.permute.xlu0 %2069  ;;  %v3101_v59 = vshll.u32 %v10811_v2, 16  ;;  %v2833_v60 = vld [vmem:[#allocation2 + $0x78] sm:$0xf] }
  0xe0   : > { %8509 = vmatprep.mubr.msk.bf16.mxu0 %vm13994_vm11, %v2156_v45  ;;  %v3086_v9 = vrot.slane %v3084_v57, 1  ;;  %v10802_v45 = vld [vmem:[#allocation2 + $0x70] sm:$0xf]  ;;  %v2206_v19 = vsel %vm13994_vm11, %v14076_v38, %v2070_v11  ;;  %v14077_v57 = vld [vmem:[#allocation10_spill] sm:$0xff]  ;;  %v10834_v38 = vld [vmem:[#allocation2 + $0x88] sm:$0xf] }
  0xe1   : > { %v10806_v7 = vcombine.low %v2831_v0, %v10802_v45  ;;  %v3103_v48 = vrot.slane %v3101_v59, 1  ;;  %v10843_v59 = vld [vmem:[#allocation2 + $0x8c] ss:$0 sps:$4 sm:$0x11]  }
  0xe2   : > { %v3087_v63 = vor.u32 %v3086_v9, %v3082_v39  ;;  %v10827_v9 = vld [vmem:[#allocation2 + $0x80] ss:$0 sps:$4 sm:$0x11]  }
  0xe3   : > { %v3096_v46 = vshll.u32 %v10806_v7, 16  ;;  %v3094_v10 = vshrl.u32 %v10806_v7, 16  ;;  %v2072_v47 = vpop.permute.xlu1 %2071 }
  0xe4   : > { %v3092_v18 = vsel %vm13992_vm9, %v3087_v63, %v3091_v21  ;;  %v2209_v39 = vsel %vm13994_vm11, %v14077_v57, %v2072_v47  ;;  %v3113_v63 = vshll.u32 %v10827_v9, 16  ;;  %v3125_v47 = vshll.u32 %v10843_v59, 16 }
  0xe5   : > { %3213 = vrot.lane.b32.xlu0 %v3092_v18, %s9780_s13  ;;  %v3098_v54 = vrot.slane %v3096_v46, 1  ;;  %v2835_v18 = vld [vmem:[#allocation2 + $0x84] sm:$0xf] }
  0xe6   : > { %v3115_v11 = vrot.slane %v3113_v63, 1  ;;  %v10838_v46 = vcombine.low %v2835_v18, %v10834_v38  ;;  %v14079_v63 = vld [vmem:[#allocation12_spill] sm:$0xff] }
  0xe7   : > { %2463 = vmatmul.mubr.bf16.gmra.mrb[28].mxu0 %v2203_v30  ;;  %v3099_v56 = vor.u32 %v3098_v54, %v3094_v10  ;;  %v10822_v30 = vcombine.low %v2833_v60, %v10818_v35  ;;  %v14078_v10 = vld [vmem:[#allocation11_spill] sm:$0xff] }
  0xe8   : > { %8510 = vmatprep.mubr.msk.bf16.mxu0 %vm13994_vm11, %v14075_v41 }
  0xe9   : > { %v3104_v55 = vsel %vm13992_vm9, %v3099_v56, %v3103_v48  ;;  %v3106_v22 = vshrl.u32 %v10822_v30, 16  ;;  %v3118_v56 = vshrl.u32 %v10838_v46, 16 }
  0xea   : > { %3215 = vrot.lane.b32.xlu1 %v3104_v55, %s9780_s13  ;;  %v2074_v0 = vpop.permute.xlu0 %2073  ;;  %v3127_v55 = vrot.slane %v3125_v47, 1 }
  0xeb   : > { %v2212_v54 = vsel %vm13994_vm11, %v14078_v10, %v2074_v0 }
  0xee   : > { %v2076_v57 = vpop.permute.xlu1 %2075 }
  0xef   : > { %2471 = vmatmul.mubr.bf16.gmra.mrb[32].mxu0 %v2206_v19 }
  0xf0   : > { %8511 = vmatprep.mubr.msk.bf16.mxu0 %vm13994_vm11, %v10515_v36  ;;  %v3108_v36 = vshll.u32 %v10822_v30, 16 }
  0xf2   : > { %v3110_v41 = vrot.slane %v3108_v36, 1  ;;  %v10850_v36 = vld [vmem:[#allocation2 + $0x94] sm:$0xf] }
  0xf4   : > { %v3111_v21 = vor.u32 %v3110_v41, %v3106_v22 }
  0xf6   : > { %v3116_v19 = vsel %vm13992_vm9, %v3111_v21, %v3115_v11  ;;  %v2215_v21 = vsel %vm13994_vm11, %v14079_v63, %v2076_v57  ;;  %v10859_v11 = vld [vmem:[#allocation2 + $0x98] ss:$0 sps:$4 sm:$0x11]  }
  0xf7   : > { %2479 = vmatmul.mubr.bf16.gmra.mrb[36].mxu0 %v2209_v39  ;;  %3217 = vrot.lane.b32.xlu0 %v3116_v19, %s9780_s13  ;;  %v2837_v39 = vld [vmem:[#allocation2 + $0x90] sm:$0xf]  ;;  %v3137_v19 = vshll.u32 %v10859_v11, 16 }
  0xf8   : > { %8512 = vmatprep.mubr.msk.bf16.mxu0 %vm13994_vm11, %v10531_v44  ;;  %v3120_v44 = vshll.u32 %v10838_v46, 16  ;;  %v10854_v41 = vcombine.low %v2837_v39, %v10850_v36  ;;  %v10875_v39 = vld [vmem:[#allocation2 + $0xa4] ss:$0 sps:$4 sm:$0x11]  }
  0xfa   : > { %v3122_v48 = vrot.slane %v3120_v44, 1  ;;  %v3130_v0 = vshrl.u32 %v10854_v41, 16  ;;  %v2078_v44 = vpop.permute.xlu0 %2077 }
  0xfc   : > { %v3123_v60 = vor.u32 %v3122_v48, %v3118_v56  ;;  %v2839_v56 = vld [vmem:[#allocation2 + $0x9c] sm:$0xf]  ;;  %v10866_v48 = vld [vmem:[#allocation2 + $0xa0] sm:$0xf] }
  0xfe   : > { %v3128_v22 = vsel %vm13992_vm9, %v3123_v60, %v3127_v55  ;;  %v10870_v60 = vcombine.low %v2839_v56, %v10866_v48  ;;  %v14081_v55 = vld [vmem:[#allocation13_spill] sm:$0xff]  ;;  %v14083_v56 = vld [vmem:[#allocation14_spill] sm:$0xff] }
  0xff   : > { %2487 = vmatmul.mubr.bf16.gmra.mrb[40].mxu0 %v2212_v54  ;;  %3219 = vrot.lane.b32.xlu1 %v3128_v22, %s9780_s13  ;;  %v3139_v54 = vrot.slane %v3137_v19, 1  ;;  %v2218_v57 = vsel %vm13994_vm11, %v14081_v55, %v2078_v44  ;;  %v2841_v19 = vld [vmem:[#allocation2 + $0xa8] sm:$0xf]  ;;  %v10891_v55 = vld [vmem:[#allocation2 + $0xb0] ss:$0 sps:$4 sm:$0x11]  }
 0x100   : > { %8513 = vmatprep.mubr.msk.bf16.mxu0 %vm13994_vm11, %v10557_v53  ;;  %v3132_v53 = vshll.u32 %v10854_v41, 16  ;;  %14080 = vst [vmem:[#allocation24_spill] sm:$0xff] %v10870_v60  ;;  %v3142_v22 = vshrl.u32 %v10870_v60, 16 }
 0x102   : > { %v3134_v18 = vrot.slane %v3132_v53, 1 }
 0x104   : > { %v3135_v10 = vor.u32 %v3134_v18, %v3130_v0  ;;  %v2080_v18 = vpop.permute.xlu1 %2079 }
 0x106   : > { %v3140_v47 = vsel %vm13992_vm9, %v3135_v10, %v3139_v54  ;;  %v10882_v10 = vld [vmem:[#allocation2 + $0xac] sm:$0xf] }
 0x107   : > { %2495 = vmatmul.mubr.bf16.gmra.mrb[44].mxu0 %v2215_v21  ;;  %3221 = vrot.lane.b32.xlu0 %v3140_v47, %s9780_s13  ;;  %v3149_v21 = vshll.u32 %v10875_v39, 16  ;;  %v10886_v44 = vcombine.low %v2841_v19, %v10882_v10  ;;  %v2221_v47 = vsel %vm13994_vm11, %v14083_v56, %v2080_v18  ;;  %v10898_v19 = vld [vmem:[#allocation2 + $0xb8] sm:$0xf]  ;;  %v14086_v56 = vld [vmem:[#allocation15_spill] sm:$0xff] }
 0x108   : > { %8514 = vmatprep.mubr.msk.bf16.mxu0 %vm13994_vm11, %v10578_v27  ;;  %v3144_v27 = vshll.u32 %v10870_v60, 16  ;;  %14084 = vst [vmem:[#allocation8_spill] sm:$0xff] %v10898_v19 }
 0x109   : > { %v3151_v0 = vrot.slane %v3149_v21, 1  ;;  %14082 = vst [vmem:[#allocation26_spill] sm:$0xff] %v10886_v44 }
 0x10a   : > { %v3146_v63 = vrot.slane %v3144_v27, 1 }
 0x10c   : > { %v3147_v53 = vor.u32 %v3146_v63, %v3142_v22  ;;  %v3161_v22 = vshll.u32 %v10891_v55, 16 }
 0x10e   : > { %v3152_v54 = vsel %vm13992_vm9, %v3147_v53, %v3151_v0  ;;  %v3163_v21 = vrot.slane %v3161_v22, 1  ;;  %v2082_v53 = vpop.permute.xlu0 %2081  ;;  %v2843_v0 = vld [vmem:[#allocation2 + $0xb4] sm:$0xf] }
 0x10f   : > { %2503 = vmatmul.mubr.bf16.gmra.mrb[48].mxu0 %v2218_v57  ;;  %3223 = vrot.lane.b32.xlu1 %v3152_v54, %s9780_s13  ;;  %v3154_v57 = vshrl.u32 %v10886_v44, 16  ;;  %v10902_v54 = vcombine.low %v2843_v0, %v10898_v19  ;;  %v375_v0 = vld [vmem:[#allocation2 + $0xcc] sm:$0x1]  ;;  %v10914_v19 = vld [vmem:[#allocation2 + $0xc4] sm:$0xf] }
 0x110   : > { %8515 = vmatprep.mubr.msk.bf16.mxu0 %vm13994_vm11, %v10598_v25  ;;  %v3156_v25 = vshll.u32 %v10886_v44, 16  ;;  %v2845_v44 = vld [vmem:[#allocation2 + $0xc0] sm:$0xf]  ;;  %14088 = vst [vmem:[#allocation10_spill] sm:$0xff] %v10914_v19 }
 0x111   : > { %14085 = vst [vmem:[#allocation27_spill] sm:$0xff] %v10902_v54 }
 0x112   : > { %v3158_v27 = vrot.slane %v3156_v25, 1  ;;  %v2224_v25 = vsel %vm13994_vm11, %v14086_v56, %v2082_v53  ;;  %v376_v56 = vsel %vm9833_vm2, 0, %v375_v0 }
 0x113   : > { %377 = vst [vmem:[#allocation2 + $0xcc] sm:$0x1] %v376_v56 }
 0x114   : > { %v3159_v63 = vor.u32 %v3158_v27, %v3154_v57  ;;  %v3166_v57 = vshrl.u32 %v10902_v54, 16 }
 0x116   : > { %v3164_v18 = vsel %vm13992_vm9, %v3159_v63, %v3163_v21 }
 0x117   : > { %2511 = vmatmul.mubr.bf16.gmra.mrb[52].mxu0 %v2221_v47  ;;  %3225 = vrot.lane.b32.xlu0 %v3164_v18, %s9780_s13  ;;  %v10907_v47 = vld [vmem:[#allocation2 + $0xbc] ss:$0 sps:$4 sm:$0x11]   ;;  %v2084_v18 = vpop.permute.xlu1 %2083 }
 0x118   : > { %8516 = vmatprep.mubr.msk.bf16.mxu0 %vm13994_vm11, %v10612_v32  ;;  %14087 = vst [vmem:[#allocation9_spill] sm:$0xff] %v10907_v47  ;;  %v3168_v32 = vshll.u32 %v10902_v54, 16  ;;  %v3173_v22 = vshll.u32 %v10907_v47, 16 }
 0x11a   : > { %v3170_v27 = vrot.slane %v3168_v32, 1  ;;  %v3175_v21 = vrot.slane %v3173_v22, 1  ;;  %v10920_v32 = vcombine.low %v2845_v44, %v10914_v19  ;;  %v2847_v56 = vld [vmem:[#allocation2 + $0xcc] sm:$0xf] }
 0x11c   : > { %v3171_v63 = vor.u32 %v3170_v27, %v3166_v57  ;;  %v10925_v27 = vld [vmem:[#allocation2 + $0xc8] ss:$0 sps:$4 sm:$0x11]   ;;  %v3180_v22 = vshll.u32 %v10920_v32, 16 }
 0x11d   : > { %v3185_v44 = vshll.u32 %v10925_v27, 16 }
 0x11e   : > { %v3176_v60 = vsel %vm13992_vm9, %v3171_v63, %v3175_v21  ;;  %v3178_v63 = vshrl.u32 %v10920_v32, 16  ;;  %v3182_v21 = vrot.slane %v3180_v22, 1 }
 0x11f   : > { %2519 = vmatmul.mubr.bf16.gmra.mrb[56].mxu0 %v2224_v25  ;;  %3227 = vrot.lane.b32.xlu1 %v3176_v60, %s9780_s13  ;;  %v431_v25 = vld [vmem:[#allocation2 + $0xd4] sm:$0x1]  ;;  %v3187_v0 = vrot.slane %v3185_v44, 1 }
 0x120   : > { %8517 = vmatprep.mubr.msk.bf16.mxu0 %vm13994_vm11, %v10635_v1  ;;  %v14090_v1 = vld [vmem:[#allocation19_spill] sm:$0xff]  ;;  %v432_v47 = vsel %vm9843_vm5, 0, %v431_v25  ;;  %v3183_v60 = vor.u32 %v3182_v21, %v3178_v63 }
 0x121   : > { %v2227_v57 = vsel %vm13994_vm11, %v14090_v1, %v2084_v18  ;;  %433 = vst [vmem:[#allocation2 + $0xd4] sm:$0x1] %v432_v47  ;;  %v1468_v18 = vpop.permute.xlu0 %1467  ;;  %v10934_v1 = vld [vmem:[#allocation2 + $0xd0] sm:$0xf]  ;;  %v9382_v47 = vld [vmem:[%s13950_s1 + $0xc0] sm:$0xff]  }
 0x122   : > { %v3188_v19 = vsel %vm13992_vm9, %v3183_v60, %v3187_v0  ;;  %v10938_v25 = vcombine.low %v2847_v56, %v10934_v1  ;;  %v1470_v56 = vpop.permute.xlu1 %1469 }
 0x123   : > { %3229 = vrot.lane.b32.xlu0 %v3188_v19, %s9780_s13  ;;  %v9386_v19 = vld [vmem:[%s13950_s1 + $0xc8] sm:$0xff]  }
 0x124   : > { %v3192_v63 = vshll.u32 %v10938_v25, 16  ;;  %v3190_v21 = vshrl.u32 %v10938_v25, 16 }
 0x126   : > { %v3194_v44 = vrot.slane %v3192_v63, 1  ;;  %v14093_v63 = vld [vmem:[#allocation16_spill] sm:$0xff] }
 0x127   : > { %2527 = vmatmul.mubr.bf16.gmra.mrb[60].mxu0 %v2227_v57  ;;  %v14092_v57 = vld [vmem:[#allocation17_spill] sm:$0xff] }
 0x128   : > { %8530 = vmatprep.mubr.msk.bf16.mxu0 %vm13994_vm11, %v10653_v12  ;;  %v1598_v12 = vsel %vm13994_vm11, %v14092_v57, %v1468_v18  ;;  %v10946_v22 = vld [vmem:[#allocation2 + $0xd4] ss:$0 sps:$4 sm:$0x11]   ;;  %v3195_v0 = vor.u32 %v3194_v44, %v3190_v21  ;;  %v1472_v21 = vpop.permute.xlu0 %1471  ;;  %v14094_v44 = vld [vmem:[#allocation18_spill] sm:$0xff] }
 0x129   : > { %v3197_v60 = vshll.u32 %v10946_v22, 16 }
 0x12b   : > { %v3199_v18 = vrot.slane %v3197_v60, 1  ;;  %v1604_v60 = vsel %vm13994_vm11, %v14094_v44, %v1472_v21  ;;  %v14097_v44 = vld [vmem:[#allocation22_spill] sm:$0xff] }
 0x12d   : > { %v3200_v57 = vsel %vm13992_vm9, %v3195_v0, %v3199_v18  ;;  %v1474_v0 = vpop.permute.xlu1 %1473  ;;  %v14095_v18 = vld [vmem:[#allocation20_spill] sm:$0xff] }
 0x12e   : > { %3231 = vrot.lane.b32.xlu1 %v3200_v57, %s9780_s13  ;;  %v9412_v57 = vld [vmem:[%s13950_s1 + $0xf0] sm:$0xff]  }
 0x12f   : > { %2688 = vmatmul.mubr.bf16.vlgmr.msra.gmra.mrb[0].mxu0 %v1598_v12  ;;  %v1601_v12 = vsel %vm13994_vm11, %v14093_v63, %v1470_v56  ;;  %v1607_v56 = vsel %vm13994_vm11, %v14095_v18, %v1474_v0  ;;  %v1476_v63 = vpop.permute.xlu0 %1475  ;;  %v1138_v0 = vld [vmem:[#allocation2 + $0x60] sm:$0xe]  ;;  %v14098_v18 = vld [vmem:[#allocation23_spill] sm:$0xff] }
 0x130   : > { %3523 = vmatpush1.bf16.msra.mxu0 %v9382_v47  ;;  %8531 = vmatprep.mubr.msk.bf16.mxu0 %vm13994_vm11, %v10668_v43  ;;  %v9392_v43 = vld [vmem:[%s13950_s1 + $0xd0] sm:$0xff]   ;;  %v9397_v47 = vld [vmem:[%s13950_s1 + $0xd8] sm:$0xff]  }
 0x131   : > { %3524 = vmatprep.subr.bf16.mxu0 %v14068_v58  ;;  %v1478_v21 = vpop.permute.xlu1 %1477 }
 0x134   : > { %3525 = vmatpush1.bf16.msra.mxu0 %v9386_v19  ;;  %v9401_v19 = vld [vmem:[%s13950_s1 + $0xe0] sm:$0xff]  }
 0x135   : > { %3526 = vmatprep.subr.bf16.mxu0 %v14068_v58 }
 0x137   : > { %2696 = vmatmul.mubr.bf16.gmra.mrb[4].mxu0 %v1601_v12  ;;  %v14096_v12 = vld [vmem:[#allocation21_spill] sm:$0xff] }
 0x138   : > { %8532 = vmatprep.mubr.msk.bf16.mxu0 %vm13994_vm11, %v10698_v61  ;;  %3527 = vmatpush1.bf16.msra.mxu0 %v9392_v43  ;;  %v9407_v61 = vld [vmem:[%s13950_s1 + $0xe8] sm:$0xff]   ;;  %v1610_v43 = vsel %vm13994_vm11, %v14096_v12, %v1476_v63 }
 0x139   : > { %3528 = vmatprep.subr.bf16.mxu0 %v14068_v58  ;;  %v9651_v12 = vld [vmem:[#allocation2 + $0x68] ss:$0 sps:$4 sm:$0x11]  }
 0x13c   : > { %3529 = vmatpush1.bf16.msra.mxu0 %v9397_v47  ;;  %v9422_v47 = vld [vmem:[%s13950_s1 + $0x100] sm:$0xff]  }
 0x13d   : > { %3530 = vmatprep.subr.bf16.mxu0 %v14068_v58 }
 0x13f   : > { %2704 = vmatmul.mubr.bf16.gmra.mrb[8].mxu0 %v1604_v60  ;;  %v1613_v60 = vsel %vm13994_vm11, %v14097_v44, %v1478_v21 }
 0x140   : > { %8533 = vmatprep.mubr.msk.bf16.mxu0 %vm13994_vm11, %v10709_v15  ;;  %3531 = vmatpush1.bf16.msra.mxu0 %v9401_v19  ;;  %v9416_v15 = vld [vmem:[%s13950_s1 + $0xf8] sm:$0xff]   ;;  %v9431_v19 = vld [vmem:[%s13950_s1 + $0x110] sm:$0xff]  }
 0x141   : > { %3532 = vmatprep.subr.bf16.mxu0 %v14068_v58 }
 0x144   : > { %3533 = vmatpush1.bf16.msra.mxu0 %v9407_v61  ;;  %v1480_v61 = vpop.permute.xlu0 %1479 }
 0x145   : > { %3534 = vmatprep.subr.bf16.mxu0 %v14068_v58 }
 0x147   : > { %2712 = vmatmul.mubr.bf16.gmra.mrb[12].mxu0 %v1607_v56  ;;  %v1616_v56 = vsel %vm13994_vm11, %v14098_v18, %v1480_v61 }
 0x148   : > { %8534 = vmatprep.mubr.msk.bf16.mxu0 %vm13994_vm11, %v10721_v20  ;;  %3535 = vmatpush1.bf16.msra.mxu0 %v9412_v57  ;;  %v9427_v20 = vld [vmem:[%s13950_s1 + $0x108] sm:$0xff]   ;;  %v9650_v57 = vld [vmem:[#allocation2 + $0x64] sm:$0xf] }
 0x149   : > { %3536 = vmatprep.subr.bf16.mxu0 %v14068_v58 }
 0x14c   : > { %3537 = vmatpush1.bf16.msra.mxu0 %v9416_v15  ;;  %v8410_v15 = vcombine.low %v1138_v0, %v9650_v57  ;;  %v9653_v0 = vld [vmem:[#allocation2 + $0x74] ss:$0 sps:$4 sm:$0x11]  }
 0x14d   : > { %3538 = vmatprep.subr.bf16.mxu0 %v14068_v58  ;;  %v1576_v18 = vrot.slane %v9653_v0, 1 }
 0x14e   : > { %v1572_v63 = vrot.slane %v8410_v15, 1  ;;  %v9654_v15 = vld [vmem:[#allocation2 + $0x7c] sm:$0xf] }
 0x14f   : > { %2720 = vmatmul.mubr.bf16.gmra.mrb[16].mxu0 %v1610_v43  ;;  %v1573_v43 = vrot.slane %v9651_v12, 1 }
 0x150   : > { %8535 = vmatprep.mubr.msk.bf16.mxu0 %vm13994_vm11, %v10748_v13  ;;  %3539 = vmatpush1.bf16.msra.mxu0 %v9422_v47  ;;  %v9437_v13 = vld [vmem:[%s13950_s1 + $0x118] sm:$0xff]   ;;  %v1139_v47 = vld [vmem:[#allocation2 + $0x6c] sm:$0xe] }
 0x151   : > { %3540 = vmatprep.subr.bf16.mxu0 %v14068_v58  ;;  %v1574_v44 = vsel %vm13993_vm10, %v1572_v63, %v1573_v43  ;;  %v9655_v43 = vld [vmem:[#allocation2 + $0x80] ss:$0 sps:$4 sm:$0x11]  }
 0x154   : > { %3541 = vmatpush1.bf16.msra.mxu0 %v9427_v20  ;;  %v14099_v20 = vld [vmem:[#allocation25_spill] sm:$0xff] }
 0x155   : > { %3542 = vmatprep.subr.bf16.mxu0 %v14068_v58 }
 0x157   : > { %2728 = vmatmul.mubr.bf16.gmra.mrb[20].mxu0 %v1613_v60  ;;  %v9652_v60 = vld [vmem:[#allocation2 + $0x70] sm:$0xf] }
 0x158   : > { %8536 = vmatprep.mubr.msk.bf16.mxu0 %vm13994_vm11, %v10771_v40  ;;  %3543 = vmatpush1.bf16.msra.mxu0 %v9431_v19  ;;  %v1482_v40 = vpop.permute.xlu1 %1481  ;;  %v8411_v19 = vcombine.low %v1139_v47, %v9652_v60  ;;  %v1579_v47 = vrot.slane %v9655_v43, 1  ;;  %v9656_v60 = vld [vmem:[#allocation2 + $0x88] sm:$0xf]  ;;  %v1143_v43 = vld [vmem:[#allocation2 + $0x9c] sm:$0xe] }
 0x159   : > { %3544 = vmatprep.subr.bf16.mxu0 %v14068_v58  ;;  %v1619_v21 = vsel %vm13994_vm11, %v14099_v20, %v1482_v40  ;;  %v1141_v20 = vld [vmem:[#allocation2 + $0x84] sm:$0xe] }
 0x15a   : > { %v1575_v61 = vrot.slane %v8411_v19, 1  ;;  %v8413_v19 = vcombine.low %v1141_v20, %v9656_v60 }
 0x15c   : > { %3545 = vmatpush1.bf16.msra.mxu0 %v9437_v13  ;;  %v1484_v13 = vpop.permute.xlu0 %1483  ;;  %v1577_v57 = vsel %vm13993_vm10, %v1575_v61, %v1576_v18  ;;  %v1486_v40 = vpop.permute.xlu1 %1485  ;;  %v9657_v61 = vld [vmem:[#allocation2 + $0x8c] ss:$0 sps:$4 sm:$0x11]   ;;  %v1142_v18 = vld [vmem:[#allocation2 + $0x90] sm:$0xe] }
 0x15d   : > { %v1582_v0 = vrot.slane %v9657_v61, 1 }
 0x15f   : > { %2736 = vmatmul.mubr.bf16.gmra.mrb[24].mxu0 %v1616_v56  ;;  %v1622_v56 = vsel %vm13994_vm11, %v10507_v62, %v1484_v13  ;;  %v1581_v13 = vrot.slane %v8413_v19, 1  ;;  %v9661_v19 = vld [vmem:[#allocation2 + $0xa4] ss:$0 sps:$4 sm:$0x11]  }
 0x160   : > { %8537 = vmatprep.mubr.msk.bf16.mxu0 %vm13994_vm11, %v10793_v33  ;;  %v1140_v33 = vld [vmem:[#allocation2 + $0x78] sm:$0xe]  ;;  %v1488_v62 = vpop.permute.xlu0 %1487 }
 0x161   : > { %v8412_v12 = vcombine.low %v1140_v33, %v9654_v15  ;;  %v1628_v33 = vsel %vm13994_vm11, %v10542_v52, %v1488_v62  ;;  %v1588_v62 = vrot.slane %v9661_v19, 1  ;;  %v9666_v19 = vld [vmem:[#allocation2 + $0x1c] sm:$0xf] }
 0x163   : > { %v1578_v63 = vrot.slane %v8412_v12, 1 }
 0x164   : > { %v1492_v52 = vpop.permute.xlu0 %1491 }
 0x165   : > { %v1634_v61 = vsel %vm13994_vm11, %v10586_v42, %v1492_v52 }
 0x167   : > { %2744 = vmatmul.mubr.bf16.gmra.mrb[28].mxu0 %v1619_v21  ;;  %v1625_v21 = vsel %vm13994_vm11, %v10517_v26, %v1486_v40  ;;  %v1490_v26 = vpop.permute.xlu1 %1489  ;;  %v9659_v40 = vld [vmem:[#allocation2 + $0x98] ss:$0 sps:$4 sm:$0x11]  }
 0x168   : > { %8538 = vmatprep.mubr.msk.bf16.mxu0 %vm13994_vm11, %v1574_v44  ;;  %v1580_v44 = vsel %vm13993_vm10, %v1578_v63, %v1579_v47  ;;  %v1585_v63 = vrot.slane %v9659_v40, 1  ;;  %v1631_v47 = vsel %vm13994_vm11, %v10562_v49, %v1490_v26  ;;  %v1145_v26 = vld [vmem:[#allocation2 + $0xb4] sm:$0xe]  ;;  %v1496_v42 = vpop.permute.xlu0 %1495 }
 0x169   : > { %v1640_v52 = vsel %vm13994_vm11, %v10618_v17, %v1496_v42  ;;  %v444_v17 = vld [vmem:[#allocation3 + $0xc] sm:$0x1] }
 0x16b   : > { %v1494_v49 = vpop.permute.xlu1 %1493 }
 0x16f   : > { %2752 = vmatmul.mubr.bf16.gmra.mrb[32].mxu0 %v1622_v56  ;;  %v1583_v56 = vsel %vm13993_vm10, %v1581_v13, %v1582_v0  ;;  %v1144_v13 = vld [vmem:[#allocation2 + $0xa8] sm:$0xe] }
 0x170   : > { %8539 = vmatprep.mubr.msk.bf16.mxu0 %vm13994_vm11, %v1577_v57  ;;  %v9658_v57 = vld [vmem:[#allocation2 + $0x94] sm:$0xf] }
 0x171   : > { %v8414_v15 = vcombine.low %v1142_v18, %v9658_v57  ;;  %v9662_v18 = vld [vmem:[#allocation2 + $0xac] sm:$0xf]  ;;  %v9663_v57 = vld [vmem:[#allocation2 + $0xb0] ss:$0 sps:$4 sm:$0x11]  }
 0x173   : > { %v1584_v12 = vrot.slane %v8414_v15, 1  ;;  %v1591_v15 = vrot.slane %v9663_v57, 1 }
 0x175   : > { %v1586_v20 = vsel %vm13993_vm10, %v1584_v12, %v1585_v63  ;;  %v1637_v12 = vsel %vm13994_vm11, %v10602_v34, %v1494_v49  ;;  %v9664_v63 = vld [vmem:[#allocation2 + $0xb8] sm:$0xf]  ;;  %v1498_v34 = vpop.permute.xlu1 %1497 }
 0x177   : > { %2760 = vmatmul.mubr.bf16.gmra.mrb[36].mxu0 %v1625_v21  ;;  %v9660_v21 = vld [vmem:[#allocation2 + $0xa0] sm:$0xf] }
 0x178   : > { %8540 = vmatprep.mubr.msk.bf16.mxu0 %vm13994_vm11, %v1580_v44  ;;  %v8415_v44 = vcombine.low %v1143_v43, %v9660_v21  ;;  %v8417_v43 = vcombine.low %v1145_v26, %v9664_v63  ;;  %v3202_v26 = vpop.permute.xlu0 %3201 }
 0x17a   : > { %v1587_v60 = vrot.slane %v8415_v44, 1  ;;  %v2865_v44 = vld [vmem:[#allocation2 + $0x18] sm:$0xe] }
 0x17c   : > { %v1589_v0 = vsel %vm13993_vm10, %v1587_v60, %v1588_v62  ;;  %v8578_v62 = vcombine.low %v2865_v44, %v9666_v19  ;;  %v2868_v19 = vld [vmem:[#allocation2 + $0x3c] sm:$0xe] }
 0x17f   : > { %2768 = vmatmul.mubr.bf16.gmra.mrb[40].mxu0 %v1628_v33  ;;  %v8416_v33 = vcombine.low %v1144_v13, %v9662_v18  ;;  %v3281_v13 = vrot.slane %v8578_v62, 1  ;;  %v2866_v18 = vld [vmem:[#allocation2 + $0x24] sm:$0xe] }
 0x180   : > { %8541 = vmatprep.mubr.msk.bf16.mxu0 %vm13994_vm11, %v1583_v56 }
 0x181   : > { %v1590_v56 = vrot.slane %v8416_v33, 1  ;;  %v1643_v33 = vsel %vm13994_vm11, %v10641_v51, %v1498_v34  ;;  %v3330_v51 = vsel %vm13994_vm11, %v10659_v14, %v3202_v26  ;;  %v3206_v14 = vpop.permute.xlu0 %3205  ;;  %v2870_v26 = vld [vmem:[#allocation2 + $0x54] sm:$0xe] }
 0x183   : > { %v1592_v40 = vsel %vm13993_vm10, %v1590_v56, %v1591_v15  ;;  %v9668_v56 = vld [vmem:[#allocation2 + $0x28] sm:$0xf]  ;;  %v445_v15 = vsel %vm9833_vm2, 0, %v444_v17 }
 0x184   : > { %v8579_v57 = vcombine.low %v2866_v18, %v9668_v56  ;;  %446 = vst [vmem:[#allocation3 + $0xc] sm:$0x1] %v445_v15  ;;  %v3291_v18 = vrot.slane %v10717_v24, 1  ;;  %v3294_v15 = vrot.slane %v10742_v50, 1 }
 0x187   : > { %2776 = vmatmul.mubr.bf16.gmra.mrb[44].mxu0 %v1631_v47  ;;  %v1593_v47 = vrot.slane %v8417_v43, 1  ;;  %v2867_v43 = vld [vmem:[#allocation2 + $0x30] sm:$0xe] }
 0x188   : > { %8542 = vmatprep.mubr.msk.bf16.mxu0 %vm13994_vm11, %v1586_v20  ;;  %v9665_v20 = vld [vmem:[#allocation2 + $0xbc] ss:$0 sps:$4 sm:$0x11]  }
 0x189   : > { %v1594_v21 = vrot.slane %v9665_v20, 1 }
 0x18b   : > { %v1595_v60 = vsel %vm13993_vm10, %v1593_v47, %v1594_v21  ;;  %v9670_v47 = vld [vmem:[#allocation2 + $0x34] sm:$0xf]  ;;  %v3204_v21 = vpop.permute.xlu1 %3203 }
 0x18c   : > { %v8580_v20 = vcombine.low %v2867_v43, %v9670_v47  ;;  %v3333_v62 = vsel %vm13994_vm11, %v10678_v28, %v3204_v21  ;;  %v2871_v43 = vld [vmem:[#allocation2 + $0x60] sm:$0xe]  ;;  %v3300_v47 = vrot.slane %v10795_v31, 1 }
 0x18e   : > { %v3287_v44 = vrot.slane %v8580_v20, 1  ;;  %v2872_v20 = vld [vmem:[#allocation2 + $0x6c] sm:$0xe] }
 0x18f   : > { %2784 = vmatmul.mubr.bf16.gmra.mrb[48].mxu0 %v1634_v61  ;;  %v9667_v61 = vld [vmem:[#allocation2 + $0x20] ss:$0 sps:$4 sm:$0x11]   ;;  %v3208_v28 = vpop.permute.xlu1 %3207 }
 0x190   : > { %8543 = vmatprep.mubr.msk.bf16.mxu0 %vm13994_vm11, %v1589_v0  ;;  %v3282_v0 = vrot.slane %v9667_v61, 1 }
 0x192   : > { %v3283_v49 = vsel %vm13993_vm10, %v3281_v13, %v3282_v0  ;;  %v9672_v13 = vld [vmem:[#allocation2 + $0x40] sm:$0xf] }
 0x193   : > { %v8581_v61 = vcombine.low %v2868_v19, %v9672_v13  ;;  %v2874_v13 = vld [vmem:[#allocation2 + $0x84] sm:$0xe] }
 0x195   : > { %v3290_v0 = vrot.slane %v8581_v61, 1 }
 0x197   : > { %2792 = vmatmul.mubr.bf16.gmra.mrb[52].mxu0 %v1637_v12  ;;  %v3284_v12 = vrot.slane %v8579_v57, 1  ;;  %v3292_v56 = vsel %vm13993_vm10, %v3290_v0, %v3291_v18  ;;  %v3309_v0 = vrot.slane %v10843_v59, 1  ;;  %v2875_v18 = vld [vmem:[#allocation2 + $0x90] sm:$0xe] }
 0x198   : > { %8544 = vmatprep.mubr.msk.bf16.mxu0 %vm13994_vm11, %v1592_v40  ;;  %v9669_v40 = vld [vmem:[#allocation2 + $0x2c] ss:$0 sps:$4 sm:$0x11]  }
 0x199   : > { %v3285_v63 = vrot.slane %v9669_v40, 1  ;;  %v8583_v40 = vcombine.low %v2870_v26, %v10761_v6  ;;  %v2877_v26 = vld [vmem:[#allocation2 + $0xa8] sm:$0xe] }
 0x19b   : > { %v3286_v42 = vsel %vm13993_vm10, %v3284_v12, %v3285_v63  ;;  %v3339_v12 = vsel %vm13994_vm11, %v10715_v8, %v3208_v28  ;;  %v3297_v63 = vrot.slane %v10773_v4, 1  ;;  %v3212_v8 = vpop.permute.xlu1 %3211 }
 0x19c   : > { %v3345_v21 = vsel %vm13994_vm11, %v10764_v23, %v3212_v8 }
 0x19f   : > { %2800 = vmatmul.mubr.bf16.gmra.mrb[56].mxu0 %v1640_v52  ;;  %v9671_v52 = vld [vmem:[#allocation2 + $0x38] ss:$0 sps:$4 sm:$0x11]   ;;  %v3216_v23 = vpop.permute.xlu1 %3215 }
 0x1a0   : > { %8545 = vmatprep.mubr.msk.bf16.mxu0 %vm13994_vm11, %v1595_v60  ;;  %v3288_v60 = vrot.slane %v9671_v52, 1  ;;  %v3303_v52 = vrot.slane %v10811_v2, 1  ;;  %v3351_v61 = vsel %vm13994_vm11, %v10806_v7, %v3216_v23 }
 0x1a2   : > { %v3289_v34 = vsel %vm13993_vm10, %v3287_v44, %v3288_v60  ;;  %v8585_v44 = vcombine.low %v2872_v20, %v10802_v45  ;;  %v2873_v60 = vld [vmem:[#allocation2 + $0x78] sm:$0xe]  ;;  %v2879_v20 = vld [vmem:[#allocation2 + $0xc0] sm:$0xe] }
 0x1a3   : > { %v3220_v7 = vpop.permute.xlu1 %3219 }
 0x1a4   : > { %v3357_v28 = vsel %vm13994_vm11, %v10838_v46, %v3220_v7 }
 0x1a7   : > { %2808 = vmatmul.mubr.bf16.gmra.mrb[60].mxu0 %v1643_v33  ;;  %v2869_v33 = vld [vmem:[#allocation2 + $0x48] sm:$0xe]  ;;  %v3224_v46 = vpop.permute.xlu1 %3223 }
 0x1a8   : > { %8630 = vmatprep.mubr.msk.bf16.mxu0 %vm13994_vm11, %v3283_v49  ;;  %v3336_v49 = vsel %vm13994_vm11, %v10700_v5, %v3206_v14  ;;  %v8582_v57 = vcombine.low %v2869_v33, %v10733_v37  ;;  %v3210_v5 = vpop.permute.xlu0 %3209  ;;  %v3296_v37 = vrot.slane %v8583_v40, 1  ;;  %v8587_v14 = vcombine.low %v2874_v13, %v10834_v38  ;;  %v14105_v13 = vld [vmem:[#allocation27_spill] sm:$0xff] }
 0x1a9   : > { %v3318_v40 = vrot.slane %v10891_v55, 1 }
 0x1aa   : > { %v3293_v17 = vrot.slane %v8582_v57, 1  ;;  %v3298_v50 = vsel %vm13993_vm10, %v3296_v37, %v3297_v63  ;;  %v2876_v57 = vld [vmem:[#allocation2 + $0x9c] sm:$0xe]  ;;  %v14100_v37 = vld [vmem:[#allocation24_spill] sm:$0xff] }
 0x1ab   : > { %v3363_v63 = vsel %vm13994_vm11, %v14100_v37, %v3224_v46 }
 0x1ac   : > { %v3295_v24 = vsel %vm13993_vm10, %v3293_v17, %v3294_v15  ;;  %v8589_v17 = vcombine.low %v2876_v57, %v10866_v48  ;;  %v3315_v15 = vrot.slane %v10875_v39, 1  ;;  %v498_v39 = vld [vmem:[#allocation3 + $0x14] sm:$0x1] }
 0x1af   : > { %3555 = vmatmul.mubr.bf16.vlgmr.msra.gmra.mrb[0].mxu0 %v3330_v51  ;;  %v3342_v51 = vsel %vm13994_vm11, %v10737_v3, %v3210_v5  ;;  %v3214_v3 = vpop.permute.xlu0 %3213  ;;  %v2878_v5 = vld [vmem:[#allocation2 + $0xb4] sm:$0xe] }
 0x1b0   : > { %8631 = vmatprep.mubr.msk.bf16.mxu0 %vm13994_vm11, %v3286_v42  ;;  %v8584_v42 = vcombine.low %v2871_v43, %v10783_v29  ;;  %v3302_v29 = vrot.slane %v8585_v44, 1  ;;  %v3348_v19 = vsel %vm13994_vm11, %v10787_v16, %v3214_v3  ;;  %v501_v44 = vld [vmem:[#allocation3 + $0x20] sm:$0x1] }
 0x1b2   : > { %v3299_v6 = vrot.slane %v8584_v42, 1  ;;  %v3304_v31 = vsel %vm13993_vm10, %v3302_v29, %v3303_v52  ;;  %v14104_v29 = vld [vmem:[#allocation10_spill] sm:$0xff] }
 0x1b3   : > { %v3218_v16 = vpop.permute.xlu0 %3217  ;;  %v8592_v52 = vcombine.low %v2879_v20, %v14104_v29  ;;  %v531_v20 = vld [vmem:[#allocation3 + $0x98] sm:$0x1] }
 0x1b4   : > { %v3301_v4 = vsel %vm13993_vm10, %v3299_v6, %v3300_v47  ;;  %v3354_v33 = vsel %vm13994_vm11, %v10822_v30, %v3218_v16  ;;  %v14102_v6 = vld [vmem:[#allocation9_spill] sm:$0xff] }
 0x1b5   : > { %v3321_v47 = vrot.slane %v14102_v6, 1  ;;  %v3323_v23 = vrot.slane %v8592_v52, 1  ;;  %v477_v6 = vld [vmem:[#allocation3 + $0x90] sm:$0x1]  ;;  %v483_v52 = vld [vmem:[#allocation3 + $0xa8] sm:$0x1] }
 0x1b7   : > { %3563 = vmatmul.mubr.bf16.gmra.mrb[4].mxu0 %v3333_v62  ;;  %v8586_v62 = vcombine.low %v2873_v60, %v10818_v35  ;;  %v3308_v35 = vrot.slane %v8587_v14, 1  ;;  %v3222_v30 = vpop.permute.xlu0 %3221  ;;  %v502_v60 = vsel %vm9843_vm5, 0, %v501_v44 }
 0x1b8   : > { %8632 = vmatprep.mubr.msk.bf16.mxu0 %vm13994_vm11, %v3289_v34  ;;  %v3306_v34 = vrot.slane %v10827_v9, 1  ;;  %503 = vst [vmem:[#allocation3 + $0x20] sm:$0x1] %v502_v60  ;;  %v484_v60 = vsel %vm9833_vm2, 0, %v483_v52 }
 0x1b9   : > { %v3305_v45 = vrot.slane %v8586_v62, 1  ;;  %v3310_v9 = vsel %vm13993_vm10, %v3308_v35, %v3309_v0  ;;  %v3228_v62 = vpop.permute.xlu1 %3227  ;;  %v453_v0 = vld [vmem:[#allocation3 + $0x30] sm:$0x1]  ;;  %485 = vst [vmem:[#allocation3 + $0xa8] sm:$0x1] %v484_v60 }
 0x1bb   : > { %v3307_v2 = vsel %vm13993_vm10, %v3305_v45, %v3306_v34  ;;  %v3226_v55 = vpop.permute.xlu0 %3225  ;;  %v3324_v45 = vrot.slane %v10925_v27, 1  ;;  %v2880_v34 = vld [vmem:[#allocation2 + $0xcc] sm:$0xe] }
 0x1bc   : > { %v8593_v16 = vcombine.low %v2880_v34, %v10934_v1  ;;  %v507_v1 = vld [vmem:[#allocation3 + $0x38] sm:$0x1] }
 0x1bd   : > { %v3325_v14 = vsel %vm13993_vm10, %v3323_v23, %v3324_v45  ;;  %v540_v45 = vld [vmem:[#allocation3 + $0xbc] sm:$0x1] }
 0x1be   : > { %v541_v34 = vsel %vm9843_vm5, 0, %v540_v45 }
 0x1bf   : > { %3571 = vmatmul.mubr.bf16.gmra.mrb[8].mxu0 %v3336_v49  ;;  %v8588_v49 = vcombine.low %v2875_v18, %v10850_v36  ;;  %v3314_v36 = vrot.slane %v8589_v17, 1  ;;  %v454_v18 = vsel %vm9833_vm2, 0, %v453_v0  ;;  %v3230_v27 = vpop.permute.xlu0 %3229  ;;  %v459_v17 = vld [vmem:[#allocation3 + $0x48] sm:$0x1]  ;;  %542 = vst [vmem:[#allocation3 + $0xbc] sm:$0x1] %v541_v34 }
 0x1c0   : > { %8633 = vmatprep.mubr.msk.bf16.mxu0 %vm13994_vm11, %v3292_v56  ;;  %v3312_v56 = vrot.slane %v10859_v11, 1  ;;  %455 = vst [vmem:[#allocation3 + $0x30] sm:$0x1] %v454_v18 }
 0x1c1   : > { %v3311_v38 = vrot.slane %v8588_v49, 1  ;;  %v3316_v11 = vsel %vm13993_vm10, %v3314_v36, %v3315_v15  ;;  %v3372_v49 = vsel %vm13994_vm11, %v10920_v32, %v3230_v27  ;;  %v510_v32 = vld [vmem:[#allocation3 + $0x44] sm:$0x1]  ;;  %v513_v36 = vld [vmem:[#allocation3 + $0x50] sm:$0x1] }
 0x1c2   : > { %v514_v15 = vsel %vm9843_vm5, 0, %v513_v36 }
 0x1c3   : > { %v3313_v59 = vsel %vm13993_vm10, %v3311_v38, %v3312_v56  ;;  %v508_v38 = vsel %vm9843_vm5, 0, %v507_v1  ;;  %v456_v56 = vld [vmem:[#allocation3 + $0x3c] sm:$0x1]  ;;  %515 = vst [vmem:[#allocation3 + $0x50] sm:$0x1] %v514_v15 }
 0x1c4   : > { %509 = vst [vmem:[#allocation3 + $0x38] sm:$0x1] %v508_v38  ;;  %v457_v57 = vsel %vm9833_vm2, 0, %v456_v56 }
 0x1c5   : > { %458 = vst [vmem:[#allocation3 + $0x3c] sm:$0x1] %v457_v57 }
 0x1c7   : > { %3579 = vmatmul.mubr.bf16.gmra.mrb[12].mxu0 %v3339_v12  ;;  %v3360_v12 = vsel %vm13994_vm11, %v10854_v41, %v3222_v30  ;;  %v460_v30 = vsel %vm9833_vm2, 0, %v459_v17 }
 0x1c8   : > { %8634 = vmatprep.mubr.msk.bf16.mxu0 %vm13994_vm11, %v3295_v24  ;;  %v8590_v24 = vcombine.low %v2877_v26, %v10882_v10  ;;  %v447_v10 = vld [vmem:[#allocation3 + $0x18] sm:$0x1]  ;;  %461 = vst [vmem:[#allocation3 + $0x48] sm:$0x1] %v460_v30  ;;  %v462_v26 = vld [vmem:[#allocation3 + $0x54] sm:$0x1] }
 0x1c9   : > { %v448_v42 = vsel %vm9833_vm2, 0, %v447_v10  ;;  %v474_v10 = vld [vmem:[#allocation3 + $0x84] sm:$0x1] }
 0x1ca   : > { %v3317_v48 = vrot.slane %v8590_v24, 1  ;;  %449 = vst [vmem:[#allocation3 + $0x18] sm:$0x1] %v448_v42  ;;  %v465_v24 = vld [vmem:[#allocation3 + $0x60] sm:$0x1]  ;;  %v475_v42 = vsel %vm9833_vm2, 0, %v474_v10 }
 0x1cb   : > { %v466_v46 = vsel %vm9833_vm2, 0, %v465_v24  ;;  %476 = vst [vmem:[#allocation3 + $0x84] sm:$0x1] %v475_v42 }
 0x1cc   : > { %v3319_v43 = vsel %vm13993_vm10, %v3317_v48, %v3318_v40  ;;  %467 = vst [vmem:[#allocation3 + $0x60] sm:$0x1] %v466_v46  ;;  %v519_v48 = vld [vmem:[#allocation3 + $0x68] sm:$0x1] }
 0x1cd   : > { %v520_v40 = vsel %vm9843_vm5, 0, %v519_v48 }
 0x1ce   : > { %521 = vst [vmem:[#allocation3 + $0x68] sm:$0x1] %v520_v40 }
 0x1cf   : > { %3587 = vmatmul.mubr.bf16.gmra.mrb[16].mxu0 %v3342_v51  ;;  %v14101_v51 = vld [vmem:[#allocation8_spill] sm:$0xff] }
 0x1d0   : > { %8635 = vmatprep.mubr.msk.bf16.mxu0 %vm13994_vm11, %v3298_v50  ;;  %v8591_v41 = vcombine.low %v2878_v5, %v14101_v51  ;;  %v499_v50 = vsel %vm9843_vm5, 0, %v498_v39  ;;  %v468_v5 = vld [vmem:[#allocation3 + $0x6c] sm:$0x1] }
 0x1d1   : > { %500 = vst [vmem:[#allocation3 + $0x14] sm:$0x1] %v499_v50  ;;  %v469_v37 = vsel %vm9833_vm2, 0, %v468_v5 }
 0x1d2   : > { %v3320_v8 = vrot.slane %v8591_v41, 1  ;;  %470 = vst [vmem:[#allocation3 + $0x6c] sm:$0x1] %v469_v37  ;;  %v525_v41 = vld [vmem:[#allocation3 + $0x80] sm:$0x1] }
 0x1d3   : > { %v526_v50 = vsel %vm9843_vm5, 0, %v525_v41 }
 0x1d4   : > { %v3322_v3 = vsel %vm13993_vm10, %v3320_v8, %v3321_v47  ;;  %527 = vst [vmem:[#allocation3 + $0x80] sm:$0x1] %v526_v50  ;;  %v478_v47 = vsel %vm9833_vm2, 0, %v477_v6 }
 0x1d5   : > { %479 = vst [vmem:[#allocation3 + $0x90] sm:$0x1] %v478_v47 }
 0x1d7   : > { %3595 = vmatmul.mubr.bf16.gmra.mrb[20].mxu0 %v3345_v21  ;;  %v14103_v21 = vld [vmem:[#allocation26_spill] sm:$0xff] }
 0x1d8   : > { %8636 = vmatprep.mubr.msk.bf16.mxu0 %vm13994_vm11, %v3301_v4  ;;  %v3366_v4 = vsel %vm13994_vm11, %v14103_v21, %v3226_v55  ;;  %v528_v55 = vld [vmem:[#allocation3 + $0x8c] sm:$0x1]  ;;  %v532_v21 = vsel %vm9843_vm5, 0, %v531_v20 }
 0x1d9   : > { %v529_v8 = vsel %vm9843_vm5, 0, %v528_v55  ;;  %533 = vst [vmem:[#allocation3 + $0x98] sm:$0x1] %v532_v21 }
 0x1da   : > { %530 = vst [vmem:[#allocation3 + $0x8c] sm:$0x1] %v529_v8 }
 0x1df   : > { %3603 = vmatmul.mubr.bf16.gmra.mrb[24].mxu0 %v3348_v19  ;;  %v450_v19 = vld [vmem:[#allocation3 + $0x24] sm:$0x1] }
 0x1e0   : > { %8637 = vmatprep.mubr.msk.bf16.mxu0 %vm13994_vm11, %v3304_v31  ;;  %v451_v31 = vsel %vm9833_vm2, 0, %v450_v19  ;;  %v537_v19 = vld [vmem:[#allocation3 + $0xb0] sm:$0x1] }
 0x1e1   : > { %452 = vst [vmem:[#allocation3 + $0x24] sm:$0x1] %v451_v31  ;;  %v538_v31 = vsel %vm9843_vm5, 0, %v537_v19 }
 0x1e2   : > { %539 = vst [vmem:[#allocation3 + $0xb0] sm:$0x1] %v538_v31 }
 0x1e7   : > { %3611 = vmatmul.mubr.bf16.gmra.mrb[28].mxu0 %v3351_v61  ;;  %v3369_v61 = vsel %vm13994_vm11, %v14105_v13, %v3228_v62  ;;  %v486_v62 = vld [vmem:[#allocation3 + $0xb4] sm:$0x1]  ;;  %v489_v13 = vld [vmem:[#allocation3 + $0xc0] sm:$0x1] }
 0x1e8   : > { %8638 = vmatprep.mubr.msk.bf16.mxu0 %vm13994_vm11, %v3307_v2  ;;  %v504_v2 = vld [vmem:[#allocation3 + $0x2c] sm:$0x1]  ;;  %v487_v23 = vsel %vm9833_vm2, 0, %v486_v62 }
 0x1e9   : > { %v505_v35 = vsel %vm9843_vm5, 0, %v504_v2  ;;  %488 = vst [vmem:[#allocation3 + $0xb4] sm:$0x1] %v487_v23  ;;  %v543_v2 = vld [vmem:[#allocation3 + $0xc8] sm:$0x1] }
 0x1ea   : > { %506 = vst [vmem:[#allocation3 + $0x2c] sm:$0x1] %v505_v35 }
 0x1ef   : > { %3619 = vmatmul.mubr.bf16.gmra.mrb[32].mxu0 %v3354_v33  ;;  %v3326_v33 = vrot.slane %v8593_v16, 1 }
 0x1f0   : > { %8639 = vmatprep.mubr.msk.bf16.mxu0 %vm13994_vm11, %v3310_v9  ;;  %v3327_v9 = vrot.slane %v10946_v22, 1 }
 0x1f2   : > { %v3328_v7 = vsel %vm13993_vm10, %v3326_v33, %v3327_v9 }
 0x1f7   : > { %3627 = vmatmul.mubr.bf16.gmra.mrb[36].mxu0 %v3357_v28  ;;  %v3232_v28 = vpop.permute.xlu1 %3231 }
 0x1f8   : > { %8640 = vmatprep.mubr.msk.bf16.mxu0 %vm13994_vm11, %v3313_v59  ;;  %v3375_v22 = vsel %vm13994_vm11, %v10938_v25, %v3232_v28  ;;  %v511_v59 = vsel %vm9843_vm5, 0, %v510_v32  ;;  %v463_v25 = vsel %vm9833_vm2, 0, %v462_v26 }
 0x1f9   : > { %512 = vst [vmem:[#allocation3 + $0x44] sm:$0x1] %v511_v59  ;;  %464 = vst [vmem:[#allocation3 + $0x54] sm:$0x1] %v463_v25 }
 0x1ff   : > { %3635 = vmatmul.mubr.bf16.gmra.mrb[40].mxu0 %v3360_v12  ;;  %v516_v12 = vld [vmem:[#allocation3 + $0x5c] sm:$0x1] }
 0x200   : > { %8641 = vmatprep.mubr.msk.bf16.mxu0 %vm13994_vm11, %v3316_v11  ;;  %v517_v11 = vsel %vm9843_vm5, 0, %v516_v12 }
 0x201   : > { %518 = vst [vmem:[#allocation3 + $0x5c] sm:$0x1] %v517_v11 }
 0x207   : > { %3643 = vmatmul.mubr.bf16.gmra.mrb[44].mxu0 %v3363_v63  ;;  %v522_v63 = vld [vmem:[#allocation3 + $0x74] sm:$0x1] }
 0x208   : > { %8642 = vmatprep.mubr.msk.bf16.mxu0 %vm13994_vm11, %v3319_v43  ;;  %v523_v39 = vsel %vm9843_vm5, 0, %v522_v63  ;;  %v471_v43 = vld [vmem:[#allocation3 + $0x78] sm:$0x1] }
 0x209   : > { %524 = vst [vmem:[#allocation3 + $0x74] sm:$0x1] %v523_v39  ;;  %v472_v51 = vsel %vm9833_vm2, 0, %v471_v43 }
 0x20a   : > { %473 = vst [vmem:[#allocation3 + $0x78] sm:$0x1] %v472_v51 }
 0x20f   : > { %3651 = vmatmul.mubr.bf16.gmra.mrb[48].mxu0 %v3366_v4  ;;  %v480_v4 = vld [vmem:[#allocation3 + $0x9c] sm:$0x1] }
 0x210   : > { %8643 = vmatprep.mubr.msk.bf16.mxu0 %vm13994_vm11, %v3322_v3  ;;  %v481_v44 = vsel %vm9833_vm2, 0, %v480_v4  ;;  %v534_v3 = vld [vmem:[#allocation3 + $0xa4] sm:$0x1] }
 0x211   : > { %482 = vst [vmem:[#allocation3 + $0x9c] sm:$0x1] %v481_v44  ;;  %v535_v29 = vsel %vm9843_vm5, 0, %v534_v3 }
 0x212   : > { %536 = vst [vmem:[#allocation3 + $0xa4] sm:$0x1] %v535_v29 }
 0x217   : > { %3659 = vmatmul.mubr.bf16.gmra.mrb[52].mxu0 %v3369_v61  ;;  %v490_v61 = vsel %vm9833_vm2, 0, %v489_v13 }
 0x218   : > { %8644 = vmatprep.mubr.msk.bf16.mxu0 %vm13994_vm11, %v3325_v14  ;;  %491 = vst [vmem:[#allocation3 + $0xc0] sm:$0x1] %v490_v61  ;;  %v544_v14 = vsel %vm9843_vm5, 0, %v543_v2 }
 0x219   : > { %545 = vst [vmem:[#allocation3 + $0xc8] sm:$0x1] %v544_v14 }
 0x21f   : > { %3667 = vmatmul.mubr.bf16.gmra.mrb[56].mxu0 %v3372_v49 }
 0x220   : > { %8645 = vmatprep.mubr.msk.bf16.mxu0 %vm13994_vm11, %v3328_v7 }
 0x227   : > { %3675 = vmatmul.mubr.bf16.gmra.mrb[60].mxu0 %v3375_v22 }
 0x282   : > { %v11210_v16 = vpop.f32.mrb[0].mxu0 }
 0x283   : > { %v3558_v35 = vpop.f32.mrb[1].mxu0  ;;  %v3715_v18 = vsel %vm13994_vm11, %v11210_v16, 0.0 }
 0x284   : > { %v11212_v0 = vpop.f32.mrb[2].mxu0 }
 0x285   : > { %v3716_v27 = vsel %vm13994_vm11, %v11212_v0, 0.0  ;;  %v3561_v33 = vpop.f32.mrb[3].mxu0 }
 0x286   : > { %v3717_v9 = vadd.f32 %v3716_v27, %v3715_v18 }
 0x28a   : > { %v11218_v49 = vpop.f32.mrb[4].mxu0 }
 0x28b   : > { %v3718_v1 = vsel %vm13994_vm11, %v11218_v49, 0.0  ;;  %v3566_v7 = vpop.f32.mrb[5].mxu0 }
 0x28c   : > { %v3719_v38 = vadd.f32 %v3718_v1, %v3717_v9  ;;  %v11222_v56 = vpop.f32.mrb[6].mxu0 }
 0x28d   : > { %v3720_v57 = vsel %vm13994_vm11, %v11222_v56, 0.0  ;;  %v3569_v28 = vpop.f32.mrb[7].mxu0 }
 0x28e   : > { %v3721_v22 = vadd.f32 %v3720_v57, %v3719_v38 }
 0x292   : > { %v11226_v32 = vpop.f32.mrb[8].mxu0 }
 0x293   : > { %v3722_v59 = vsel %vm13994_vm11, %v11226_v32, 0.0  ;;  %v3574_v17 = vpop.f32.mrb[9].mxu0 }
 0x294   : > { %v3723_v30 = vadd.f32 %v3722_v59, %v3721_v22  ;;  %v11230_v36 = vpop.f32.mrb[10].mxu0 }
 0x295   : > { %v3724_v15 = vsel %vm13994_vm11, %v11230_v36, 0.0  ;;  %v3577_v26 = vpop.f32.mrb[11].mxu0 }
 0x296   : > { %v3725_v25 = vadd.f32 %v3724_v15, %v3723_v30 }
 0x29a   : > { %v11234_v12 = vpop.f32.mrb[12].mxu0 }
 0x29b   : > { %v3726_v11 = vsel %vm13994_vm11, %v11234_v12, 0.0  ;;  %v3582_v24 = vpop.f32.mrb[13].mxu0 }
 0x29c   : > { %v3727_v46 = vadd.f32 %v3726_v11, %v3725_v25  ;;  %v11238_v48 = vpop.f32.mrb[14].mxu0 }
 0x29d   : > { %v3728_v40 = vsel %vm13994_vm11, %v11238_v48, 0.0  ;;  %v3585_v5 = vpop.f32.mrb[15].mxu0 }
 0x29e   : > { %v3729_v37 = vadd.f32 %v3728_v40, %v3727_v46 }
 0x2a2   : > { %v11242_v63 = vpop.f32.mrb[16].mxu0 }
 0x2a3   : > { %v3730_v39 = vsel %vm13994_vm11, %v11242_v63, 0.0  ;;  %v3590_v43 = vpop.f32.mrb[17].mxu0 }
 0x2a4   : > { %v3731_v51 = vadd.f32 %v3730_v39, %v3729_v37  ;;  %v11246_v41 = vpop.f32.mrb[18].mxu0 }
 0x2a5   : > { %v3732_v50 = vsel %vm13994_vm11, %v11246_v41, 0.0  ;;  %v3593_v10 = vpop.f32.mrb[19].mxu0 }
 0x2a6   : > { %v3733_v42 = vadd.f32 %v3732_v50, %v3731_v51 }
 0x2aa   : > { %v11250_v55 = vpop.f32.mrb[20].mxu0 }
 0x2ab   : > { %v3734_v8 = vsel %vm13994_vm11, %v11250_v55, 0.0  ;;  %v3598_v6 = vpop.f32.mrb[21].mxu0 }
 0x2ac   : > { %v3735_v47 = vadd.f32 %v3734_v8, %v3733_v42  ;;  %v11254_v20 = vpop.f32.mrb[22].mxu0 }
 0x2ad   : > { %v3736_v21 = vsel %vm13994_vm11, %v11254_v20, 0.0  ;;  %v3601_v4 = vpop.f32.mrb[23].mxu0 }
 0x2ae   : > { %v3737_v44 = vadd.f32 %v3736_v21, %v3735_v47 }
 0x2b2   : > { %v11258_v3 = vpop.f32.mrb[24].mxu0 }
 0x2b3   : > { %v3738_v29 = vsel %vm13994_vm11, %v11258_v3, 0.0  ;;  %v3606_v52 = vpop.f32.mrb[25].mxu0 }
 0x2b4   : > { %v3739_v60 = vadd.f32 %v3738_v29, %v3737_v44  ;;  %v11262_v19 = vpop.f32.mrb[26].mxu0 }
 0x2b5   : > { %v3740_v31 = vsel %vm13994_vm11, %v11262_v19, 0.0  ;;  %v3609_v62 = vpop.f32.mrb[27].mxu0 }
 0x2b6   : > { %v3741_v23 = vadd.f32 %v3740_v31, %v3739_v60 }
 0x2ba   : > { %v11266_v45 = vpop.f32.mrb[28].mxu0 }
 0x2bb   : > { %v3742_v34 = vsel %vm13994_vm11, %v11266_v45, 0.0  ;;  %v3614_v13 = vpop.f32.mrb[29].mxu0 }
 0x2bc   : > { %v3743_v61 = vadd.f32 %v3742_v34, %v3741_v23  ;;  %v11270_v2 = vpop.f32.mrb[30].mxu0 }
 0x2bd   : > { %v3744_v14 = vsel %vm13994_vm11, %v11270_v2, 0.0  ;;  %v3617_v35 = vpop.f32.mrb[31].mxu0 }
 0x2be   : > { %v3745_v18 = vadd.f32 %v3744_v14, %v3743_v61 }
 0x2c2   : > { %v11274_v27 = vpop.f32.mrb[32].mxu0 }
 0x2c3   : > { %v3746_v33 = vsel %vm13994_vm11, %v11274_v27, 0.0  ;;  %v3622_v9 = vpop.f32.mrb[33].mxu0 }
 0x2c4   : > { %v3747_v1 = vadd.f32 %v3746_v33, %v3745_v18  ;;  %v11278_v7 = vpop.f32.mrb[34].mxu0 }
 0x2c5   : > { %v3748_v38 = vsel %vm13994_vm11, %v11278_v7, 0.0  ;;  %v3625_v57 = vpop.f32.mrb[35].mxu0 }
 0x2c6   : > { %v3749_v28 = vadd.f32 %v3748_v38, %v3747_v1 }
 0x2ca   : > { %v11282_v22 = vpop.f32.mrb[36].mxu0 }
 0x2cb   : > { %v3750_v59 = vsel %vm13994_vm11, %v11282_v22, 0.0  ;;  %v3630_v17 = vpop.f32.mrb[37].mxu0 }
 0x2cc   : > { %v3751_v30 = vadd.f32 %v3750_v59, %v3749_v28  ;;  %v11286_v15 = vpop.f32.mrb[38].mxu0 }
 0x2cd   : > { %v3752_v26 = vsel %vm13994_vm11, %v11286_v15, 0.0  ;;  %v3633_v25 = vpop.f32.mrb[39].mxu0 }
 0x2ce   : > { %v3753_v11 = vadd.f32 %v3752_v26, %v3751_v30 }
 0x2d2   : > { %v11290_v24 = vpop.f32.mrb[40].mxu0 }
 0x2d3   : > { %v3754_v46 = vsel %vm13994_vm11, %v11290_v24, 0.0  ;;  %v3638_v40 = vpop.f32.mrb[41].mxu0 }
 0x2d4   : > { %v3755_v5 = vadd.f32 %v3754_v46, %v3753_v11  ;;  %v11294_v37 = vpop.f32.mrb[42].mxu0 }
 0x2d5   : > { %v3756_v39 = vsel %vm13994_vm11, %v11294_v37, 0.0  ;;  %v3641_v43 = vpop.f32.mrb[43].mxu0 }
 0x2d6   : > { %v3757_v51 = vadd.f32 %v3756_v39, %v3755_v5 }
 0x2da   : > { %v11298_v50 = vpop.f32.mrb[44].mxu0 }
 0x2db   : > { %v3758_v10 = vsel %vm13994_vm11, %v11298_v50, 0.0  ;;  %v3646_v42 = vpop.f32.mrb[45].mxu0 }
 0x2dc   : > { %v3759_v8 = vadd.f32 %v3758_v10, %v3757_v51  ;;  %v11302_v6 = vpop.f32.mrb[46].mxu0 }
 0x2dd   : > { %v3760_v47 = vsel %vm13994_vm11, %v11302_v6, 0.0  ;;  %v3649_v21 = vpop.f32.mrb[47].mxu0 }
 0x2de   : > { %v3761_v4 = vadd.f32 %v3760_v47, %v3759_v8 }
 0x2e2   : > { %v11306_v44 = vpop.f32.mrb[48].mxu0 }
 0x2e3   : > { %v3762_v29 = vsel %vm13994_vm11, %v11306_v44, 0.0  ;;  %v3654_v52 = vpop.f32.mrb[49].mxu0 }
 0x2e4   : > { %v3763_v60 = vadd.f32 %v3762_v29, %v3761_v4  ;;  %v3655_v31 = vpop.f32.mrb[50].mxu0 }
 0x2e5   : > { %v3764_v62 = vsel %vm13994_vm11, %v3655_v31, 0.0  ;;  %v3657_v23 = vpop.f32.mrb[51].mxu0 }
 0x2e6   : > { %v3765_v34 = vadd.f32 %v3764_v62, %v3763_v60 }
 0x2ea   : > { %v3660_v13 = vpop.f32.mrb[52].mxu0 }
 0x2eb   : > { %v3766_v61 = vsel %vm13994_vm11, %v3660_v13, 0.0  ;;  %v3662_v14 = vpop.f32.mrb[53].mxu0 }
 0x2ec   : > { %v3767_v35 = vadd.f32 %v3766_v61, %v3765_v34  ;;  %v3663_v18 = vpop.f32.mrb[54].mxu0 }
 0x2ed   : > { %v3768_v33 = vsel %vm13994_vm11, %v3663_v18, 0.0  ;;  %v3665_v9 = vpop.f32.mrb[55].mxu0 }
 0x2ee   : > { %v3769_v1 = vadd.f32 %v3768_v33, %v3767_v35 }
 0x2f2   : > { %v3668_v38 = vpop.f32.mrb[56].mxu0 }
 0x2f3   : > { %v3770_v57 = vsel %vm13994_vm11, %v3668_v38, 0.0  ;;  %v3670_v28 = vpop.f32.mrb[57].mxu0 }
 0x2f4   : > { %v3771_v59 = vadd.f32 %v3770_v57, %v3769_v1  ;;  %v3671_v17 = vpop.f32.mrb[58].mxu0 }
 0x2f5   : > { %v3772_v30 = vsel %vm13994_vm11, %v3671_v17, 0.0  ;;  %v3673_v26 = vpop.f32.mrb[59].mxu0 }
 0x2f6   : > { %v3773_v25 = vadd.f32 %v3772_v30, %v3771_v59 }
 0x2fa   : > { %v3676_v11 = vpop.f32.mrb[60].mxu0 }
 0x2fb   : > { %v3774_v46 = vsel %vm13994_vm11, %v3676_v11, 0.0  ;;  %v3678_v40 = vpop.f32.mrb[61].mxu0 }
 0x2fc   : > { %v3775_v5 = vadd.f32 %v3774_v46, %v3773_v25  ;;  %v3679_v39 = vpop.f32.mrb[62].mxu0 }
 0x2fd   : > { %v3776_v43 = vsel %vm13994_vm11, %v3679_v39, 0.0  ;;  %v3681_v51 = vpop.f32.mrb[63].mxu0 }
 0x2fe   : > { %v3777_v10 = vadd.f32 %v3776_v43, %v3775_v5 }
 0x300   : > { %v3778_v42 = vrot.slane %v3777_v10, 4 }
 0x302   : > { %v3779_v8 = vadd.f32 %v3778_v42, %v3777_v10 }
 0x304   : > { %v3780_v47 = vrot.slane %v3779_v8, 2 }
 0x306   : > { %v3781_v21 = vadd.f32 %v3780_v47, %v3779_v8 }
 0x308   : > { %v3782_v4 = vrot.slane %v3781_v21, 1 }
 0x30a   : > { %v3783_v29 = vadd.f32 %v3782_v4, %v3781_v21 }
 0x30c   : > { %v3784_v52 = vmul.f32 0.00390625, %v3783_v29 }
 0x30e   : > { %v11318_v60 = vsub.f32 %v11210_v16, %v3784_v52  ;;  %v11321_v62 = vsub.f32 %v11212_v0, %v3784_v52  ;;  %v11324_v23 = vsub.f32 %v11218_v49, %v3784_v52  ;;  %v11327_v34 = vsub.f32 %v11222_v56, %v3784_v52 }
 0x30f   : > { %v11330_v61 = vsub.f32 %v11226_v32, %v3784_v52  ;;  %v11333_v14 = vsub.f32 %v11230_v36, %v3784_v52  ;;  %v11336_v35 = vsub.f32 %v11234_v12, %v3784_v52  ;;  %v11339_v16 = vsub.f32 %v11238_v48, %v3784_v52 }
 0x310   : > { %v11342_v0 = vsub.f32 %v11242_v63, %v3784_v52  ;;  %v11345_v49 = vsub.f32 %v11246_v41, %v3784_v52  ;;  %v11348_v56 = vsub.f32 %v11250_v55, %v3784_v52  ;;  %v11351_v32 = vsub.f32 %v11254_v20, %v3784_v52 }
 0x311   : > { %v11354_v36 = vsub.f32 %v11258_v3, %v3784_v52  ;;  %v11357_v12 = vsub.f32 %v11262_v19, %v3784_v52  ;;  %v11360_v48 = vsub.f32 %v11266_v45, %v3784_v52  ;;  %v11363_v63 = vsub.f32 %v11270_v2, %v3784_v52 }
 0x312   : > { %v11366_v41 = vsub.f32 %v11274_v27, %v3784_v52  ;;  %v11369_v55 = vsub.f32 %v11278_v7, %v3784_v52  ;;  %v11372_v20 = vsub.f32 %v11282_v22, %v3784_v52  ;;  %v11375_v3 = vsub.f32 %v11286_v15, %v3784_v52 }
 0x313   : > { %v11378_v19 = vsub.f32 %v11290_v24, %v3784_v52  ;;  %v11381_v45 = vsub.f32 %v11294_v37, %v3784_v52  ;;  %v11384_v2 = vsub.f32 %v11298_v50, %v3784_v52  ;;  %v11387_v27 = vsub.f32 %v11302_v6, %v3784_v52 }
 0x314   : > { %v11390_v7 = vsub.f32 %v11306_v44, %v3784_v52  ;;  %v11392_v22 = vsub.f32 %v3655_v31, %v3784_v52  ;;  %v11394_v33 = vsub.f32 %v3660_v13, %v3784_v52  ;;  %v11396_v15 = vsub.f32 %v3663_v18, %v3784_v52 }
 0x315   : > { %v11398_v24 = vsub.f32 %v3668_v38, %v3784_v52  ;;  %v11400_v9 = vsub.f32 %v3671_v17, %v3784_v52  ;;  %v11402_v37 = vsub.f32 %v3676_v11, %v3784_v52  ;;  %v11404_v50 = vsub.f32 %v3679_v39, %v3784_v52 }
 0x316   : > { %v3817_v6 = vmul.f32 %v11318_v60, %v11318_v60  ;;  %v3818_v44 = vmul.f32 %v11321_v62, %v11321_v62  ;;  %v3819_v31 = vmul.f32 %v11324_v23, %v11324_v23  ;;  %v3820_v13 = vmul.f32 %v11327_v34, %v11327_v34 }
 0x317   : > { %v3821_v57 = vmul.f32 %v11330_v61, %v11330_v61  ;;  %v3822_v17 = vmul.f32 %v11333_v14, %v11333_v14  ;;  %v3823_v25 = vmul.f32 %v11336_v35, %v11336_v35  ;;  %v3824_v40 = vmul.f32 %v11339_v16, %v11339_v16 }
 0x318   : > { %v3849_v18 = vsel %vm13994_vm11, %v3817_v6, 0.0  ;;  %v3850_v1 = vsel %vm13994_vm11, %v3818_v44, 0.0  ;;  %v3852_v28 = vsel %vm13994_vm11, %v3819_v31, 0.0  ;;  %v3854_v30 = vsel %vm13994_vm11, %v3820_v13, 0.0 }
 0x319   : > { %v3851_v38 = vadd.f32 %v3850_v1, %v3849_v18  ;;  %v3856_v11 = vsel %vm13994_vm11, %v3821_v57, 0.0  ;;  %v3858_v5 = vsel %vm13994_vm11, %v3822_v17, 0.0  ;;  %v3825_v43 = vmul.f32 %v11342_v0, %v11342_v0 }
 0x31a   : > { %v3860_v51 = vsel %vm13994_vm11, %v3823_v25, 0.0  ;;  %v3826_v42 = vmul.f32 %v11345_v49, %v11345_v49  ;;  %v3862_v8 = vsel %vm13994_vm11, %v3824_v40, 0.0  ;;  %v3827_v21 = vmul.f32 %v11348_v56, %v11348_v56 }
 0x31b   : > { %v3853_v59 = vadd.f32 %v3852_v28, %v3851_v38  ;;  %v3864_v4 = vsel %vm13994_vm11, %v3825_v43, 0.0  ;;  %v3828_v52 = vmul.f32 %v11351_v32, %v11351_v32  ;;  %v3829_v31 = vmul.f32 %v11354_v36, %v11354_v36 }
 0x31c   : > { %v3866_v6 = vsel %vm13994_vm11, %v3826_v42, 0.0  ;;  %v3868_v13 = vsel %vm13994_vm11, %v3827_v21, 0.0  ;;  %v3830_v1 = vmul.f32 %v11357_v12, %v11357_v12  ;;  %v3831_v28 = vmul.f32 %v11360_v48, %v11360_v48 }
 0x31d   : > { %v3855_v26 = vadd.f32 %v3854_v30, %v3853_v59  ;;  %v3870_v38 = vsel %vm13994_vm11, %v3828_v52, 0.0  ;;  %v3872_v59 = vsel %vm13994_vm11, %v3829_v31, 0.0  ;;  %v3832_v30 = vmul.f32 %v11363_v63, %v11363_v63 }
 0x31f   : > { %v3857_v46 = vadd.f32 %v3856_v11, %v3855_v26  ;;  %v3874_v26 = vsel %vm13994_vm11, %v3830_v1, 0.0  ;;  %v3833_v11 = vmul.f32 %v11366_v41, %v11366_v41 }
 0x321   : > { %v3859_v39 = vadd.f32 %v3858_v5, %v3857_v46  ;;  %v3876_v46 = vsel %vm13994_vm11, %v3831_v28, 0.0  ;;  %v3834_v5 = vmul.f32 %v11369_v55, %v11369_v55 }
 0x323   : > { %v3861_v10 = vadd.f32 %v3860_v51, %v3859_v39  ;;  %v3878_v39 = vsel %vm13994_vm11, %v3832_v30, 0.0  ;;  %v3835_v51 = vmul.f32 %v11372_v20, %v11372_v20 }
 0x325   : > { %v3863_v47 = vadd.f32 %v3862_v8, %v3861_v10  ;;  %v3880_v10 = vsel %vm13994_vm11, %v3833_v11, 0.0  ;;  %v3836_v8 = vmul.f32 %v11375_v3, %v11375_v3 }
 0x327   : > { %v3865_v29 = vadd.f32 %v3864_v4, %v3863_v47  ;;  %v3882_v47 = vsel %vm13994_vm11, %v3834_v5, 0.0  ;;  %v3837_v4 = vmul.f32 %v11378_v19, %v11378_v19 }
 0x329   : > { %v3867_v44 = vadd.f32 %v3866_v6, %v3865_v29  ;;  %v3884_v29 = vsel %vm13994_vm11, %v3835_v51, 0.0  ;;  %v3838_v6 = vmul.f32 %v11381_v45, %v11381_v45 }
 0x32b   : > { %v3869_v18 = vadd.f32 %v3868_v13, %v3867_v44  ;;  %v3886_v44 = vsel %vm13994_vm11, %v3836_v8, 0.0  ;;  %v3839_v13 = vmul.f32 %v11384_v2, %v11384_v2 }
 0x32d   : > { %v3871_v57 = vadd.f32 %v3870_v38, %v3869_v18  ;;  %v3888_v18 = vsel %vm13994_vm11, %v3837_v4, 0.0  ;;  %v3840_v38 = vmul.f32 %v11387_v27, %v11387_v27 }
 0x32f   : > { %v3873_v17 = vadd.f32 %v3872_v59, %v3871_v57  ;;  %v3890_v57 = vsel %vm13994_vm11, %v3838_v6, 0.0  ;;  %v3841_v59 = vmul.f32 %v11390_v7, %v11390_v7 }
 0x331   : > { %v3875_v25 = vadd.f32 %v3874_v26, %v3873_v17  ;;  %v3892_v17 = vsel %vm13994_vm11, %v3839_v13, 0.0  ;;  %v3842_v26 = vmul.f32 %v11392_v22, %v11392_v22 }
 0x333   : > { %v3877_v40 = vadd.f32 %v3876_v46, %v3875_v25  ;;  %v3894_v25 = vsel %vm13994_vm11, %v3840_v38, 0.0  ;;  %v3843_v46 = vmul.f32 %v11394_v33, %v11394_v33 }
 0x335   : > { %v3879_v43 = vadd.f32 %v3878_v39, %v3877_v40  ;;  %v3896_v40 = vsel %vm13994_vm11, %v3841_v59, 0.0  ;;  %v3844_v39 = vmul.f32 %v11396_v15, %v11396_v15 }
 0x337   : > { %v3881_v42 = vadd.f32 %v3880_v10, %v3879_v43  ;;  %v3898_v43 = vsel %vm13994_vm11, %v3842_v26, 0.0  ;;  %v3845_v10 = vmul.f32 %v11398_v24, %v11398_v24 }
 0x339   : > { %v3883_v21 = vadd.f32 %v3882_v47, %v3881_v42  ;;  %v3900_v42 = vsel %vm13994_vm11, %v3843_v46, 0.0  ;;  %v3846_v47 = vmul.f32 %v11400_v9, %v11400_v9 }
 0x33b   : > { %v3885_v52 = vadd.f32 %v3884_v29, %v3883_v21  ;;  %v3902_v21 = vsel %vm13994_vm11, %v3844_v39, 0.0  ;;  %v3847_v29 = vmul.f32 %v11402_v37, %v11402_v37 }
 0x33d   : > { %v3887_v31 = vadd.f32 %v3886_v44, %v3885_v52  ;;  %v3904_v52 = vsel %vm13994_vm11, %v3845_v10, 0.0  ;;  %v3848_v44 = vmul.f32 %v11404_v50, %v11404_v50 }
 0x33f   : > { %v3889_v1 = vadd.f32 %v3888_v18, %v3887_v31  ;;  %v3906_v31 = vsel %vm13994_vm11, %v3846_v47, 0.0  ;;  %v3908_v18 = vsel %vm13994_vm11, %v3847_v29, 0.0  ;;  %v3910_v38 = vsel %vm13994_vm11, %v3848_v44, 0.0 }
 0x341   : > { %v3891_v28 = vadd.f32 %v3890_v57, %v3889_v1 }
 0x343   : > { %v3893_v30 = vadd.f32 %v3892_v17, %v3891_v28 }
 0x345   : > { %v3895_v11 = vadd.f32 %v3894_v25, %v3893_v30 }
 0x347   : > { %v3897_v5 = vadd.f32 %v3896_v40, %v3895_v11 }
 0x349   : > { %v3899_v51 = vadd.f32 %v3898_v43, %v3897_v5  ;;  %v11507_v5 = vld [vmem:[%s13951_s2] ss:$0 sm:$0xff] }
 0x34b   : > { %v3901_v8 = vadd.f32 %v3900_v42, %v3899_v51  ;;  %v11516_v51 = vld [vmem:[%s13952_s3] ss:$0 sm:$0xff] }
 0x34d   : > { %v3903_v4 = vadd.f32 %v3902_v21, %v3901_v8 }
 0x34f   : > { %v3905_v6 = vadd.f32 %v3904_v52, %v3903_v4 }
 0x351   : > { %v3907_v13 = vadd.f32 %v3906_v31, %v3905_v6 }
 0x353   : > { %v3909_v1 = vadd.f32 %v3908_v18, %v3907_v13 }
 0x355   : > { %v3911_v57 = vadd.f32 %v3910_v38, %v3909_v1 }
 0x357   : > { %v3912_v28 = vrot.slane %v3911_v57, 4 }
 0x359   : > { %v3913_v59 = vadd.f32 %v3912_v28, %v3911_v57 }
 0x35b   : > { %v3914_v17 = vrot.slane %v3913_v59, 2 }
 0x35d   : > { %v3915_v30 = vadd.f32 %v3914_v17, %v3913_v59 }
 0x35f   : > { %v3916_v26 = vrot.slane %v3915_v30, 1 }
 0x361   : > { %v3917_v25 = vadd.f32 %v3916_v26, %v3915_v30  ;;  %v4653_v26 = vld [vmem:[#allocation3 + $0xc8] sm:$0x1] }
 0x363   : > { %v3918_v11 = vmul.f32 0.00390625, %v3917_v25 }
 0x365   : > { %v3919_v46 = vadd.f32 1e-05, %v3918_v11 }
 0x367   : > { %9632 = vrsqrt.f32 %v3919_v46 }
 0x371   : > { %v11502_v40 = vpop.eup %9632 }
 0x372   : > { %v3951_v39 = vmul.f32 %v11502_v40, %v11402_v37  ;;  %v3952_v43 = vmul.f32 %v11502_v40, %v11404_v50  ;;  %v3921_v10 = vmul.f32 %v11502_v40, %v11318_v60  ;;  %v3922_v42 = vmul.f32 %v11502_v40, %v11321_v62 }
 0x373   : > { %v3923_v37 = vmul.f32 %v11502_v40, %v11324_v23  ;;  %v3924_v50 = vmul.f32 %v11502_v40, %v11327_v34  ;;  %v3925_v21 = vmul.f32 %v11502_v40, %v11330_v61  ;;  %v3926_v4 = vmul.f32 %v11502_v40, %v11333_v14 }
 0x374   : > { %v3990_v8 = vmul.f32 %v11507_v5, %v3951_v39  ;;  %v3991_v47 = vmul.f32 %v11507_v5, %v3952_v43  ;;  %v3929_v60 = vmul.f32 %v11502_v40, %v11342_v0  ;;  %v3930_v62 = vmul.f32 %v11502_v40, %v11345_v49 }
 0x375   : > { %v3931_v23 = vmul.f32 %v11502_v40, %v11348_v56  ;;  %v3932_v34 = vmul.f32 %v11502_v40, %v11351_v32  ;;  %v3933_v61 = vmul.f32 %v11502_v40, %v11354_v36  ;;  %v3934_v14 = vmul.f32 %v11502_v40, %v11357_v12 }
 0x376   : > { %v4029_v29 = vadd.f32 %v11516_v51, %v3990_v8  ;;  %v4030_v52 = vadd.f32 %v11516_v51, %v3991_v47  ;;  %v3935_v0 = vmul.f32 %v11502_v40, %v11360_v48  ;;  %v3936_v49 = vmul.f32 %v11502_v40, %v11363_v63 }
 0x377   : > { %v3937_v56 = vmul.f32 %v11502_v40, %v11366_v41  ;;  %v3938_v32 = vmul.f32 %v11502_v40, %v11369_v55  ;;  %v3939_v36 = vmul.f32 %v11502_v40, %v11372_v20  ;;  %v3940_v12 = vmul.f32 %v11502_v40, %v11375_v3 }
 0x378   : > { %vm4061_vm12 = vcmp.gt.f32.partialorder %v4029_v29, 0.0  ;;  %vm4062_vm13 = vcmp.gt.f32.partialorder %v4030_v52, 0.0  ;;  %v4093_v6 = vmul.f32 0.2, %v4029_v29  ;;  %v4094_v44 = vmul.f32 0.2, %v4030_v52 }
 0x379   : > { %v3941_v63 = vmul.f32 %v11502_v40, %v11378_v19  ;;  %v3942_v13 = vmul.f32 %v11502_v40, %v11381_v45  ;;  %v3943_v41 = vmul.f32 %v11502_v40, %v11384_v2  ;;  %v3944_v55 = vmul.f32 %v11502_v40, %v11387_v27 }
 0x37a   : > { %v4125_v48 = vsel %vm4061_vm12, %v4029_v29, %v4093_v6  ;;  %v4126_v31 = vsel %vm4062_vm13, %v4030_v52, %v4094_v44  ;;  %v3945_v20 = vmul.f32 %v11502_v40, %v11390_v7  ;;  %v3946_v3 = vmul.f32 %v11502_v40, %v11392_v22 }
 0x37b   : > { %v9024_v18 = vpack.c.bf16 %v4125_v48, %v4125_v48  ;;  %v9025_v1 = vpack.c.bf16 %v4126_v31, %v4126_v31  ;;  %v3947_v19 = vmul.f32 %v11502_v40, %v11394_v33  ;;  %v3948_v45 = vmul.f32 %v11502_v40, %v11396_v15 }
 0x37c   : > { %v3949_v2 = vmul.f32 %v11502_v40, %v11398_v24  ;;  %v3950_v27 = vmul.f32 %v11502_v40, %v11400_v9  ;;  %v3960_v7 = vmul.f32 %v11507_v5, %v3921_v10  ;;  %v3961_v22 = vmul.f32 %v11507_v5, %v3922_v42 }
 0x37d   : > { %v4479_v38 = vshrl.u32 %v9024_v18, 16  ;;  %v4487_v57 = vshrl.u32 %v9025_v1, 16  ;;  %v4490_v28 = vshll.u32 %v9025_v1, 16  ;;  %v4482_v59 = vshll.u32 %v9024_v18, 16 }
 0x37e   : > { %v3964_v33 = vmul.f32 %v11507_v5, %v3925_v21  ;;  %v3965_v15 = vmul.f32 %v11507_v5, %v3926_v4  ;;  %v3962_v25 = vmul.f32 %v11507_v5, %v3923_v37  ;;  %v3963_v24 = vmul.f32 %v11507_v5, %v3924_v50 }
 0x37f   : > { %v4481_v17 = vrot.slane %v4479_v38, 7  ;;  %v4489_v30 = vrot.slane %v4487_v57, 7  ;;  %v3968_v11 = vmul.f32 %v11507_v5, %v3929_v60  ;;  %v3969_v9 = vmul.f32 %v11507_v5, %v3930_v62 }
 0x380   : > { %v3970_v10 = vmul.f32 %v11507_v5, %v3931_v23  ;;  %v3971_v42 = vmul.f32 %v11507_v5, %v3932_v34  ;;  %v3972_v8 = vmul.f32 %v11507_v5, %v3933_v61  ;;  %v3973_v47 = vmul.f32 %v11507_v5, %v3934_v14 }
 0x381   : > { %v4485_v46 = vrot.slane %v4481_v17, 4  ;;  %v4492_v39 = vor.u32 %v4490_v28, %v4489_v30  ;;  %v4494_v43 = vrot.slane %v4489_v30, 4  ;;  %v3974_v21 = vmul.f32 %v11507_v5, %v3935_v0 }
 0x382   : > { %v3975_v60 = vmul.f32 %v11507_v5, %v3936_v49  ;;  %v3976_v62 = vmul.f32 %v11507_v5, %v3937_v56  ;;  %v3977_v29 = vmul.f32 %v11507_v5, %v3938_v32  ;;  %v3978_v52 = vmul.f32 %v11507_v5, %v3939_v36 }
 0x383   : > { %v4493_v50 = vsel %vm9910_vm7, %v4485_v46, %v4492_v39  ;;  %v4654_v4 = vsel %vm9833_vm2, %v4494_v43, %v4653_v26  ;;  %v3979_v23 = vmul.f32 %v11507_v5, %v3940_v12  ;;  %v3980_v34 = vmul.f32 %v11507_v5, %v3941_v63  ;;  %v4649_v46 = vld [vmem:[#allocation3 + $0xc0] sm:$0xf] }
 0x384   : > { %4652 = vst.msk [vmem:[#allocation3 + $0xc4] sm:$0xf] %vm13995_vm4, %v4493_v50  ;;  %4655 = vst [vmem:[#allocation3 + $0xc8] sm:$0x1] %v4654_v4  ;;  %v3981_v61 = vmul.f32 %v11507_v5, %v3942_v13  ;;  %v3982_v14 = vmul.f32 %v11507_v5, %v3943_v41  ;;  %v3983_v0 = vmul.f32 %v11507_v5, %v3944_v55 }
 0x385   : > { %v3984_v49 = vmul.f32 %v11507_v5, %v3945_v20  ;;  %v3985_v6 = vmul.f32 %v11507_v5, %v3946_v3  ;;  %v3986_v44 = vmul.f32 %v11507_v5, %v3947_v19  ;;  %v3987_v56 = vmul.f32 %v11507_v5, %v3948_v45 }
 0x386   : > { %v3988_v32 = vmul.f32 %v11507_v5, %v3949_v2  ;;  %v11612_v36 = vmul.f32 %v11502_v40, %v11336_v35  ;;  %v3989_v12 = vmul.f32 %v11507_v5, %v3950_v27  ;;  %v3999_v48 = vadd.f32 %v11516_v51, %v3960_v7 }
 0x387   : > { %v4000_v31 = vadd.f32 %v11516_v51, %v3961_v22  ;;  %v3928_v63 = vmul.f32 %v11502_v40, %v11339_v16  ;;  %v4484_v13 = vor.u32 %v4482_v59, %v4481_v17  ;;  %v11620_v18 = vadd.f32 %v11516_v51, %v3964_v33 }
 0x388   : > { %v11623_v1 = vadd.f32 %v11516_v51, %v3965_v15  ;;  %vm4031_vm14 = vcmp.gt.f32.partialorder %v3999_v48, 0.0  ;;  %v4063_v35 = vmul.f32 0.2, %v3999_v48  ;;  %v4001_v55 = vadd.f32 %v11516_v51, %v3962_v25 }
 0x389   : > { %vm4032_vm15 = vcmp.gt.f32.partialorder %v4000_v31, 0.0  ;;  %v4064_v41 = vmul.f32 0.2, %v4000_v31  ;;  %v4002_v20 = vadd.f32 %v11516_v51, %v3963_v24  ;;  %v11628_v3 = vadd.f32 %v11516_v51, %v3968_v11 }
 0x38a   : > { %v11631_v16 = vadd.f32 %v11516_v51, %v3969_v9  ;;  %v4095_v40 = vsel %vm4031_vm14, %v3999_v48, %v4063_v35  ;;  %v11634_v45 = vadd.f32 %v11516_v51, %v3970_v10  ;;  %v11637_v38 = vadd.f32 %v11516_v51, %v3971_v42 }
 0x38b   : > { %v4096_v19 = vsel %vm4032_vm15, %v4000_v31, %v4064_v41  ;;  %v8994_v57 = vpack.c.bf16 %v4095_v40, %v4095_v40  ;;  %v11640_v27 = vadd.f32 %v11516_v51, %v3972_v8  ;;  %v11643_v28 = vadd.f32 %v11516_v51, %v3973_v47  ;;  %v4544_v8 = vld [vmem:[#allocation3 + $0xc] sm:$0xf]  ;;  %v4548_v47 = vld [vmem:[#allocation3 + $0x14] sm:$0x1] }
 0x38c   : > { %v8995_v2 = vpack.c.bf16 %v4096_v19, %v4096_v19  ;;  %v11646_v59 = vadd.f32 %v11516_v51, %v3974_v21  ;;  %v11649_v7 = vadd.f32 %v11516_v51, %v3975_v60  ;;  %v11652_v22 = vadd.f32 %v11516_v51, %v3976_v62 }
 0x38d   : > { %v11655_v17 = vadd.f32 %v11516_v51, %v3977_v29  ;;  %v4224_v30 = vshrl.u32 %v8994_v57, 16  ;;  %v4227_v33 = vshll.u32 %v8994_v57, 16  ;;  %v11658_v25 = vadd.f32 %v11516_v51, %v3978_v52 }
 0x38e   : > { %v4232_v15 = vshrl.u32 %v8995_v2, 16  ;;  %v4235_v26 = vshll.u32 %v8995_v2, 16  ;;  %v11661_v24 = vadd.f32 %v11516_v51, %v3979_v23  ;;  %v11664_v11 = vadd.f32 %v11516_v51, %v3980_v34 }
 0x38f   : > { %v11667_v9 = vadd.f32 %v11516_v51, %v3981_v61  ;;  %v4226_v39 = vrot.slane %v4224_v30, 7  ;;  %v11670_v10 = vadd.f32 %v11516_v51, %v3982_v14  ;;  %v11673_v42 = vadd.f32 %v11516_v51, %v3983_v0 }
 0x390   : > { %v4234_v43 = vrot.slane %v4232_v15, 7  ;;  %v11676_v21 = vadd.f32 %v11516_v51, %v3984_v49  ;;  %v11679_v50 = vadd.f32 %v11516_v51, %v3985_v6  ;;  %v11682_v4 = vadd.f32 %v11516_v51, %v3986_v44 }
 0x391   : > { %v11685_v60 = vadd.f32 %v11516_v51, %v3987_v56  ;;  %v4229_v62 = vor.u32 %v4227_v33, %v4226_v39  ;;  %v4230_v29 = vrot.slane %v4226_v39, 4  ;;  %v11688_v34 = vadd.f32 %v11516_v51, %v3988_v32 }
 0x392   : > { %v4237_v52 = vor.u32 %v4235_v26, %v4234_v43  ;;  %v4239_v23 = vrot.slane %v4234_v43, 4  ;;  %v11691_v61 = vadd.f32 %v11516_v51, %v3989_v12  ;;  %v4650_v0 = vsel %vm9917_vm8, %v4484_v13, %v4649_v46 }
 0x393   : > { %vm4033_vm0 = vcmp.gt.f32.partialorder %v4001_v55, 0.0  ;;  %v4545_v6 = vsel %vm9917_vm8, %v4229_v62, %v4544_v8  ;;  %vm4034_vm1 = vcmp.gt.f32.partialorder %v4002_v20, 0.0  ;;  %4651 = vst [vmem:[#allocation3 + $0xc0] sm:$0xf] %v4650_v0  ;;  %v4065_v56 = vmul.f32 0.2, %v4001_v55 }
 0x394   : > { %v4238_v49 = vsel %vm9910_vm7, %v4230_v29, %v4237_v52  ;;  %v4549_v44 = vsel %vm9833_vm2, %v4239_v23, %v4548_v47  ;;  %4546 = vst [vmem:[#allocation3 + $0xc] sm:$0xf] %v4545_v6  ;;  %v4066_v32 = vmul.f32 0.2, %v4002_v20  ;;  %v3966_v12 = vmul.f32 %v11507_v5, %v11612_v36 }
 0x395   : > { %4547 = vst.msk [vmem:[#allocation3 + $0x10] sm:$0xf] %vm13995_vm4, %v4238_v49  ;;  %4550 = vst [vmem:[#allocation3 + $0x14] sm:$0x1] %v4549_v44  ;;  %v3967_v48 = vmul.f32 %v11507_v5, %v3928_v63  ;;  %v4097_v31 = vsel %vm4033_vm0, %v4001_v55, %v4065_v56  ;;  %vm4035_vm3 = vcmp.gt.f32.partialorder %v11620_v18, 0.0  ;;  %vm4036_vm6 = vcmp.gt.f32.partialorder %v11623_v1, 0.0 }
 0x396   : > { %v4098_v13 = vsel %vm4034_vm1, %v4002_v20, %v4066_v32  ;;  %v8996_v35 = vpack.c.bf16 %v4097_v31, %v4097_v31  ;;  %v11706_v40 = vadd.f32 %v11516_v51, %v3966_v12  ;;  %v4551_v63 = vld [vmem:[#allocation3 + $0x18] sm:$0xf]  ;;  %vm4039_vm14 = vcmp.gt.f32.partialorder %v11628_v3, 0.0 }
 0x397   : > { %v8997_v41 = vpack.c.bf16 %v4098_v13, %v4098_v13  ;;  %v11709_v19 = vadd.f32 %v11516_v51, %v3967_v48  ;;  %v4555_v51 = vld [vmem:[#allocation3 + $0x20] sm:$0x1]  ;;  %vm4040_vm15 = vcmp.gt.f32.partialorder %v11631_v16, 0.0  ;;  %vm4042_vm1 = vcmp.gt.f32.partialorder %v11637_v38, 0.0 }
 0x398   : > { %v4241_v57 = vshrl.u32 %v8996_v35, 16  ;;  %v4244_v33 = vshll.u32 %v8996_v35, 16  ;;  %vm4037_vm12 = vcmp.gt.f32.partialorder %v11706_v40, 0.0  ;;  %v4067_v6 = vmul.f32 0.2, %v11620_v18 }
 0x399   : > { %v4249_v2 = vshrl.u32 %v8997_v41, 16  ;;  %v4252_v26 = vshll.u32 %v8997_v41, 16  ;;  %v4068_v44 = vmul.f32 0.2, %v11623_v1  ;;  %v4069_v56 = vmul.f32 0.2, %v11706_v40 }
 0x39a   : > { %v4243_v5 = vrot.slane %v4241_v57, 7  ;;  %v4070_v32 = vmul.f32 0.2, %v11709_v19  ;;  %v4071_v12 = vmul.f32 0.2, %v11628_v3  ;;  %vm4050_vm13 = vcmp.gt.f32.partialorder %v11661_v24, 0.0 }
 0x39b   : > { %v5288_v15 = vld [vmem:[#allocation3 + $0xc] sm:$0xe]  ;;  %v4251_v20 = vrot.slane %v4249_v2, 7  ;;  %v4072_v48 = vmul.f32 0.2, %v11631_v16  ;;  %vm4055_vm9 = vcmp.gt.f32.partialorder %v11676_v21, 0.0 }
 0x39c   : > { %v5241_v30 = vld [vmem:[#allocation3 + $0x10] sm:$0xf]  ;;  %v11712_v36 = vld [vmem:[#allocation3 + $0x14] ss:$0 sps:$4 sm:$0x11]   ;;  %v4246_v39 = vor.u32 %v4244_v33, %v4243_v5  ;;  %v4247_v43 = vrot.slane %v4243_v5, 4 }
 0x39d   : > { %v8760_v55 = vcombine.low %v5288_v15, %v5241_v30  ;;  %v5705_v46 = vrot.slane %v11712_v36, 1  ;;  %v4254_v47 = vor.u32 %v4252_v26, %v4251_v20  ;;  %v4256_v62 = vrot.slane %v4251_v20, 4  ;;  %v5240_v52 = vld [vmem:[#allocation3 + $0xc] sm:$0xf]  ;;  %v4659_v14 = vld [vmem:[#allocation3 + $0x10] sm:$0xf] }
 0x39e   : > { %v4552_v29 = vsel %vm9917_vm8, %v4246_v39, %v4551_v63  ;;  %v4073_v31 = vmul.f32 0.2, %v11634_v45  ;;  %v4074_v13 = vmul.f32 0.2, %v11637_v38  ;;  %v4075_v35 = vmul.f32 0.2, %v11640_v27 }
 0x39f   : > { %v5704_v8 = vrot.slane %v8760_v55, 1  ;;  %v4255_v0 = vsel %vm9910_vm7, %v4247_v43, %v4254_v47  ;;  %4553 = vst [vmem:[#allocation3 + $0x18] sm:$0xf] %v4552_v29  ;;  %v4556_v49 = vsel %vm9833_vm2, %v4256_v62, %v4555_v51  ;;  %v11747_v41 = vcombine.low %v5240_v52, %v5241_v30 }
 0x3a0   : > { %4554 = vst.msk [vmem:[#allocation3 + $0x1c] sm:$0xf] %vm13995_vm4, %v4255_v0  ;;  %4557 = vst [vmem:[#allocation3 + $0x20] sm:$0x1] %v4556_v49  ;;  %v4076_v57 = vmul.f32 0.2, %v11643_v28  ;;  %v11764_v63 = vsel %vm4035_vm3, %v11620_v18, %v4067_v6  ;;  %v4100_v51 = vsel %vm4036_vm6, %v11623_v1, %v4068_v44  ;;  %v4101_v43 = vsel %vm4037_vm12, %v11706_v40, %v4069_v56 }
 0x3a1   : > { %v5706_v23 = vsel %vm13993_vm10, %v5704_v8, %v5705_v46  ;;  %v4077_v2 = vmul.f32 0.2, %v11646_v59  ;;  %v4078_v33 = vmul.f32 0.2, %v11649_v7  ;;  %v4079_v30 = vmul.f32 0.2, %v11652_v22 }
 0x3a2   : > { %8812 = vmatprep.mubr.msk.bf16.mxu1 %vm13994_vm11, %v5706_v23  ;;  %vm4054_vm11 = vcmp.gt.f32.partialorder %v11673_v42, 0.0  ;;  %v4080_v15 = vmul.f32 0.2, %v11655_v17  ;;  %v4081_v5 = vmul.f32 0.2, %v11658_v25  ;;  %vm4056_vm0 = vcmp.gt.f32.partialorder %v11679_v50, 0.0 }
 0x3a3   : > { %v4082_v55 = vmul.f32 0.2, %v11661_v24  ;;  %v4083_v20 = vmul.f32 0.2, %v11664_v11  ;;  %v4084_v26 = vmul.f32 0.2, %v11667_v9  ;;  %v4103_v62 = vsel %vm4039_vm14, %v11628_v3, %v4071_v12 }
 0x3a4   : > { %vm4059_vm3 = vcmp.gt.f32.partialorder %v11688_v34, 0.0  ;;  %v4085_v18 = vmul.f32 0.2, %v11670_v10  ;;  %v4086_v39 = vmul.f32 0.2, %v11673_v42  ;;  %vm14108_vm4 = vcmp.gt.f32.partialorder %v11709_v19, 0.0 }
 0x3a5   : > { %v4102_v8 = vsel %vm14108_vm4, %v11709_v19, %v4070_v32  ;;  %vm4060_vm10 = vcmp.gt.f32.partialorder %v11691_v61, 0.0  ;;  %v4087_v1 = vmul.f32 0.2, %v11676_v21  ;;  %v4104_v29 = vsel %vm4040_vm15, %v11631_v16, %v4072_v48 }
 0x3a6   : > { %v5242_v46 = vld [vmem:[#allocation3 + $0x18] sm:$0xf]  ;;  %vm14109_vm6 = vcmp.gt.f32.partialorder %v11634_v45, 0.0  ;;  %v4088_v23 = vmul.f32 0.2, %v11679_v50  ;;  %v4106_v0 = vsel %vm4042_vm1, %v11637_v38, %v4074_v13  ;;  %vm14110_vm4 = vcmp.gt.f32.partialorder %v11640_v27, 0.0 }
 0x3a7   : > { %v5243_v47 = vld [vmem:[#allocation3 + $0x1c] sm:$0xf]  ;;  %v4105_v40 = vsel %vm14109_vm6, %v11634_v45, %v4073_v31  ;;  %v9463_v19 = vld [vmem:[#allocation3 + $0x20] ss:$0 sps:$4 sm:$0x11]   ;;  %v4107_v3 = vsel %vm14110_vm4, %v11640_v27, %v4075_v35  ;;  %v5433_v6 = vshrl.u32 %v11747_v41, 16 }
 0x3a8   : > { %v11795_v52 = vcombine.low %v5242_v46, %v5243_v47  ;;  %v4089_v49 = vmul.f32 0.2, %v11682_v4  ;;  %v4090_v16 = vmul.f32 0.2, %v11685_v60  ;;  %vm14111_vm12 = vcmp.gt.f32.partialorder %v11643_v28, 0.0  ;;  %v9528_v47 = vld [vmem:[%s13953_s4 + $0x60] sm:$0xff]  }
 0x3a9   : > { %v4108_v45 = vsel %vm14111_vm12, %v11643_v28, %v4076_v57  ;;  %v5452_v56 = vshll.u32 %v9463_v19, 16  ;;  %v4091_v32 = vmul.f32 0.2, %v11688_v34  ;;  %vm14112_vm14 = vcmp.gt.f32.partialorder %v11646_v59, 0.0  ;;  %5946 = vmatpush1.bf16.msra.mxu1 %v9528_v47 }
 0x3aa   : > { %v5447_v44 = vshll.u32 %v11795_v52, 16  ;;  %v4109_v38 = vsel %vm14112_vm14, %v11646_v59, %v4077_v2  ;;  %v5445_v27 = vshrl.u32 %v11795_v52, 16  ;;  %v4092_v12 = vmul.f32 0.2, %v11691_v61  ;;  %5947 = vmatprep.subr.bf16.mxu1 %v14068_v58 }
 0x3ab   : > { %v5435_v48 = vshll.u32 %v11747_v41, 16  ;;  %v5440_v31 = vshll.u32 %v11712_v36, 16  ;;  %v5454_v35 = vrot.slane %v5452_v56, 1  ;;  %vm14113_vm15 = vcmp.gt.f32.partialorder %v11649_v7, 0.0 }
 0x3ac   : > { %v5449_v13 = vrot.slane %v5447_v44, 1  ;;  %v4110_v28 = vsel %vm14113_vm15, %v11649_v7, %v4078_v33  ;;  %vm14114_vm1 = vcmp.gt.f32.partialorder %v11652_v22, 0.0  ;;  %vm14115_vm6 = vcmp.gt.f32.partialorder %v11655_v17, 0.0 }
 0x3ad   : > { %v4111_v57 = vsel %vm14114_vm1, %v11652_v22, %v4079_v30  ;;  %v5437_v46 = vrot.slane %v5435_v48, 1  ;;  %v5442_v59 = vrot.slane %v5440_v31, 1  ;;  %v4112_v2 = vsel %vm14115_vm6, %v11655_v17, %v4080_v15 }
 0x3ae   : > { %vm14116_vm4 = vcmp.gt.f32.partialorder %v11658_v25, 0.0  ;;  %v5450_v19 = vor.u32 %v5449_v13, %v5445_v27  ;;  %v4114_v7 = vsel %vm4050_vm13, %v11661_v24, %v4082_v55  ;;  %vm14117_vm12 = vcmp.gt.f32.partialorder %v11664_v11, 0.0 }
 0x3af   : > { %v4113_v36 = vsel %vm14116_vm4, %v11658_v25, %v4081_v5  ;;  %v4115_v22 = vsel %vm14117_vm12, %v11664_v11, %v4083_v20  ;;  %vm14118_vm14 = vcmp.gt.f32.partialorder %v11667_v9, 0.0  ;;  %v5438_v33 = vor.u32 %v5437_v46, %v5433_v6  ;;  %v9543_v46 = vld [vmem:[%s13953_s4 + $0x78] sm:$0xff]  }
 0x3b0   : > { %v4116_v17 = vsel %vm14118_vm14, %v11667_v9, %v4084_v26  ;;  %vm14119_vm15 = vcmp.gt.f32.partialorder %v11670_v10, 0.0  ;;  %v4118_v30 = vsel %vm4054_vm11, %v11673_v42, %v4086_v39  ;;  %v4119_v24 = vsel %vm4055_vm9, %v11676_v21, %v4087_v1 }
 0x3b1   : > { %v4117_v25 = vsel %vm14119_vm15, %v11670_v10, %v4085_v18  ;;  %vm14120_vm13 = vsmask.f32 7424  ;;  %v4120_v9 = vsel %vm4056_vm0, %v11679_v50, %v4088_v23  ;;  %vm14121_vm1 = vcmp.gt.f32.partialorder %v11682_v4, 0.0 }
 0x3b2   : > { %v5455_v11 = vsel %vm14120_vm13, %v5450_v19, %v5454_v35  ;;  %v4121_v15 = vsel %vm14121_vm1, %v11682_v4, %v4089_v49  ;;  %vm14122_vm6 = vcmp.gt.f32.partialorder %v11685_v60, 0.0  ;;  %vm14123_vm9 = vmmov %vm14120_vm13  ;;  %v11868_v21 = vsel %vm4059_vm3, %v11688_v34, %v4091_v32  ;;  %v9533_v4 = vld [vmem:[%s13953_s4 + $0x68] sm:$0xff]  }
 0x3b3   : > { %v4122_v10 = vsel %vm14122_vm6, %v11685_v60, %v4090_v16  ;;  %5626 = vrot.lane.b32.xlu1 %v5455_v11, %s9780_s13  ;;  %v5443_v42 = vsel %vm14123_vm9, %v5438_v33, %v5442_v59  ;;  %v9000_v50 = vpack.c.bf16 %v4101_v43, %v4101_v43  ;;  %v9001_v5 = vpack.c.bf16 %v4102_v8, %v4102_v8  ;;  %v4569_v16 = vld [vmem:[#allocation3 + $0x38] sm:$0x1]  ;;  %v4558_v33 = vld [vmem:[#allocation3 + $0x24] sm:$0xf]  ;;  %vm14128_vm0 = vmmov %vm14123_vm9 }
 0x3b4   : > { %5624 = vrot.lane.b32.xlu0 %v5443_v42, %s9780_s13  ;;  %v11877_v60 = vsel %vm4060_vm10, %v11691_v61, %v4092_v12  ;;  %v11881_v55 = vpack.c.bf16 %v11764_v63, %v11764_v63  ;;  %v11883_v20 = vpack.c.bf16 %v4100_v51, %v4100_v51  ;;  %v11885_v34 = vpack.c.bf16 %v4103_v62, %v4103_v62  ;;  %vm14130_vm3 = vmmov %vm14128_vm0 }
 0x3b5   : > { %v4275_v26 = vshrl.u32 %v9000_v50, 16  ;;  %v4283_v18 = vshrl.u32 %v9001_v5, 16  ;;  %v11887_v39 = vpack.c.bf16 %v4104_v29, %v4104_v29  ;;  %v11889_v43 = vpack.c.bf16 %v4105_v40, %v4105_v40  ;;  %5948 = vmatpush1.bf16.msra.mxu1 %v9533_v4  ;;  %v9538_v29 = vld [vmem:[%s13953_s4 + $0x70] sm:$0xff]   ;;  %v4565_v40 = vld [vmem:[#allocation3 + $0x30] sm:$0xf]  ;;  %vm14160_vm14 = vmmov %vm14128_vm0 }
 0x3b6   : > { %v4278_v8 = vshll.u32 %v9000_v50, 16  ;;  %v4286_v1 = vshll.u32 %v9001_v5, 16  ;;  %v11891_v23 = vpack.c.bf16 %v4106_v0, %v4106_v0  ;;  %v11893_v61 = vpack.c.bf16 %v4107_v3, %v4107_v3  ;;  %5949 = vmatprep.subr.bf16.mxu1 %v14068_v58  ;;  %v9548_v50 = vld [vmem:[%s13953_s4 + $0x80] sm:$0xff]  }
 0x3b7   : > { %v4277_v63 = vrot.slane %v4275_v26, 7  ;;  %v4285_v51 = vrot.slane %v4283_v18, 7  ;;  %v11896_v49 = vpack.c.bf16 %v4108_v45, %v4108_v45  ;;  %v11898_v62 = vpack.c.bf16 %v4109_v38, %v4109_v38  ;;  %v4562_v5 = vld [vmem:[#allocation3 + $0x2c] sm:$0x1] }
 0x3b8   : > { %v11903_v6 = vpack.c.bf16 %v4110_v28, %v4110_v28  ;;  %v11905_v0 = vpack.c.bf16 %v4111_v57, %v4111_v57  ;;  %v11907_v3 = vpack.c.bf16 %v4112_v2, %v4112_v2  ;;  %v11909_v44 = vpack.c.bf16 %v4113_v36, %v4113_v36 }
 0x3b9   : > { %v4280_v56 = vor.u32 %v4278_v8, %v4277_v63  ;;  %v4281_v32 = vrot.slane %v4277_v63, 4  ;;  %v4288_v45 = vor.u32 %v4286_v1, %v4285_v51  ;;  %v4290_v27 = vrot.slane %v4285_v51, 4  ;;  %5950 = vmatpush1.bf16.msra.mxu1 %v9538_v29 }
 0x3ba   : > { %v11911_v38 = vpack.c.bf16 %v4114_v7, %v4114_v7  ;;  %v11913_v12 = vpack.c.bf16 %v4115_v22, %v4115_v22  ;;  %v11915_v48 = vpack.c.bf16 %v4116_v17, %v4116_v17  ;;  %v11917_v31 = vpack.c.bf16 %v4117_v25, %v4117_v25  ;;  %5951 = vmatprep.subr.bf16.mxu1 %v14068_v58 }
 0x3bb   : > { %v4289_v13 = vsel %vm9910_vm7, %v4281_v32, %v4288_v45  ;;  %v4566_v35 = vsel %vm9917_vm8, %v4280_v56, %v4565_v40  ;;  %v4570_v28 = vsel %vm9833_vm2, %v4290_v27, %v4569_v16  ;;  %v11926_v57 = vpack.c.bf16 %v4118_v30, %v4118_v30 }
 0x3bc   : > { %4567 = vst [vmem:[#allocation3 + $0x30] sm:$0xf] %v4566_v35  ;;  %vm14124_vm10 = vcmask 519168   ;;  %4571 = vst [vmem:[#allocation3 + $0x38] sm:$0x1] %v4570_v28  ;;  %v11932_v59 = vpack.c.bf16 %v4119_v24, %v4119_v24  ;;  %v11934_v2 = vpack.c.bf16 %v4120_v9, %v4120_v9  ;;  %v11936_v36 = vpack.c.bf16 %v4121_v15, %v4121_v15 }
 0x3bd   : > { %4568 = vst.msk [vmem:[#allocation3 + $0x34] sm:$0xf] %vm14124_vm10, %v4289_v13  ;;  %v11938_v47 = vpack.c.bf16 %v4122_v10, %v4122_v10  ;;  %v4258_v19 = vshrl.u32 %v11881_v55, 16  ;;  %v4261_v7 = vshll.u32 %v11881_v55, 16  ;;  %v4266_v22 = vshrl.u32 %v11883_v20, 16  ;;  %5952 = vmatpush1.bf16.msra.mxu1 %v9543_v46  ;;  %vm14126_vm11 = vmmov %vm14124_vm10 }
 0x3be   : > { %v4269_v17 = vshll.u32 %v11883_v20, 16  ;;  %v4292_v25 = vshrl.u32 %v11885_v34, 16  ;;  %v4300_v24 = vshrl.u32 %v11887_v39, 16  ;;  %5953 = vmatprep.subr.bf16.mxu1 %v14068_v58  ;;  %v4309_v10 = vshrl.u32 %v11889_v43, 16  ;;  %vm14131_vm4 = vmmov %vm14124_vm10 }
 0x3bf   : > { %v4260_v9 = vrot.slane %v4258_v19, 7  ;;  %v4268_v15 = vrot.slane %v4266_v22, 7  ;;  %v4312_v42 = vshll.u32 %v11889_v43, 16  ;;  %v4317_v4 = vshrl.u32 %v11891_v23, 16  ;;  %v5270_v22 = vld [vmem:[#allocation3 + $0xc0] sm:$0xf]  ;;  %vm14143_vm12 = vmmov %vm14131_vm4 }
 0x3c0   : > { %v4320_v55 = vshll.u32 %v11891_v23, 16  ;;  %v4326_v20 = vshrl.u32 %v11893_v61, 16  ;;  %v4334_v51 = vshrl.u32 %v11896_v49, 16  ;;  %v4343_v40 = vshrl.u32 %v11898_v62, 16  ;;  %vm14163_vm15 = vmmov %vm14131_vm4 }
 0x3c1   : > { %v4263_v18 = vor.u32 %v4261_v7, %v4260_v9  ;;  %v4264_v8 = vrot.slane %v4260_v9, 4  ;;  %v4271_v1 = vor.u32 %v4269_v17, %v4268_v15  ;;  %v4273_v63 = vrot.slane %v4268_v15, 4  ;;  %5954 = vmatpush1.bf16.msra.mxu1 %v9548_v50  ;;  %vm14167_vm13 = vmmov %vm14131_vm4 }
 0x3c2   : > { %5955 = vmatprep.subr.bf16.mxu1 %v14068_v58  ;;  %v11965_v45 = vpack.c.bf16 %v11868_v21, %v11868_v21  ;;  %v4351_v19 = vshrl.u32 %v11903_v6, 16  ;;  %v4360_v7 = vshrl.u32 %v11905_v0, 16  ;;  %v4368_v17 = vshrl.u32 %v11907_v3, 16  ;;  %vm14168_vm1 = vmmov %vm14131_vm4 }
 0x3c3   : > { %v5246_v56 = vld [vmem:[#allocation3 + $0x30] sm:$0xf]  ;;  %v4272_v27 = vsel %vm9910_vm7, %v4264_v8, %v4271_v1  ;;  %v4559_v13 = vsel %vm9917_vm8, %v4263_v18, %v4558_v33  ;;  %v4563_v35 = vsel %vm9833_vm2, %v4273_v63, %v4562_v5  ;;  %v9465_v46 = vld [vmem:[#allocation3 + $0x38] ss:$0 sps:$4 sm:$0x11]   ;;  %v4377_v9 = vshrl.u32 %v11909_v44, 16  ;;  %vm14169_vm6 = vmmov %vm14168_vm1 }
 0x3c4   : > { %v5247_v32 = vld [vmem:[#allocation3 + $0x34] sm:$0xf]  ;;  %4560 = vst [vmem:[#allocation3 + $0x24] sm:$0xf] %v4559_v13  ;;  %4561 = vst.msk [vmem:[#allocation3 + $0x28] sm:$0xf] %vm14126_vm11, %v4272_v27 }
 0x3c5   : > { %v11973_v28 = vcombine.low %v5246_v56, %v5247_v32  ;;  %4564 = vst [vmem:[#allocation3 + $0x2c] sm:$0x1] %v4563_v35  ;;  %v5476_v5 = vshll.u32 %v9465_v46, 16  ;;  %v5271_v8 = vld [vmem:[#allocation3 + $0xc4] sm:$0xf]  ;;  %v9553_v32 = vld [vmem:[%s13953_s4 + $0x88] sm:$0xff]   ;;  %vm14170_vm9 = vmmov %vm14168_vm1 }
 0x3c6   : > { %v12003_v11 = vcombine.low %v5270_v22, %v5271_v8  ;;  %v4453_v22 = vshrl.u32 %v11938_v47, 16  ;;  %5956 = vmatpush1.bf16.msra.mxu1 %v9553_v32  ;;  %v4319_v8 = vrot.slane %v4317_v4, 7  ;;  %v4583_v46 = vld [vmem:[#allocation3 + $0x50] sm:$0x1]  ;;  %v4302_v32 = vrot.slane %v4300_v24, 7  ;;  %v9558_v4 = vld [vmem:[%s13953_s4 + $0x90] sm:$0xff]   ;;  %vm14171_vm10 = vmmov %vm14168_vm1 }
 0x3c7   : > { %14125 = vst [vmem:[#allocation11_spill] sm:$0xff] %v11973_v28  ;;  %v5469_v15 = vshrl.u32 %v11973_v28, 16  ;;  %v5471_v50 = vshll.u32 %v11973_v28, 16  ;;  %v5478_v13 = vrot.slane %v5476_v5, 1  ;;  %v12001_v5 = vpack.c.bf16 %v11877_v60, %v11877_v60  ;;  %5957 = vmatprep.subr.bf16.mxu1 %v14068_v58  ;;  %vm14175_vm11 = vmmov %vm14168_vm1 }
 0x3c8   : > { %14127 = vst [vmem:[#allocation12_spill] sm:$0xff] %v12003_v11  ;;  %v4311_v60 = vrot.slane %v4309_v10, 7  ;;  %v4322_v10 = vor.u32 %v4320_v55, %v4319_v8  ;;  %v4324_v1 = vrot.slane %v4319_v8, 4  ;;  %v12049_v43 = vrot.slane %v4343_v40, 7  ;;  %v4572_v8 = vld [vmem:[#allocation3 + $0x3c] sm:$0xf] }
 0x3c9   : > { %v5473_v27 = vrot.slane %v5471_v50, 1  ;;  %v4436_v50 = vshrl.u32 %v11934_v2, 16  ;;  %v4470_v21 = vshrl.u32 %v12001_v5, 16  ;;  %v12059_v55 = vrot.slane %v4351_v19, 7 }
 0x3ca   : > { %v4315_v29 = vrot.slane %v4311_v60, 4  ;;  %5958 = vmatpush1.bf16.msra.mxu1 %v9558_v4  ;;  %v12072_v40 = vrot.slane %v4368_v17, 7  ;;  %v12076_v19 = vrot.slane %v4377_v9, 7 }
 0x3cb   : > { %v5474_v63 = vor.u32 %v5473_v27, %v5469_v15  ;;  %v5244_v33 = vld [vmem:[#allocation3 + $0x24] sm:$0xf]  ;;  %v5245_v26 = vld [vmem:[#allocation3 + $0x28] sm:$0xf]  ;;  %v4445_v27 = vshrl.u32 %v11936_v36, 16  ;;  %5959 = vmatprep.subr.bf16.mxu1 %v14068_v58  ;;  %v12104_v4 = vrot.slane %v4436_v50, 7 }
 0x3cc   : > { %v12006_v30 = vcombine.low %v5244_v33, %v5245_v26  ;;  %v9467_v16 = vld [vmem:[#allocation3 + $0x2c] ss:$0 sps:$4 sm:$0x11]   ;;  %v4462_v26 = vshrl.u32 %v11965_v45, 16  ;;  %v4579_v33 = vld [vmem:[#allocation3 + $0x48] sm:$0xf]  ;;  %v4323_v23 = vsel %vm9910_vm7, %v4315_v29, %v4322_v10 }
 0x3cd   : > { %v5479_v18 = vsel %vm14128_vm0, %v5474_v63, %v5478_v13  ;;  %v5464_v15 = vshll.u32 %v9467_v16, 16  ;;  %v4294_v16 = vrot.slane %v4292_v25, 7  ;;  %v12045_v25 = vrot.slane %v4334_v51, 7  ;;  %4582 = vst.msk [vmem:[#allocation3 + $0x4c] sm:$0xf] %vm14131_vm4, %v4323_v23  ;;  %vm14176_vm0 = vmmov %vm14168_vm1 }
 0x3ce   : > { %14129 = vst [vmem:[#allocation13_spill] sm:$0xff] %v12006_v30  ;;  %5630 = vrot.lane.b32.xlu1 %v5479_v18, %s9780_s13  ;;  %v5457_v63 = vshrl.u32 %v12006_v30, 16  ;;  %v5459_v13 = vshll.u32 %v12006_v30, 16  ;;  %v4314_v18 = vor.u32 %v4312_v42, %v4311_v60  ;;  %v4584_v42 = vsel %vm9833_vm2, %v4324_v1, %v4583_v46  ;;  %v4576_v23 = vld [vmem:[#allocation3 + $0x44] sm:$0x1]  ;;  %vm14191_vm4 = vmmov %vm14130_vm3 }
 0x3cf   : > { %v5466_v56 = vrot.slane %v5464_v15, 1  ;;  %v12041_v15 = vrot.slane %v4326_v20, 7  ;;  %v9561_v20 = vld [vmem:[%s13953_s4 + $0x98] sm:$0xff]   ;;  %4585 = vst [vmem:[#allocation3 + $0x50] sm:$0x1] %v4584_v42  ;;  %v12068_v29 = vrot.slane %v4360_v7, 7 }
 0x3d0   : > { %v5461_v35 = vrot.slane %v5459_v13, 1  ;;  %v4580_v24 = vsel %vm9917_vm8, %v4314_v18, %v4579_v33  ;;  %v14132_v1 = vshrl.u32 %v11911_v38, 16  ;;  %v14134_v46 = vshrl.u32 %v11915_v48, 16  ;;  %5960 = vmatpush1.bf16.msra.mxu1 %v9561_v20 }
 0x3d1   : > { %4581 = vst [vmem:[#allocation3 + $0x48] sm:$0xf] %v4580_v24  ;;  %v14135_v60 = vshrl.u32 %v11917_v31, 16  ;;  %v14136_v33 = vshrl.u32 %v11926_v57, 16  ;;  %v14137_v18 = vshrl.u32 %v11932_v59, 16  ;;  %v12108_v24 = vrot.slane %v4453_v22, 7  ;;  %5961 = vmatprep.subr.bf16.mxu1 %v14068_v58 }
 0x3d2   : > { %v5462_v13 = vor.u32 %v5461_v35, %v5457_v63  ;;  %v14133_v35 = vshrl.u32 %v11913_v12, 16  ;;  %v12090_v17 = vrot.slane %v14134_v46, 7  ;;  %v12110_v42 = vrot.slane %v4462_v26, 7  ;;  %v9562_v46 = vld [vmem:[%s13953_s4 + $0xa0] sm:$0xff]  }
 0x3d3   : > { %v12094_v9 = vrot.slane %v14135_v60, 7  ;;  %v12098_v63 = vrot.slane %v14136_v33, 7  ;;  %v12102_v10 = vrot.slane %v14137_v18, 7  ;;  %v4298_v60 = vrot.slane %v4294_v16, 4 }
 0x3d4   : > { %v5467_v51 = vsel %vm14130_vm3, %v5462_v13, %v5466_v56  ;;  %v12082_v56 = vrot.slane %v14132_v1, 7  ;;  %v12086_v7 = vrot.slane %v14133_v35, 7  ;;  %v12106_v13 = vrot.slane %v4445_v27, 7  ;;  %5962 = vmatpush1.bf16.msra.mxu1 %v9562_v46 }
 0x3d5   : > { %5628 = vrot.lane.b32.xlu0 %v5467_v51, %s9780_s13  ;;  %v12112_v51 = vrot.slane %v4470_v21, 7  ;;  %v14138_v1 = vshll.u32 %v11885_v34, 16  ;;  %v14139_v50 = vshll.u32 %v11887_v39, 16  ;;  %v4307_v33 = vrot.slane %v4302_v32, 4  ;;  %5963 = vmatprep.subr.bf16.mxu1 %v14068_v58 }
 0x3d6   : > { %v14140_v22 = vshll.u32 %v11893_v61, 16  ;;  %v14141_v20 = vshll.u32 %v11896_v49, 16  ;;  %v14142_v18 = vshll.u32 %v11898_v62, 16  ;;  %v9563_v49 = vld [vmem:[%s13953_s4 + $0xa8] sm:$0xff]   ;;  %v14145_v62 = vshll.u32 %v11905_v0, 16 }
 0x3d7   : > { %v4297_v35 = vor.u32 %v14138_v1, %v4294_v16  ;;  %v4305_v27 = vor.u32 %v14139_v50, %v4302_v32  ;;  %v4577_v61 = vsel %vm9833_vm2, %v4307_v33, %v4576_v23  ;;  %v5251_v50 = vld [vmem:[#allocation3 + $0x4c] sm:$0xf]  ;;  %v14146_v33 = vshll.u32 %v11907_v3, 16 }
 0x3d8   : > { %v12124_v26 = vor.u32 %v14140_v22, %v12041_v15  ;;  %v12133_v16 = vor.u32 %v14141_v20, %v12045_v25  ;;  %4578 = vst [vmem:[#allocation3 + $0x44] sm:$0x1] %v4577_v61  ;;  %v4383_v3 = vrot.slane %v12076_v19, 4  ;;  %v14150_v46 = vshll.u32 %v11913_v12, 16  ;;  %5964 = vmatpush1.bf16.msra.mxu1 %v9563_v49 }
 0x3d9   : > { %v4573_v34 = vsel %vm9917_vm8, %v4297_v35, %v4572_v8  ;;  %v4306_v32 = vsel %vm9910_vm7, %v4298_v60, %v4305_v27  ;;  %v12143_v8 = vor.u32 %v14142_v18, %v12049_v43  ;;  %v5250_v35 = vld [vmem:[#allocation3 + $0x48] sm:$0xf]  ;;  %v14144_v60 = vshll.u32 %v11903_v6, 16  ;;  %v9469_v6 = vld [vmem:[#allocation3 + $0x50] ss:$0 sps:$4 sm:$0x11]   ;;  %5965 = vmatprep.subr.bf16.mxu1 %v14068_v58 }
 0x3da   : > { %4574 = vst [vmem:[#allocation3 + $0x3c] sm:$0xf] %v4573_v34  ;;  %4575 = vst.msk [vmem:[#allocation3 + $0x40] sm:$0xf] %vm14143_vm12, %v4306_v32  ;;  %v12156_v27 = vor.u32 %v14145_v62, %v12068_v29  ;;  %v12161_v22 = vor.u32 %v14146_v33, %v12072_v40  ;;  %v14147_v34 = vshll.u32 %v11909_v44, 16  ;;  %v12168_v32 = vcombine.low %v5250_v35, %v5251_v50 }
 0x3db   : > { %v4356_v23 = vor.u32 %v14144_v60, %v12059_v55  ;;  %v14149_v60 = vshll.u32 %v11911_v38, 16  ;;  %v12182_v35 = vor.u32 %v14150_v46, %v12086_v7  ;;  %v4400_v18 = vrot.slane %v12086_v7, 4  ;;  %v4593_v46 = vld [vmem:[#allocation3 + $0x60] sm:$0xf]  ;;  %vm14192_vm12 = vmmov %vm14130_vm3 }
 0x3dc   : > { %v12166_v20 = vor.u32 %v14147_v34, %v12076_v19  ;;  %14148 = vst [vmem:[#allocation14_spill] sm:$0xff] %v12168_v32  ;;  %v5493_v50 = vshrl.u32 %v12168_v32, 16  ;;  %v5495_v33 = vshll.u32 %v12168_v32, 16  ;;  %v5500_v34 = vshll.u32 %v9469_v6, 16  ;;  %v9564_v6 = vld [vmem:[%s13953_s4 + $0xb0] sm:$0xff]  }
 0x3dd   : > { %v4390_v44 = vor.u32 %v14149_v60, %v12082_v56  ;;  %v14151_v19 = vshll.u32 %v11915_v48, 16  ;;  %v14152_v60 = vshll.u32 %v11917_v31, 16  ;;  %v4417_v12 = vrot.slane %v12094_v9, 4  ;;  %v4597_v31 = vld [vmem:[#allocation3 + $0x68] sm:$0x1]  ;;  %5966 = vmatpush1.bf16.msra.mxu1 %v9564_v6 }
 0x3de   : > { %v5497_v7 = vrot.slane %v5495_v33, 1  ;;  %v5502_v0 = vrot.slane %v5500_v34, 1  ;;  %v14153_v48 = vshll.u32 %v11926_v57, 16  ;;  %v4434_v21 = vrot.slane %v12102_v10, 4  ;;  %5967 = vmatprep.subr.bf16.mxu1 %v14068_v58  ;;  %v4607_v6 = vld [vmem:[#allocation3 + $0x78] sm:$0xf] }
 0x3df   : > { %v4407_v39 = vor.u32 %v14151_v19, %v12090_v17  ;;  %v12194_v62 = vor.u32 %v14152_v60, %v12094_v9  ;;  %v14154_v9 = vshll.u32 %v11932_v59, 16  ;;  %v14155_v33 = vshll.u32 %v11934_v2, 16  ;;  %v9471_v2 = vld [vmem:[#allocation3 + $0x44] ss:$0 sps:$4 sm:$0x11]  }
 0x3e0   : > { %v4424_v19 = vor.u32 %v14153_v48, %v12098_v63  ;;  %v5498_v48 = vor.u32 %v5497_v7, %v5493_v50  ;;  %v14156_v38 = vshll.u32 %v11936_v36, 16  ;;  %v4451_v32 = vrot.slane %v12106_v13, 4  ;;  %v4611_v57 = vld [vmem:[#allocation3 + $0x80] sm:$0x1] }
 0x3e1   : > { %v5248_v60 = vld [vmem:[#allocation3 + $0x3c] sm:$0xf]  ;;  %v12208_v49 = vor.u32 %v14154_v9, %v12102_v10  ;;  %v4441_v34 = vor.u32 %v14155_v33, %v12104_v4  ;;  %v5249_v61 = vld [vmem:[#allocation3 + $0x40] sm:$0xf]  ;;  %v14157_v59 = vshll.u32 %v11938_v47, 16  ;;  %v14159_v50 = vshll.u32 %v11965_v45, 16 }
 0x3e2   : > { %v12218_v1 = vor.u32 %v14156_v38, %v12106_v13  ;;  %v4586_v10 = vld [vmem:[#allocation3 + $0x54] sm:$0xf]  ;;  %v12224_v28 = vcombine.low %v5248_v60, %v5249_v61  ;;  %v4468_v36 = vrot.slane %v12110_v42, 4  ;;  %v9565_v13 = vld [vmem:[%s13953_s4 + $0xb8] sm:$0xff]   ;;  %v4590_v47 = vld [vmem:[#allocation3 + $0x5c] sm:$0x1]  ;;  %v5503_v61 = vsel %vm14160_vm14, %v5498_v48, %v5502_v0 }
 0x3e3   : > { %v4458_v9 = vor.u32 %v14157_v59, %v12108_v24  ;;  %v12230_v7 = vor.u32 %v14159_v50, %v12110_v42  ;;  %v4600_v38 = vld [vmem:[#allocation3 + $0x6c] sm:$0xf]  ;;  %v4604_v59 = vld [vmem:[#allocation3 + $0x74] sm:$0x1]  ;;  %v14161_v60 = vshll.u32 %v12001_v5, 16  ;;  %v14162_v50 = vrot.slane %v12049_v43, 4  ;;  %5634 = vrot.lane.b32.xlu1 %v5503_v61, %s9780_s13  ;;  %5968 = vmatpush1.bf16.msra.mxu1 %v9565_v13  ;;  %vm14195_vm14 = vmmov %vm14130_vm3 }
 0x3e4   : > { %14158 = vst [vmem:[#allocation15_spill] sm:$0xff] %v12224_v28  ;;  %v5481_v30 = vshrl.u32 %v12224_v28, 16  ;;  %v5483_v0 = vshll.u32 %v12224_v28, 16  ;;  %v5488_v48 = vshll.u32 %v9471_v2, 16  ;;  %v4594_v5 = vsel %vm9917_vm8, %v12143_v8, %v4593_v46  ;;  %v4614_v43 = vld [vmem:[#allocation3 + $0x84] sm:$0xf]  ;;  %6226 = vmatprep.subr.bf16.mxu1 %v14068_v58 }
 0x3e5   : > { %v4475_v33 = vor.u32 %v14161_v60, %v12112_v51  ;;  %v4357_v42 = vsel %vm9910_vm7, %v14162_v50, %v4356_v23  ;;  %v4618_v60 = vld [vmem:[#allocation3 + $0x8c] sm:$0x1]  ;;  %4595 = vst [vmem:[#allocation3 + $0x60] sm:$0xf] %v4594_v5  ;;  %v14164_v23 = vrot.slane %v12059_v55, 4  ;;  %v14165_v61 = vrot.slane %v12041_v15, 4 }
 0x3e6   : > { %4596 = vst.msk [vmem:[#allocation3 + $0x64] sm:$0xf] %vm14163_vm15, %v4357_v42  ;;  %v14166_v45 = vrot.slane %v12068_v29, 4  ;;  %v4391_v46 = vsel %vm9910_vm7, %v4383_v3, %v4390_v44  ;;  %v4621_v42 = vld [vmem:[#allocation3 + $0x90] sm:$0xf]  ;;  %v5485_v5 = vrot.slane %v5483_v0, 1  ;;  %v4408_v15 = vsel %vm9910_vm7, %v4400_v18, %v4407_v39  ;;  %vm14197_vm15 = vmmov %vm14130_vm3 }
 0x3e7   : > { %v4598_v50 = vsel %vm9833_vm2, %v14164_v23, %v4597_v31  ;;  %v4340_v2 = vsel %vm9910_vm7, %v14165_v61, %v12133_v16  ;;  %v4625_v55 = vld [vmem:[#allocation3 + $0x98] sm:$0x1]  ;;  %v5490_v28 = vrot.slane %v5488_v48, 1  ;;  %v4425_v16 = vsel %vm9910_vm7, %v4417_v12, %v4424_v19  ;;  %4610 = vst.msk [vmem:[#allocation3 + $0x7c] sm:$0xf] %vm14169_vm6, %v4391_v46 }
 0x3e8   : > { %v4374_v8 = vsel %vm9910_vm7, %v14166_v45, %v12161_v22  ;;  %4599 = vst [vmem:[#allocation3 + $0x68] sm:$0x1] %v4598_v50  ;;  %4589 = vst.msk [vmem:[#allocation3 + $0x58] sm:$0xf] %vm14167_vm13, %v4340_v2  ;;  %v4628_v29 = vld [vmem:[#allocation3 + $0x9c] sm:$0xf]  ;;  %v4442_v3 = vsel %vm9910_vm7, %v4434_v21, %v4441_v34  ;;  %v4459_v44 = vsel %vm9910_vm7, %v4451_v32, %v4458_v9 }
 0x3e9   : > { %4603 = vst.msk [vmem:[#allocation3 + $0x70] sm:$0xf] %vm14168_vm1, %v4374_v8  ;;  %v4632_v22 = vld [vmem:[#allocation3 + $0xa4] sm:$0x1]  ;;  %v4476_v39 = vsel %vm9910_vm7, %v4468_v36, %v4475_v33  ;;  %v4587_v18 = vsel %vm9917_vm8, %v12124_v26, %v4586_v10  ;;  %v4635_v12 = vld [vmem:[#allocation3 + $0xa8] sm:$0xf]  ;;  %v5486_v21 = vor.u32 %v5485_v5, %v5481_v30  ;;  %v4601_v32 = vsel %vm9917_vm8, %v12156_v27, %v4600_v38  ;;  %vm14174_vm7 = vmmov %vm14168_vm1 }
 0x3ea   : > { %4617 = vst.msk [vmem:[#allocation3 + $0x88] sm:$0xf] %vm14170_vm9, %v4408_v15  ;;  %v4639_v19 = vld [vmem:[#allocation3 + $0xb0] sm:$0x1]  ;;  %v4642_v31 = vld [vmem:[#allocation3 + $0xb4] sm:$0xf]  ;;  %v4615_v27 = vsel %vm9917_vm8, %v12182_v35, %v4614_v43  ;;  %vm14199_vm13 = vmmov %vm14130_vm3 }
 0x3eb   : > { %4624 = vst.msk [vmem:[#allocation3 + $0x94] sm:$0xf] %vm14171_vm10, %v4425_v16  ;;  %v14172_v34 = vrot.slane %v12045_v25, 4  ;;  %v14173_v26 = vrot.slane %v12072_v40, 4  ;;  %4588 = vst [vmem:[#allocation3 + $0x54] sm:$0xf] %v4587_v18  ;;  %v4608_v25 = vsel %vm9917_vm8, %v12166_v20, %v4607_v6  ;;  %v5491_v13 = vsel %vm14130_vm3, %v5486_v21, %v5490_v28 }
 0x3ec   : > { %4631 = vst.msk [vmem:[#allocation3 + $0xa0] sm:$0xf] %vm14174_vm7, %v4442_v3  ;;  %v4646_v30 = vld [vmem:[#allocation3 + $0xbc] sm:$0x1]  ;;  %v14177_v10 = vrot.slane %v12082_v56, 4  ;;  %v14178_v33 = vrot.slane %v12090_v17, 4  ;;  %v4622_v56 = vsel %vm9917_vm8, %v12194_v62, %v4621_v42  ;;  %v4629_v17 = vsel %vm9917_vm8, %v12208_v49, %v4628_v29  ;;  %5632 = vrot.lane.b32.xlu0 %v5491_v13, %s9780_s13  ;;  %vm14201_vm1 = vmmov %vm14130_vm3 }
 0x3ed   : > { %v4591_v37 = vsel %vm9833_vm2, %v14172_v34, %v4590_v47  ;;  %v4605_v9 = vsel %vm9833_vm2, %v14173_v26, %v4604_v59  ;;  %4638 = vst.msk [vmem:[#allocation3 + $0xac] sm:$0xf] %vm14175_vm11, %v4459_v44  ;;  %4602 = vst [vmem:[#allocation3 + $0x6c] sm:$0xf] %v4601_v32  ;;  %v14179_v20 = vrot.slane %v12098_v63, 4  ;;  %v14180_v47 = vrot.slane %v12104_v4, 4 }
 0x3ee   : > { %4645 = vst.msk [vmem:[#allocation3 + $0xb8] sm:$0xf] %vm14176_vm0, %v4476_v39  ;;  %v4612_v40 = vsel %vm9833_vm2, %v14177_v10, %v4611_v57  ;;  %v4619_v36 = vsel %vm9833_vm2, %v14178_v33, %v4618_v60  ;;  %4592 = vst [vmem:[#allocation3 + $0x5c] sm:$0x1] %v4591_v37  ;;  %v441_v35 = vld [vmem:[#allocation3] sm:$0x1]  ;;  %v4636_v62 = vsel %vm9917_vm8, %v12218_v1, %v4635_v12 }
 0x3ef   : > { %4606 = vst [vmem:[#allocation3 + $0x74] sm:$0x1] %v4605_v9  ;;  %v4626_v57 = vsel %vm9833_vm2, %v14179_v20, %v4625_v55  ;;  %4609 = vst [vmem:[#allocation3 + $0x78] sm:$0xf] %v4608_v25  ;;  %v5255_v28 = vld [vmem:[#allocation3 + $0x64] sm:$0xf]  ;;  %v4633_v63 = vsel %vm9833_vm2, %v14180_v47, %v4632_v22  ;;  %v4643_v59 = vsel %vm9917_vm8, %v12230_v7, %v4642_v31 }
 0x3f0   : > { %4613 = vst [vmem:[#allocation3 + $0x80] sm:$0x1] %v4612_v40  ;;  %4616 = vst [vmem:[#allocation3 + $0x84] sm:$0xf] %v4615_v27  ;;  %v14181_v38 = vrot.slane %v12108_v24, 4  ;;  %v14182_v6 = vrot.slane %v12112_v51, 4 }
 0x3f1   : > { %4620 = vst [vmem:[#allocation3 + $0x8c] sm:$0x1] %v4619_v36  ;;  %4623 = vst [vmem:[#allocation3 + $0x90] sm:$0xf] %v4622_v56  ;;  %v5254_v45 = vld [vmem:[#allocation3 + $0x60] sm:$0xf] }
 0x3f2   : > { %v4640_v49 = vsel %vm9833_vm2, %v14181_v38, %v4639_v19  ;;  %4627 = vst [vmem:[#allocation3 + $0x98] sm:$0x1] %v4626_v57  ;;  %4630 = vst [vmem:[#allocation3 + $0x9c] sm:$0xf] %v4629_v17  ;;  %v4647_v1 = vsel %vm9833_vm2, %v14182_v6, %v4646_v30  ;;  %v5615_v24 = vshll.u32 %v12003_v11, 16  ;;  %v12349_v7 = vcombine.low %v5254_v45, %v5255_v28 }
 0x3f3   : > { %v12342_v4 = vld [vmem:[#allocation3 + $0xc8] ss:$0 sps:$4 sm:$0x11]   ;;  %4634 = vst [vmem:[#allocation3 + $0xa4] sm:$0x1] %v4633_v63  ;;  %v442_v43 = vsel %vm9833_vm2, 0, %v441_v35  ;;  %vm14187_vm8 = vmmov %vm14130_vm3 }
 0x3f4   : > { %4637 = vst [vmem:[#allocation3 + $0xa8] sm:$0xf] %v4636_v62  ;;  %4641 = vst [vmem:[#allocation3 + $0xb0] sm:$0x1] %v4640_v49  ;;  %v4658_v0 = vld [vmem:[#allocation3 + $0xc] sm:$0xf] }
 0x3f5   : > { %4644 = vst [vmem:[#allocation3 + $0xb4] sm:$0xf] %v4643_v59  ;;  %v9473_v48 = vld [vmem:[#allocation3 + $0x68] ss:$0 sps:$4 sm:$0x11]   ;;  %v5613_v23 = vshrl.u32 %v12003_v11, 16  ;;  %v12361_v31 = vcombine.low %v4658_v0, %v4659_v14  ;;  %vm14202_vm6 = vmmov %vm14201_vm1 }
 0x3f6   : > { %4648 = vst [vmem:[#allocation3 + $0xbc] sm:$0x1] %v4647_v1  ;;  %v5253_v60 = vld [vmem:[#allocation3 + $0x58] sm:$0xf]  ;;  %v5259_v51 = vld [vmem:[#allocation3 + $0x7c] sm:$0xf]  ;;  %vm14203_vm9 = vmmov %vm14201_vm1 }
 0x3f7   : > { %443 = vst [vmem:[#allocation3] sm:$0x1] %v442_v43  ;;  %v4660_v50 = vld [vmem:[#allocation3 + $0x18] sm:$0xf]  ;;  %v4661_v61 = vld [vmem:[#allocation3 + $0x1c] sm:$0xf]  ;;  %vm14205_vm10 = vmmov %vm14201_vm1 }
 0x3f8   : > { %v4664_v2 = vld [vmem:[#allocation3 + $0x30] sm:$0xf]  ;;  %v4665_v8 = vld [vmem:[#allocation3 + $0x34] sm:$0xf]  ;;  %v6388_v46 = vld [vmem:[#allocation3 + $0x18] sm:$0xf]  ;;  %v12367_v36 = vcombine.low %v4660_v50, %v4661_v61 }
 0x3f9   : > { %v6389_v42 = vld [vmem:[#allocation3 + $0x1c] sm:$0xf]  ;;  %v5517_v55 = vshrl.u32 %v12349_v7, 16  ;;  %v5519_v5 = vshll.u32 %v12349_v7, 16  ;;  %v5524_v15 = vshll.u32 %v9473_v48, 16  ;;  %v5620_v29 = vshll.u32 %v12342_v4, 16  ;;  %vm14206_vm7 = vmmov %vm14201_vm1 }
 0x3fa   : > { %v5252_v16 = vld [vmem:[#allocation3 + $0x54] sm:$0xf]  ;;  %v9475_v3 = vld [vmem:[#allocation3 + $0x5c] ss:$0 sps:$4 sm:$0x11]   ;;  %v12359_v39 = vrot.slane %v5615_v24, 1  ;;  %v12369_v13 = vcombine.low %v4664_v2, %v4665_v8  ;;  %v12371_v56 = vcombine.low %v6388_v46, %v6389_v42  ;;  %vm14207_vm11 = vmmov %vm14201_vm1 }
 0x3fb   : > { %v12357_v22 = vcombine.low %v5252_v16, %v5253_v60  ;;  %v5257_v44 = vld [vmem:[#allocation3 + $0x70] sm:$0xf]  ;;  %v5521_v18 = vrot.slane %v5519_v5, 1  ;;  %v5526_v12 = vrot.slane %v5524_v15, 1  ;;  %v5258_v19 = vld [vmem:[#allocation3 + $0x78] sm:$0xf]  ;;  %vm14209_vm0 = vmmov %vm14201_vm1 }
 0x3fc   : > { %14183 = vst [vmem:[#allocation19_spill] sm:$0xff] %v12361_v31  ;;  %v4662_v21 = vld [vmem:[#allocation3 + $0x24] sm:$0xf]  ;;  %v4663_v34 = vld [vmem:[#allocation3 + $0x28] sm:$0xf]  ;;  %v5512_v30 = vshll.u32 %v9475_v3, 16  ;;  %v12365_v25 = vcombine.low %v5258_v19, %v5259_v51  ;;  %vm14211_vm3 = vmmov %vm14209_vm0 }
 0x3fd   : > { %v6392_v37 = vld [vmem:[#allocation3 + $0x30] sm:$0xf]  ;;  %v6393_v32 = vld [vmem:[#allocation3 + $0x34] sm:$0xf]  ;;  %v5505_v26 = vshrl.u32 %v12357_v22, 16  ;;  %v5507_v9 = vshll.u32 %v12357_v22, 16  ;;  %v5522_v40 = vor.u32 %v5521_v18, %v5517_v55  ;;  %v12381_v48 = vcombine.low %v4662_v21, %v4663_v34 }
 0x3fe   : > { %v9477_v10 = vld [vmem:[#allocation3 + $0x80] ss:$0 sps:$4 sm:$0x11]   ;;  %v5256_v27 = vld [vmem:[#allocation3 + $0x6c] sm:$0xf]  ;;  %14184 = vst [vmem:[#allocation17_spill] sm:$0xff] %v12367_v36  ;;  %v12383_v43 = vcombine.low %v6392_v37, %v6393_v32 }
 0x3ff   : > { %v5262_v33 = vld [vmem:[#allocation3 + $0x90] sm:$0xf]  ;;  %14185 = vst [vmem:[#allocation16_spill] sm:$0xff] %v12369_v13  ;;  %14186 = vst [vmem:[#allocation18_spill] sm:$0xff] %v12371_v56  ;;  %v5509_v20 = vrot.slane %v5507_v9, 1  ;;  %v5514_v57 = vrot.slane %v5512_v30, 1  ;;  %v5527_v47 = vsel %vm14187_vm8, %v5522_v40, %v5526_v12  ;;  %v12376_v62 = vcombine.low %v5256_v27, %v5257_v44 }
 0x400   : > { %v5541_v17 = vshrl.u32 %v12365_v25, 16  ;;  %v5543_v35 = vshll.u32 %v12365_v25, 16  ;;  %v5263_v28 = vld [vmem:[#allocation3 + $0x94] sm:$0xf]  ;;  %v5548_v63 = vshll.u32 %v9477_v10, 16  ;;  %5638 = vrot.lane.b32.xlu1 %v5527_v47, %s9780_s13  ;;  %14189 = vst [vmem:[#allocation21_spill] sm:$0xff] %v12381_v48  ;;  %vm14212_vm8 = vmmov %vm14209_vm0 }
 0x401   : > { %v9479_v38 = vld [vmem:[#allocation3 + $0x74] ss:$0 sps:$4 sm:$0x11]   ;;  %v12378_v49 = vcombine.low %v5262_v33, %v5263_v28  ;;  %v495_v59 = vld [vmem:[#allocation3 + $0x8] sm:$0x1]  ;;  %v5510_v1 = vor.u32 %v5509_v20, %v5505_v26  ;;  %14190 = vst [vmem:[#allocation22_spill] sm:$0xff] %v12383_v43 }
 0x402   : > { %v4666_v45 = vld [vmem:[#allocation3 + $0x3c] sm:$0xf]  ;;  %v4667_v6 = vld [vmem:[#allocation3 + $0x40] sm:$0xf]  ;;  %v5545_v24 = vrot.slane %v5543_v35, 1  ;;  %v5550_v60 = vrot.slane %v5548_v63, 1 }
 0x403   : > { %14188 = vst [vmem:[#allocation20_spill] sm:$0xff] %v12378_v49  ;;  %v9481_v0 = vld [vmem:[#allocation3 + $0x98] ss:$0 sps:$4 sm:$0x11]   ;;  %v5260_v14 = vld [vmem:[#allocation3 + $0x84] sm:$0xf]  ;;  %v5515_v8 = vsel %vm14191_vm4, %v5510_v1, %v5514_v57  ;;  %v12396_v37 = vcombine.low %v4666_v45, %v4667_v6  ;;  %vm14214_vm4 = vmmov %vm14209_vm0 }
 0x404   : > { %v5529_v51 = vshrl.u32 %v12376_v62, 16  ;;  %v5531_v50 = vshll.u32 %v12376_v62, 16  ;;  %v5536_v61 = vshll.u32 %v9479_v38, 16  ;;  %v5261_v2 = vld [vmem:[#allocation3 + $0x88] sm:$0xf]  ;;  %v5546_v46 = vor.u32 %v5545_v24, %v5541_v17  ;;  %5636 = vrot.lane.b32.xlu0 %v5515_v8, %s9780_s13 }
 0x405   : > { %v5565_v42 = vshrl.u32 %v12378_v49, 16  ;;  %v5567_v55 = vshll.u32 %v12378_v49, 16  ;;  %v5266_v5 = vld [vmem:[#allocation3 + $0xa8] sm:$0xf]  ;;  %v5572_v3 = vshll.u32 %v9481_v0, 16  ;;  %v12391_v44 = vcombine.low %v5260_v14, %v5261_v2  ;;  %14193 = vst [vmem:[#allocation23_spill] sm:$0xff] %v12396_v37 }
 0x406   : > { %v5533_v15 = vrot.slane %v5531_v50, 1  ;;  %v5538_v16 = vrot.slane %v5536_v61, 1  ;;  %v9483_v18 = vld [vmem:[#allocation3 + $0x8c] ss:$0 sps:$4 sm:$0x11]   ;;  %v5551_v12 = vsel %vm14192_vm12, %v5546_v46, %v5550_v60  ;;  %v496_v34 = vsel %vm9843_vm5, 0, %v495_v59  ;;  %vm14217_vm12 = vmmov %vm14209_vm0 }
 0x407   : > { %v5569_v19 = vrot.slane %v5567_v55, 1  ;;  %v5267_v21 = vld [vmem:[#allocation3 + $0xac] sm:$0xf]  ;;  %5642 = vrot.lane.b32.xlu1 %v5551_v12, %s9780_s13  ;;  %v5574_v26 = vrot.slane %v5572_v3, 1  ;;  %v5553_v9 = vshrl.u32 %v12391_v44, 16  ;;  %v5555_v30 = vshll.u32 %v12391_v44, 16 }
 0x408   : > { %v5534_v32 = vor.u32 %v5533_v15, %v5529_v51  ;;  %v9485_v10 = vld [vmem:[#allocation3 + $0xb0] ss:$0 sps:$4 sm:$0x11]   ;;  %497 = vst [vmem:[#allocation3 + $0x8] sm:$0x1] %v496_v34  ;;  %v5560_v27 = vshll.u32 %v9483_v18, 16  ;;  %v12401_v33 = vcombine.low %v5266_v5, %v5267_v21 }
 0x409   : > { %v5570_v40 = vor.u32 %v5569_v19, %v5565_v42  ;;  %v5264_v20 = vld [vmem:[#allocation3 + $0x9c] sm:$0xf]  ;;  %v5265_v57 = vld [vmem:[#allocation3 + $0xa0] sm:$0xf]  ;;  %v4657_v17 = vld [vmem:[#allocation3 + $0x4] sm:$0xf]  ;;  %v5618_v42 = vor.u32 %v12359_v39, %v5613_v23 }
 0x40a   : > { %14194 = vst [vmem:[#allocation25_spill] sm:$0xff] %v12401_v33  ;;  %v4861_v35 = vshrl.u32 %v12361_v31, 16  ;;  %v5539_v28 = vsel %vm14195_vm14, %v5534_v32, %v5538_v16  ;;  %v5557_v47 = vrot.slane %v5555_v30, 1  ;;  %v5596_v63 = vshll.u32 %v9485_v10, 16  ;;  %v5268_v59 = vld [vmem:[#allocation3 + $0xb4] sm:$0xf]  ;;  %vm14220_vm14 = vmmov %vm14209_vm0 }
 0x40b   : > { %v12405_v38 = vcombine.low %v5264_v20, %v5265_v57  ;;  %5640 = vrot.lane.b32.xlu0 %v5539_v28, %s9780_s13  ;;  %v5575_v45 = vsel %vm14197_vm15, %v5570_v40, %v5574_v26  ;;  %v5562_v6 = vrot.slane %v5560_v27, 1  ;;  %v5589_v1 = vshrl.u32 %v12401_v33, 16  ;;  %v9487_v0 = vld [vmem:[#allocation3 + $0xa4] ss:$0 sps:$4 sm:$0x11]   ;;  %vm14224_vm15 = vmmov %vm14209_vm0 }
 0x40c   : > { %v5591_v24 = vshll.u32 %v12401_v33, 16  ;;  %v9495_v14 = vld [vmem:[#allocation3 + $0x14] ss:$0 sps:$4 sm:$0x11]   ;;  %5646 = vrot.lane.b32.xlu1 %v5575_v45, %s9780_s13  ;;  %v5558_v60 = vor.u32 %v5557_v47, %v5553_v9  ;;  %v5598_v51 = vrot.slane %v5596_v63, 1  ;;  %v5584_v46 = vshll.u32 %v9487_v0, 16 }
 0x40d   : > { %14196 = vst [vmem:[#allocation24_spill] sm:$0xff] %v12405_v38  ;;  %v5577_v50 = vshrl.u32 %v12405_v38, 16  ;;  %v5579_v61 = vshll.u32 %v12405_v38, 16  ;;  %v5269_v2 = vld [vmem:[#allocation3 + $0xb8] sm:$0xf]  ;;  %v4863_v12 = vshll.u32 %v12361_v31, 16 }
 0x40e   : > { %v5593_v8 = vrot.slane %v5591_v24, 1  ;;  %v12417_v55 = vcombine.low %v5268_v59, %v5269_v2  ;;  %v4656_v5 = vld [vmem:[#allocation3] sm:$0xf]  ;;  %v5563_v15 = vsel %vm14199_vm13, %v5558_v60, %v5562_v6  ;;  %v9491_v3 = vld [vmem:[#allocation3 + $0xbc] ss:$0 sps:$4 sm:$0x11]   ;;  %vm14225_vm13 = vmmov %vm14209_vm0 }
 0x40f   : > { %v5581_v16 = vrot.slane %v5579_v61, 1  ;;  %v12420_v18 = vcombine.low %v4656_v5, %v4657_v17  ;;  %v9497_v19 = vld [vmem:[#allocation3 + $0x20] ss:$0 sps:$4 sm:$0x11]   ;;  %5644 = vrot.lane.b32.xlu0 %v5563_v15, %s9780_s13  ;;  %v5586_v34 = vrot.slane %v5584_v46, 1  ;;  %v5608_v26 = vshll.u32 %v9491_v3, 16 }
 0x410   : > { %14198 = vst [vmem:[#allocation8_spill] sm:$0xff] %v12417_v55  ;;  %v5594_v21 = vor.u32 %v5593_v8, %v5589_v1  ;;  %v5601_v32 = vshrl.u32 %v12417_v55, 16  ;;  %v5603_v23 = vshll.u32 %v12417_v55, 16  ;;  %v9493_v9 = vld [vmem:[#allocation3 + $0x8] ss:$0 sps:$4 sm:$0x11]  }
 0x411   : > { %14200 = vst [vmem:[#allocation9_spill] sm:$0xff] %v12420_v18  ;;  %v5582_v39 = vor.u32 %v5581_v16, %v5577_v50  ;;  %v4849_v30 = vshrl.u32 %v12420_v18, 16  ;;  %v4851_v10 = vshll.u32 %v12420_v18, 16  ;;  %v9499_v40 = vld [vmem:[#allocation3 + $0x2c] ss:$0 sps:$4 sm:$0x11]  }
 0x412   : > { %v5599_v27 = vsel %vm14201_vm1, %v5594_v21, %v5598_v51  ;;  %v5605_v20 = vrot.slane %v5603_v23, 1  ;;  %v4865_v57 = vrot.slane %v4863_v12, 1  ;;  %v4868_v17 = vshll.u32 %v9495_v14, 16  ;;  %v9501_v28 = vld [vmem:[#allocation3 + $0x38] ss:$0 sps:$4 sm:$0x11]   ;;  %vm14227_vm1 = vmmov %vm14209_vm0 }
 0x413   : > { %v4668_v47 = vld [vmem:[#allocation3 + $0x48] sm:$0xf]  ;;  %5650 = vrot.lane.b32.xlu1 %v5599_v27, %s9780_s13  ;;  %v5587_v63 = vsel %vm14202_vm6, %v5582_v39, %v5586_v34  ;;  %v5622_v59 = vrot.slane %v5620_v29, 1  ;;  %v4853_v45 = vrot.slane %v4851_v10, 1  ;;  %v4856_v6 = vshll.u32 %v9493_v9, 16  ;;  %vm14229_vm6 = vmmov %vm14209_vm0 }
 0x414   : > { %v4669_v1 = vld [vmem:[#allocation3 + $0x4c] sm:$0xf]  ;;  %5648 = vrot.lane.b32.xlu0 %v5587_v63, %s9780_s13  ;;  %v5606_v24 = vor.u32 %v5605_v20, %v5601_v32  ;;  %v5610_v0 = vrot.slane %v5608_v26, 1  ;;  %v4866_v60 = vor.u32 %v4865_v57, %v4861_v35  ;;  %v4870_v51 = vrot.slane %v4868_v17, 1  ;;  %v4670_v23 = vld [vmem:[#allocation3 + $0x54] sm:$0xf] }
 0x415   : > { %v4854_v50 = vor.u32 %v4853_v45, %v4849_v30  ;;  %v4858_v14 = vrot.slane %v4856_v6, 1  ;;  %v4875_v61 = vshll.u32 %v12367_v36, 16  ;;  %v4880_v2 = vshll.u32 %v9497_v19, 16  ;;  %v9503_v8 = vld [vmem:[#allocation3 + $0x44] ss:$0 sps:$4 sm:$0x11]  }
 0x416   : > { %v5623_v46 = vsel %vm14203_vm9, %v5618_v42, %v5622_v59  ;;  %v4873_v4 = vshrl.u32 %v12367_v36, 16  ;;  %v4887_v29 = vshll.u32 %v12381_v48, 16  ;;  %v12438_v5 = vcombine.low %v4668_v47, %v4669_v1  ;;  %v9505_v15 = vld [vmem:[#allocation3 + $0x50] ss:$0 sps:$4 sm:$0x11]   ;;  %vm14230_vm9 = vmmov %vm14209_vm0 }
 0x417   : > { %5654 = vrot.lane.b32.xlu1 %v5623_v46, %s9780_s13  ;;  %v5611_v35 = vsel %vm14205_vm10, %v5606_v24, %v5610_v0  ;;  %v4871_v16 = vsel %vm14206_vm7, %v4866_v60, %v4870_v51  ;;  %v4877_v3 = vrot.slane %v4875_v61, 1  ;;  %v4892_v12 = vshll.u32 %v9499_v40, 16  ;;  %v9507_v21 = vld [vmem:[#allocation3 + $0x5c] ss:$0 sps:$4 sm:$0x11]   ;;  %vm14231_vm10 = vmmov %vm14209_vm0 }
 0x418   : > { %14204 = vst [vmem:[#allocation26_spill] sm:$0xff] %v12438_v5  ;;  %5652 = vrot.lane.b32.xlu0 %v5611_v35, %s9780_s13  ;;  %v4885_v42 = vshrl.u32 %v12381_v48, 16  ;;  %v4889_v19 = vrot.slane %v4887_v29, 1  ;;  %v4899_v34 = vshll.u32 %v12369_v13, 16  ;;  %v4904_v32 = vshll.u32 %v9501_v28, 16  ;;  %vm14232_vm7 = vmmov %vm14209_vm0 }
 0x419   : > { %v4671_v39 = vld [vmem:[#allocation3 + $0x58] sm:$0xf]  ;;  %v4859_v26 = vsel %vm14207_vm11, %v4854_v50, %v4858_v14  ;;  %v4882_v9 = vrot.slane %v4880_v2, 1  ;;  %v4897_v30 = vshrl.u32 %v12369_v13, 16  ;;  %v4911_v10 = vshll.u32 %v12396_v37, 16  ;;  %vm14233_vm11 = vmmov %vm14209_vm0 }
 0x41a   : > { %v4672_v27 = vld [vmem:[#allocation3 + $0x60] sm:$0xf]  ;;  %v4673_v40 = vld [vmem:[#allocation3 + $0x64] sm:$0xf]  ;;  %v4890_v20 = vor.u32 %v4889_v19, %v4885_v42  ;;  %v4894_v57 = vrot.slane %v4892_v12, 1  ;;  %v4901_v17 = vrot.slane %v4899_v34, 1  ;;  %v4878_v28 = vor.u32 %v4877_v3, %v4873_v4 }
 0x41b   : > { %v4916_v47 = vshll.u32 %v9503_v8, 16  ;;  %v12449_v63 = vld [vmem:[#allocation3 + $0x68] ss:$0 sps:$4 sm:$0x11]   ;;  %5042 = vrot.lane.b32.xlu1 %v4871_v16, %s9780_s13  ;;  %v4909_v59 = vshrl.u32 %v12396_v37, 16  ;;  %v4913_v45 = vrot.slane %v4911_v10, 1  ;;  %v12458_v8 = vcombine.low %v4670_v23, %v4671_v39 }
 0x41c   : > { %v4923_v6 = vshll.u32 %v12438_v5, 16  ;;  %v12454_v1 = vld [vmem:[#allocation3 + $0x74] ss:$0 sps:$4 sm:$0x11]   ;;  %5040 = vrot.lane.b32.xlu0 %v4859_v26, %s9780_s13  ;;  %v4902_v24 = vor.u32 %v4901_v17, %v4897_v30  ;;  %v4906_v0 = vrot.slane %v4904_v32, 1  ;;  %v4921_v60 = vshrl.u32 %v12438_v5, 16 }
 0x41d   : > { %v4928_v51 = vshll.u32 %v9505_v15, 16  ;;  %v4674_v50 = vld [vmem:[#allocation3 + $0x6c] sm:$0xf]  ;;  %v4675_v14 = vld [vmem:[#allocation3 + $0x70] sm:$0xf]  ;;  %v4918_v61 = vrot.slane %v4916_v47, 1  ;;  %v4895_v35 = vsel %vm14209_vm0, %v4890_v20, %v4894_v57  ;;  %v4914_v16 = vor.u32 %v4913_v45, %v4909_v59 }
 0x41e   : > { %v4925_v2 = vrot.slane %v4923_v6, 1  ;;  %14208 = vst [vmem:[#allocation10_spill] sm:$0xff] %v12458_v8  ;;  %v4940_v46 = vshll.u32 %v9507_v21, 16  ;;  %v4676_v4 = vld [vmem:[#allocation3 + $0x78] sm:$0xf]  ;;  %v12461_v12 = vcombine.low %v4672_v27, %v4673_v40  ;;  %v4883_v15 = vsel %vm14211_vm3, %v4878_v28, %v4882_v9  ;;  %vm14236_vm3 = vmmov %vm14209_vm0 }
 0x41f   : > { %v4677_v29 = vld [vmem:[#allocation3 + $0x7c] sm:$0xf]  ;;  %v4930_v3 = vrot.slane %v4928_v51, 1  ;;  %v12463_v42 = vld [vmem:[#allocation3 + $0x80] ss:$0 sps:$4 sm:$0x11]   ;;  %5046 = vrot.lane.b32.xlu1 %v4895_v35, %s9780_s13  ;;  %v4907_v34 = vsel %vm14212_vm8, %v4902_v24, %v4906_v0  ;;  %v12474_v47 = vcombine.low %v4674_v50, %v4675_v14  ;;  %v4919_v45 = vsel %vm14214_vm4, %v4914_v16, %v4918_v61  ;;  %vm14239_vm8 = vmmov %vm14209_vm0 }
 0x420   : > { %14210 = vst [vmem:[#allocation27_spill] sm:$0xff] %v12461_v12  ;;  %v4678_v19 = vld [vmem:[#allocation3 + $0x84] sm:$0xf]  ;;  %v4935_v32 = vshll.u32 %v12458_v8, 16  ;;  %v4952_v21 = vshll.u32 %v12449_v63, 16  ;;  %5044 = vrot.lane.b32.xlu0 %v4883_v15, %s9780_s13  ;;  %v4926_v10 = vor.u32 %v4925_v2, %v4921_v60  ;;  %v4933_v27 = vshrl.u32 %v12458_v8, 16  ;;  %vm14240_vm4 = vmmov %vm14209_vm0 }
 0x421   : > { %v4679_v23 = vld [vmem:[#allocation3 + $0x88] sm:$0xf]  ;;  %v6390_v39 = vld [vmem:[#allocation3 + $0x24] sm:$0xf]  ;;  %v6394_v30 = vld [vmem:[#allocation3 + $0x3c] sm:$0xf]  ;;  %v12480_v24 = vcombine.low %v4676_v4, %v4677_v29 }
 0x422   : > { %v6391_v26 = vld [vmem:[#allocation3 + $0x28] sm:$0xf]  ;;  %v4942_v40 = vrot.slane %v4940_v46, 1  ;;  %v4947_v9 = vshll.u32 %v12461_v12, 16  ;;  %v6395_v20 = vld [vmem:[#allocation3 + $0x40] sm:$0xf]  ;;  %v12482_v0 = vcombine.low %v4678_v19, %v4679_v23  ;;  %v4931_v61 = vsel %vm14217_vm12, %v4926_v10, %v4930_v3  ;;  %vm14243_vm12 = vmmov %vm14209_vm0 }
 0x423   : > { %v4937_v57 = vrot.slane %v4935_v32, 1  ;;  %v4945_v17 = vshrl.u32 %v12461_v12, 16  ;;  %14213 = vst [vmem:[#allocation6_spill] sm:$0xff] %v12474_v47  ;;  %v4964_v63 = vshll.u32 %v12454_v1, 16  ;;  %v4680_v28 = vld [vmem:[#allocation3 + $0x90] sm:$0xf]  ;;  %5050 = vrot.lane.b32.xlu1 %v4919_v45, %s9780_s13  ;;  %v12495_v19 = vcombine.low %v6390_v39, %v6391_v26 }
 0x424   : > { %v12477_v59 = vld [vmem:[#allocation3 + $0x94] sm:$0xf]  ;;  %v4949_v6 = vrot.slane %v4947_v9, 1  ;;  %14215 = vst [vmem:[#allocation7_spill] sm:$0xff] %v12480_v24  ;;  %14216 = vst [vmem:[#allocation28_spill] sm:$0xff] %v12482_v0  ;;  %v4957_v2 = vshrl.u32 %v12474_v47, 16  ;;  %5048 = vrot.lane.b32.xlu0 %v4907_v34, %s9780_s13  ;;  %v12497_v15 = vcombine.low %v6394_v30, %v6395_v20 }
 0x425   : > { %v9515_v60 = vld [vmem:[#allocation3 + $0x8c] ss:$0 sps:$4 sm:$0x11]   ;;  %v4938_v51 = vor.u32 %v4937_v57, %v4933_v27  ;;  %v4959_v50 = vshll.u32 %v12474_v47, 16  ;;  %v4976_v1 = vshll.u32 %v12463_v42, 16  ;;  %v4971_v4 = vshll.u32 %v12480_v24, 16 }
 0x426   : > { %v4682_v14 = vld [vmem:[#allocation3 + $0x9c] sm:$0xf]  ;;  %v6396_v46 = vld [vmem:[#allocation3 + $0x48] sm:$0xf]  ;;  %v6397_v35 = vld [vmem:[#allocation3 + $0x4c] sm:$0xf]  ;;  %v4950_v32 = vor.u32 %v4949_v6, %v4945_v17  ;;  %v12504_v10 = vcombine.low %v4680_v28, %v12477_v59 }
 0x427   : > { %v12491_v29 = vld [vmem:[#allocation3 + $0x98] ss:$0 sps:$4 sm:$0x11]   ;;  %v12493_v16 = vld [vmem:[#allocation3 + $0xa0] sm:$0xf]  ;;  %14218 = vst [vmem:[#allocation29_spill] sm:$0xff] %v12495_v19  ;;  %v4943_v34 = vsel %vm14220_vm14, %v4938_v51, %v4942_v40  ;;  %v12516_v28 = vcombine.low %v6396_v46, %v6397_v35  ;;  %vm14244_vm14 = vmmov %vm14209_vm0 }
 0x428   : > { %14219 = vst [vmem:[#allocation30_spill] sm:$0xff] %v12497_v15  ;;  %v4961_v23 = vrot.slane %v4959_v50, 1  ;;  %v4969_v42 = vshrl.u32 %v12480_v24, 16  ;;  %v4983_v27 = vshll.u32 %v12482_v0, 16  ;;  %v4973_v9 = vrot.slane %v4971_v4, 1  ;;  %14221 = vst [vmem:[#allocation31_spill] sm:$0xff] %v12504_v10  ;;  %5054 = vrot.lane.b32.xlu1 %v4943_v34, %s9780_s13  ;;  %5052 = vrot.lane.b32.xlu0 %v4931_v61, %s9780_s13 }
 0x429   : > { %v4981_v3 = vshrl.u32 %v12482_v0, 16  ;;  %v12506_v57 = vld [vmem:[#allocation3 + $0xa4] ss:$0 sps:$4 sm:$0x11]   ;;  %v4988_v30 = vshll.u32 %v9515_v60, 16  ;;  %v12510_v20 = vcombine.low %v4682_v14, %v12493_v16  ;;  %v4966_v40 = vrot.slane %v4964_v63, 1 }
 0x42a   : > { %v4962_v39 = vor.u32 %v4961_v23, %v4957_v2  ;;  %v4985_v26 = vrot.slane %v4983_v27, 1  ;;  %v4684_v17 = vld [vmem:[#allocation3 + $0xa8] sm:$0xf]  ;;  %v4974_v45 = vor.u32 %v4973_v9, %v4969_v42  ;;  %v4995_v6 = vshll.u32 %v12504_v10, 16  ;;  %v12514_v51 = vld [vmem:[#allocation3 + $0xac] sm:$0xf] }
 0x42b   : > { %14222 = vst [vmem:[#allocation32_spill] sm:$0xff] %v12510_v20  ;;  %14223 = vst [vmem:[#allocation33_spill] sm:$0xff] %v12516_v28  ;;  %v4954_v50 = vrot.slane %v4952_v21, 1  ;;  %v4978_v4 = vrot.slane %v4976_v1, 1  ;;  %v5000_v2 = vshll.u32 %v12491_v29, 16  ;;  %v5007_v61 = vshll.u32 %v12510_v20, 16 }
 0x42c   : > { %v4986_v34 = vor.u32 %v4985_v26, %v4981_v3  ;;  %v12519_v60 = vld [vmem:[#allocation3 + $0xb0] ss:$0 sps:$4 sm:$0x11]   ;;  %v4967_v14 = vsel %vm14224_vm15, %v4962_v39, %v4966_v40  ;;  %v4997_v23 = vrot.slane %v4995_v6, 1  ;;  %v5012_v63 = vshll.u32 %v12506_v57, 16  ;;  %vm14246_vm15 = vmmov %vm14209_vm0 }
 0x42d   : > { %v4686_v42 = vld [vmem:[#allocation3 + $0xb4] sm:$0xf]  ;;  %v9525_v27 = vld [vmem:[#allocation3 + $0x20] ss:$0 sps:$4 sm:$0x11]   ;;  %v4955_v9 = vsel %vm14225_vm13, %v4950_v32, %v4954_v50  ;;  %5058 = vrot.lane.b32.xlu1 %v4967_v14, %s9780_s13  ;;  %v4990_v21 = vrot.slane %v4988_v30, 1  ;;  %v12528_v46 = vcombine.low %v4684_v17, %v12514_v51  ;;  %v4979_v3 = vsel %vm14227_vm1, %v4974_v45, %v4978_v4  ;;  %vm14247_vm13 = vmmov %vm14209_vm0 }
 0x42e   : > { %v4993_v1 = vshrl.u32 %v12504_v10, 16  ;;  %v12530_v35 = vld [vmem:[#allocation3 + $0xb8] sm:$0xf]  ;;  %5056 = vrot.lane.b32.xlu0 %v4955_v9, %s9780_s13  ;;  %v5005_v39 = vshrl.u32 %v12510_v20, 16  ;;  %v5009_v26 = vrot.slane %v5007_v61, 1  ;;  %v5024_v17 = vshll.u32 %v12519_v60, 16  ;;  %vm14248_vm1 = vmmov %vm14209_vm0 }
 0x42f   : > { %14226 = vst [vmem:[#allocation34_spill] sm:$0xff] %v12528_v46  ;;  %v12536_v40 = vcombine.low %v4686_v42, %v12530_v35  ;;  %v12538_v32 = vld [vmem:[#allocation3 + $0xbc] ss:$0 sps:$4 sm:$0x11]   ;;  %v4991_v30 = vsel %vm14229_vm6, %v4986_v34, %v4990_v21  ;;  %v5019_v6 = vshll.u32 %v12528_v46, 16  ;;  %v6583_v50 = vshll.u32 %v12371_v56, 16  ;;  %vm14249_vm6 = vmmov %vm14209_vm0 }
 0x430   : > { %v9527_v14 = vld [vmem:[#allocation3 + $0x2c] ss:$0 sps:$4 sm:$0x11]   ;;  %v4998_v9 = vor.u32 %v4997_v23, %v4993_v1  ;;  %v5010_v10 = vor.u32 %v5009_v26, %v5005_v39  ;;  %v5014_v45 = vrot.slane %v5012_v63, 1  ;;  %v5017_v42 = vshrl.u32 %v12528_v46, 16 }
 0x431   : > { %14228 = vst [vmem:[#allocation35_spill] sm:$0xff] %v12536_v40  ;;  %v5031_v4 = vshll.u32 %v12536_v40, 16  ;;  %v9530_v61 = vld [vmem:[#allocation3 + $0x38] ss:$0 sps:$4 sm:$0x11]   ;;  %5062 = vrot.lane.b32.xlu1 %v4991_v30, %s9780_s13  ;;  %v5021_v20 = vrot.slane %v5019_v6, 1 }
 0x432   : > { %v5029_v34 = vshrl.u32 %v12536_v40, 16  ;;  %v5036_v21 = vshll.u32 %v12538_v32, 16  ;;  %5060 = vrot.lane.b32.xlu0 %v4979_v3, %s9780_s13  ;;  %v6585_v24 = vrot.slane %v6583_v50, 1  ;;  %v6588_v47 = vshll.u32 %v9525_v27, 16  ;;  %v6398_v5 = vld [vmem:[#allocation3 + $0x54] sm:$0xf] }
 0x433   : > { %v5033_v0 = vrot.slane %v5031_v4, 1  ;;  %v6595_v23 = vshll.u32 %v12495_v19, 16  ;;  %v5002_v63 = vrot.slane %v5000_v2, 1  ;;  %v5015_v1 = vsel %vm14230_vm9, %v5010_v10, %v5014_v45  ;;  %v9532_v30 = vld [vmem:[#allocation3 + $0x44] ss:$0 sps:$4 sm:$0x11]  }
 0x434   : > { %v5026_v39 = vrot.slane %v5024_v17, 1  ;;  %v6581_v26 = vshrl.u32 %v12371_v56, 16  ;;  %v9535_v46 = vld [vmem:[#allocation3 + $0x50] ss:$0 sps:$4 sm:$0x11]   ;;  %v5022_v6 = vor.u32 %v5021_v20, %v5017_v42  ;;  %v6600_v8 = vshll.u32 %v9527_v14, 16 }
 0x435   : > { %v5034_v12 = vor.u32 %v5033_v0, %v5029_v34  ;;  %v6597_v40 = vrot.slane %v6595_v23, 1  ;;  %v5003_v3 = vsel %vm14231_vm10, %v4998_v9, %v5002_v63  ;;  %5066 = vrot.lane.b32.xlu1 %v5015_v1, %s9780_s13  ;;  %v6593_v27 = vshrl.u32 %v12495_v19, 16  ;;  %v12557_v50 = vld [vmem:[#allocation3 + $0x58] sm:$0xf]  ;;  %v12559_v10 = vld [vmem:[#allocation3 + $0x64] sm:$0xf]  ;;  %vm14251_vm10 = vmmov %vm14209_vm0 }
 0x436   : > { %v6607_v2 = vshll.u32 %v12383_v43, 16  ;;  %5064 = vrot.lane.b32.xlu0 %v5003_v3, %s9780_s13  ;;  %v5038_v17 = vrot.slane %v5036_v21, 1  ;;  %v6586_v20 = vor.u32 %v6585_v24, %v6581_v26  ;;  %v6590_v0 = vrot.slane %v6588_v47, 1  ;;  %v6400_v14 = vld [vmem:[#allocation3 + $0x60] sm:$0xf] }
 0x437   : > { %v6612_v45 = vshll.u32 %v9530_v61, 16  ;;  %v6598_v4 = vor.u32 %v6597_v40, %v6593_v27  ;;  %v6605_v9 = vshrl.u32 %v12383_v43, 16  ;;  %v6619_v34 = vshll.u32 %v12497_v15, 16  ;;  %v12564_v23 = vld [vmem:[#allocation3 + $0x5c] ss:$0 sps:$4 sm:$0x11]  }
 0x438   : > { %v6609_v42 = vrot.slane %v6607_v2, 1  ;;  %v5027_v63 = vsel %vm14232_vm7, %v5022_v6, %v5026_v39  ;;  %v5039_v1 = vsel %vm14233_vm11, %v5034_v12, %v5038_v17  ;;  %v6602_v19 = vrot.slane %v6600_v8, 1  ;;  %v12569_v21 = vld [vmem:[#allocation3 + $0x68] ss:$0 sps:$4 sm:$0x11]   ;;  %vm14253_vm11 = vmmov %vm14209_vm0 }
 0x439   : > { %v6631_v3 = vshll.u32 %v12516_v28, 16  ;;  %v6402_v47 = vld [vmem:[#allocation3 + $0x6c] sm:$0xf]  ;;  %5070 = vrot.lane.b32.xlu1 %v5039_v1, %s9780_s13  ;;  %v6621_v24 = vrot.slane %v6619_v34, 1  ;;  %v6624_v40 = vshll.u32 %v9532_v30, 16  ;;  %v6636_v61 = vshll.u32 %v9535_v46, 16 }
 0x43a   : > { %v12573_v26 = vcombine.low %v6398_v5, %v12557_v50  ;;  %5068 = vrot.lane.b32.xlu0 %v5027_v63, %s9780_s13  ;;  %v6591_v39 = vsel %vm14209_vm0, %v6586_v20, %v6590_v0  ;;  %v6614_v6 = vrot.slane %v6612_v45, 1  ;;  %v6617_v8 = vshrl.u32 %v12497_v15, 16  ;;  %v12581_v27 = vld [vmem:[#allocation3 + $0x70] sm:$0xf]  ;;  %v6404_v2 = vld [vmem:[#allocation3 + $0x78] sm:$0xf] }
 0x43b   : > { %v12579_v12 = vcombine.low %v6400_v14, %v12559_v10  ;;  %v6603_v17 = vsel %vm14236_vm3, %v6598_v4, %v6602_v19  ;;  %v6610_v30 = vor.u32 %v6609_v42, %v6605_v9  ;;  %v6633_v46 = vrot.slane %v6631_v3, 1  ;;  %v12585_v34 = vld [vmem:[#allocation3 + $0x7c] sm:$0xf]  ;;  %v12590_v14 = vld [vmem:[#allocation3 + $0x74] ss:$0 sps:$4 sm:$0x11]   ;;  %vm14255_vm3 = vmmov %vm14248_vm1 }
 0x43c   : > { %14234 = vst [vmem:[#allocation36_spill] sm:$0xff] %v12573_v26  ;;  %v6643_v5 = vshll.u32 %v12573_v26, 16  ;;  %v6622_v63 = vor.u32 %v6621_v24, %v6617_v8  ;;  %v6629_v20 = vshrl.u32 %v12516_v28, 16  ;;  %v6648_v0 = vshll.u32 %v12564_v23, 16  ;;  %v6406_v9 = vld [vmem:[#allocation3 + $0x84] sm:$0xf] }
 0x43d   : > { %14235 = vst [vmem:[#allocation37_spill] sm:$0xff] %v12579_v12  ;;  %v6655_v45 = vshll.u32 %v12579_v12, 16  ;;  %6774 = vrot.lane.b32.xlu1 %v6603_v17, %s9780_s13  ;;  %v6626_v1 = vrot.slane %v6624_v40, 1  ;;  %v6638_v15 = vrot.slane %v6636_v61, 1  ;;  %v12594_v4 = vcombine.low %v6402_v47, %v12581_v27  ;;  %v12602_v8 = vld [vmem:[#allocation3 + $0x88] sm:$0xf] }
 0x43e   : > { %v6645_v19 = vrot.slane %v6643_v5, 1  ;;  %6772 = vrot.lane.b32.xlu0 %v6591_v39, %s9780_s13  ;;  %v6641_v42 = vshrl.u32 %v12573_v26, 16  ;;  %v6660_v3 = vshll.u32 %v12569_v21, 16  ;;  %v12600_v24 = vcombine.low %v6404_v2, %v12585_v34  ;;  %v12606_v47 = vld [vmem:[#allocation3 + $0x80] ss:$0 sps:$4 sm:$0x11]  }
 0x43f   : > { %14237 = vst [vmem:[#allocation38_spill] sm:$0xff] %v12594_v4  ;;  %v6615_v17 = vsel %vm14239_vm8, %v6610_v30, %v6614_v6  ;;  %v6634_v40 = vor.u32 %v6633_v46, %v6629_v20  ;;  %v6657_v61 = vrot.slane %v6655_v45, 1  ;;  %v6667_v5 = vshll.u32 %v12594_v4, 16  ;;  %v6408_v28 = vld [vmem:[#allocation3 + $0x90] sm:$0xf]  ;;  %vm14256_vm8 = vmmov %vm14248_vm1 }
 0x440   : > { %14238 = vst [vmem:[#allocation39_spill] sm:$0xff] %v12600_v24  ;;  %v12608_v43 = vld [vmem:[#allocation3 + $0x94] sm:$0xf]  ;;  %v6627_v39 = vsel %vm14240_vm4, %v6622_v63, %v6626_v1  ;;  %v6646_v26 = vor.u32 %v6645_v19, %v6641_v42  ;;  %v6650_v56 = vrot.slane %v6648_v0, 1  ;;  %v6679_v2 = vshll.u32 %v12600_v24, 16 }
 0x441   : > { %v12612_v37 = vld [vmem:[#allocation3 + $0x8c] ss:$0 sps:$4 sm:$0x11]   ;;  %6778 = vrot.lane.b32.xlu1 %v6627_v39, %s9780_s13  ;;  %v6653_v6 = vshrl.u32 %v12579_v12, 16  ;;  %v6669_v30 = vrot.slane %v6667_v5, 1  ;;  %v6672_v46 = vshll.u32 %v12590_v14, 16  ;;  %v12618_v20 = vcombine.low %v6406_v9, %v12602_v8 }
 0x442   : > { %v6416_v45 = vld [vmem:[#allocation3 + $0xc0] sm:$0xf]  ;;  %v6417_v13 = vld [vmem:[#allocation3 + $0xc4] sm:$0xf]  ;;  %6776 = vrot.lane.b32.xlu0 %v6615_v17, %s9780_s13  ;;  %v6662_v63 = vrot.slane %v6660_v3, 1  ;;  %v6665_v0 = vshrl.u32 %v12594_v4, 16  ;;  %v12623_v1 = vcombine.low %v6408_v28, %v12608_v43  ;;  %v6639_v5 = vsel %vm14243_vm12, %v6634_v40, %v6638_v15 }
 0x443   : > { %14241 = vst [vmem:[#allocation40_spill] sm:$0xff] %v12618_v20  ;;  %v6410_v19 = vld [vmem:[#allocation3 + $0x9c] sm:$0xf]  ;;  %v12625_v42 = vld [vmem:[#allocation3 + $0xa0] sm:$0xf]  ;;  %v6658_v39 = vor.u32 %v6657_v61, %v6653_v6  ;;  %v6681_v12 = vrot.slane %v6679_v2, 1  ;;  %v6651_v17 = vsel %vm14244_vm14, %v6646_v26, %v6650_v56 }
 0x444   : > { %14242 = vst [vmem:[#allocation41_spill] sm:$0xff] %v12623_v1  ;;  %v6691_v9 = vshll.u32 %v12618_v20, 16  ;;  %v6412_v48 = vld [vmem:[#allocation3 + $0xa8] sm:$0xf]  ;;  %v12629_v36 = vld [vmem:[#allocation3 + $0xac] sm:$0xf]  ;;  %v6670_v3 = vor.u32 %v6669_v30, %v6665_v0  ;;  %v12638_v61 = vcombine.low %v6410_v19, %v12625_v42 }
 0x445   : > { %v6677_v4 = vshrl.u32 %v12600_v24, 16  ;;  %v6703_v28 = vshll.u32 %v12623_v1, 16  ;;  %v5289_v31 = vld [vmem:[#allocation3 + $0x18] sm:$0xe]  ;;  %6782 = vrot.lane.b32.xlu1 %v6651_v17, %s9780_s13  ;;  %v6684_v54 = vshll.u32 %v12606_v47, 16  ;;  %v6696_v40 = vshll.u32 %v12612_v37, 16 }
 0x446   : > { %v6693_v15 = vrot.slane %v6691_v9, 1  ;;  %14245 = vst [vmem:[#allocation42_spill] sm:$0xff] %v12638_v61  ;;  %v12640_v2 = vld [vmem:[#allocation3 + $0xa4] ss:$0 sps:$4 sm:$0x11]   ;;  %6780 = vrot.lane.b32.xlu0 %v6639_v5, %s9780_s13  ;;  %v6674_v56 = vrot.slane %v6672_v46, 1  ;;  %v12645_v6 = vcombine.low %v6412_v48, %v12629_v36  ;;  %v12649_v17 = vcombine.low %v6416_v45, %v6417_v13 }
 0x447   : > { %v6689_v26 = vshrl.u32 %v12618_v20, 16  ;;  %v6414_v30 = vld [vmem:[#allocation3 + $0xb4] sm:$0xf]  ;;  %v12647_v0 = vld [vmem:[#allocation3 + $0xb8] sm:$0xf]  ;;  %v6663_v9 = vsel %vm14246_vm15, %v6658_v39, %v6662_v63  ;;  %v6682_v24 = vor.u32 %v6681_v12, %v6677_v4  ;;  %v6715_v53 = vshll.u32 %v12638_v61, 16  ;;  %v5625_v39 = vpop.permute.xlu0 %5624  ;;  %vm14260_vm15 = vmmov %vm14248_vm1 }
 0x448   : > { %v12652_v19 = vld [vmem:[#allocation3 + $0x98] ss:$0 sps:$4 sm:$0x11]   ;;  %v9673_v18 = vld [vmem:[#allocation3 + $0x1c] sm:$0xf]  ;;  %v6675_v46 = vsel %vm14247_vm13, %v6670_v3, %v6674_v56  ;;  %v6705_v11 = vrot.slane %v6703_v28, 1  ;;  %v12659_v12 = vcombine.low %v6414_v30, %v12647_v0 }
 0x449   : > { %v8761_v5 = vcombine.low %v5289_v31, %v9673_v18  ;;  %v6694_v20 = vor.u32 %v6693_v15, %v6689_v26  ;;  %v6727_v48 = vshll.u32 %v12645_v6, 16  ;;  %v5290_v55 = vld [vmem:[#allocation3 + $0x24] sm:$0xe]  ;;  %6786 = vrot.lane.b32.xlu1 %v6675_v46, %s9780_s13  ;;  %v6686_v13 = vrot.slane %v6684_v54, 1  ;;  %v9566_v15 = vld [vmem:[%s13953_s4] sm:$0xff]  }
 0x44a   : > { %v6698_v45 = vrot.slane %v6696_v40, 1  ;;  %v6717_v33 = vrot.slane %v6715_v53, 1  ;;  %6784 = vrot.lane.b32.xlu0 %v6663_v9, %s9780_s13  ;;  %v6701_v4 = vshrl.u32 %v12623_v1, 16  ;;  %v6713_v31 = vshrl.u32 %v12638_v61, 16  ;;  %v9674_v40 = vld [vmem:[#allocation3 + $0x28] sm:$0xf] }
 0x44b   : > { %v6720_v18 = vshll.u32 %v12640_v2, 16  ;;  %v12665_v63 = vld [vmem:[#allocation3 + $0xbc] ss:$0 sps:$4 sm:$0x11]   ;;  %v6687_v3 = vsel %vm14248_vm1, %v6682_v24, %v6686_v13  ;;  %v6708_v54 = vshll.u32 %v12652_v19, 16  ;;  %v6739_v53 = vshll.u32 %v12659_v12, 16 }
 0x44c   : > { %v12669_v28 = vld [vmem:[#allocation3 + $0xb0] ss:$0 sps:$4 sm:$0x11]   ;;  %v8762_v56 = vcombine.low %v5290_v55, %v9674_v40  ;;  %v6699_v26 = vsel %vm14249_vm6, %v6694_v20, %v6698_v45  ;;  %v6706_v30 = vor.u32 %v6705_v11, %v6701_v4  ;;  %v6718_v9 = vor.u32 %v6717_v33, %v6713_v31  ;;  %v9560_v13 = vld [vmem:[#allocation3 + $0xc8] ss:$0 sps:$4 sm:$0x11]  }
 0x44d   : > { %v6729_v46 = vrot.slane %v6727_v48, 1  ;;  %6790 = vrot.lane.b32.xlu1 %v6699_v26, %s9780_s13  ;;  %v6741_v24 = vrot.slane %v6739_v53, 1  ;;  %v6751_v61 = vshll.u32 %v12649_v17, 16  ;;  %vm14250_vm9 = vcmask 523264   ;;  %v5627_v53 = vpop.permute.xlu1 %5626 }
 0x44e   : > { %v5753_v1 = vsel %vm14250_vm9, %v11747_v41, %v5625_v39  ;;  %v5707_v38 = vrot.slane %v8761_v5, 1  ;;  %6788 = vrot.lane.b32.xlu0 %v6687_v3, %s9780_s13  ;;  %v6722_v49 = vrot.slane %v6720_v18, 1  ;;  %v6737_v55 = vshrl.u32 %v12659_v12, 16  ;;  %v9675_v11 = vld [vmem:[#allocation3 + $0x20] ss:$0 sps:$4 sm:$0x11]   ;;  %vm14254_vm0 = vmmov %vm14250_vm9 }
 0x44f   : > { %v6744_v20 = vshll.u32 %v12665_v63, 16  ;;  %5978 = vmatmul.mubr.bf16.vlgmr.msra.gmra.mrb[0].mxu1 %v5753_v1  ;;  %v5708_v33 = vrot.slane %v9675_v11, 1  ;;  %v6710_v48 = vrot.slane %v6708_v54, 1  ;;  %v6725_v45 = vshrl.u32 %v12645_v6, 16  ;;  %v9567_v41 = vld [vmem:[%s13953_s4 + $0x8] sm:$0xff]   ;;  %vm14257_vm4 = vmmov %vm14254_vm0 }
 0x450   : > { %v6732_v4 = vshll.u32 %v12669_v28, 16  ;;  %6227 = vmatpush1.bf16.msra.mxu1 %v9566_v15  ;;  %v6723_v5 = vsel %vm14251_vm10, %v6718_v9, %v6722_v49  ;;  %v6742_v31 = vor.u32 %v6741_v24, %v6737_v55  ;;  %vm14252_vm7 = vcmask 1046528   ;;  %v9676_v40 = vld [vmem:[#allocation3 + $0x2c] ss:$0 sps:$4 sm:$0x11]   ;;  %vm14259_vm14 = vmmov %vm14254_vm0 }
 0x451   : > { %v5709_v18 = vsel %vm14252_vm7, %v5707_v38, %v5708_v33  ;;  %6228 = vmatprep.subr.bf16.mxu1 %v14068_v58  ;;  %v6711_v1 = vsel %vm14253_vm11, %v6706_v30, %v6710_v48  ;;  %6794 = vrot.lane.b32.xlu1 %v6723_v5, %s9780_s13  ;;  %v6730_v39 = vor.u32 %v6729_v46, %v6725_v45  ;;  %v6753_v3 = vrot.slane %v6751_v61, 1  ;;  %v5291_v24 = vld [vmem:[#allocation3 + $0x30] sm:$0xe]  ;;  %v9568_v30 = vld [vmem:[%s13953_s4 + $0x10] sm:$0xff]   ;;  %vm14258_vm12 = vmmov %vm14252_vm7 }
 0x452   : > { %8813 = vmatprep.mubr.msk.bf16.mxu1 %vm14254_vm0, %v5709_v18  ;;  %6792 = vrot.lane.b32.xlu0 %v6711_v1, %s9780_s13  ;;  %v6746_v54 = vrot.slane %v6744_v20, 1  ;;  %v5710_v15 = vrot.slane %v8762_v56, 1  ;;  %v5711_v49 = vrot.slane %v9676_v40, 1  ;;  %v6734_v26 = vrot.slane %v6732_v4, 1  ;;  %v9677_v20 = vld [vmem:[#allocation3 + $0x34] sm:$0xf]  ;;  %vm14262_vm13 = vmmov %vm14254_vm0  ;;  %v5631_v40 = vpop.permute.xlu1 %5630 }
 0x453   : > { %v6749_v38 = vshrl.u32 %v12649_v17, 16  ;;  %v6756_v9 = vshll.u32 %v9560_v13, 16  ;;  %v5756_v55 = vsel %vm14257_vm4, %v11795_v52, %v5627_v53  ;;  %v8763_v11 = vcombine.low %v5291_v24, %v9677_v20  ;;  %v9569_v48 = vld [vmem:[%s13953_s4 + $0x18] sm:$0xff]   ;;  %v5629_v52 = vpop.permute.xlu0 %5628  ;;  %v9570_v18 = vld [vmem:[%s13953_s4 + $0x20] sm:$0xff]   ;;  %vm14263_vm1 = vmmov %vm14252_vm7 }
 0x454   : > { %6229 = vmatpush1.bf16.msra.mxu1 %v9567_v41  ;;  %v6747_v61 = vsel %vm14255_vm3, %v6742_v31, %v6746_v54  ;;  %v6735_v46 = vsel %vm14256_vm8, %v6730_v39, %v6734_v26  ;;  %v5712_v13 = vsel %vm14258_vm12, %v5710_v15, %v5711_v49  ;;  %v9678_v41 = vld [vmem:[#allocation3 + $0x38] ss:$0 sps:$4 sm:$0x11]   ;;  %v5292_v31 = vld [vmem:[#allocation3 + $0x3c] sm:$0xe]  ;;  %v14261_v1 = vld [vmem:[#allocation13_spill] sm:$0xff] }
 0x455   : > { %6230 = vmatprep.subr.bf16.mxu1 %v14068_v58  ;;  %6798 = vrot.lane.b32.xlu1 %v6747_v61, %s9780_s13  ;;  %v6754_v56 = vor.u32 %v6753_v3, %v6749_v38  ;;  %v6758_v33 = vrot.slane %v6756_v9, 1  ;;  %v5713_v4 = vrot.slane %v8763_v11, 1  ;;  %v5714_v5 = vrot.slane %v9678_v41, 1  ;;  %v9679_v54 = vld [vmem:[#allocation3 + $0x40] sm:$0xf]  ;;  %vm14264_vm6 = vmmov %vm14254_vm0  ;;  %v9571_v15 = vld [vmem:[%s13953_s4 + $0x28] sm:$0xff]  }
 0x456   : > { %6796 = vrot.lane.b32.xlu0 %v6735_v46, %s9780_s13  ;;  %v5759_v39 = vsel %vm14262_vm13, %v14261_v1, %v5629_v52  ;;  %v8764_v53 = vcombine.low %v5292_v31, %v9679_v54  ;;  %v9680_v26 = vld [vmem:[#allocation3 + $0x44] ss:$0 sps:$4 sm:$0x11]   ;;  %v5293_v9 = vld [vmem:[#allocation3 + $0x48] sm:$0xe]  ;;  %v9573_v24 = vld [vmem:[%s13953_s4 + $0x30] sm:$0xff]  }
 0x457   : > { %5986 = vmatmul.mubr.bf16.gmra.mrb[4].mxu1 %v5756_v55  ;;  %v6759_v45 = vsel %vm14260_vm15, %v6754_v56, %v6758_v33  ;;  %v5715_v3 = vsel %vm14263_vm1, %v5713_v4, %v5714_v5  ;;  %v5717_v38 = vrot.slane %v9680_v26, 1  ;;  %vm14266_vm9 = vmmov %vm14254_vm0  ;;  %v9681_v46 = vld [vmem:[#allocation3 + $0x4c] sm:$0xf]  ;;  %v4716_v55 = vld [vmem:[#allocation3 + $0x90] sm:$0xe]  ;;  %v5157_v4 = vrot.slane %v12491_v29, 1 }
 0x458   : > { %8814 = vmatprep.mubr.msk.bf16.mxu1 %vm14259_vm14, %v5712_v13  ;;  %6231 = vmatpush1.bf16.msra.mxu1 %v9568_v30  ;;  %v5716_v49 = vrot.slane %v8764_v53, 1  ;;  %v14265_v30 = vld [vmem:[#allocation11_spill] sm:$0xff]  ;;  %v8765_v56 = vcombine.low %v5293_v9, %v9681_v46  ;;  %vm14267_vm10 = vmmov %vm14263_vm1  ;;  %v4717_v20 = vld [vmem:[#allocation3 + $0x9c] sm:$0xe]  ;;  %v8724_v52 = vcombine.low %v4716_v55, %v12477_v59  ;;  %v5160_v31 = vrot.slane %v12506_v57, 1 }
 0x459   : > { %6232 = vmatprep.subr.bf16.mxu1 %v14068_v58  ;;  %v5762_v61 = vsel %vm14266_vm9, %v14265_v30, %v5631_v40  ;;  %vm14268_vm7 = vmmov %vm14254_vm0  ;;  %v9576_v11 = vld [vmem:[%s13953_s4 + $0x38] sm:$0xff]   ;;  %v4718_v33 = vld [vmem:[#allocation3 + $0xa8] sm:$0xe]  ;;  %v8725_v5 = vcombine.low %v4717_v20, %v12493_v16  ;;  %v5166_v29 = vrot.slane %v12538_v32, 1 }
 0x45a   : > { %6800 = vrot.lane.b32.xlu0 %v6759_v45, %s9780_s13  ;;  %v5718_v13 = vsel %vm14267_vm10, %v5716_v49, %v5717_v38  ;;  %v5294_v45 = vld [vmem:[#allocation3 + $0x54] sm:$0xe]  ;;  %v5719_v41 = vrot.slane %v8765_v56, 1  ;;  %v8726_v1 = vcombine.low %v4718_v33, %v12514_v51  ;;  %v9682_v54 = vld [vmem:[#allocation3 + $0x50] ss:$0 sps:$4 sm:$0x11]   ;;  %vm14269_vm11 = vmmov %vm14263_vm1  ;;  %v5635_v33 = vpop.permute.xlu1 %5634 }
 0x45b   : > { %v5720_v53 = vrot.slane %v9682_v54, 1  ;;  %v5159_v59 = vrot.slane %v8725_v5, 1  ;;  %v9578_v16 = vld [vmem:[%s13953_s4 + $0x40] sm:$0xff]   ;;  %vm14270_vm0 = vmmov %vm14263_vm1  ;;  %v14271_v26 = vld [vmem:[#allocation15_spill] sm:$0xff]  ;;  %v6874_v54 = vrot.slane %v12590_v14, 1 }
 0x45c   : > { %6233 = vmatpush1.bf16.msra.mxu1 %v9569_v48  ;;  %v4719_v48 = vld [vmem:[#allocation3 + $0xb4] sm:$0xe]  ;;  %v5162_v51 = vrot.slane %v8726_v1, 1  ;;  %vm14272_vm3 = vmmov %vm14257_vm4  ;;  %v9684_v46 = vld [vmem:[#allocation3 + $0x5c] ss:$0 sps:$4 sm:$0x11]  }
 0x45d   : > { %6234 = vmatprep.subr.bf16.mxu1 %v14068_v58  ;;  %v12754_v49 = vsel %vm14270_vm0, %v5159_v59, %v5160_v31  ;;  %vm14273_vm8 = vmmov %vm14270_vm0  ;;  %v5723_v56 = vrot.slane %v9684_v46, 1  ;;  %v5295_v55 = vld [vmem:[#allocation3 + $0x60] sm:$0xe]  ;;  %v9580_v20 = vld [vmem:[%s13953_s4 + $0x48] sm:$0xff]   ;;  %v6871_v31 = vrot.slane %v12569_v21, 1  ;;  %v6889_v46 = vrot.slane %v12669_v28, 1 }
 0x45e   : > { %vm14274_vm4 = vmmov %vm14270_vm0  ;;  %v6447_v59 = vld [vmem:[#allocation3 + $0x9c] sm:$0xe] }
 0x45f   : > { %5994 = vmatmul.mubr.bf16.gmra.mrb[8].mxu1 %v5759_v39  ;;  %v5163_v39 = vrot.slane %v12519_v60, 1  ;;  %vm14275_vm12 = vmmov %vm14270_vm0 }
 0x460   : > { %8815 = vmatprep.mubr.msk.bf16.mxu1 %vm14264_vm6, %v5715_v3  ;;  %6235 = vmatpush1.bf16.msra.mxu1 %v9570_v18  ;;  %v5156_v18 = vrot.slane %v8724_v52, 1  ;;  %v8727_v3 = vcombine.low %v4719_v48, %v12530_v35  ;;  %v5633_v35 = vpop.permute.xlu0 %5632  ;;  %v5721_v30 = vsel %vm14275_vm12, %v5719_v41, %v5720_v53  ;;  %vm14276_vm14 = vmmov %vm14272_vm3  ;;  %v6444_v52 = vld [vmem:[#allocation3 + $0x78] sm:$0xe]  ;;  %v6446_v53 = vld [vmem:[#allocation3 + $0x90] sm:$0xe] }
 0x461   : > { %6236 = vmatprep.subr.bf16.mxu1 %v14068_v58  ;;  %v5765_v38 = vsel %vm14272_vm3, %v14271_v26, %v5633_v35  ;;  %v12759_v32 = vsel %vm14273_vm8, %v5162_v51, %v5163_v39  ;;  %vm14277_vm15 = vmmov %vm14270_vm0  ;;  %v8896_v21 = vcombine.low %v6444_v52, %v12585_v34  ;;  %v6448_v51 = vld [vmem:[#allocation3 + $0xa8] sm:$0xe]  ;;  %v8898_v34 = vcombine.low %v6446_v53, %v12608_v43  ;;  %v6449_v26 = vld [vmem:[#allocation3 + $0xb4] sm:$0xe] }
 0x462   : > { %v12751_v57 = vsel %vm14269_vm11, %v5156_v18, %v5157_v4  ;;  %v5165_v60 = vrot.slane %v8727_v3, 1  ;;  %v9685_v4 = vld [vmem:[#allocation3 + $0x64] sm:$0xf]  ;;  %vm14279_vm13 = vmmov %vm14272_vm3  ;;  %v5296_v52 = vld [vmem:[#allocation3 + $0x6c] sm:$0xe] }
 0x463   : > { %v8767_v41 = vcombine.low %v5295_v55, %v9685_v4  ;;  %v6445_v18 = vld [vmem:[#allocation3 + $0x84] sm:$0xe]  ;;  %vm14280_vm1 = vmmov %vm14270_vm0  ;;  %v6876_v35 = vrot.slane %v8896_v21, 1  ;;  %v9690_v21 = vld [vmem:[#allocation3 + $0x80] ss:$0 sps:$4 sm:$0x11]  }
 0x464   : > { %6237 = vmatpush1.bf16.msra.mxu1 %v9571_v15  ;;  %v9683_v15 = vld [vmem:[#allocation3 + $0x58] sm:$0xf]  ;;  %v12762_v9 = vsel %vm14274_vm4, %v5165_v60, %v5166_v29  ;;  %v8897_v29 = vcombine.low %v6445_v18, %v12602_v8  ;;  %vm14281_vm6 = vmmov %vm14270_vm0  ;;  %v6886_v8 = vrot.slane %v12640_v2, 1 }
 0x465   : > { %6238 = vmatprep.subr.bf16.mxu1 %v14068_v58  ;;  %v8766_v40 = vcombine.low %v5294_v45, %v9683_v15  ;;  %v6868_v45 = vrot.slane %v12564_v23, 1  ;;  %v14278_v15 = vld [vmem:[#allocation14_spill] sm:$0xff]  ;;  %v9583_v23 = vld [vmem:[%s13953_s4 + $0x50] sm:$0xff]   ;;  %vm14282_vm9 = vmmov %vm14270_vm0 }
 0x466   : > { %vm14283_vm10 = vmmov %vm14272_vm3 }
 0x467   : > { %6002 = vmatmul.mubr.bf16.gmra.mrb[12].mxu1 %v5762_v61  ;;  %v5722_v61 = vrot.slane %v8766_v40, 1  ;;  %v6877_v40 = vrot.slane %v12606_v47, 1  ;;  %v6883_v47 = vrot.slane %v12652_v19, 1  ;;  %v6882_v19 = vrot.slane %v8898_v34, 1  ;;  %vm14285_vm11 = vmmov %vm14270_vm0 }
 0x468   : > { %8816 = vmatprep.mubr.msk.bf16.mxu1 %vm14268_vm7, %v5718_v13  ;;  %6239 = vmatpush1.bf16.msra.mxu1 %v9573_v24  ;;  %v6441_v24 = vld [vmem:[#allocation3 + $0x54] sm:$0xe]  ;;  %v6442_v13 = vld [vmem:[#allocation3 + $0x60] sm:$0xe]  ;;  %vm14284_vm7 = vmmov %vm14270_vm0 }
 0x469   : > { %6240 = vmatprep.subr.bf16.mxu1 %v14068_v58  ;;  %v8893_v48 = vcombine.low %v6441_v24, %v12557_v50  ;;  %v8894_v5 = vcombine.low %v6442_v13, %v12559_v10  ;;  %v5724_v1 = vsel %vm14277_vm15, %v5722_v61, %v5723_v56  ;;  %v5768_v50 = vsel %vm14279_vm13, %v14278_v15, %v5635_v33  ;;  %vm14286_vm3 = vmmov %vm14270_vm0  ;;  %v9692_v34 = vld [vmem:[#allocation3 + $0x8c] ss:$0 sps:$4 sm:$0x11]  }
 0x46a   : > { %v6879_v24 = vrot.slane %v8897_v29, 1  ;;  %v12805_v43 = vsel %vm14284_vm7, %v6876_v35, %v6877_v40  ;;  %v8900_v61 = vcombine.low %v6448_v51, %v12629_v36  ;;  %v8901_v56 = vcombine.low %v6449_v26, %v12647_v0  ;;  %vm14287_vm8 = vmmov %vm14270_vm0  ;;  %v5299_v26 = vld [vmem:[#allocation3 + $0x90] sm:$0xe] }
 0x46b   : > { %v6867_v39 = vrot.slane %v8893_v48, 1  ;;  %v6870_v10 = vrot.slane %v8894_v5, 1  ;;  %v12815_v55 = vsel %vm14270_vm0, %v6882_v19, %v6883_v47  ;;  %v5725_v33 = vrot.slane %v8767_v41, 1  ;;  %v9686_v48 = vld [vmem:[#allocation3 + $0x68] ss:$0 sps:$4 sm:$0x11]   ;;  %vm14288_vm4 = vmmov %vm14270_vm0 }
 0x46c   : > { %6241 = vmatpush1.bf16.msra.mxu1 %v9576_v11  ;;  %v6443_v11 = vld [vmem:[#allocation3 + $0x6c] sm:$0xe]  ;;  %v6888_v13 = vrot.slane %v8900_v61, 1  ;;  %v5726_v36 = vrot.slane %v9686_v48, 1  ;;  %vm14289_vm12 = vmmov %vm14283_vm10  ;;  %v9687_v5 = vld [vmem:[#allocation3 + $0x70] sm:$0xf] }
 0x46d   : > { %6242 = vmatprep.subr.bf16.mxu1 %v14068_v58  ;;  %v8895_v3 = vcombine.low %v6443_v11, %v12581_v27  ;;  %v12786_v27 = vsel %vm14280_vm1, %v6867_v39, %v6868_v45  ;;  %v12791_v60 = vsel %vm14281_vm6, %v6870_v10, %v6871_v31  ;;  %v6891_v45 = vrot.slane %v8901_v56, 1  ;;  %vm14291_vm15 = vmmov %vm14283_vm10  ;;  %v9688_v39 = vld [vmem:[#allocation3 + $0x74] ss:$0 sps:$4 sm:$0x11]  }
 0x46e   : > { %v12822_v4 = vsel %vm14287_vm8, %v6888_v13, %v6889_v46  ;;  %v8768_v31 = vcombine.low %v5296_v52, %v9687_v5  ;;  %vm14292_vm13 = vmmov %vm14283_vm10  ;;  %v5732_v40 = vrot.slane %v9690_v21, 1  ;;  %v5735_v47 = vrot.slane %v9692_v34, 1  ;;  %v9694_v61 = vld [vmem:[#allocation3 + $0x98] ss:$0 sps:$4 sm:$0x11]  }
 0x46f   : > { %6010 = vmatmul.mubr.bf16.gmra.mrb[16].mxu1 %v5765_v38  ;;  %v6873_v14 = vrot.slane %v8895_v3, 1  ;;  %v5729_v3 = vrot.slane %v9688_v39, 1  ;;  %vm14293_vm1 = vmmov %vm14270_vm0  ;;  %v5738_v46 = vrot.slane %v9694_v61, 1  ;;  %v9696_v48 = vld [vmem:[#allocation3 + $0xa4] ss:$0 sps:$4 sm:$0x11]  }
 0x470   : > { %8817 = vmatprep.mubr.msk.bf16.mxu1 %vm14276_vm14, %v5721_v30  ;;  %6243 = vmatpush1.bf16.msra.mxu1 %v9578_v16  ;;  %v6880_v16 = vrot.slane %v12612_v37, 1  ;;  %v8899_v30 = vcombine.low %v6447_v59, %v12625_v42  ;;  %v9585_v37 = vld [vmem:[%s13953_s4 + $0x58] sm:$0xff]   ;;  %vm14290_vm14 = vmmov %vm14270_vm0  ;;  %v14303_v52 = vld [vmem:[#allocation20_spill] sm:$0xff] }
 0x471   : > { %6244 = vmatprep.subr.bf16.mxu1 %v14068_v58  ;;  %v12796_v38 = vsel %vm14282_vm9, %v6873_v14, %v6874_v54  ;;  %v5727_v41 = vsel %vm14290_vm14, %v5725_v33, %v5726_v36  ;;  %v5297_v54 = vld [vmem:[#allocation3 + $0x78] sm:$0xe]  ;;  %vm14294_vm6 = vmmov %vm14283_vm10  ;;  %v5298_v59 = vld [vmem:[#allocation3 + $0x84] sm:$0xe]  ;;  %v5741_v36 = vrot.slane %v9696_v48, 1 }
 0x472   : > { %v12811_v42 = vsel %vm14285_vm11, %v6879_v24, %v6880_v16  ;;  %v6885_v2 = vrot.slane %v8899_v30, 1  ;;  %v5639_v18 = vpop.permute.xlu1 %5638  ;;  %vm14295_vm9 = vmmov %vm14294_vm6  ;;  %v9691_v16 = vld [vmem:[#allocation3 + $0x88] sm:$0xf]  ;;  %v9697_v5 = vld [vmem:[#allocation3 + $0xac] sm:$0xf] }
 0x473   : > { %v5774_v53 = vsel %vm14292_vm13, %v12349_v7, %v5639_v18  ;;  %v8770_v7 = vcombine.low %v5298_v59, %v9691_v16  ;;  %vm14297_vm7 = vmmov %vm14294_vm6  ;;  %v9700_v21 = vld [vmem:[#allocation3 + $0xbc] ss:$0 sps:$4 sm:$0x11]   ;;  %v5303_v59 = vld [vmem:[#allocation3 + $0xc0] sm:$0xe] }
 0x474   : > { %6245 = vmatpush1.bf16.msra.mxu1 %v9580_v20  ;;  %v6892_v20 = vrot.slane %v12665_v63, 1  ;;  %v12819_v28 = vsel %vm14286_vm3, %v6885_v2, %v6886_v8  ;;  %vm14298_vm11 = vmmov %vm14294_vm6  ;;  %v9693_v8 = vld [vmem:[#allocation3 + $0x94] sm:$0xf]  ;;  %v5300_v2 = vld [vmem:[#allocation3 + $0x9c] sm:$0xe] }
 0x475   : > { %6246 = vmatprep.subr.bf16.mxu1 %v14068_v58  ;;  %v5734_v35 = vrot.slane %v8770_v7, 1  ;;  %vm14299_vm3 = vmmov %vm14294_vm6  ;;  %v9701_v7 = vld [vmem:[#allocation3 + $0xc4] sm:$0xf] }
 0x476   : > { %v5637_v11 = vpop.permute.xlu0 %5636  ;;  %v12826_v0 = vsel %vm14288_vm4, %v6891_v45, %v6892_v20  ;;  %vm14300_vm8 = vmmov %vm14299_vm3  ;;  %v9695_v20 = vld [vmem:[#allocation3 + $0xa0] sm:$0xf]  ;;  %v5301_v45 = vld [vmem:[#allocation3 + $0xa8] sm:$0xe] }
 0x477   : > { %6018 = vmatmul.mubr.bf16.gmra.mrb[20].mxu1 %v5768_v50  ;;  %v5771_v63 = vsel %vm14289_vm12, %v12357_v22, %v5637_v11  ;;  %v9689_v50 = vld [vmem:[#allocation3 + $0x7c] sm:$0xf]  ;;  %v5736_v30 = vsel %vm14270_vm0, %v5734_v35, %v5735_v47  ;;  %vm14301_vm4 = vmmov %vm14270_vm0  ;;  %v4704_v35 = vld [vmem:[#allocation3] sm:$0xe] }
 0x478   : > { %8818 = vmatprep.mubr.msk.bf16.mxu1 %vm14283_vm10, %v5724_v1  ;;  %6247 = vmatpush1.bf16.msra.mxu1 %v9583_v23  ;;  %v5728_v1 = vrot.slane %v8768_v31, 1  ;;  %v8769_v22 = vcombine.low %v5297_v54, %v9689_v50  ;;  %vm14296_vm10 = vmmov %vm14270_vm0  ;;  %v14307_v54 = vld [vmem:[#allocation24_spill] sm:$0xff] }
 0x479   : > { %6248 = vmatprep.subr.bf16.mxu1 %v14068_v58  ;;  %v5643_v51 = vpop.permute.xlu1 %5642  ;;  %vm14302_vm12 = vmmov %vm14299_vm3  ;;  %v9699_v50 = vld [vmem:[#allocation3 + $0xb8] sm:$0xf] }
 0x47a   : > { %v5730_v15 = vsel %vm14293_vm1, %v5728_v1, %v5729_v3  ;;  %v5731_v10 = vrot.slane %v8769_v22, 1  ;;  %v5780_v24 = vsel %vm14298_vm11, %v12365_v25, %v5643_v51  ;;  %v8772_v25 = vcombine.low %v5300_v2, %v9695_v20  ;;  %vm14304_vm14 = vmmov %vm14299_vm3  ;;  %v9698_v1 = vld [vmem:[#allocation3 + $0xb0] ss:$0 sps:$4 sm:$0x11]   ;;  %v5302_v3 = vld [vmem:[#allocation3 + $0xb4] sm:$0xe] }
 0x47b   : > { %vm14306_vm13 = vmmov %vm14299_vm3  ;;  %v5744_v39 = vrot.slane %v9698_v1, 1  ;;  %v8774_v22 = vcombine.low %v5302_v3, %v9699_v50  ;;  %v8775_v51 = vcombine.low %v5303_v59, %v9701_v7  ;;  %v9707_v1 = vld [vmem:[#allocation3 + $0x1c] sm:$0xf]  ;;  %v9590_v3 = vld [vmem:[%s13953_s4 + $0xc8] sm:$0xff]  }
 0x47c   : > { %6249 = vmatpush1.bf16.msra.mxu1 %v9585_v37  ;;  %v5733_v29 = vsel %vm14296_vm10, %v5731_v10, %v5732_v40  ;;  %v5740_v33 = vrot.slane %v8772_v25, 1  ;;  %vm14308_vm1 = vmmov %vm14299_vm3  ;;  %v5747_v40 = vrot.slane %v9700_v21, 1  ;;  %v14320_v25 = vld [vmem:[#allocation12_spill] sm:$0xff] }
 0x47d   : > { %7093 = vmatprep.subr.bf16.mxu1 %v14068_v58  ;;  %v5641_v23 = vpop.permute.xlu0 %5640  ;;  %v5746_v10 = vrot.slane %v8774_v22, 1  ;;  %vm14312_vm10 = vmmov %vm14308_vm1  ;;  %v5749_v47 = vrot.slane %v8775_v51, 1 }
 0x47e   : > { %v5777_v14 = vsel %vm14295_vm9, %v12376_v62, %v5641_v23  ;;  %v8771_v62 = vcombine.low %v5299_v26, %v9693_v8  ;;  %v5647_v11 = vpop.permute.xlu1 %5646  ;;  %vm14310_vm9 = vmmov %vm14308_vm1  ;;  %v9702_v26 = vld [vmem:[#allocation3 + $0xc8] ss:$0 sps:$4 sm:$0x11]  }
 0x47f   : > { %6026 = vmatmul.mubr.bf16.gmra.mrb[24].mxu1 %v5771_v63  ;;  %v5786_v63 = vsel %vm14304_vm14, %v14303_v52, %v5647_v11  ;;  %vm14314_vm11 = vmmov %vm14308_vm1  ;;  %v9706_v52 = vld [vmem:[#allocation3 + $0x14] ss:$0 sps:$4 sm:$0x11]  }
 0x480   : > { %8819 = vmatprep.mubr.msk.bf16.mxu1 %vm14291_vm15, %v5727_v41  ;;  %v5737_v19 = vrot.slane %v8771_v62, 1  ;;  %vm14305_vm15 = vmmov %vm14270_vm0  ;;  %v14315_v62 = vld [vmem:[#allocation8_spill] sm:$0xff] }
 0x481   : > { %v5645_v37 = vpop.permute.xlu0 %5644  ;;  %v5742_v41 = vsel %vm14305_vm15, %v5740_v33, %v5741_v36  ;;  %v9705_v33 = vld [vmem:[#allocation3 + $0x10] sm:$0xf] }
 0x482   : > { %v5783_v56 = vsel %vm14300_vm8, %v12391_v44, %v5645_v37  ;;  %v5739_v13 = vsel %vm14301_vm4, %v5737_v19, %v5738_v46  ;;  %v8773_v44 = vcombine.low %v5301_v45, %v9697_v5  ;;  %v9704_v46 = vld [vmem:[#allocation3 + $0x8] ss:$0 sps:$4 sm:$0x11]  }
 0x483   : > { %v5121_v2 = vrot.slane %v9704_v46, 1  ;;  %v4708_v46 = vld [vmem:[#allocation3 + $0x30] sm:$0xe] }
 0x484   : > { %v5743_v18 = vrot.slane %v8773_v44, 1  ;;  %v9587_v44 = vld [vmem:[%s13953_s4 + $0xc0] sm:$0xff]  }
 0x485   : > { %v5651_v23 = vpop.permute.xlu1 %5650 }
 0x486   : > { %v5649_v31 = vpop.permute.xlu0 %5648 }
 0x487   : > { %6034 = vmatmul.mubr.bf16.gmra.mrb[28].mxu1 %v5774_v53  ;;  %v5789_v53 = vsel %vm14308_vm1, %v14307_v54, %v5649_v31  ;;  %v4706_v31 = vld [vmem:[#allocation3 + $0x18] sm:$0xe]  ;;  %v492_v54 = vld [vmem:[#allocation3 + $0xcc] sm:$0x1] }
 0x488   : > { %8820 = vmatprep.mubr.msk.bf16.mxu1 %vm14294_vm6, %v5730_v15  ;;  %vm14309_vm6 = vmmov %vm14270_vm0  ;;  %v493_v50 = vsel %vm9833_vm2, 0, %v492_v54  ;;  %v14338_v54 = vld [vmem:[#allocation21_spill] sm:$0xff] }
 0x489   : > { %v5745_v15 = vsel %vm14309_vm6, %v5743_v18, %v5744_v39  ;;  %v8714_v39 = vcombine.low %v4706_v31, %v9707_v1  ;;  %494 = vst [vmem:[#allocation3 + $0xcc] sm:$0x1] %v493_v50  ;;  %v9713_v50 = vld [vmem:[#allocation3 + $0x40] sm:$0xf] }
 0x48a   : > { %v5653_v34 = vpop.permute.xlu0 %5652 }
 0x48b   : > { %v5126_v21 = vrot.slane %v8714_v39, 1  ;;  %v4709_v39 = vld [vmem:[#allocation3 + $0x3c] sm:$0xe] }
 0x48c   : > { %v8717_v22 = vcombine.low %v4709_v39, %v9713_v50  ;;  %v9720_v39 = vld [vmem:[#allocation3 + $0x68] ss:$0 sps:$4 sm:$0x11]   ;;  %v9721_v50 = vld [vmem:[#allocation3 + $0x70] sm:$0xf] }
 0x48e   : > { %v5041_v36 = vpop.permute.xlu0 %5040 }
 0x48f   : > { %6042 = vmatmul.mubr.bf16.gmra.mrb[32].mxu1 %v5777_v14  ;;  %v14311_v14 = vld [vmem:[#allocation25_spill] sm:$0xff] }
 0x490   : > { %8821 = vmatprep.mubr.msk.bf16.mxu1 %vm14297_vm7, %v5733_v29  ;;  %v5792_v29 = vsel %vm14312_vm10, %v14311_v14, %v5651_v23  ;;  %vm14313_vm7 = vmmov %vm14270_vm0  ;;  %v4707_v14 = vld [vmem:[#allocation3 + $0x24] sm:$0xe] }
 0x491   : > { %v5748_v16 = vsel %vm14313_vm7, %v5746_v10, %v5747_v40  ;;  %vm14316_vm0 = vmmov %vm14308_vm1  ;;  %v9708_v40 = vld [vmem:[#allocation3 + $0x20] ss:$0 sps:$4 sm:$0x11]  }
 0x492   : > { %v5795_v37 = vsel %vm14316_vm0, %v14315_v62, %v5653_v34  ;;  %vm14318_vm8 = vmmov %vm14316_vm0  ;;  %v5127_v59 = vrot.slane %v9708_v40, 1  ;;  %v5045_v62 = vpop.permute.xlu0 %5044  ;;  %v9714_v40 = vld [vmem:[#allocation3 + $0x44] ss:$0 sps:$4 sm:$0x11]  }
 0x493   : > { %vm14322_vm14 = vmmov %vm14316_vm0 }
 0x494   : > { %vm14324_vm15 = vmmov %vm14316_vm0 }
 0x495   : > { %vm14326_vm1 = vmmov %vm14316_vm0 }
 0x496   : > { %vm14330_vm6 = vmmov %vm14316_vm0 }
 0x497   : > { %6050 = vmatmul.mubr.bf16.gmra.mrb[36].mxu1 %v5780_v24  ;;  %v5750_v24 = vrot.slane %v9702_v26, 1  ;;  %v9594_v26 = vld [vmem:[%s13953_s4 + $0xd8] sm:$0xff]   ;;  %vm14336_vm7 = vmmov %vm14316_vm0 }
 0x498   : > { %8822 = vmatprep.mubr.msk.bf16.mxu1 %vm14299_vm3, %v5736_v30  ;;  %v9703_v30 = vld [vmem:[#allocation3 + $0x4] sm:$0xf]  ;;  %vm14317_vm3 = vmmov %vm14301_vm4 }
 0x499   : > { %v8712_v8 = vcombine.low %v4704_v35, %v9703_v30  ;;  %v5751_v19 = vsel %vm14317_vm3, %v5749_v47, %v5750_v24  ;;  %vm14319_vm4 = vmmov %vm14317_vm3  ;;  %v9709_v35 = vld [vmem:[#allocation3 + $0x28] sm:$0xf]  ;;  %v12890_v47 = vld [vmem:[#allocation3 + $0xd0] sm:$0xf] }
 0x49a   : > { %vm14331_vm2 = vmmov %vm14317_vm3  ;;  %v8715_v34 = vcombine.low %v4707_v14, %v9709_v35  ;;  %v6418_v24 = vld [vmem:[#allocation3 + $0xcc] sm:$0xf]  ;;  %v4710_v14 = vld [vmem:[#allocation3 + $0x48] sm:$0xe] }
 0x49b   : > { %v5120_v61 = vrot.slane %v8712_v8, 1  ;;  %v5128_v51 = vsel %vm14331_vm2, %v5126_v21, %v5127_v59  ;;  %v12898_v30 = vcombine.low %v6418_v24, %v12890_v47  ;;  %vm14335_vm10 = vmmov %vm14331_vm2  ;;  %v5135_v21 = vrot.slane %v8717_v22, 1  ;;  %v9715_v35 = vld [vmem:[#allocation3 + $0x4c] sm:$0xf] }
 0x49c   : > { %v5136_v59 = vrot.slane %v9714_v40, 1 }
 0x49d   : > { %v5122_v20 = vsel %vm14319_vm4, %v5120_v61, %v5121_v2  ;;  %v9597_v2 = vld [vmem:[%s13953_s4 + $0xe0] sm:$0xff]   ;;  %vm14342_vm4 = vmmov %vm14316_vm0 }
 0x49f   : > { %6058 = vmatmul.mubr.bf16.gmra.mrb[40].mxu1 %v5783_v56  ;;  %v5655_v56 = vpop.permute.xlu1 %5654 }
 0x4a0   : > { %8823 = vmatprep.mubr.msk.bf16.mxu1 %vm14302_vm12, %v5739_v13  ;;  %v4705_v13 = vld [vmem:[#allocation3 + $0xc] sm:$0xe]  ;;  %vm14321_vm12 = vmmov %vm14316_vm0 }
 0x4a1   : > { %v5798_v11 = vsel %vm14321_vm12, %v14320_v25, %v5655_v56  ;;  %v8713_v48 = vcombine.low %v4705_v13, %v9705_v33  ;;  %v6761_v56 = vshrl.u32 %v12898_v30, 16  ;;  %v6763_v13 = vshll.u32 %v12898_v30, 16  ;;  %v14333_v25 = vld [vmem:[#allocation17_spill] sm:$0xff]  ;;  %vm14343_vm12 = vmmov %vm14331_vm2 }
 0x4a3   : > { %v5123_v45 = vrot.slane %v8713_v48, 1  ;;  %v5043_v10 = vpop.permute.xlu1 %5042  ;;  %v6765_v33 = vrot.slane %v6763_v13, 1 }
 0x4a7   : > { %6066 = vmatmul.mubr.bf16.gmra.mrb[44].mxu1 %v5786_v63  ;;  %v5124_v63 = vrot.slane %v9706_v52, 1 }
 0x4a8   : > { %8824 = vmatprep.mubr.msk.bf16.mxu1 %vm14306_vm13, %v5742_v41  ;;  %v14323_v41 = vld [vmem:[#allocation9_spill] sm:$0xff]  ;;  %vm14325_vm13 = vmmov %vm14317_vm3 }
 0x4a9   : > { %v5169_v5 = vsel %vm14324_vm15, %v14323_v41, %v5041_v36  ;;  %v5125_v18 = vsel %vm14325_vm13, %v5123_v45, %v5124_v63  ;;  %v9711_v45 = vld [vmem:[#allocation3 + $0x34] sm:$0xf]  ;;  %v6766_v41 = vor.u32 %v6765_v33, %v6761_v56  ;;  %vm14339_vm3 = vmmov %vm14331_vm2 }
 0x4aa   : > { %v8716_v52 = vcombine.low %v4708_v46, %v9711_v45  ;;  %v9599_v63 = vld [vmem:[%s13953_s4 + $0xe8] sm:$0xff]   ;;  %v9611_v46 = vld [vmem:[%s13953_s4 + $0x110] sm:$0xff]   ;;  %vm14346_vm15 = vmmov %vm14316_vm0 }
 0x4ab   : > { %vm14347_vm13 = vmmov %vm14331_vm2 }
 0x4ac   : > { %v5132_v31 = vrot.slane %v8716_v52, 1  ;;  %v4712_v52 = vld [vmem:[#allocation3 + $0x60] sm:$0xe] }
 0x4af   : > { %6074 = vmatmul.mubr.bf16.gmra.mrb[48].mxu1 %v5789_v53  ;;  %v546_v53 = vld [vmem:[#allocation3 + $0xd4] sm:$0x1] }
 0x4b0   : > { %8825 = vmatprep.mubr.msk.bf16.mxu1 %vm14310_vm9, %v5745_v15  ;;  %v547_v23 = vsel %vm9843_vm5, 0, %v546_v53  ;;  %vm14332_vm5 = vmmov %vm14316_vm0 }
 0x4b1   : > { %548 = vst [vmem:[#allocation3 + $0xd4] sm:$0x1] %v547_v23  ;;  %vm14334_vm9 = vmmov %vm14316_vm0  ;;  %v9604_v23 = vld [vmem:[%s13953_s4 + $0xf8] sm:$0xff]  }
 0x4b7   : > { %6082 = vmatmul.mubr.bf16.gmra.mrb[52].mxu1 %v5792_v29  ;;  %v9592_v29 = vld [vmem:[%s13953_s4 + $0xd0] sm:$0xff]  }
 0x4b8   : > { %8826 = vmatprep.mubr.msk.bf16.mxu1 %vm14314_vm11, %v5748_v16  ;;  %v14329_v16 = vld [vmem:[#allocation19_spill] sm:$0xff]  ;;  %vm14337_vm11 = vsmask.f32 7424 }
 0x4b9   : > { %v5172_v7 = vsel %vm14330_vm6, %v14329_v16, %v5043_v10  ;;  %v12900_v8 = vld [vmem:[#allocation3 + $0xd4] ss:$0 sps:$4 sm:$0x11]   ;;  %v5049_v10 = vpop.permute.xlu0 %5048  ;;  %v14341_v16 = vld [vmem:[#allocation16_spill] sm:$0xff]  ;;  %vm14350_vm6 = vmmov %vm14316_vm0 }
 0x4bd   : > { %v5053_v33 = vpop.permute.xlu0 %5052 }
 0x4bf   : > { %6090 = vmatmul.mubr.bf16.gmra.mrb[56].mxu1 %v5795_v37  ;;  %v5129_v37 = vrot.slane %v8715_v34, 1  ;;  %v8718_v34 = vcombine.low %v4710_v14, %v9715_v35  ;;  %v14356_v14 = vld [vmem:[#allocation27_spill] sm:$0xff] }
 0x4c0   : > { %8827 = vmatprep.mubr.msk.bf16.mxu1 %vm14318_vm8, %v5751_v19  ;;  %v9710_v19 = vld [vmem:[#allocation3 + $0x2c] ss:$0 sps:$4 sm:$0x11]   ;;  %vm14340_vm8 = vmmov %vm14316_vm0 }
 0x4c1   : > { %v5130_v61 = vrot.slane %v9710_v19, 1 }
 0x4c3   : > { %v5131_v36 = vsel %vm14335_vm10, %v5129_v37, %v5130_v61  ;;  %v9716_v37 = vld [vmem:[#allocation3 + $0x50] ss:$0 sps:$4 sm:$0x11]   ;;  %v4711_v61 = vld [vmem:[#allocation3 + $0x54] sm:$0xe]  ;;  %vm14354_vm10 = vmmov %vm14331_vm2 }
 0x4c4   : > { %v5139_v19 = vrot.slane %v9716_v37, 1  ;;  %v14360_v37 = vld [vmem:[#allocation6_spill] sm:$0xff] }
 0x4c7   : > { %6098 = vmatmul.mubr.bf16.gmra.mrb[60].mxu1 %v5798_v11  ;;  %v5175_v11 = vsel %vm14334_vm9, %v14333_v25, %v5045_v62  ;;  %v5138_v62 = vrot.slane %v8718_v34, 1  ;;  %vm14353_vm9 = vmmov %vm14316_vm0 }
 0x4c8   : > { %8840 = vmatprep.mubr.msk.bf16.mxu1 %vm14322_vm14, %v5122_v20  ;;  %v6768_v20 = vshll.u32 %v12900_v8, 16  ;;  %vm14344_vm14 = vmmov %vm14316_vm0 }
 0x4c9   : > { %v5140_v13 = vsel %vm14347_vm13, %v5138_v62, %v5139_v19  ;;  %v4715_v62 = vld [vmem:[#allocation3 + $0x84] sm:$0xe] }
 0x4ca   : > { %v6770_v48 = vrot.slane %v6768_v20, 1  ;;  %v9717_v20 = vld [vmem:[#allocation3 + $0x58] sm:$0xf] }
 0x4cb   : > { %v8719_v25 = vcombine.low %v4711_v61, %v9717_v20  ;;  %v9726_v20 = vld [vmem:[#allocation3 + $0x8c] ss:$0 sps:$4 sm:$0x11]  }
 0x4cf   : > { %6259 = vmatmul.mubr.bf16.vlgmr.msra.gmra.mrb[0].mxu1 %v5169_v5  ;;  %v6771_v5 = vsel %vm14337_vm11, %v6766_v41, %v6770_v48  ;;  %v5141_v48 = vrot.slane %v8719_v25, 1  ;;  %vm14357_vm11 = vmmov %vm14316_vm0  ;;  %v5154_v25 = vrot.slane %v9726_v20, 1 }
 0x4d0   : > { %7094 = vmatpush1.bf16.msra.mxu1 %v9587_v44  ;;  %8841 = vmatprep.mubr.msk.bf16.mxu1 %vm14326_vm1, %v5125_v18  ;;  %v5047_v44 = vpop.permute.xlu1 %5046  ;;  %v9712_v18 = vld [vmem:[#allocation3 + $0x38] ss:$0 sps:$4 sm:$0x11]   ;;  %vm14348_vm1 = vmmov %vm14316_vm0 }
 0x4d1   : > { %7095 = vmatprep.subr.bf16.mxu1 %v14068_v58  ;;  %v5133_v1 = vrot.slane %v9712_v18, 1  ;;  %6802 = vrot.lane.b32.xlu1 %v6771_v5, %s9780_s13  ;;  %v5178_v53 = vsel %vm14316_vm0, %v14338_v54, %v5047_v44  ;;  %v9719_v44 = vld [vmem:[#allocation3 + $0x64] sm:$0xf]  ;;  %v14352_v54 = vld [vmem:[#allocation10_spill] sm:$0xff]  ;;  %vm14367_vm13 = vmmov %vm14348_vm1 }
 0x4d3   : > { %v5134_v15 = vsel %vm14339_vm3, %v5132_v31, %v5133_v1  ;;  %v8720_v31 = vcombine.low %v4712_v52, %v9719_v44  ;;  %vm14359_vm3 = vmmov %vm14348_vm1 }
 0x4d4   : > { %7096 = vmatpush1.bf16.msra.mxu1 %v9590_v3  ;;  %v9601_v3 = vld [vmem:[%s13953_s4 + $0xf0] sm:$0xff]   ;;  %v5051_v24 = vpop.permute.xlu1 %5050 }
 0x4d5   : > { %7097 = vmatprep.subr.bf16.mxu1 %v14068_v58  ;;  %v5144_v1 = vrot.slane %v8720_v31, 1  ;;  %v14373_v31 = vld [vmem:[#allocation32_spill] sm:$0xff] }
 0x4d7   : > { %6267 = vmatmul.mubr.bf16.gmra.mrb[4].mxu1 %v5172_v7  ;;  %v5181_v7 = vsel %vm14342_vm4, %v14341_v16, %v5049_v10 }
 0x4d8   : > { %8842 = vmatprep.mubr.msk.bf16.mxu1 %vm14332_vm5, %v5128_v51  ;;  %7098 = vmatpush1.bf16.msra.mxu1 %v9592_v29  ;;  %v9606_v29 = vld [vmem:[%s13953_s4 + $0x100] sm:$0xff]   ;;  %v5137_v51 = vsel %vm14343_vm12, %v5135_v21, %v5136_v59  ;;  %vm14351_vm5 = vmmov %vm14316_vm0  ;;  %v5055_v18 = vpop.permute.xlu1 %5054  ;;  %v9722_v21 = vld [vmem:[#allocation3 + $0x74] ss:$0 sps:$4 sm:$0x11]  }
 0x4d9   : > { %7099 = vmatprep.subr.bf16.mxu1 %v14068_v58  ;;  %v5148_v40 = vrot.slane %v9722_v21, 1  ;;  %v4714_v59 = vld [vmem:[#allocation3 + $0x78] sm:$0xe]  ;;  %vm14363_vm12 = vmmov %vm14348_vm1  ;;  %v9729_v21 = vld [vmem:[#allocation3 + $0x28] sm:$0xf] }
 0x4dc   : > { %7100 = vmatpush1.bf16.msra.mxu1 %v9594_v26  ;;  %v9608_v26 = vld [vmem:[%s13953_s4 + $0x108] sm:$0xff]   ;;  %v5059_v35 = vpop.permute.xlu1 %5058 }
 0x4dd   : > { %7101 = vmatprep.subr.bf16.mxu1 %v14068_v58 }
 0x4df   : > { %6275 = vmatmul.mubr.bf16.gmra.mrb[8].mxu1 %v5175_v11  ;;  %v9613_v11 = vld [vmem:[%s13953_s4 + $0x118] sm:$0xff]  }
 0x4e0   : > { %8843 = vmatprep.mubr.msk.bf16.mxu1 %vm14336_vm7, %v5131_v36  ;;  %7102 = vmatpush1.bf16.msra.mxu1 %v9597_v2  ;;  %v14345_v2 = vld [vmem:[#allocation23_spill] sm:$0xff]  ;;  %v9718_v36 = vld [vmem:[#allocation3 + $0x5c] ss:$0 sps:$4 sm:$0x11]   ;;  %vm14355_vm7 = vmmov %vm14316_vm0 }
 0x4e1   : > { %7103 = vmatprep.subr.bf16.mxu1 %v14068_v58  ;;  %v5184_v56 = vsel %vm14346_vm15, %v14345_v2, %v5051_v24  ;;  %v5142_v45 = vrot.slane %v9718_v36, 1  ;;  %vm14358_vm0 = vmmov %vm14331_vm2  ;;  %v5063_v36 = vpop.permute.xlu1 %5062 }
 0x4e2   : > { %vm14362_vm4 = vmmov %vm14358_vm0 }
 0x4e3   : > { %v5143_v5 = vsel %vm14331_vm2, %v5141_v48, %v5142_v45  ;;  %vm14366_vm15 = vmmov %vm14358_vm0  ;;  %v14368_v45 = vld [vmem:[#allocation28_spill] sm:$0xff] }
 0x4e4   : > { %7104 = vmatpush1.bf16.msra.mxu1 %v9599_v63  ;;  %v14349_v63 = vld [vmem:[#allocation26_spill] sm:$0xff]  ;;  %v5202_v52 = vsel %vm14348_vm1, %v14368_v45, %v5063_v36  ;;  %vm14371_vm2 = vmmov %vm14348_vm1 }
 0x4e5   : > { %7105 = vmatprep.subr.bf16.mxu1 %v14068_v58  ;;  %v5187_v41 = vsel %vm14350_vm6, %v14349_v63, %v5053_v33  ;;  %vm14369_vm6 = vmmov %vm14348_vm1  ;;  %v5067_v44 = vpop.permute.xlu1 %5066  ;;  %v6440_v36 = vld [vmem:[#allocation3 + $0x48] sm:$0xe] }
 0x4e6   : > { %v14391_v45 = vld [vmem:[#allocation22_spill] sm:$0xff] }
 0x4e7   : > { %6283 = vmatmul.mubr.bf16.gmra.mrb[12].mxu1 %v5178_v53  ;;  %v5190_v53 = vsel %vm14353_vm9, %v14352_v54, %v5055_v18  ;;  %vm14374_vm9 = vmmov %vm14348_vm1 }
 0x4e8   : > { %8844 = vmatprep.mubr.msk.bf16.mxu1 %vm14340_vm8, %v5134_v15  ;;  %7106 = vmatpush1.bf16.msra.mxu1 %v9601_v3  ;;  %v4713_v3 = vld [vmem:[#allocation3 + $0x6c] sm:$0xe]  ;;  %vm14361_vm8 = vmmov %vm14348_vm1  ;;  %v5208_v18 = vsel %vm14374_vm9, %v14373_v31, %v5067_v44 }
 0x4e9   : > { %7107 = vmatprep.subr.bf16.mxu1 %v14068_v58  ;;  %v8721_v22 = vcombine.low %v4713_v3, %v9721_v50  ;;  %v5196_v19 = vsel %vm14361_vm8, %v14360_v37, %v5059_v35  ;;  %v9727_v3 = vld [vmem:[#allocation3 + $0x1c] sm:$0xf]  ;;  %v9732_v37 = vld [vmem:[#allocation3 + $0x38] ss:$0 sps:$4 sm:$0x11]  }
 0x4eb   : > { %v5147_v10 = vrot.slane %v8721_v22, 1  ;;  %v6437_v22 = vld [vmem:[#allocation3 + $0x24] sm:$0xe] }
 0x4ec   : > { %7108 = vmatpush1.bf16.msra.mxu1 %v9604_v23  ;;  %v5057_v23 = vpop.permute.xlu0 %5056 }
 0x4ed   : > { %7109 = vmatprep.subr.bf16.mxu1 %v14068_v58  ;;  %v5149_v16 = vsel %vm14358_vm0, %v5147_v10, %v5148_v40  ;;  %vm14380_vm0 = vmmov %vm14348_vm1  ;;  %v8889_v40 = vcombine.low %v6437_v22, %v9729_v21  ;;  %v14407_v21 = vld [vmem:[#allocation38_spill] sm:$0xff] }
 0x4ee   : > { %vm14382_vm8 = vmmov %vm14380_vm0 }
 0x4ef   : > { %6291 = vmatmul.mubr.bf16.gmra.mrb[16].mxu1 %v5181_v7  ;;  %v9723_v7 = vld [vmem:[#allocation3 + $0x7c] sm:$0xf]  ;;  %vm14396_vm9 = vmmov %vm14380_vm0 }
 0x4f0   : > { %8845 = vmatprep.mubr.msk.bf16.mxu1 %vm14344_vm14, %v5137_v51  ;;  %7110 = vmatpush1.bf16.msra.mxu1 %v9606_v29  ;;  %v5193_v29 = vsel %vm14357_vm11, %v14356_v14, %v5057_v23  ;;  %v8722_v51 = vcombine.low %v4714_v59, %v9723_v7  ;;  %vm14365_vm14 = vmmov %vm14348_vm1  ;;  %v14379_v23 = vld [vmem:[#allocation35_spill] sm:$0xff]  ;;  %v6855_v14 = vrot.slane %v8889_v40, 1  ;;  %v14383_v7 = vld [vmem:[#allocation18_spill] sm:$0xff] }
 0x4f1   : > { %7111 = vmatprep.subr.bf16.mxu1 %v14068_v58  ;;  %vm14378_vm11 = vmmov %vm14348_vm1 }
 0x4f2   : > { %v5150_v34 = vrot.slane %v8722_v51, 1 }
 0x4f4   : > { %7112 = vmatpush1.bf16.msra.mxu1 %v9608_v26  ;;  %v9724_v26 = vld [vmem:[#allocation3 + $0x80] ss:$0 sps:$4 sm:$0x11]  }
 0x4f5   : > { %7113 = vmatprep.subr.bf16.mxu1 %v14068_v58  ;;  %v5151_v24 = vrot.slane %v9724_v26, 1 }
 0x4f7   : > { %6299 = vmatmul.mubr.bf16.gmra.mrb[20].mxu1 %v5184_v56  ;;  %v5152_v61 = vsel %vm14362_vm4, %v5150_v34, %v5151_v24  ;;  %v5061_v56 = vpop.permute.xlu0 %5060  ;;  %v9731_v34 = vld [vmem:[#allocation3 + $0x34] sm:$0xf] }
 0x4f8   : > { %8846 = vmatprep.mubr.msk.bf16.mxu1 %vm14348_vm1, %v5140_v13  ;;  %7114 = vmatpush1.bf16.msra.mxu1 %v9611_v46  ;;  %v9725_v46 = vld [vmem:[#allocation3 + $0x88] sm:$0xf] }
 0x4f9   : > { %7115 = vmatprep.subr.bf16.mxu1 %v14068_v58  ;;  %v5145_v58 = vrot.slane %v9720_v39, 1  ;;  %v8723_v2 = vcombine.low %v4715_v62, %v9725_v46  ;;  %v6436_v39 = vld [vmem:[#allocation3 + $0x18] sm:$0xe]  ;;  %v14387_v46 = vld [vmem:[#allocation29_spill] sm:$0xff] }
 0x4fa   : > { %v8888_v54 = vcombine.low %v6436_v39, %v9727_v3  ;;  %v14395_v39 = vld [vmem:[#allocation30_spill] sm:$0xff] }
 0x4fb   : > { %v5146_v15 = vsel %vm14354_vm10, %v5144_v1, %v5145_v58  ;;  %v5153_v13 = vrot.slane %v8723_v2, 1  ;;  %v5065_v63 = vpop.permute.xlu0 %5064  ;;  %vm14375_vm10 = vmmov %vm14348_vm1  ;;  %v14376_v58 = vld [vmem:[#allocation34_spill] sm:$0xff] }
 0x4fc   : > { %7116 = vmatpush1.bf16.msra.mxu1 %v9613_v11  ;;  %v14364_v11 = vld [vmem:[#allocation7_spill] sm:$0xff] }
 0x4fd   : > { %v5199_v33 = vsel %vm14365_vm14, %v14364_v11, %v5061_v56  ;;  %v5155_v48 = vsel %vm14366_vm15, %v5153_v13, %v5154_v25  ;;  %vm14386_vm14 = vmmov %vm14380_vm0  ;;  %v9733_v13 = vld [vmem:[#allocation3 + $0x40] sm:$0xf] }
 0x4fe   : > { %vm14388_vm15 = vmmov %vm14380_vm0 }
 0x4ff   : > { %6307 = vmatmul.mubr.bf16.gmra.mrb[24].mxu1 %v5187_v41  ;;  %v14370_v41 = vld [vmem:[#allocation31_spill] sm:$0xff]  ;;  %v5069_v1 = vpop.permute.xlu0 %5068 }
 0x500   : > { %8847 = vmatprep.mubr.msk.bf16.mxu1 %vm14351_vm5, %v5143_v5  ;;  %v5205_v5 = vsel %vm14371_vm2, %v14370_v41, %v5065_v63  ;;  %vm14372_vm5 = vmmov %vm14348_vm1  ;;  %v9735_v41 = vld [vmem:[#allocation3 + $0x4c] sm:$0xf] }
 0x503   : > { %v6773_v59 = vpop.permute.xlu0 %6772 }
 0x507   : > { %6315 = vmatmul.mubr.bf16.gmra.mrb[28].mxu1 %v5190_v53  ;;  %v6852_v53 = vrot.slane %v8888_v54, 1  ;;  %v6777_v25 = vpop.permute.xlu0 %6776  ;;  %v14399_v54 = vld [vmem:[#allocation33_spill] sm:$0xff] }
 0x508   : > { %8848 = vmatprep.mubr.msk.bf16.mxu1 %vm14355_vm7, %v5146_v15  ;;  %vm14377_vm7 = vmmov %vm14348_vm1  ;;  %v9728_v15 = vld [vmem:[#allocation3 + $0x20] ss:$0 sps:$4 sm:$0x11]  }
 0x509   : > { %v6853_v50 = vrot.slane %v9728_v15, 1  ;;  %vm14390_vm1 = vmmov %vm14380_vm0  ;;  %v14401_v15 = vld [vmem:[#allocation36_spill] sm:$0xff] }
 0x50b   : > { %v6781_v3 = vpop.permute.xlu0 %6780 }
 0x50f   : > { %6323 = vmatmul.mubr.bf16.gmra.mrb[32].mxu1 %v5193_v29  ;;  %v9730_v29 = vld [vmem:[#allocation3 + $0x2c] ss:$0 sps:$4 sm:$0x11]   ;;  %v6785_v22 = vpop.permute.xlu0 %6784 }
 0x510   : > { %8849 = vmatprep.mubr.msk.bf16.mxu1 %vm14359_vm3, %v5149_v16  ;;  %vm14381_vm3 = vmmov %vm14362_vm4  ;;  %v6856_v16 = vrot.slane %v9730_v29, 1  ;;  %v14413_v29 = vld [vmem:[#allocation40_spill] sm:$0xff] }
 0x511   : > { %vm14384_vm4 = vmmov %vm14380_vm0 }
 0x512   : > { %v6901_v51 = vsel %vm14384_vm4, %v14383_v7, %v6773_v59  ;;  %vm14393_vm2 = vmmov %vm14381_vm3  ;;  %v14410_v59 = vld [vmem:[#allocation39_spill] sm:$0xff] }
 0x513   : > { %vm14405_vm4 = vmmov %vm14380_vm0  ;;  %v6789_v40 = vpop.permute.xlu0 %6788 }
 0x517   : > { %6331 = vmatmul.mubr.bf16.gmra.mrb[36].mxu1 %v5196_v19  ;;  %v6859_v19 = vrot.slane %v9732_v37, 1 }
 0x518   : > { %8850 = vmatprep.mubr.msk.bf16.mxu1 %vm14363_vm12, %v5152_v61  ;;  %vm14385_vm12 = vmmov %vm14381_vm3  ;;  %v6439_v61 = vld [vmem:[#allocation3 + $0x3c] sm:$0xe] }
 0x519   : > { %v6857_v35 = vsel %vm14385_vm12, %v6855_v14, %v6856_v16  ;;  %v8891_v20 = vcombine.low %v6439_v61, %v9733_v13  ;;  %vm14406_vm12 = vmmov %vm14380_vm0  ;;  %v6793_v16 = vpop.permute.xlu0 %6792 }
 0x51b   : > { %v6861_v11 = vrot.slane %v8891_v20, 1 }
 0x51f   : > { %6339 = vmatmul.mubr.bf16.gmra.mrb[40].mxu1 %v5199_v33  ;;  %v9734_v33 = vld [vmem:[#allocation3 + $0x44] ss:$0 sps:$4 sm:$0x11]  }
 0x520   : > { %8851 = vmatprep.mubr.msk.bf16.mxu1 %vm14367_vm13, %v5155_v48  ;;  %vm14389_vm13 = vmmov %vm14381_vm3  ;;  %v6862_v48 = vrot.slane %v9734_v33, 1 }
 0x522   : > { %v6863_v63 = vsel %vm14393_vm2, %v6861_v11, %v6862_v48 }
 0x527   : > { %6347 = vmatmul.mubr.bf16.gmra.mrb[44].mxu1 %v5202_v52 }
 0x528   : > { %8852 = vmatprep.mubr.msk.bf16.mxu1 %vm14369_vm6, %v12751_v57  ;;  %v5211_v57 = vsel %vm14377_vm7, %v14376_v58, %v5069_v1  ;;  %vm14392_vm6 = vmmov %vm14380_vm0 }
 0x529   : > { %v6907_v52 = vsel %vm14392_vm6, %v14391_v45, %v6777_v25  ;;  %vm14398_vm7 = vmmov %vm14380_vm0 }
 0x52a   : > { %vm14414_vm6 = vmmov %vm14380_vm0 }
 0x52f   : > { %6355 = vmatmul.mubr.bf16.gmra.mrb[48].mxu1 %v5205_v5  ;;  %v8892_v5 = vcombine.low %v6440_v36, %v9735_v41 }
 0x530   : > { %8853 = vmatprep.mubr.msk.bf16.mxu1 %vm14372_vm5, %v12754_v49  ;;  %v5071_v49 = vpop.permute.xlu1 %5070  ;;  %vm14394_vm5 = vmmov %vm14380_vm0 }
 0x531   : > { %v5214_v10 = vsel %vm14380_vm0, %v14379_v23, %v5071_v49  ;;  %v6864_v31 = vrot.slane %v8892_v5, 1  ;;  %v14404_v23 = vld [vmem:[#allocation37_spill] sm:$0xff] }
 0x534   : > { %v6775_v24 = vpop.permute.xlu1 %6774 }
 0x535   : > { %v6904_v2 = vsel %vm14388_vm15, %v14387_v46, %v6775_v24  ;;  %vm14409_vm15 = vmmov %vm14380_vm0 }
 0x537   : > { %6363 = vmatmul.mubr.bf16.gmra.mrb[52].mxu1 %v5208_v18  ;;  %v9736_v18 = vld [vmem:[#allocation3 + $0x50] ss:$0 sps:$4 sm:$0x11]  }
 0x538   : > { %8854 = vmatprep.mubr.msk.bf16.mxu1 %vm14375_vm10, %v12759_v32  ;;  %v6854_v32 = vsel %vm14381_vm3, %v6852_v53, %v6853_v50  ;;  %v6779_v44 = vpop.permute.xlu1 %6778  ;;  %v6865_v1 = vrot.slane %v9736_v18, 1  ;;  %vm14397_vm10 = vmmov %vm14393_vm2 }
 0x539   : > { %v6910_v58 = vsel %vm14396_vm9, %v14395_v39, %v6779_v44  ;;  %vm14402_vm3 = vmmov %vm14380_vm0 }
 0x53a   : > { %vm14415_vm2 = vmmov %vm14380_vm0 }
 0x53b   : > { %vm14418_vm9 = vmmov %vm14380_vm0 }
 0x53c   : > { %v6783_v53 = vpop.permute.xlu1 %6782 }
 0x53d   : > { %v6916_v50 = vsel %vm14402_vm3, %v14401_v15, %v6783_v53  ;;  %vm14423_vm3 = vmmov %vm14380_vm0 }
 0x53f   : > { %6371 = vmatmul.mubr.bf16.gmra.mrb[56].mxu1 %v5211_v57  ;;  %v6866_v57 = vsel %vm14397_vm10, %v6864_v31, %v6865_v1  ;;  %vm14420_vm10 = vmmov %vm14380_vm0 }
 0x540   : > { %8855 = vmatprep.mubr.msk.bf16.mxu1 %vm14378_vm11, %v12762_v9  ;;  %v6438_v9 = vld [vmem:[#allocation3 + $0x30] sm:$0xe]  ;;  %vm14400_vm11 = vmmov %vm14380_vm0 }
 0x541   : > { %v8890_v26 = vcombine.low %v6438_v9, %v9731_v34  ;;  %v6913_v49 = vsel %vm14400_vm11, %v14399_v54, %v6781_v3  ;;  %v14416_v9 = vld [vmem:[#allocation41_spill] sm:$0xff]  ;;  %vm14422_vm11 = vmmov %vm14380_vm0 }
 0x542   : > { %v6450_v34 = vld [vmem:[#allocation3 + $0xc0] sm:$0xe] }
 0x543   : > { %v6858_v62 = vrot.slane %v8890_v26, 1  ;;  %v9737_v26 = vld [vmem:[#allocation3 + $0xc4] sm:$0xf] }
 0x544   : > { %v8902_v24 = vcombine.low %v6450_v34, %v9737_v26 }
 0x545   : > { %v6860_v56 = vsel %vm14389_vm13, %v6858_v62, %v6859_v19  ;;  %vm14411_vm13 = vmmov %vm14380_vm0  ;;  %v9738_v19 = vld [vmem:[#allocation3 + $0xc8] ss:$0 sps:$4 sm:$0x11]  }
 0x546   : > { %v6894_v37 = vrot.slane %v8902_v24, 1  ;;  %v6895_v61 = vrot.slane %v9738_v19, 1 }
 0x547   : > { %6379 = vmatmul.mubr.bf16.gmra.mrb[60].mxu1 %v5214_v10  ;;  %v6919_v10 = vsel %vm14405_vm4, %v14404_v23, %v6785_v22  ;;  %vm14425_vm4 = vmmov %vm14380_vm0 }
 0x548   : > { %8940 = vmatprep.mubr.msk.bf16.mxu1 %vm14382_vm8, %v6854_v32  ;;  %vm14403_vm8 = vmmov %vm14380_vm0  ;;  %v6787_v32 = vpop.permute.xlu1 %6786 }
 0x54c   : > { %v6791_v14 = vpop.permute.xlu1 %6790 }
 0x54f   : > { %7126 = vmatmul.mubr.bf16.vlgmr.msra.gmra.mrb[0].mxu1 %v6901_v51  ;;  %v14419_v51 = vld [vmem:[#allocation42_spill] sm:$0xff] }
 0x550   : > { %8941 = vmatprep.mubr.msk.bf16.mxu1 %vm14386_vm14, %v6857_v35  ;;  %vm14408_vm14 = vmmov %vm14380_vm0  ;;  %v6795_v7 = vpop.permute.xlu1 %6794  ;;  %v6797_v35 = vpop.permute.xlu0 %6796 }
 0x554   : > { %v6799_v62 = vpop.permute.xlu1 %6798  ;;  %v6801_v13 = vpop.permute.xlu0 %6800 }
 0x557   : > { %7134 = vmatmul.mubr.bf16.gmra.mrb[4].mxu1 %v6904_v2 }
 0x558   : > { %8942 = vmatprep.mubr.msk.bf16.mxu1 %vm14390_vm1, %v6860_v56  ;;  %vm14412_vm1 = vmmov %vm14380_vm0  ;;  %v6898_v56 = vrot.slane %v12900_v8, 1 }
 0x55f   : > { %7142 = vmatmul.mubr.bf16.gmra.mrb[8].mxu1 %v6907_v52 }
 0x560   : > { %8943 = vmatprep.mubr.msk.bf16.mxu1 %vm14394_vm5, %v6863_v63  ;;  %vm14417_vm5 = vmmov %vm14380_vm0 }
 0x567   : > { %7150 = vmatmul.mubr.bf16.gmra.mrb[12].mxu1 %v6910_v58 }
 0x568   : > { %8944 = vmatprep.mubr.msk.bf16.mxu1 %vm14398_vm7, %v6866_v57  ;;  %vm14421_vm7 = vmmov %vm14380_vm0 }
 0x56f   : > { %7158 = vmatmul.mubr.bf16.gmra.mrb[16].mxu1 %v6913_v49 }
 0x570   : > { %8945 = vmatprep.mubr.msk.bf16.mxu1 %vm14380_vm0, %v12786_v27  ;;  %v6922_v27 = vsel %vm14408_vm14, %v14407_v21, %v6787_v32  ;;  %vm14427_vm14 = vmmov %vm14380_vm0 }
 0x571   : > { %v6943_v20 = vsel %vm14427_vm14, %v12649_v17, %v6801_v13  ;;  %vm14442_vm14 = vmmov %vm14380_vm0 }
 0x577   : > { %7166 = vmatmul.mubr.bf16.gmra.mrb[20].mxu1 %v6916_v50 }
 0x578   : > { %8946 = vmatprep.mubr.msk.bf16.mxu1 %vm14403_vm8, %v12791_v60  ;;  %v6925_v60 = vsel %vm14411_vm13, %v14410_v59, %v6789_v40  ;;  %vm14424_vm8 = vcmask 1046528   ;;  %vm14429_vm13 = vmmov %vm14380_vm0 }
 0x579   : > { %v6896_v2 = vsel %vm14424_vm8, %v6894_v37, %v6895_v61 }
 0x57f   : > { %7174 = vmatmul.mubr.bf16.gmra.mrb[24].mxu1 %v6919_v10 }
 0x580   : > { %8947 = vmatprep.mubr.msk.bf16.mxu1 %vm14406_vm12, %v12796_v38  ;;  %v6928_v38 = vsel %vm14414_vm6, %v14413_v29, %v6791_v14  ;;  %vm14426_vm12 = vmmov %vm14424_vm8 }
 0x581   : > { %vm14431_vm6 = vmmov %vm14380_vm0 }
 0x582   : > { %vm14439_vm8 = vmmov %vm14380_vm0 }
 0x587   : > { %7182 = vmatmul.mubr.bf16.gmra.mrb[28].mxu1 %v6922_v27 }
 0x588   : > { %8948 = vmatprep.mubr.msk.bf16.mxu1 %vm14409_vm15, %v12805_v43  ;;  %v6931_v43 = vsel %vm14417_vm5, %v14416_v9, %v6793_v16  ;;  %vm14428_vm15 = vmmov %vm14380_vm0 }
 0x589   : > { %vm14433_vm5 = vmmov %vm14380_vm0 }
 0x58f   : > { %7190 = vmatmul.mubr.bf16.gmra.mrb[32].mxu1 %v6925_v60 }
 0x590   : > { %8949 = vmatprep.mubr.msk.bf16.mxu1 %vm14412_vm1, %v12811_v42  ;;  %v6934_v42 = vsel %vm14420_vm10, %v14419_v51, %v6795_v7  ;;  %vm14430_vm1 = vmmov %vm14380_vm0 }
 0x591   : > { %vm14435_vm10 = vmmov %vm14380_vm0 }
 0x597   : > { %7198 = vmatmul.mubr.bf16.gmra.mrb[36].mxu1 %v6928_v38 }
 0x598   : > { %8950 = vmatprep.mubr.msk.bf16.mxu1 %vm14415_vm2, %v12815_v55  ;;  %v6937_v55 = vsel %vm14422_vm11, %v12645_v6, %v6797_v35  ;;  %vm14432_vm2 = vmmov %vm14380_vm0 }
 0x599   : > { %vm14437_vm11 = vmmov %vm14380_vm0 }
 0x59f   : > { %7206 = vmatmul.mubr.bf16.gmra.mrb[40].mxu1 %v6931_v43 }
 0x5a0   : > { %8951 = vmatprep.mubr.msk.bf16.mxu1 %vm14418_vm9, %v12819_v28  ;;  %v6451_v28 = vld [vmem:[#allocation3 + $0xcc] sm:$0xe]  ;;  %vm14434_vm9 = vmmov %vm14380_vm0 }
 0x5a1   : > { %v8903_v46 = vcombine.low %v6451_v28, %v12890_v47  ;;  %v6803_v47 = vpop.permute.xlu1 %6802 }
 0x5a3   : > { %v6897_v6 = vrot.slane %v8903_v46, 1 }
 0x5a7   : > { %7214 = vmatmul.mubr.bf16.gmra.mrb[44].mxu1 %v6934_v42 }
 0x5a8   : > { %8952 = vmatprep.mubr.msk.bf16.mxu1 %vm14421_vm7, %v12822_v4  ;;  %v6940_v4 = vsel %vm14423_vm3, %v12659_v12, %v6799_v62  ;;  %v6946_v12 = vsel %vm14429_vm13, %v12898_v30, %v6803_v47  ;;  %vm14436_vm7 = vmmov %vm14380_vm0 }
 0x5a9   : > { %vm14438_vm3 = vmmov %vm14380_vm0 }
 0x5aa   : > { %vm14444_vm13 = vmmov %vm14380_vm0 }
 0x5af   : > { %7222 = vmatmul.mubr.bf16.gmra.mrb[48].mxu1 %v6937_v55 }
 0x5b0   : > { %8953 = vmatprep.mubr.msk.bf16.mxu1 %vm14380_vm0, %v12826_v0  ;;  %v6899_v0 = vsel %vm14426_vm12, %v6897_v6, %v6898_v56  ;;  %vm14441_vm12 = vmmov %vm14380_vm0 }
 0x5b7   : > { %7230 = vmatmul.mubr.bf16.gmra.mrb[52].mxu1 %v6940_v4 }
 0x5b8   : > { %8954 = vmatprep.mubr.msk.bf16.mxu1 %vm14425_vm4, %v6896_v2  ;;  %vm14440_vm4 = vmmov %vm14380_vm0 }
 0x5bf   : > { %7238 = vmatmul.mubr.bf16.gmra.mrb[56].mxu1 %v6943_v20 }
 0x5c0   : > { %8955 = vmatprep.mubr.msk.bf16.mxu1 %vm14428_vm15, %v6899_v0  ;;  %vm14443_vm15 = vmmov %vm14380_vm0 }
 0x5c7   : > { %7246 = vmatmul.mubr.bf16.gmra.mrb[60].mxu1 %v6946_v12 }
 0x622   : > { %v13059_v25 = vpop.f32.mrb[0].mxu1 }
 0x623   : > { %v7129_v11 = vpop.f32.mrb[1].mxu1  ;;  %v7286_v8 = vsel %vm14430_vm1, %v13059_v25, 0.0  ;;  %vm14445_vm1 = vmmov %vm14380_vm0 }
 0x624   : > { %v13061_v33 = vpop.f32.mrb[2].mxu1 }
 0x625   : > { %v7287_v48 = vsel %vm14431_vm6, %v13061_v33, 0.0  ;;  %v7132_v17 = vpop.f32.mrb[3].mxu1  ;;  %vm14446_vm6 = vmmov %vm14380_vm0 }
 0x626   : > { %v7288_v36 = vadd.f32 %v7287_v48, %v7286_v8 }
 0x62a   : > { %v13067_v45 = vpop.f32.mrb[4].mxu1 }
 0x62b   : > { %v7289_v52 = vsel %vm14432_vm2, %v13067_v45, 0.0  ;;  %v7137_v30 = vpop.f32.mrb[5].mxu1  ;;  %vm14447_vm2 = vmmov %vm14380_vm0 }
 0x62c   : > { %v7290_v63 = vadd.f32 %v7289_v52, %v7288_v36  ;;  %v13071_v41 = vpop.f32.mrb[6].mxu1 }
 0x62d   : > { %v7291_v5 = vsel %vm14433_vm5, %v13071_v41, 0.0  ;;  %v7140_v44 = vpop.f32.mrb[7].mxu1  ;;  %vm14448_vm5 = vmmov %vm14380_vm0 }
 0x62e   : > { %v7292_v31 = vadd.f32 %v7291_v5, %v7290_v63 }
 0x632   : > { %v13075_v18 = vpop.f32.mrb[8].mxu1 }
 0x633   : > { %v7293_v1 = vsel %vm14434_vm9, %v13075_v18, 0.0  ;;  %v7145_v39 = vpop.f32.mrb[9].mxu1  ;;  %vm14449_vm9 = vmmov %vm14380_vm0 }
 0x634   : > { %v7294_v58 = vadd.f32 %v7293_v1, %v7292_v31  ;;  %v13079_v57 = vpop.f32.mrb[10].mxu1 }
 0x635   : > { %v7295_v3 = vsel %vm14435_vm10, %v13079_v57, 0.0  ;;  %v7148_v54 = vpop.f32.mrb[11].mxu1  ;;  %vm14450_vm10 = vmmov %vm14380_vm0 }
 0x636   : > { %v7296_v49 = vadd.f32 %v7295_v3, %v7294_v58 }
 0x63a   : > { %v13083_v53 = vpop.f32.mrb[12].mxu1 }
 0x63b   : > { %v7297_v15 = vsel %vm14436_vm7, %v13083_v53, 0.0  ;;  %v7153_v50 = vpop.f32.mrb[13].mxu1  ;;  %vm14451_vm7 = vmmov %vm14380_vm0 }
 0x63c   : > { %v7298_v22 = vadd.f32 %v7297_v15, %v7296_v49  ;;  %v13087_v23 = vpop.f32.mrb[14].mxu1 }
 0x63d   : > { %v7299_v10 = vsel %vm14437_vm11, %v13087_v23, 0.0  ;;  %v7156_v32 = vpop.f32.mrb[15].mxu1  ;;  %vm14452_vm11 = vmmov %vm14380_vm0 }
 0x63e   : > { %v7300_v21 = vadd.f32 %v7299_v10, %v7298_v22 }
 0x642   : > { %v13091_v27 = vpop.f32.mrb[16].mxu1 }
 0x643   : > { %v7301_v40 = vsel %vm14380_vm0, %v13091_v27, 0.0  ;;  %v7161_v59 = vpop.f32.mrb[17].mxu1 }
 0x644   : > { %v7302_v60 = vadd.f32 %v7301_v40, %v7300_v21  ;;  %v13095_v14 = vpop.f32.mrb[18].mxu1 }
 0x645   : > { %v7303_v29 = vsel %vm14438_vm3, %v13095_v14, 0.0  ;;  %v7164_v38 = vpop.f32.mrb[19].mxu1  ;;  %vm14453_vm3 = vmmov %vm14380_vm0 }
 0x646   : > { %v7304_v16 = vadd.f32 %v7303_v29, %v7302_v60 }
 0x64a   : > { %v13099_v9 = vpop.f32.mrb[20].mxu1 }
 0x64b   : > { %v7305_v43 = vsel %vm14439_vm8, %v13099_v9, 0.0  ;;  %v7169_v7 = vpop.f32.mrb[21].mxu1  ;;  %vm14454_vm8 = vmmov %vm14380_vm0 }
 0x64c   : > { %v7306_v51 = vadd.f32 %v7305_v43, %v7304_v16  ;;  %v13103_v42 = vpop.f32.mrb[22].mxu1 }
 0x64d   : > { %v7307_v35 = vsel %vm14440_vm4, %v13103_v42, 0.0  ;;  %v7172_v34 = vpop.f32.mrb[23].mxu1  ;;  %vm14455_vm4 = vmmov %vm14380_vm0 }
 0x64e   : > { %v7308_v55 = vadd.f32 %v7307_v35, %v7306_v51 }
 0x652   : > { %v13107_v26 = vpop.f32.mrb[24].mxu1 }
 0x653   : > { %v7309_v24 = vsel %vm14441_vm12, %v13107_v26, 0.0  ;;  %v7177_v28 = vpop.f32.mrb[25].mxu1  ;;  %vm14456_vm12 = vmmov %vm14380_vm0 }
 0x654   : > { %v7310_v62 = vadd.f32 %v7309_v24, %v7308_v55  ;;  %v13111_v37 = vpop.f32.mrb[26].mxu1 }
 0x655   : > { %v7311_v19 = vsel %vm14442_vm14, %v13111_v37, 0.0  ;;  %v7180_v61 = vpop.f32.mrb[27].mxu1  ;;  %vm14457_vm14 = vmmov %vm14380_vm0 }
 0x656   : > { %v7312_v46 = vadd.f32 %v7311_v19, %v7310_v62 }
 0x65a   : > { %v13115_v4 = vpop.f32.mrb[28].mxu1 }
 0x65b   : > { %v7313_v2 = vsel %vm14443_vm15, %v13115_v4, 0.0  ;;  %v7185_v6 = vpop.f32.mrb[29].mxu1  ;;  %vm14458_vm15 = vmmov %vm14380_vm0 }
 0x65c   : > { %v7314_v56 = vadd.f32 %v7313_v2, %v7312_v46  ;;  %v13119_v13 = vpop.f32.mrb[30].mxu1 }
 0x65d   : > { %v7315_v0 = vsel %vm14444_vm13, %v13119_v13, 0.0  ;;  %v7188_v20 = vpop.f32.mrb[31].mxu1  ;;  %vm14459_vm13 = vmmov %vm14380_vm0 }
 0x65e   : > { %v7316_v47 = vadd.f32 %v7315_v0, %v7314_v56 }
 0x662   : > { %v13123_v12 = vpop.f32.mrb[32].mxu1 }
 0x663   : > { %v7317_v11 = vsel %vm14445_vm1, %v13123_v12, 0.0  ;;  %v7193_v8 = vpop.f32.mrb[33].mxu1  ;;  %vm14460_vm1 = vmmov %vm14380_vm0 }
 0x664   : > { %v7318_v48 = vadd.f32 %v7317_v11, %v7316_v47  ;;  %v13127_v17 = vpop.f32.mrb[34].mxu1 }
 0x665   : > { %v7319_v36 = vsel %vm14446_vm6, %v13127_v17, 0.0  ;;  %v7196_v52 = vpop.f32.mrb[35].mxu1  ;;  %vm14461_vm6 = vmmov %vm14380_vm0 }
 0x666   : > { %v7320_v30 = vadd.f32 %v7319_v36, %v7318_v48 }
 0x66a   : > { %v13131_v63 = vpop.f32.mrb[36].mxu1 }
 0x66b   : > { %v7321_v5 = vsel %vm14447_vm2, %v13131_v63, 0.0  ;;  %v7201_v44 = vpop.f32.mrb[37].mxu1  ;;  %vm14462_vm2 = vmmov %vm14380_vm0 }
 0x66c   : > { %v7322_v31 = vadd.f32 %v7321_v5, %v7320_v30  ;;  %v13135_v1 = vpop.f32.mrb[38].mxu1 }
 0x66d   : > { %v7323_v39 = vsel %vm14448_vm5, %v13135_v1, 0.0  ;;  %v7204_v58 = vpop.f32.mrb[39].mxu1  ;;  %vm14463_vm5 = vmmov %vm14380_vm0 }
 0x66e   : > { %v7324_v3 = vadd.f32 %v7323_v39, %v7322_v31 }
 0x672   : > { %v13139_v54 = vpop.f32.mrb[40].mxu1 }
 0x673   : > { %v7325_v49 = vsel %vm14449_vm9, %v13139_v54, 0.0  ;;  %v7209_v15 = vpop.f32.mrb[41].mxu1  ;;  %vm14464_vm9 = vmmov %vm14380_vm0 }
 0x674   : > { %v7326_v50 = vadd.f32 %v7325_v49, %v7324_v3  ;;  %v13143_v22 = vpop.f32.mrb[42].mxu1 }
 0x675   : > { %v7327_v10 = vsel %vm14450_vm10, %v13143_v22, 0.0  ;;  %v7212_v32 = vpop.f32.mrb[43].mxu1  ;;  %vm14465_vm10 = vmmov %vm14380_vm0 }
 0x676   : > { %v7328_v21 = vadd.f32 %v7327_v10, %v7326_v50 }
 0x67a   : > { %v13147_v40 = vpop.f32.mrb[44].mxu1 }
 0x67b   : > { %v7329_v59 = vsel %vm14451_vm7, %v13147_v40, 0.0  ;;  %v7217_v60 = vpop.f32.mrb[45].mxu1  ;;  %vm14466_vm7 = vmmov %vm14380_vm0 }
 0x67c   : > { %v7330_v29 = vadd.f32 %v7329_v59, %v7328_v21  ;;  %v13151_v38 = vpop.f32.mrb[46].mxu1 }
 0x67d   : > { %v7331_v16 = vsel %vm14452_vm11, %v13151_v38, 0.0  ;;  %v7220_v43 = vpop.f32.mrb[47].mxu1  ;;  %vm14467_vm11 = vmmov %vm14380_vm0 }
 0x67e   : > { %v7332_v7 = vadd.f32 %v7331_v16, %v7330_v29 }
 0x682   : > { %v13155_v51 = vpop.f32.mrb[48].mxu1 }
 0x683   : > { %v7333_v35 = vsel %vm14380_vm0, %v13155_v51, 0.0  ;;  %v7225_v34 = vpop.f32.mrb[49].mxu1 }
 0x684   : > { %v7334_v55 = vadd.f32 %v7333_v35, %v7332_v7  ;;  %v7226_v24 = vpop.f32.mrb[50].mxu1 }
 0x685   : > { %v7335_v28 = vsel %vm14453_vm3, %v7226_v24, 0.0  ;;  %v7228_v62 = vpop.f32.mrb[51].mxu1  ;;  %vm14468_vm3 = vmmov %vm14380_vm0 }
 0x686   : > { %v7336_v19 = vadd.f32 %v7335_v28, %v7334_v55 }
 0x68a   : > { %v7231_v61 = vpop.f32.mrb[52].mxu1 }
 0x68b   : > { %v7337_v46 = vsel %vm14454_vm8, %v7231_v61, 0.0  ;;  %v7233_v2 = vpop.f32.mrb[53].mxu1  ;;  %vm14469_vm8 = vmmov %vm14380_vm0 }
 0x68c   : > { %v7338_v6 = vadd.f32 %v7337_v46, %v7336_v19  ;;  %v7234_v56 = vpop.f32.mrb[54].mxu1 }
 0x68d   : > { %v7339_v0 = vsel %vm14455_vm4, %v7234_v56, 0.0  ;;  %v7236_v20 = vpop.f32.mrb[55].mxu1  ;;  %vm14470_vm4 = vmmov %vm14380_vm0 }
 0x68e   : > { %v7340_v47 = vadd.f32 %v7339_v0, %v7338_v6 }
 0x692   : > { %v7239_v11 = vpop.f32.mrb[56].mxu1 }
 0x693   : > { %v7341_v8 = vsel %vm14456_vm12, %v7239_v11, 0.0  ;;  %v7241_v48 = vpop.f32.mrb[57].mxu1  ;;  %vm14471_vm12 = vmmov %vm14380_vm0 }
 0x694   : > { %v7342_v36 = vadd.f32 %v7341_v8, %v7340_v47  ;;  %v7242_v52 = vpop.f32.mrb[58].mxu1 }
 0x695   : > { %v7343_v30 = vsel %vm14457_vm14, %v7242_v52, 0.0  ;;  %v7244_v5 = vpop.f32.mrb[59].mxu1  ;;  %vm14472_vm14 = vmmov %vm14380_vm0 }
 0x696   : > { %v7344_v44 = vadd.f32 %v7343_v30, %v7342_v36 }
 0x69a   : > { %v7247_v31 = vpop.f32.mrb[60].mxu1 }
 0x69b   : > { %v7345_v39 = vsel %vm14458_vm15, %v7247_v31, 0.0  ;;  %v7249_v58 = vpop.f32.mrb[61].mxu1  ;;  %vm14473_vm15 = vmmov %vm14380_vm0 }
 0x69c   : > { %v7346_v3 = vadd.f32 %v7345_v39, %v7344_v44  ;;  %v7250_v49 = vpop.f32.mrb[62].mxu1 }
 0x69d   : > { %v7347_v15 = vsel %vm14459_vm13, %v7250_v49, 0.0  ;;  %v7252_v50 = vpop.f32.mrb[63].mxu1  ;;  %vm14474_vm13 = vmmov %vm14380_vm0 }
 0x69e   : > { %v7348_v10 = vadd.f32 %v7347_v15, %v7346_v3 }
 0x6a0   : > { %v7349_v32 = vrot.slane %v7348_v10, 4 }
 0x6a2   : > { %v7350_v21 = vadd.f32 %v7349_v32, %v7348_v10 }
 0x6a4   : > { %v7351_v59 = vrot.slane %v7350_v21, 2 }
 0x6a6   : > { %v7352_v60 = vadd.f32 %v7351_v59, %v7350_v21 }
 0x6a8   : > { %v7353_v29 = vrot.slane %v7352_v60, 1 }
 0x6aa   : > { %v7354_v16 = vadd.f32 %v7353_v29, %v7352_v60 }
 0x6ac   : > { %v7355_v43 = vmul.f32 0.00390625, %v7354_v16 }
 0x6ae   : > { %v13167_v7 = vsub.f32 %v13059_v25, %v7355_v43  ;;  %v13170_v35 = vsub.f32 %v13061_v33, %v7355_v43  ;;  %v13173_v34 = vsub.f32 %v13067_v45, %v7355_v43  ;;  %v13176_v55 = vsub.f32 %v13071_v41, %v7355_v43 }
 0x6af   : > { %v13179_v28 = vsub.f32 %v13075_v18, %v7355_v43  ;;  %v13182_v62 = vsub.f32 %v13079_v57, %v7355_v43  ;;  %v13185_v19 = vsub.f32 %v13083_v53, %v7355_v43  ;;  %v13188_v25 = vsub.f32 %v13087_v23, %v7355_v43 }
 0x6b0   : > { %v13191_v33 = vsub.f32 %v13091_v27, %v7355_v43  ;;  %v13194_v45 = vsub.f32 %v13095_v14, %v7355_v43  ;;  %v13197_v41 = vsub.f32 %v13099_v9, %v7355_v43  ;;  %v13200_v18 = vsub.f32 %v13103_v42, %v7355_v43 }
 0x6b1   : > { %v13203_v57 = vsub.f32 %v13107_v26, %v7355_v43  ;;  %v13206_v53 = vsub.f32 %v13111_v37, %v7355_v43  ;;  %v13209_v23 = vsub.f32 %v13115_v4, %v7355_v43  ;;  %v13212_v27 = vsub.f32 %v13119_v13, %v7355_v43 }
 0x6b2   : > { %v13215_v14 = vsub.f32 %v13123_v12, %v7355_v43  ;;  %v13218_v9 = vsub.f32 %v13127_v17, %v7355_v43  ;;  %v13221_v42 = vsub.f32 %v13131_v63, %v7355_v43  ;;  %v13224_v26 = vsub.f32 %v13135_v1, %v7355_v43 }
 0x6b3   : > { %v13227_v37 = vsub.f32 %v13139_v54, %v7355_v43  ;;  %v13230_v4 = vsub.f32 %v13143_v22, %v7355_v43  ;;  %v13233_v13 = vsub.f32 %v13147_v40, %v7355_v43  ;;  %v13236_v12 = vsub.f32 %v13151_v38, %v7355_v43 }
 0x6b4   : > { %v13239_v17 = vsub.f32 %v13155_v51, %v7355_v43  ;;  %v13241_v63 = vsub.f32 %v7226_v24, %v7355_v43  ;;  %v13243_v46 = vsub.f32 %v7231_v61, %v7355_v43  ;;  %v13245_v1 = vsub.f32 %v7234_v56, %v7355_v43 }
 0x6b5   : > { %v13247_v54 = vsub.f32 %v7239_v11, %v7355_v43  ;;  %v13249_v2 = vsub.f32 %v7242_v52, %v7355_v43  ;;  %v13251_v22 = vsub.f32 %v7247_v31, %v7355_v43  ;;  %v13253_v40 = vsub.f32 %v7250_v49, %v7355_v43 }
 0x6b6   : > { %v7388_v38 = vmul.f32 %v13167_v7, %v13167_v7  ;;  %v7389_v51 = vmul.f32 %v13170_v35, %v13170_v35  ;;  %v7390_v24 = vmul.f32 %v13173_v34, %v13173_v34  ;;  %v7391_v61 = vmul.f32 %v13176_v55, %v13176_v55 }
 0x6b7   : > { %v7392_v20 = vmul.f32 %v13179_v28, %v13179_v28  ;;  %v7393_v8 = vmul.f32 %v13182_v62, %v13182_v62  ;;  %v7394_v52 = vmul.f32 %v13185_v19, %v13185_v19  ;;  %v7395_v44 = vmul.f32 %v13188_v25, %v13188_v25 }
 0x6b8   : > { %v7420_v6 = vsel %vm14460_vm1, %v7388_v38, 0.0  ;;  %v7421_v56 = vsel %vm14461_vm6, %v7389_v51, 0.0  ;;  %v7423_v47 = vsel %vm14462_vm2, %v7390_v24, 0.0  ;;  %v7425_v48 = vsel %vm14463_vm5, %v7391_v61, 0.0  ;;  %vm14475_vm1 = vmmov %vm14380_vm0 }
 0x6b9   : > { %v7422_v0 = vadd.f32 %v7421_v56, %v7420_v6  ;;  %v7427_v30 = vsel %vm14464_vm9, %v7392_v20, 0.0  ;;  %v7429_v31 = vsel %vm14465_vm10, %v7393_v8, 0.0  ;;  %v7396_v58 = vmul.f32 %v13191_v33, %v13191_v33  ;;  %vm14476_vm6 = vmmov %vm14380_vm0 }
 0x6ba   : > { %v7431_v3 = vsel %vm14466_vm7, %v7394_v52, 0.0  ;;  %v7397_v15 = vmul.f32 %v13194_v45, %v13194_v45  ;;  %v7433_v50 = vsel %vm14467_vm11, %v7395_v44, 0.0  ;;  %v7398_v32 = vmul.f32 %v13197_v41, %v13197_v41  ;;  %vm14477_vm2 = vmmov %vm14380_vm0 }
 0x6bb   : > { %v7424_v11 = vadd.f32 %v7423_v47, %v7422_v0  ;;  %v7435_v21 = vsel %vm14380_vm0, %v7396_v58, 0.0  ;;  %v7399_v60 = vmul.f32 %v13200_v18, %v13200_v18  ;;  %v7400_v43 = vmul.f32 %v13203_v57, %v13203_v57  ;;  %vm14478_vm5 = vmmov %vm14380_vm0 }
 0x6bc   : > { %v7437_v29 = vsel %vm14468_vm3, %v7397_v15, 0.0  ;;  %v7439_v38 = vsel %vm14469_vm8, %v7398_v32, 0.0  ;;  %v7401_v24 = vmul.f32 %v13206_v53, %v13206_v53  ;;  %v7402_v56 = vmul.f32 %v13209_v23, %v13209_v23  ;;  %vm14479_vm9 = vmmov %vm14380_vm0 }
 0x6bd   : > { %v7426_v36 = vadd.f32 %v7425_v48, %v7424_v11  ;;  %v7441_v61 = vsel %vm14470_vm4, %v7399_v60, 0.0  ;;  %v7443_v0 = vsel %vm14471_vm12, %v7400_v43, 0.0  ;;  %v7403_v47 = vmul.f32 %v13212_v27, %v13212_v27  ;;  %vm14480_vm10 = vmmov %vm14380_vm0 }
 0x6be   : > { %v7445_v11 = vsel %vm14472_vm14, %v7401_v24, 0.0  ;;  %v7404_v48 = vmul.f32 %v13215_v14, %v13215_v14  ;;  %vm14481_vm7 = vmmov %vm14380_vm0 }
 0x6bf   : > { %v7428_v5 = vadd.f32 %v7427_v30, %v7426_v36  ;;  %v7447_v36 = vsel %vm14473_vm15, %v7402_v56, 0.0  ;;  %v7405_v30 = vmul.f32 %v13218_v9, %v13218_v9  ;;  %vm14482_vm11 = vmmov %vm14380_vm0 }
 0x6c0   : > { %vm14483_vm3 = vmmov %vm14380_vm0 }
 0x6c1   : > { %v7430_v39 = vadd.f32 %v7429_v31, %v7428_v5  ;;  %v7449_v5 = vsel %vm14474_vm13, %v7403_v47, 0.0  ;;  %v7406_v31 = vmul.f32 %v13221_v42, %v13221_v42  ;;  %vm14484_vm8 = vmmov %vm14380_vm0 }
 0x6c2   : > { %vm14485_vm4 = vmmov %vm14380_vm0 }
 0x6c3   : > { %v7432_v49 = vadd.f32 %v7431_v3, %v7430_v39  ;;  %v7451_v39 = vsel %vm14475_vm1, %v7404_v48, 0.0  ;;  %v7407_v3 = vmul.f32 %v13224_v26, %v13224_v26  ;;  %vm14486_vm12 = vmmov %vm14380_vm0 }
 0x6c4   : > { %vm14487_vm14 = vmmov %vm14380_vm0 }
 0x6c5   : > { %v7434_v10 = vadd.f32 %v7433_v50, %v7432_v49  ;;  %v7453_v49 = vsel %vm14476_vm6, %v7405_v30, 0.0  ;;  %v7408_v50 = vmul.f32 %v13227_v37, %v13227_v37  ;;  %vm14488_vm15 = vmmov %vm14380_vm0 }
 0x6c6   : > { %vm14489_vm13 = vmmov %vm14380_vm0 }
 0x6c7   : > { %v7436_v59 = vadd.f32 %v7435_v21, %v7434_v10  ;;  %v7455_v10 = vsel %vm14477_vm2, %v7406_v31, 0.0  ;;  %v7409_v21 = vmul.f32 %v13230_v4, %v13230_v4  ;;  %vm14492_vm1 = vmmov %vm14380_vm0 }
 0x6c8   : > { %vm14493_vm6 = vmmov %vm14380_vm0 }
 0x6c9   : > { %v7438_v16 = vadd.f32 %v7437_v29, %v7436_v59  ;;  %v7457_v59 = vsel %vm14478_vm5, %v7407_v3, 0.0  ;;  %v7410_v29 = vmul.f32 %v13233_v13, %v13233_v13  ;;  %vm14494_vm2 = vmmov %vm14380_vm0 }
 0x6ca   : > { %vm14495_vm5 = vmmov %vm14380_vm0 }
 0x6cb   : > { %v7440_v51 = vadd.f32 %v7439_v38, %v7438_v16  ;;  %v7459_v16 = vsel %vm14479_vm9, %v7408_v50, 0.0  ;;  %v7411_v38 = vmul.f32 %v13236_v12, %v13236_v12  ;;  %vm14496_vm9 = vmmov %vm14380_vm0 }
 0x6cd   : > { %v7442_v6 = vadd.f32 %v7441_v61, %v7440_v51  ;;  %v7461_v51 = vsel %vm14480_vm10, %v7409_v21, 0.0  ;;  %v7412_v61 = vmul.f32 %v13239_v17, %v13239_v17  ;;  %vm14497_vm10 = vmmov %vm14380_vm0 }
 0x6cf   : > { %v7444_v20 = vadd.f32 %v7443_v0, %v7442_v6  ;;  %v7463_v6 = vsel %vm14481_vm7, %v7410_v29, 0.0  ;;  %v7413_v0 = vmul.f32 %v13241_v63, %v13241_v63  ;;  %vm14498_vm7 = vmmov %vm14380_vm0 }
 0x6d1   : > { %v7446_v8 = vadd.f32 %v7445_v11, %v7444_v20  ;;  %v7465_v20 = vsel %vm14482_vm11, %v7411_v38, 0.0  ;;  %v7414_v11 = vmul.f32 %v13243_v46, %v13243_v46  ;;  %vm14499_vm11 = vmmov %vm14380_vm0 }
 0x6d3   : > { %v7448_v52 = vadd.f32 %v7447_v36, %v7446_v8  ;;  %v7467_v8 = vsel %vm14380_vm0, %v7412_v61, 0.0  ;;  %v7415_v36 = vmul.f32 %v13245_v1, %v13245_v1 }
 0x6d5   : > { %v7450_v44 = vadd.f32 %v7449_v5, %v7448_v52  ;;  %v7469_v52 = vsel %vm14483_vm3, %v7413_v0, 0.0  ;;  %v7416_v5 = vmul.f32 %v13247_v54, %v13247_v54  ;;  %vm14500_vm3 = vmmov %vm14380_vm0 }
 0x6d7   : > { %v7452_v58 = vadd.f32 %v7451_v39, %v7450_v44  ;;  %v7471_v44 = vsel %vm14484_vm8, %v7414_v11, 0.0  ;;  %v7417_v39 = vmul.f32 %v13249_v2, %v13249_v2  ;;  %v7639_v11 = vlaneseq  ;;  %vm14501_vm8 = vmmov %vm14380_vm0 }
 0x6d9   : > { %v7454_v15 = vadd.f32 %v7453_v49, %v7452_v58  ;;  %v7473_v58 = vsel %vm14485_vm4, %v7415_v36, 0.0  ;;  %v7418_v49 = vmul.f32 %v13251_v22, %v13251_v22  ;;  %vm14502_vm4 = vmmov %vm14380_vm0 }
 0x6db   : > { %v7456_v32 = vadd.f32 %v7455_v10, %v7454_v15  ;;  %v7475_v15 = vsel %vm14486_vm12, %v7416_v5, 0.0  ;;  %v7419_v10 = vmul.f32 %v13253_v40, %v13253_v40  ;;  %vm14503_vm12 = vmmov %vm14380_vm0 }
 0x6dd   : > { %v7458_v60 = vadd.f32 %v7457_v59, %v7456_v32  ;;  %v7477_v32 = vsel %vm14487_vm14, %v7417_v39, 0.0  ;;  %v7479_v59 = vsel %vm14488_vm15, %v7418_v49, 0.0  ;;  %v7481_v29 = vsel %vm14489_vm13, %v7419_v10, 0.0  ;;  %vm14504_vm14 = vmmov %vm14380_vm0 }
 0x6de   : > { %vm14505_vm15 = vmmov %vm14380_vm0 }
 0x6df   : > { %v7460_v43 = vadd.f32 %v7459_v16, %v7458_v60  ;;  %vm14506_vm13 = vmmov %vm14380_vm0 }
 0x6e1   : > { %v7462_v24 = vadd.f32 %v7461_v51, %v7460_v43 }
 0x6e3   : > { %v7464_v56 = vadd.f32 %v7463_v6, %v7462_v24 }
 0x6e5   : > { %v7466_v47 = vadd.f32 %v7465_v20, %v7464_v56  ;;  %v9781_v20 = vmov 1983009808  }
 0x6e7   : > { %v7468_v48 = vadd.f32 %v7467_v8, %v7466_v47  ;;  %v7637_v47 = vunpack.c.l.s4 %v9781_v20  ;;  %v9782_v8 = vmov 1934713408  }
 0x6e9   : > { %v7470_v30 = vadd.f32 %v7469_v52, %v7468_v48  ;;  %v7701_v48 = vunpack.c.l.s4 %v9782_v8  ;;  %v7638_v36 = vunpack.c.0.s8 %v7637_v47  ;;  %v7640_v52 = vshrl.u32 %v7639_v11, 7 }
 0x6eb   : > { %v7472_v31 = vadd.f32 %v7471_v44, %v7470_v30  ;;  %v7702_v30 = vunpack.c.0.s8 %v7701_v48  ;;  %v13354_v44 = vld [vmem:[%s13954_s5] ss:$0 sm:$0xff] }
 0x6ed   : > { %v7474_v3 = vadd.f32 %v7473_v58, %v7472_v31  ;;  %v13356_v31 = vsub.s32 %v7638_v36, %v7640_v52  ;;  %v13358_v39 = vsub.s32 %v7702_v30, %v7640_v52 }
 0x6ef   : > { %v7476_v50 = vadd.f32 %v7475_v15, %v7474_v3 }
 0x6f1   : > { %v7478_v21 = vadd.f32 %v7477_v32, %v7476_v50  ;;  %v13367_v50 = vld [vmem:[%s13955_s6] ss:$0 sm:$0xff] }
 0x6f3   : > { %v7480_v60 = vadd.f32 %v7479_v59, %v7478_v21 }
 0x6f5   : > { %v7482_v16 = vadd.f32 %v7481_v29, %v7480_v60 }
 0x6f7   : > { %v7483_v43 = vrot.slane %v7482_v16, 4 }
 0x6f9   : > { %v7484_v38 = vadd.f32 %v7483_v43, %v7482_v16 }
 0x6fb   : > { %v7485_v51 = vrot.slane %v7484_v38, 2 }
 0x6fd   : > { %v7486_v24 = vadd.f32 %v7485_v51, %v7484_v38  ;;  %v9739_v38 = vld [vmem:[%s9886_s8 + $0xd8] sm:$0xff] }
 0x6ff   : > { %v7487_v61 = vrot.slane %v7486_v24, 1 }
 0x701   : > { %v7488_v6 = vadd.f32 %v7487_v61, %v7486_v24 }
 0x703   : > { %v7489_v56 = vmul.f32 0.00390625, %v7488_v6 }
 0x705   : > { %v7490_v0 = vadd.f32 1e-05, %v7489_v56 }
 0x707   : > { %9634 = vrsqrt.f32 %v7490_v0 }
 0x711   : > { %v9635_v5 = vpop.eup %9634 }
 0x712   : > { %v7519_v58 = vmul.f32 %v9635_v5, %v13245_v1  ;;  %v7523_v3 = vmul.f32 %v9635_v5, %v13253_v40  ;;  %v7492_v49 = vmul.f32 %v9635_v5, %v13167_v7  ;;  %v7493_v15 = vmul.f32 %v9635_v5, %v13170_v35 }
 0x713   : > { %v7494_v10 = vmul.f32 %v9635_v5, %v13173_v34  ;;  %v7495_v32 = vmul.f32 %v9635_v5, %v13176_v55  ;;  %v7496_v21 = vmul.f32 %v9635_v5, %v13179_v28  ;;  %v7497_v59 = vmul.f32 %v9635_v5, %v13182_v62 }
 0x714   : > { %v7558_v1 = vmul.f32 %v13354_v44, %v7519_v58  ;;  %v7562_v7 = vmul.f32 %v13354_v44, %v7523_v3  ;;  %v7498_v35 = vmul.f32 %v9635_v5, %v13185_v19  ;;  %v7499_v40 = vmul.f32 %v9635_v5, %v13188_v25 }
 0x715   : > { %v7500_v60 = vmul.f32 %v9635_v5, %v13191_v33  ;;  %v7501_v34 = vmul.f32 %v9635_v5, %v13194_v45  ;;  %v7502_v55 = vmul.f32 %v9635_v5, %v13197_v41  ;;  %v7503_v28 = vmul.f32 %v9635_v5, %v13200_v18  ;;  %v9740_v18 = vld [vmem:[%s9886_s8 + $0xf8] sm:$0xff] }
 0x716   : > { %v7597_v62 = vadd.f32 %v13367_v50, %v7558_v1  ;;  %v7601_v29 = vadd.f32 %v13367_v50, %v7562_v7  ;;  %v7504_v16 = vmul.f32 %v9635_v5, %v13203_v57  ;;  %v7505_v43 = vmul.f32 %v9635_v5, %v13206_v53 }
 0x717   : > { %v7506_v19 = vmul.f32 %v9635_v5, %v13209_v23  ;;  %v7507_v25 = vmul.f32 %v9635_v5, %v13212_v27  ;;  %v7508_v33 = vmul.f32 %v9635_v5, %v13215_v14  ;;  %v7509_v45 = vmul.f32 %v9635_v5, %v13218_v9 }
 0x718   : > { %v13390_v41 = vadd.f32 %v9739_v38, %v7597_v62  ;;  %v13393_v51 = vadd.f32 %v9740_v18, %v7601_v29  ;;  %v7510_v24 = vmul.f32 %v9635_v5, %v13221_v42  ;;  %v7511_v57 = vmul.f32 %v9635_v5, %v13224_v26  ;;  %v9744_v18 = vld [vmem:[%s9886_s8 + $0xb0] sm:$0xff] }
 0x719   : > { %v7512_v53 = vmul.f32 %v9635_v5, %v13227_v37  ;;  %v7513_v23 = vmul.f32 %v9635_v5, %v13230_v4  ;;  %v7514_v27 = vmul.f32 %v9635_v5, %v13233_v13  ;;  %v7515_v14 = vmul.f32 %v9635_v5, %v13236_v12 }
 0x71a   : > { %v8090_v9 = vcombine.low %v13390_v41, %v13393_v51  ;;  %v8091_v61 = vcombine.high %v13390_v41, %v13393_v51  ;;  %v7516_v6 = vmul.f32 %v9635_v5, %v13239_v17  ;;  %v7517_v42 = vmul.f32 %v9635_v5, %v13241_v63 }
 0x71b   : > { %v7518_v26 = vmul.f32 %v9635_v5, %v13243_v46  ;;  %v7520_v37 = vmul.f32 %v9635_v5, %v13247_v54  ;;  %v7521_v4 = vmul.f32 %v9635_v5, %v13249_v2  ;;  %v7522_v13 = vmul.f32 %v9635_v5, %v13251_v22 }
 0x71c   : > { %v7531_v12 = vmul.f32 %v13354_v44, %v7492_v49  ;;  %v7532_v56 = vmul.f32 %v13354_v44, %v7493_v15  ;;  %v7533_v0 = vmul.f32 %v13354_v44, %v7494_v10  ;;  %v7534_v20 = vmul.f32 %v13354_v44, %v7495_v32 }
 0x71d   : > { %v7535_v17 = vmul.f32 %v13354_v44, %v7496_v21  ;;  %v7536_v63 = vmul.f32 %v13354_v44, %v7497_v59  ;;  %v7537_v46 = vmul.f32 %v13354_v44, %v7498_v35  ;;  %v7538_v54 = vmul.f32 %v13354_v44, %v7499_v40 }
 0x71e   : > { %v7539_v2 = vmul.f32 %v13354_v44, %v7500_v60  ;;  %v7540_v22 = vmul.f32 %v13354_v44, %v7501_v34  ;;  %v13422_v47 = vmul.f32 %v13354_v44, %v7502_v55  ;;  %v13425_v11 = vmul.f32 %v13354_v44, %v7503_v28 }
 0x71f   : > { %v13428_v8 = vmul.f32 %v13354_v44, %v7504_v16  ;;  %v13431_v48 = vmul.f32 %v13354_v44, %v7505_v43  ;;  %v13434_v36 = vmul.f32 %v13354_v44, %v7506_v19  ;;  %v13437_v52 = vmul.f32 %v13354_v44, %v7507_v25  ;;  %v9741_v43 = vld [vmem:[%s9886_s8 + $0x80] sm:$0xff]  ;;  %v9742_v25 = vld [vmem:[%s9886_s8 + $0x90] sm:$0xff] }
 0x720   : > { %v7547_v30 = vmul.f32 %v13354_v44, %v7508_v33  ;;  %v13441_v5 = vmul.f32 %v13354_v44, %v7509_v45  ;;  %v7549_v58 = vmul.f32 %v13354_v44, %v7510_v24  ;;  %v13445_v3 = vmul.f32 %v13354_v44, %v7511_v57  ;;  %v9743_v45 = vld [vmem:[%s9886_s8 + $0xa0] sm:$0xff] }
 0x721   : > { %v7551_v49 = vmul.f32 %v13354_v44, %v7512_v53  ;;  %v7552_v15 = vmul.f32 %v13354_v44, %v7513_v23  ;;  %v7553_v10 = vmul.f32 %v13354_v44, %v7514_v27  ;;  %v7554_v32 = vmul.f32 %v13354_v44, %v7515_v14  ;;  %v9745_v57 = vld [vmem:[%s9886_s8 + $0xc0] sm:$0xff]  ;;  %v9746_v23 = vld [vmem:[%s9886_s8 + $0xd0] sm:$0xff] }
 0x722   : > { %v7555_v21 = vmul.f32 %v13354_v44, %v7516_v6  ;;  %v7556_v59 = vmul.f32 %v13354_v44, %v7517_v42  ;;  %v7557_v1 = vmul.f32 %v13354_v44, %v7518_v26  ;;  %v7559_v7 = vmul.f32 %v13354_v44, %v7520_v37  ;;  %v9747_v14 = vld [vmem:[%s9886_s8 + $0xe0] sm:$0xff]  ;;  %v9748_v42 = vld [vmem:[%s9886_s8 + $0xf0] sm:$0xff] }
 0x723   : > { %v7560_v35 = vmul.f32 %v13354_v44, %v7521_v4  ;;  %v7561_v40 = vmul.f32 %v13354_v44, %v7522_v13  ;;  %v7586_v60 = vadd.f32 %v13367_v50, %v7547_v30  ;;  %v7588_v34 = vadd.f32 %v13367_v50, %v7549_v58 }
 0x724   : > { %v7590_v55 = vadd.f32 %v13367_v50, %v7551_v49  ;;  %v7592_v28 = vadd.f32 %v13367_v50, %v7553_v10  ;;  %v7594_v62 = vadd.f32 %v13367_v50, %v7555_v21  ;;  %v7596_v29 = vadd.f32 %v13367_v50, %v7557_v1 }
 0x725   : > { %v7598_v16 = vadd.f32 %v13367_v50, %v7559_v7  ;;  %v7600_v44 = vadd.f32 %v13367_v50, %v7561_v40  ;;  %v13466_v19 = vadd.f32 %v9741_v43, %v7586_v60  ;;  %v13469_v33 = vadd.f32 %v9742_v25, %v7588_v34  ;;  %v9751_v25 = vld [vmem:[%s9886_s8 + $0x20] sm:$0xff] }
 0x726   : > { %v13472_v38 = vadd.f32 %v9743_v45, %v7590_v55  ;;  %v13475_v24 = vadd.f32 %v9744_v18, %v7592_v28  ;;  %v13478_v53 = vadd.f32 %v9745_v57, %v7594_v62  ;;  %v13481_v27 = vadd.f32 %v9746_v23, %v7596_v29  ;;  %v9752_v18 = vld [vmem:[%s9886_s8 + $0x30] sm:$0xff]  ;;  %v9753_v23 = vld [vmem:[%s9886_s8 + $0x40] sm:$0xff] }
 0x727   : > { %v13484_v6 = vadd.f32 %v9747_v14, %v7598_v16  ;;  %v13487_v26 = vadd.f32 %v9748_v42, %v7600_v44  ;;  %v7570_v37 = vadd.f32 %v13367_v50, %v7531_v12  ;;  %v7571_v4 = vadd.f32 %v13367_v50, %v7532_v56  ;;  %v9754_v42 = vld [vmem:[%s9886_s8 + $0x50] sm:$0xff] }
 0x728   : > { %v7770_v13 = vcombine.low %v13466_v19, %v13472_v38  ;;  %v7786_v30 = vcombine.low %v13469_v33, %v13475_v24  ;;  %v7572_v58 = vadd.f32 %v13367_v50, %v7533_v0  ;;  %v7573_v49 = vadd.f32 %v13367_v50, %v7534_v20 }
 0x729   : > { %v7802_v10 = vcombine.low %v13478_v53, %v13484_v6  ;;  %v7818_v21 = vcombine.low %v13481_v27, %v13487_v26  ;;  %v7574_v12 = vadd.f32 %v13367_v50, %v7535_v17  ;;  %v7575_v56 = vadd.f32 %v13367_v50, %v7536_v63 }
 0x72a   : > { %v13504_v1 = vrot.slane %v7770_v13, %v13356_v31  ;;  %v13507_v7 = vrot.slane %v7786_v30, %v13356_v31  ;;  %v7576_v0 = vadd.f32 %v13367_v50, %v7537_v46  ;;  %v7577_v20 = vadd.f32 %v13367_v50, %v7538_v54 }
 0x72b   : > { %v13512_v40 = vrot.slane %v7802_v10, %v13356_v31  ;;  %v13515_v60 = vrot.slane %v7818_v21, %v13356_v31  ;;  %v7578_v17 = vadd.f32 %v13367_v50, %v7539_v2  ;;  %v7579_v63 = vadd.f32 %v13367_v50, %v7540_v22 }
 0x72c   : > { %v7834_v34 = vcombine.low %v13504_v1, %v13507_v7  ;;  %v7580_v55 = vadd.f32 %v13367_v50, %v13422_v47  ;;  %v7581_v46 = vadd.f32 %v13367_v50, %v13425_v11  ;;  %v7582_v54 = vadd.f32 %v13367_v50, %v13428_v8 }
 0x72d   : > { %v7866_v28 = vcombine.low %v13512_v40, %v13515_v60  ;;  %v7583_v2 = vadd.f32 %v13367_v50, %v13431_v48  ;;  %v7584_v22 = vadd.f32 %v13367_v50, %v13434_v36  ;;  %v7585_v62 = vadd.f32 %v13367_v50, %v13437_v52 }
 0x72e   : > { %v13536_v47 = vrot.slane %v7834_v34, %v13358_v39  ;;  %v7587_v11 = vadd.f32 %v13367_v50, %v13441_v5  ;;  %v7589_v8 = vadd.f32 %v13367_v50, %v13445_v3  ;;  %v7591_v48 = vadd.f32 %v13367_v50, %v7552_v15 }
 0x72f   : > { %v13544_v29 = vrot.slane %v7866_v28, %v13358_v39  ;;  %v7593_v36 = vadd.f32 %v13367_v50, %v7554_v32  ;;  %v7595_v52 = vadd.f32 %v13367_v50, %v7556_v59  ;;  %v7599_v16 = vadd.f32 %v13367_v50, %v7560_v35  ;;  %v9749_v59 = vld [vmem:[%s9886_s8] sm:$0xff]  ;;  %v9750_v35 = vld [vmem:[%s9886_s8 + $0x10] sm:$0xff]  ;;  %v9759_v28 = vld [vmem:[%s9886_s8 + $0x28] sm:$0xff] }
 0x730   : > { %v7771_v5 = vcombine.high %v13466_v19, %v13472_v38  ;;  %v7787_v3 = vcombine.high %v13469_v33, %v13475_v24  ;;  %v7803_v15 = vcombine.high %v13478_v53, %v13484_v6  ;;  %v7819_v44 = vcombine.high %v13481_v27, %v13487_v26 }
 0x731   : > { %v7899_v32 = vcombine.high %v13536_v47, %v13544_v29  ;;  %v13560_v50 = vadd.f32 %v9749_v59, %v7570_v37  ;;  %v13563_v43 = vadd.f32 %v9750_v35, %v7572_v58  ;;  %v13566_v45 = vadd.f32 %v9751_v25, %v7574_v12  ;;  %v9755_v37 = vld [vmem:[%s9886_s8 + $0x60] sm:$0xff]  ;;  %v9756_v58 = vld [vmem:[%s9886_s8 + $0x70] sm:$0xff]  ;;  %v9757_v12 = vld [vmem:[%s9886_s8 + $0x8] sm:$0xff] }
 0x732   : > { %v13569_v57 = vadd.f32 %v9752_v18, %v7576_v0  ;;  %v13572_v14 = vadd.f32 %v9753_v23, %v7578_v17  ;;  %v13575_v13 = vadd.f32 %v9754_v42, %v7580_v55  ;;  %v13578_v30 = vadd.f32 %v9755_v37, %v7582_v54  ;;  %v9758_v17 = vld [vmem:[%s9886_s8 + $0x18] sm:$0xff]  ;;  %v9761_v35 = vld [vmem:[%s9886_s8 + $0x48] sm:$0xff] }
 0x733   : > { %8182 = vrot.lane.b32.xlu1 %v7899_v32, %s9780_s13  ;;  %v13582_v10 = vadd.f32 %v9756_v58, %v7584_v22  ;;  %v7634_v21 = vcombine.low %v13560_v50, %v13566_v45  ;;  %v13587_v0 = vadd.f32 %v9757_v12, %v7571_v4  ;;  %v13590_v34 = vadd.f32 %v9758_v17, %v7573_v49  ;;  %v9760_v32 = vld [vmem:[%s9886_s8 + $0x38] sm:$0xff]  ;;  %v9763_v42 = vld [vmem:[%s9886_s8 + $0x68] sm:$0xff] }
 0x734   : > { %v7650_v55 = vcombine.low %v13563_v43, %v13569_v57  ;;  %v7666_v54 = vcombine.low %v13572_v14, %v13578_v30  ;;  %v13597_v22 = vadd.f32 %v9759_v28, %v7575_v56  ;;  %v13600_v59 = vadd.f32 %v9760_v32, %v7577_v20  ;;  %v9762_v18 = vld [vmem:[%s9886_s8 + $0x58] sm:$0xff]  ;;  %v9767_v32 = vld [vmem:[%s9886_s8 + $0xa8] sm:$0xff] }
 0x735   : > { %v7642_v4 = vrot.slane %v7634_v21, %v13356_v31  ;;  %v7682_v49 = vcombine.low %v13575_v13, %v13582_v10  ;;  %v13606_v25 = vadd.f32 %v9761_v35, %v7579_v63  ;;  %v13609_v23 = vadd.f32 %v9762_v18, %v7581_v46  ;;  %v9764_v58 = vld [vmem:[%s9886_s8 + $0x78] sm:$0xff]  ;;  %v9765_v63 = vld [vmem:[%s9886_s8 + $0x88] sm:$0xff] }
 0x736   : > { %v7658_v56 = vrot.slane %v7650_v55, %v13356_v31  ;;  %v7674_v20 = vrot.slane %v7666_v54, %v13356_v31  ;;  %v13614_v37 = vadd.f32 %v9763_v42, %v7583_v2  ;;  %v13617_v21 = vadd.f32 %v9764_v58, %v7585_v62  ;;  %v9766_v28 = vld [vmem:[%s9886_s8 + $0x98] sm:$0xff]  ;;  %v9769_v2 = vld [vmem:[%s9886_s8 + $0xc8] sm:$0xff] }
 0x737   : > { %v7690_v12 = vrot.slane %v7682_v49, %v13356_v31  ;;  %v13621_v17 = vadd.f32 %v9765_v63, %v7587_v11  ;;  %v13624_v46 = vadd.f32 %v9766_v28, %v7589_v8  ;;  %v13627_v55 = vadd.f32 %v9767_v32, %v7591_v48  ;;  %v9768_v54 = vld [vmem:[%s9886_s8 + $0xb8] sm:$0xff]  ;;  %v9770_v62 = vld [vmem:[%s9886_s8 + $0xe8] sm:$0xff]  ;;  %s8961_s8 = sshll.u32 %s14508_s25, 7 }
 0x738   : > { %v7698_v35 = vcombine.low %v7642_v4, %v7658_v56  ;;  %v13630_v18 = vadd.f32 %v9768_v54, %v7593_v36  ;;  %v13633_v42 = vadd.f32 %v9769_v2, %v7595_v52  ;;  %v13636_v58 = vadd.f32 %v9770_v62, %v7599_v16  ;;  %s13912_s9 = scalar_lea.vmem %s13956_s7, %s8961_s8 }
 0x739   : > { %v7730_v49 = vcombine.low %v7674_v20, %v7690_v12  ;;  %v7635_v11 = vcombine.high %v13560_v50, %v13566_v45  ;;  %v7651_v8 = vcombine.high %v13563_v43, %v13569_v57  ;;  %v7667_v48 = vcombine.high %v13572_v14, %v13578_v30 }
 0x73a   : > { %v13645_v63 = vrot.slane %v7698_v35, %v13358_v39  ;;  %v7683_v36 = vcombine.high %v13575_v13, %v13582_v10  ;;  %v7835_v52 = vcombine.high %v13504_v1, %v13507_v7  ;;  %v7867_v16 = vcombine.high %v13512_v40, %v13515_v60 }
 0x73b   : > { %v13654_v50 = vrot.slane %v7730_v49, %v13358_v39  ;;  %v7906_v43 = vcombine.low %v13587_v0, %v13597_v22  ;;  %v7907_v45 = vcombine.high %v13587_v0, %v13597_v22  ;;  %v7922_v57 = vcombine.low %v13590_v34, %v13600_v59 }
 0x73c   : > { %v13663_v14 = vrot.slane %v7835_v52, %v13358_v39  ;;  %v13666_v1 = vrot.slane %v7867_v16, %v13358_v39  ;;  %v7923_v7 = vcombine.high %v13590_v34, %v13600_v59  ;;  %v7938_v40 = vcombine.low %v13606_v25, %v13614_v37 }
 0x73d   : > { %v7763_v60 = vcombine.high %v13645_v63, %v13654_v50  ;;  %v7954_v30 = vcombine.low %v13609_v23, %v13617_v21  ;;  %v8042_v32 = vcombine.low %v13621_v17, %v13627_v55  ;;  %v8043_v35 = vcombine.high %v13621_v17, %v13627_v55 }
 0x73e   : > { %v7901_v28 = vcombine.high %v13663_v14, %v13666_v1  ;;  %v8058_v54 = vcombine.low %v13624_v46, %v13630_v18  ;;  %v8059_v2 = vcombine.high %v13624_v46, %v13630_v18  ;;  %v8074_v62 = vcombine.low %v13633_v42, %v13636_v58 }
 0x73f   : > { %8180 = vrot.lane.b32.xlu0 %v7763_v60, %s9780_s13  ;;  %v8075_v49 = vcombine.high %v13633_v42, %v13636_v58  ;;  %v7699_v52 = vcombine.high %v7642_v4, %v7658_v56  ;;  %v7731_v16 = vcombine.high %v7674_v20, %v7690_v12  ;;  %v7785_v10 = vrot.slane %v7771_v5, %v13356_v31 }
 0x740   : > { %8190 = vrot.lane.b32.xlu1 %v7901_v28, %s9780_s13  ;;  %v7801_v60 = vrot.slane %v7787_v3, %v13356_v31  ;;  %v7817_v13 = vrot.slane %v7803_v15, %v13356_v31  ;;  %v7833_v56 = vrot.slane %v7819_v44, %v13356_v31  ;;  %v7649_v19 = vrot.slane %v7635_v11, %v13356_v31 }
 0x741   : > { %v13709_v4 = vrot.slane %v7699_v52, %v13358_v39  ;;  %v7665_v38 = vrot.slane %v7651_v8, %v13356_v31  ;;  %v13718_v33 = vrot.slane %v7731_v16, %v13358_v39  ;;  %v7681_v5 = vrot.slane %v7667_v48, %v13356_v31 }
 0x742   : > { %v7850_v24 = vcombine.low %v7785_v10, %v7801_v60  ;;  %v7697_v53 = vrot.slane %v7683_v36, %v13356_v31  ;;  %v7882_v6 = vcombine.low %v7817_v13, %v7833_v56  ;;  %v7851_v15 = vcombine.high %v7785_v10, %v7801_v60 }
 0x743   : > { %v7714_v3 = vcombine.low %v7649_v19, %v7665_v38  ;;  %v7883_v20 = vcombine.high %v7817_v13, %v7833_v56  ;;  %v7765_v27 = vcombine.high %v13709_v4, %v13718_v33  ;;  %v7715_v12 = vcombine.high %v7649_v19, %v7665_v38 }
 0x744   : > { %v13725_v26 = vrot.slane %v7850_v24, %v13358_v39  ;;  %v7746_v44 = vcombine.low %v7681_v5, %v7697_v53  ;;  %v13728_v11 = vrot.slane %v7882_v6, %v13358_v39  ;;  %v13734_v48 = vrot.slane %v7851_v15, %v13358_v39 }
 0x745   : > { %v13731_v8 = vrot.slane %v7714_v3, %v13358_v39  ;;  %v13737_v36 = vrot.slane %v7883_v20, %v13358_v39  ;;  %8188 = vrot.lane.b32.xlu0 %v7765_v27, %s9780_s13  ;;  %v13744_v10 = vrot.slane %v7715_v12, %v13358_v39  ;;  %v7747_v28 = vcombine.high %v7681_v5, %v7697_v53 }
 0x746   : > { %v13741_v13 = vrot.slane %v7746_v44, %v13358_v39  ;;  %v8050_v52 = vrot.slane %v8042_v32, %v13356_v31  ;;  %v7903_v16 = vcombine.high %v13725_v26, %v13728_v11  ;;  %v8066_v56 = vrot.slane %v8058_v54, %v13356_v31 }
 0x747   : > { %v7905_v60 = vcombine.high %v13734_v48, %v13737_v36  ;;  %v8082_v19 = vrot.slane %v8074_v62, %v13356_v31  ;;  %v13756_v24 = vrot.slane %v7747_v28, %v13358_v39  ;;  %v8098_v32 = vrot.slane %v8090_v9, %v13356_v31 }
 0x748   : > { %v7767_v38 = vcombine.high %v13731_v8, %v13741_v13  ;;  %v7914_v5 = vrot.slane %v7906_v43, %v13356_v31  ;;  %8198 = vrot.lane.b32.xlu1 %v7903_v16, %s9780_s13  ;;  %v8106_v53 = vcombine.low %v8050_v52, %v8066_v56  ;;  %v7930_v54 = vrot.slane %v7922_v57, %v13356_v31 }
 0x749   : > { %v7946_v62 = vrot.slane %v7938_v40, %v13356_v31  ;;  %v7962_v6 = vrot.slane %v7954_v30, %v13356_v31  ;;  %v7769_v3 = vcombine.high %v13744_v10, %v13756_v24  ;;  %v8138_v15 = vcombine.low %v8082_v19, %v8098_v32 }
 0x74a   : > { %8196 = vrot.lane.b32.xlu0 %v7767_v38, %s9780_s13  ;;  %v8107_v20 = vcombine.high %v8050_v52, %v8066_v56  ;;  %v8139_v27 = vcombine.high %v8082_v19, %v8098_v32  ;;  %v13771_v9 = vrot.slane %v8106_v53, %v13358_v39  ;;  %v7970_v43 = vcombine.low %v7914_v5, %v7930_v54 }
 0x74b   : > { %v8002_v44 = vcombine.low %v7946_v62, %v7962_v6  ;;  %v7971_v12 = vcombine.high %v7914_v5, %v7930_v54  ;;  %v13774_v57 = vrot.slane %v8138_v15, %v13358_v39  ;;  %v8003_v28 = vcombine.high %v7946_v62, %v7962_v6 }
 0x74c   : > { %v13777_v40 = vrot.slane %v8107_v20, %v13358_v39  ;;  %v13780_v30 = vrot.slane %v8139_v27, %v13358_v39  ;;  %8206 = vrot.lane.b32.xlu1 %v7905_v60, %s9780_s13  ;;  %v13784_v52 = vrot.slane %v7970_v43, %v13358_v39  ;;  %v8057_v19 = vrot.slane %v8043_v35, %v13356_v31 }
 0x74d   : > { %v13787_v16 = vrot.slane %v8002_v44, %v13358_v39  ;;  %v13790_v56 = vrot.slane %v7971_v12, %v13358_v39  ;;  %v8171_v38 = vcombine.high %v13771_v9, %v13774_v57  ;;  %v13802_v32 = vrot.slane %v8003_v28, %v13358_v39 }
 0x74e   : > { %8204 = vrot.lane.b32.xlu0 %v7769_v3, %s9780_s13  ;;  %v8173_v60 = vcombine.high %v13777_v40, %v13780_v30  ;;  %v8073_v5 = vrot.slane %v8059_v2, %v13356_v31  ;;  %v8089_v55 = vrot.slane %v8075_v49, %v13356_v31  ;;  %v8105_v35 = vrot.slane %v8091_v61, %v13356_v31 }
 0x74f   : > { %v8035_v17 = vcombine.high %v13784_v52, %v13787_v16  ;;  %v7921_v53 = vrot.slane %v7907_v45, %v13356_v31  ;;  %v8037_v46 = vcombine.high %v13790_v56, %v13802_v32  ;;  %v7937_v42 = vrot.slane %v7923_v7, %v13356_v31 }
 0x750   : > { %v8122_v18 = vcombine.low %v8057_v19, %v8073_v5  ;;  %v14490_v58 = vcombine.high %v13606_v25, %v13614_v37  ;;  %8214 = vrot.lane.b32.xlu1 %v8171_v38, %s9780_s13  ;;  %v8154_v51 = vcombine.low %v8089_v55, %v8105_v35  ;;  %v14491_v61 = vcombine.high %v13609_v23, %v13617_v21 }
 0x751   : > { %v8123_v22 = vcombine.high %v8057_v19, %v8073_v5  ;;  %v8155_v45 = vcombine.high %v8089_v55, %v8105_v35  ;;  %v7986_v59 = vcombine.low %v7921_v53, %v7937_v42  ;;  %v7987_v7 = vcombine.high %v7921_v53, %v7937_v42 }
 0x752   : > { %v7953_v41 = vrot.slane %v14490_v58, %v13356_v31  ;;  %v7969_v0 = vrot.slane %v14491_v61, %v13356_v31  ;;  %8212 = vrot.lane.b32.xlu0 %v8035_v17, %s9780_s13  ;;  %v13839_v34 = vrot.slane %v8122_v18, %v13358_v39  ;;  %v7898_v25 = vcombine.low %v13536_v47, %v13544_v29 }
 0x753   : > { %v13844_v37 = vrot.slane %v8154_v51, %v13358_v39  ;;  %v13847_v49 = vrot.slane %v8123_v22, %v13358_v39  ;;  %v13850_v31 = vrot.slane %v8155_v45, %v13358_v39  ;;  %v13853_v23 = vrot.slane %v7986_v59, %v13358_v39 }
 0x754   : > { %v8018_v2 = vcombine.low %v7953_v41, %v7969_v0  ;;  %v13856_v21 = vrot.slane %v7987_v7, %v13358_v39  ;;  %v8019_v54 = vcombine.high %v7953_v41, %v7969_v0  ;;  %v7762_v47 = vcombine.low %v13645_v63, %v13654_v50  ;;  %8222 = vrot.lane.b32.xlu1 %v8173_v60, %s9780_s13 }
 0x755   : > { %v8175_v29 = vcombine.high %v13839_v34, %v13844_v37  ;;  %v8177_v6 = vcombine.high %v13847_v49, %v13850_v31  ;;  %v7900_v3 = vcombine.low %v13663_v14, %v13666_v1  ;;  %v7764_v63 = vcombine.low %v13709_v4, %v13718_v33 }
 0x756   : > { %v13864_v62 = vrot.slane %v8018_v2, %v13358_v39  ;;  %8220 = vrot.lane.b32.xlu0 %v8037_v46, %s9780_s13  ;;  %v13872_v15 = vrot.slane %v8019_v54, %v13358_v39  ;;  %v7902_v50 = vcombine.low %v13725_v26, %v13728_v11  ;;  %v7766_v20 = vcombine.low %v13731_v8, %v13741_v13 }
 0x757   : > { %v7904_v27 = vcombine.low %v13734_v48, %v13737_v36  ;;  %v7768_v14 = vcombine.low %v13744_v10, %v13756_v24  ;;  %v8170_v39 = vcombine.low %v13771_v9, %v13774_v57  ;;  %v8034_v4 = vcombine.low %v13784_v52, %v13787_v16 }
 0x758   : > { %v8039_v1 = vcombine.high %v13853_v23, %v13864_v62  ;;  %v8172_v33 = vcombine.low %v13777_v40, %v13780_v30  ;;  %v8036_v26 = vcombine.low %v13790_v56, %v13802_v32  ;;  %8230 = vrot.lane.b32.xlu1 %v8175_v29, %s9780_s13  ;;  %v8174_v11 = vcombine.low %v13839_v34, %v13844_v37 }
 0x759   : > { %v8038_v8 = vcombine.low %v13853_v23, %v13864_v62  ;;  %v8176_v48 = vcombine.low %v13847_v49, %v13850_v31  ;;  %v8040_v36 = vcombine.low %v13856_v21, %v13872_v15  ;;  %v8041_v13 = vcombine.high %v13856_v21, %v13872_v15 }
 0x75a   : > { %8228 = vrot.lane.b32.xlu0 %v8039_v1, %s9780_s13 }
 0x75c   : > { %8238 = vrot.lane.b32.xlu1 %v8177_v6, %s9780_s13 }
 0x75e   : > { %8236 = vrot.lane.b32.xlu0 %v8041_v13, %s9780_s13 }
 0x7a5   : > { %v8183_v10 = vpop.permute.xlu1 %8182 }
 0x7a6   : > { %v8243_v24 = vsel %vm14492_vm1, %v7898_v25, %v8183_v10 }
 0x7a7   : > { %8266 = vst [vmem:[%s13912_s9 + $0x40] sm:$0xff] %v8243_v24 }
 0x7b1   : > { %v8181_v9 = vpop.permute.xlu0 %8180 }
 0x7b2   : > { %v8242_v43 = vsel %vm14493_vm6, %v7762_v47, %v8181_v9  ;;  %v8191_v44 = vpop.permute.xlu1 %8190 }
 0x7b3   : > { %8258 = vst [vmem:[%s13912_s9] sm:$0xff] %v8242_v43  ;;  %v8245_v12 = vsel %vm14494_vm2, %v7900_v3, %v8191_v44 }
 0x7b4   : > { %8267 = vst [vmem:[%s13912_s9 + $0x48] sm:$0xff] %v8245_v12 }
 0x7b7   : > { %v8189_v57 = vpop.permute.xlu0 %8188 }
 0x7b8   : > { %v8244_v40 = vsel %vm14495_vm5, %v7764_v63, %v8189_v57 }
 0x7b9   : > { %8259 = vst [vmem:[%s13912_s9 + $0x8] sm:$0xff] %v8244_v40 }
 0x7ba   : > { %v8199_v30 = vpop.permute.xlu1 %8198 }
 0x7bb   : > { %v8247_v28 = vsel %vm14496_vm9, %v7902_v50, %v8199_v30 }
 0x7bc   : > { %v8197_v52 = vpop.permute.xlu0 %8196  ;;  %8268 = vst [vmem:[%s13912_s9 + $0x50] sm:$0xff] %v8247_v28 }
 0x7bd   : > { %v8246_v16 = vsel %vm14497_vm10, %v7766_v20, %v8197_v52 }
 0x7be   : > { %8260 = vst [vmem:[%s13912_s9 + $0x10] sm:$0xff] %v8246_v16  ;;  %v8207_v56 = vpop.permute.xlu1 %8206 }
 0x7bf   : > { %v8249_v19 = vsel %vm14498_vm7, %v7904_v27, %v8207_v56 }
 0x7c0   : > { %v8205_v38 = vpop.permute.xlu0 %8204  ;;  %8269 = vst [vmem:[%s13912_s9 + $0x58] sm:$0xff] %v8249_v19 }
 0x7c1   : > { %v8248_v60 = vsel %vm14499_vm11, %v7768_v14, %v8205_v38 }
 0x7c2   : > { %8261 = vst [vmem:[%s13912_s9 + $0x18] sm:$0xff] %v8248_v60  ;;  %v8215_v32 = vpop.permute.xlu1 %8214 }
 0x7c3   : > { %v8251_v5 = vsel %vm14380_vm0, %v8170_v39, %v8215_v32 }
 0x7c4   : > { %v8213_v17 = vpop.permute.xlu0 %8212  ;;  %8270 = vst [vmem:[%s13912_s9 + $0x60] sm:$0xff] %v8251_v5 }
 0x7c5   : > { %v8250_v55 = vsel %vm14500_vm3, %v8034_v4, %v8213_v17 }
 0x7c6   : > { %8262 = vst [vmem:[%s13912_s9 + $0x20] sm:$0xff] %v8250_v55  ;;  %v8223_v35 = vpop.permute.xlu1 %8222 }
 0x7c7   : > { %v8253_v53 = vsel %vm14501_vm8, %v8172_v33, %v8223_v35 }
 0x7c8   : > { %v8221_v46 = vpop.permute.xlu0 %8220  ;;  %8271 = vst [vmem:[%s13912_s9 + $0x68] sm:$0xff] %v8253_v53 }
 0x7c9   : > { %v8252_v18 = vsel %vm14502_vm4, %v8036_v26, %v8221_v46 }
 0x7ca   : > { %8263 = vst [vmem:[%s13912_s9 + $0x28] sm:$0xff] %v8252_v18  ;;  %v8231_v42 = vpop.permute.xlu1 %8230 }
 0x7cb   : > { %v8255_v58 = vsel %vm14503_vm12, %v8174_v11, %v8231_v42 }
 0x7cc   : > { %v8229_v41 = vpop.permute.xlu0 %8228  ;;  %8272 = vst [vmem:[%s13912_s9 + $0x70] sm:$0xff] %v8255_v58 }
 0x7cd   : > { %v8254_v51 = vsel %vm14504_vm14, %v8038_v8, %v8229_v41 }
 0x7ce   : > { %8264 = vst [vmem:[%s13912_s9 + $0x30] sm:$0xff] %v8254_v51  ;;  %v8239_v61 = vpop.permute.xlu1 %8238 }
 0x7cf   : > { %v8257_v0 = vsel %vm14505_vm15, %v8176_v48, %v8239_v61 }
 0x7d0   : > { %v8237_v22 = vpop.permute.xlu0 %8236  ;;  %8273 = vst [vmem:[%s13912_s9 + $0x78] sm:$0xff] %v8257_v0 }
 0x7d1   : > { %v8256_v45 = vsel %vm14506_vm13, %v8040_v36, %v8237_v22 }
 0x7d2   : > { %8265 = vst [vmem:[%s13912_s9 + $0x38] sm:$0xff] %v8256_v45 }
 0x7d3 PF: > { %s17_s24 = sadd.s32 1, %s9777_s24  }
 0x7d4   : > { %p14_p4 = scmp.ge.s32.totalorder %s17_s24, 4  }
 0x7d6   :  { %16 = sbr.rel (!%p14_p4) target bundleno = 1 (0x1), region = 88 }

</bundles_post_ra>
